<compile_context>
chip_gen: v5e
topology: v5e:2x2
jax: 0.10.0
libtpu: 0.0.40
codegen_flags: <defaults>
</compile_context>

<pallas_src>
import jax
import jax.numpy as jnp
from jax.experimental import pallas as pl
from jax.experimental.pallas import tpu as pltpu

DIN = 10
DIN_PAD = 16            # layer-1 K dim padded for sublane alignment
DHID = 1024
DOUT = 10
DOUT_PAD = 128          # lane-dense output slab; sliced back to 10 in wrapper
BN_EPS = 1e-5
N_LAYERS = 4
_LAYER_DOUT = (DHID, DHID, DHID, DOUT_PAD)
_LAYER_PAD = ((DIN_PAD, DHID), (DHID, DHID), (DHID, DHID), (DHID, DOUT_PAD))


def _fused_encoders_kernel(x_ref, w1_ref, w2_ref, w3_ref, w4_ref, ss_ref, o_ref):
    """One (encoder, batch-tile) grid step of the fused 4-layer MLP.

    Layer i:  h = relu((h_bf16 @ upcast_bf16(W_int8_i)) * scale_i + shift_i)
    where scale_i folds BatchNorm (running stats), the Linear bias and the
    per-output-channel int8 dequant scale (all precomputed host-side).
    """
    ss = ss_ref[0]                        # (2*N_LAYERS, DHID) f32 scale/shift rows
    h = x_ref[0].astype(jnp.bfloat16)     # (TB, DIN_PAD)
    w_refs = (w1_ref, w2_ref, w3_ref, w4_ref)
    for i, w_ref in enumerate(w_refs):
        dout = _LAYER_DOUT[i]
        w = w_ref[0].astype(jnp.bfloat16)                        # int8 -> bf16 (VPU)
        y = jnp.dot(h, w, preferred_element_type=jnp.float32)    # MXU, f32 accum
        scale = ss[2 * i:2 * i + 1, :dout]                        # (1, dout)
        shift = ss[2 * i + 1:2 * i + 2, :dout]                    # (1, dout)
        a = jnp.maximum(y * scale + shift, 0.0)
        if i < N_LAYERS - 1:
            h = a.astype(jnp.bfloat16)
        else:
            o_ref[0] = a.astype(o_ref.dtype)


def _round_up(x, m):
    return (x + m - 1) // m * m


@jax.jit
def mvcln_fc_reuters_forward(x0, x1, stacked_params):
    """Forward of MvCLNfcReuters (eval mode).

    stacked_params = (w1, w2, w3, w4, ss):
        wN : (2, din_pad, dout_pad) int8   encoder0 / encoder1 stacked
        ss : (2, 2*N_LAYERS, DHID)  f32    rows = [scale1, shift1, ..., scale4, shift4]
    """
    w1, w2, w3, w4, ss = stacked_params
    B = x0.shape[0]
    TB = min(128, _round_up(B, 8))        # batch tile (static under jit)
    NB = _round_up(B, TB)

    def prep(x):
        x = x.reshape(x.shape[0], -1).astype(jnp.float32)        # .view(B, -1)
        return jnp.pad(x, ((0, NB - B), (0, DIN_PAD - x.shape[1])))

    x = jnp.stack([prep(x0), prep(x1)], axis=0)                  # (2, NB, DIN_PAD)

    def w_spec(shape):
        # Weight blocks ignore the batch grid index -> VMEM-resident across
        # batch tiles; re-DMA only when the encoder index changes.
        return pl.BlockSpec((1,) + tuple(shape[1:]), lambda e, b: (e, 0, 0))

    out = pl.pallas_call(
        _fused_encoders_kernel,
        out_shape=jax.ShapeDtypeStruct((2, NB, DOUT_PAD), jnp.float32),
        grid=(2, NB // TB),               # (encoder, batch tile)
        in_specs=[
            pl.BlockSpec((1, TB, DIN_PAD), lambda e, b: (e, b, 0)),
            w_spec(w1.shape), w_spec(w2.shape), w_spec(w3.shape), w_spec(w4.shape),
            w_spec(ss.shape),
        ],
        out_specs=pl.BlockSpec((1, TB, DOUT_PAD), lambda e, b: (e, b, 0)),
        compiler_params=pltpu.CompilerParams(
            dimension_semantics=("parallel", "arbitrary"),   # megacore split on v7x
            vmem_limit_bytes=24 << 20,                       # int8 weights => ~5 MiB buffers
        ),
    )(x, w1, w2, w3, w4, ss)
    return out[0, :B, :DOUT], out[1, :B, :DOUT]


def make_encoder_params(key):
    """Deterministic synthetic f32 parameters for one encoder.

    PyTorch-eval BN (gamma, beta, running stats) + the Linear bias are folded:
        scale = gamma / sqrt(var + eps)
        shift = beta + (bias - mean) * scale
    so  relu((x @ W) * scale + shift) == ReLU(BN(Linear(x))).
    Returns list of (W (din,dout) f32, scale (dout,) f32, shift (dout,) f32).
    """
    dims = [(DIN, DHID), (DHID, DHID), (DHID, DHID), (DHID, DOUT)]
    params = []
    for i, (din, dout) in enumerate(dims):
        kw, kb = jax.random.split(jax.random.fold_in(key, i))
        w = 0.02 * jax.random.normal(kw, (din, dout), dtype=jnp.float32)
        bias = 0.02 * jax.random.normal(kb, (dout,), dtype=jnp.float32)
        gamma = jnp.ones((dout,), jnp.float32)
        beta = jnp.zeros((dout,), jnp.float32)
        running_mean = jnp.zeros((dout,), jnp.float32)
        running_var = jnp.ones((dout,), jnp.float32)
        scale = gamma / jnp.sqrt(running_var + BN_EPS)
        shift = beta + (bias - running_mean) * scale
        params.append((w, scale, shift))
    return params


def quantize_and_stack(p0, p1):
    """Pad, int8-quantize (per out-channel) and stack both encoders' params.

    Returns (w1, w2, w3, w4, ss) with the dequant scale folded into the BN
    scale rows of ss, and all padded columns zeroed.
    """
    stacked_w = [[] for _ in range(N_LAYERS)]
    ss_rows = [[], []]
    for enc, params in enumerate((p0, p1)):
        for i, (w, scale, shift) in enumerate(params):
            din_pad, dout_pad = _LAYER_PAD[i]
            wp = jnp.zeros((din_pad, dout_pad), jnp.float32)
            wp = wp.at[:w.shape[0], :w.shape[1]].set(w)
            max_abs = jnp.max(jnp.abs(wp), axis=0)
            qs = jnp.where(max_abs > 0, max_abs / 127.0, 1.0)     # per-column scale
            wq = jnp.clip(jnp.round(wp / qs), -127, 127).astype(jnp.int8)
            sp = jnp.zeros((DHID,), jnp.float32).at[:w.shape[1]].set(scale)
            tp = jnp.zeros((DHID,), jnp.float32).at[:w.shape[1]].set(shift)
            qsp = jnp.zeros((DHID,), jnp.float32).at[:dout_pad].set(qs)
            ss_rows[enc].append(sp * qsp)                         # fold dequant scale
            ss_rows[enc].append(tp)
            stacked_w[i].append(wq)
    ws = [jnp.stack(lst, axis=0) for lst in stacked_w]            # (2, din_pad, dout_pad)
    ss = jnp.stack([jnp.stack(r, axis=0) for r in ss_rows], axis=0)  # (2, 8, DHID)
    return (*ws, ss)


def _reference_forward(x, stacked_params, enc):
    """Pure-JAX reference replicating the kernel's int8/bf16/f32 arithmetic."""
    w1, w2, w3, w4, ss = stacked_params
    h = x.reshape(x.shape[0], -1).astype(jnp.float32)
    h = jnp.pad(h, ((0, 0), (0, DIN_PAD - h.shape[1]))).astype(jnp.bfloat16)
    a = None
    for i, wq in enumerate((w1, w2, w3, w4)):
        dout = _LAYER_DOUT[i]
        w = wq[enc].astype(jnp.bfloat16)
        y = jnp.dot(h, w, preferred_element_type=jnp.float32)
        s = ss[enc, 2 * i:2 * i + 1, :dout]
        t = ss[enc, 2 * i + 1:2 * i + 2, :dout]
        a = jnp.maximum(y * s + t, 0.0)
        h = a.astype(jnp.bfloat16)
    return a[:, :DOUT]


if __name__ == "__main__":
    key = jax.random.PRNGKey(0)
    k_x0, k_x1, k_p0, k_p1 = jax.random.split(key, 4)

    B = 8
    x0 = jax.random.normal(k_x0, (B, DIN), dtype=jnp.float32)
    x1 = jax.random.normal(k_x1, (B, DIN), dtype=jnp.float32)

    params0 = make_encoder_params(k_p0)
    params1 = make_encoder_params(k_p1)
    stacked = quantize_and_stack(params0, params1)

    y0, y1 = mvcln_fc_reuters_forward(x0, x1, stacked)
    y0 = jax.block_until_ready(y0)
    y1 = jax.block_until_ready(y1)

    # NOTE: reference replicates the same int8-weight / bf16-activation math;
    # deviation from the true f32 PyTorch module is ~1e-2 relative (quant).
    r0 = _reference_forward(x0, stacked, 0)
    r1 = _reference_forward(x1, stacked, 1)
    assert y0.shape == (B, DOUT) and y1.shape == (B, DOUT)
    assert jnp.allclose(y0, r0, atol=1e-3, rtol=1e-2), float(jnp.max(jnp.abs(y0 - r0)))
    assert jnp.allclose(y1, r1, atol=1e-3, rtol=1e-2), float(jnp.max(jnp.abs(y1 - r1)))

    print("KERNEL_OK")
</pallas_src>

<mosaic_0001>
module attributes {stable_mosaic.version = 11 : i64} {
  func.func @_fused_encoders_kernel(%arg0: i32, %arg1: i32, %arg2: memref<1x8x16xf32, #tpu.memory_space<vmem>>, %arg3: memref<1x16x1024xi8, #tpu.memory_space<vmem>>, %arg4: memref<1x1024x1024xi8, #tpu.memory_space<vmem>>, %arg5: memref<1x1024x1024xi8, #tpu.memory_space<vmem>>, %arg6: memref<1x1024x128xi8, #tpu.memory_space<vmem>>, %arg7: memref<1x8x1024xf32, #tpu.memory_space<vmem>>, %arg8: memref<1x8x128xf32, #tpu.memory_space<vmem>>) attributes {dimension_semantics = [#tpu.dimension_semantics<parallel>, #tpu.dimension_semantics<arbitrary>], iteration_bounds = array<i64: 2, 1>, scalar_prefetch = 0 : i64, scratch_operands = 0 : i64, tpu.core_type = #tpu.core_type<tc>, window_params = [{transform_indices = @transform_0, window_bounds = array<i64: 1, 8, 16>}, {transform_indices = @transform_1, window_bounds = array<i64: 1, 16, 1024>}, {transform_indices = @transform_2, window_bounds = array<i64: 1, 1024, 1024>}, {transform_indices = @transform_3, window_bounds = array<i64: 1, 1024, 1024>}, {transform_indices = @transform_4, window_bounds = array<i64: 1, 1024, 128>}, {transform_indices = @transform_5, window_bounds = array<i64: 1, 8, 1024>}, {transform_indices = @transform_6, window_bounds = array<i64: 1, 8, 128>}]} {
    %c0 = arith.constant 0 : index
    %c0_0 = arith.constant 0 : index
    %c0_1 = arith.constant 0 : index
    %0 = vector.load %arg7[%c0, %c0_0, %c0_1] : memref<1x8x1024xf32, #tpu.memory_space<vmem>>, vector<1x8x1024xf32>
    %1 = vector.shape_cast %0 : vector<1x8x1024xf32> to vector<8x1024xf32>
    %c0_2 = arith.constant 0 : index
    %c0_3 = arith.constant 0 : index
    %c0_4 = arith.constant 0 : index
    %2 = vector.load %arg2[%c0_2, %c0_3, %c0_4] : memref<1x8x16xf32, #tpu.memory_space<vmem>>, vector<1x8x16xf32>
    %3 = vector.shape_cast %2 : vector<1x8x16xf32> to vector<8x16xf32>
    %4 = arith.truncf %3 : vector<8x16xf32> to vector<8x16xbf16>
    %c0_5 = arith.constant 0 : index
    %c0_6 = arith.constant 0 : index
    %c0_7 = arith.constant 0 : index
    %5 = vector.load %arg3[%c0_5, %c0_6, %c0_7] : memref<1x16x1024xi8, #tpu.memory_space<vmem>>, vector<1x16x1024xi8>
    %6 = vector.shape_cast %5 : vector<1x16x1024xi8> to vector<16x1024xi8>
    %7 = arith.sitofp %6 : vector<16x1024xi8> to vector<16x1024xbf16>
    %cst = arith.constant dense<0.000000e+00> : vector<8x1024xf32>
    %8 = tpu.matmul %4, %7, %cst {dimension_numbers = #tpu.dot_dimension_numbers<[1], [0], [0], [1], [0, 0, 1, 1], [], []>} : vector<8x16xbf16>, vector<16x1024xbf16>, vector<8x1024xf32> -> vector<8x1024xf32>
    %9 = vector.extract_strided_slice %1 {offsets = [0, 0], sizes = [1, 1024], strides = [1, 1]} : vector<8x1024xf32> to vector<1x1024xf32>
    %10 = vector.extract_strided_slice %1 {offsets = [1, 0], sizes = [1, 1024], strides = [1, 1]} : vector<8x1024xf32> to vector<1x1024xf32>
    %11 = vector.broadcast %9 : vector<1x1024xf32> to vector<8x1024xf32>
    %12 = arith.mulf %8, %11 : vector<8x1024xf32>
    %13 = vector.broadcast %10 : vector<1x1024xf32> to vector<8x1024xf32>
    %14 = arith.addf %12, %13 : vector<8x1024xf32>
    %cst_8 = arith.constant 0.000000e+00 : f32
    %15 = vector.broadcast %cst_8 : f32 to vector<8x1024xf32>
    %16 = arith.maximumf %14, %15 : vector<8x1024xf32>
    %17 = arith.truncf %16 : vector<8x1024xf32> to vector<8x1024xbf16>
    %c0_9 = arith.constant 0 : index
    %c0_10 = arith.constant 0 : index
    %c0_11 = arith.constant 0 : index
    %18 = vector.load %arg4[%c0_9, %c0_10, %c0_11] : memref<1x1024x1024xi8, #tpu.memory_space<vmem>>, vector<1x1024x1024xi8>
    %19 = vector.shape_cast %18 : vector<1x1024x1024xi8> to vector<1024x1024xi8>
    %20 = arith.sitofp %19 : vector<1024x1024xi8> to vector<1024x1024xbf16>
    %cst_12 = arith.constant dense<0.000000e+00> : vector<8x1024xf32>
    %21 = tpu.matmul %17, %20, %cst_12 {dimension_numbers = #tpu.dot_dimension_numbers<[1], [0], [0], [1], [0, 0, 1, 1], [], []>} : vector<8x1024xbf16>, vector<1024x1024xbf16>, vector<8x1024xf32> -> vector<8x1024xf32>
    %22 = vector.extract_strided_slice %1 {offsets = [2, 0], sizes = [1, 1024], strides = [1, 1]} : vector<8x1024xf32> to vector<1x1024xf32>
    %23 = vector.extract_strided_slice %1 {offsets = [3, 0], sizes = [1, 1024], strides = [1, 1]} : vector<8x1024xf32> to vector<1x1024xf32>
    %24 = vector.broadcast %22 : vector<1x1024xf32> to vector<8x1024xf32>
    %25 = arith.mulf %21, %24 : vector<8x1024xf32>
    %26 = vector.broadcast %23 : vector<1x1024xf32> to vector<8x1024xf32>
    %27 = arith.addf %25, %26 : vector<8x1024xf32>
    %cst_13 = arith.constant 0.000000e+00 : f32
    %28 = vector.broadcast %cst_13 : f32 to vector<8x1024xf32>
    %29 = arith.maximumf %27, %28 : vector<8x1024xf32>
    %30 = arith.truncf %29 : vector<8x1024xf32> to vector<8x1024xbf16>
    %c0_14 = arith.constant 0 : index
    %c0_15 = arith.constant 0 : index
    %c0_16 = arith.constant 0 : index
    %31 = vector.load %arg5[%c0_14, %c0_15, %c0_16] : memref<1x1024x1024xi8, #tpu.memory_space<vmem>>, vector<1x1024x1024xi8>
    %32 = vector.shape_cast %31 : vector<1x1024x1024xi8> to vector<1024x1024xi8>
    %33 = arith.sitofp %32 : vector<1024x1024xi8> to vector<1024x1024xbf16>
    %cst_17 = arith.constant dense<0.000000e+00> : vector<8x1024xf32>
    %34 = tpu.matmul %30, %33, %cst_17 {dimension_numbers = #tpu.dot_dimension_numbers<[1], [0], [0], [1], [0, 0, 1, 1], [], []>} : vector<8x1024xbf16>, vector<1024x1024xbf16>, vector<8x1024xf32> -> vector<8x1024xf32>
    %35 = vector.extract_strided_slice %1 {offsets = [4, 0], sizes = [1, 1024], strides = [1, 1]} : vector<8x1024xf32> to vector<1x1024xf32>
    %36 = vector.extract_strided_slice %1 {offsets = [5, 0], sizes = [1, 1024], strides = [1, 1]} : vector<8x1024xf32> to vector<1x1024xf32>
    %37 = vector.broadcast %35 : vector<1x1024xf32> to vector<8x1024xf32>
    %38 = arith.mulf %34, %37 : vector<8x1024xf32>
    %39 = vector.broadcast %36 : vector<1x1024xf32> to vector<8x1024xf32>
    %40 = arith.addf %38, %39 : vector<8x1024xf32>
    %cst_18 = arith.constant 0.000000e+00 : f32
    %41 = vector.broadcast %cst_18 : f32 to vector<8x1024xf32>
    %42 = arith.maximumf %40, %41 : vector<8x1024xf32>
    %43 = arith.truncf %42 : vector<8x1024xf32> to vector<8x1024xbf16>
    %c0_19 = arith.constant 0 : index
    %c0_20 = arith.constant 0 : index
    %c0_21 = arith.constant 0 : index
    %44 = vector.load %arg6[%c0_19, %c0_20, %c0_21] : memref<1x1024x128xi8, #tpu.memory_space<vmem>>, vector<1x1024x128xi8>
    %45 = vector.shape_cast %44 : vector<1x1024x128xi8> to vector<1024x128xi8>
    %46 = arith.sitofp %45 : vector<1024x128xi8> to vector<1024x128xbf16>
    %cst_22 = arith.constant dense<0.000000e+00> : vector<8x128xf32>
    %47 = tpu.matmul %43, %46, %cst_22 {dimension_numbers = #tpu.dot_dimension_numbers<[1], [0], [0], [1], [0, 0, 1, 1], [], []>} : vector<8x1024xbf16>, vector<1024x128xbf16>, vector<8x128xf32> -> vector<8x128xf32>
    %48 = vector.extract_strided_slice %1 {offsets = [6, 0], sizes = [1, 128], strides = [1, 1]} : vector<8x1024xf32> to vector<1x128xf32>
    %49 = vector.extract_strided_slice %1 {offsets = [7, 0], sizes = [1, 128], strides = [1, 1]} : vector<8x1024xf32> to vector<1x128xf32>
    %50 = vector.broadcast %48 : vector<1x128xf32> to vector<8x128xf32>
    %51 = arith.mulf %47, %50 : vector<8x128xf32>
    %52 = vector.broadcast %49 : vector<1x128xf32> to vector<8x128xf32>
    %53 = arith.addf %51, %52 : vector<8x128xf32>
    %cst_23 = arith.constant 0.000000e+00 : f32
    %54 = vector.broadcast %cst_23 : f32 to vector<8x128xf32>
    %55 = arith.maximumf %53, %54 : vector<8x128xf32>
    %c0_24 = arith.constant 0 : index
    %c0_25 = arith.constant 0 : index
    %c0_26 = arith.constant 0 : index
    %56 = vector.load %arg8[%c0_24, %c0_25, %c0_26] : memref<1x8x128xf32, #tpu.memory_space<vmem>>, vector<1x8x128xf32>
    %57 = vector.shape_cast %56 : vector<1x8x128xf32> to vector<8x128xf32>
    %58 = vector.shape_cast %55 : vector<8x128xf32> to vector<1x8x128xf32>
    tpu.vector_store %arg8[%c0_24, %c0_25, %c0_26], %58 {strides = array<i32>} : memref<1x8x128xf32, #tpu.memory_space<vmem>>, vector<1x8x128xf32>,
    return
  }
  func.func @transform_0(%arg0: i32, %arg1: i32) -> (i32, i32, i32) {
    %c0_i32 = arith.constant 0 : i32
    %c0_i32_0 = arith.constant 0 : i32
    return %arg0, %arg1, %c0_i32 : i32, i32, i32
  }
  func.func @transform_1(%arg0: i32, %arg1: i32) -> (i32, i32, i32) {
    %c0_i32 = arith.constant 0 : i32
    %c0_i32_0 = arith.constant 0 : i32
    %c0_i32_1 = arith.constant 0 : i32
    return %arg0, %c0_i32, %c0_i32_0 : i32, i32, i32
  }
  func.func @transform_2(%arg0: i32, %arg1: i32) -> (i32, i32, i32) {
    %c0_i32 = arith.constant 0 : i32
    %c0_i32_0 = arith.constant 0 : i32
    %c0_i32_1 = arith.constant 0 : i32
    return %arg0, %c0_i32, %c0_i32_0 : i32, i32, i32
  }
  func.func @transform_3(%arg0: i32, %arg1: i32) -> (i32, i32, i32) {
    %c0_i32 = arith.constant 0 : i32
    %c0_i32_0 = arith.constant 0 : i32
    %c0_i32_1 = arith.constant 0 : i32
    return %arg0, %c0_i32, %c0_i32_0 : i32, i32, i32
  }
  func.func @transform_4(%arg0: i32, %arg1: i32) -> (i32, i32, i32) {
    %c0_i32 = arith.constant 0 : i32
    %c0_i32_0 = arith.constant 0 : i32
    %c0_i32_1 = arith.constant 0 : i32
    return %arg0, %c0_i32, %c0_i32_0 : i32, i32, i32
  }
  func.func @transform_5(%arg0: i32, %arg1: i32) -> (i32, i32, i32) {
    %c0_i32 = arith.constant 0 : i32
    %c0_i32_0 = arith.constant 0 : i32
    %c0_i32_1 = arith.constant 0 : i32
    return %arg0, %c0_i32, %c0_i32_0 : i32, i32, i32
  }
  func.func @transform_6(%arg0: i32, %arg1: i32) -> (i32, i32, i32) {
    %c0_i32 = arith.constant 0 : i32
    %c0_i32_0 = arith.constant 0 : i32
    return %arg0, %arg1, %c0_i32 : i32, i32, i32
  }
}

</mosaic_0001>

<bundles_post_ra>
// kernel: mvcln_fc_reuters_forward.1
= control target key start
LH: loop header
LB: loop body
LE: loop exit
PB: predicated region body
PF: predicated region fallthrough
CT: control target
= control target key end

     0   :  { %s11085_s0 = inlined_call_operand.vmem [shape: f32[2,8,16], index: 0, kind: input, shape index: {}]   ;;  %s11086_s1 = inlined_call_operand.hbm [shape: s8[2,16,1024], index: 1, kind: input, shape index: {}]   ;;  %s11087_s2 = inlined_call_operand.hbm [shape: s8[2,1024,1024], index: 2, kind: input, shape index: {}]   ;;  %s11088_s3 = inlined_call_operand.hbm [shape: s8[2,1024,1024], index: 3, kind: input, shape index: {}]   ;;  %s11089_s4 = inlined_call_operand.hbm [shape: s8[2,1024,128], index: 4, kind: input, shape index: {}]   ;;  %s11090_s5 = inlined_call_operand.hbm [shape: f32[2,8,1024], index: 5, kind: input, shape index: {}]   ;;  %s11091_s6 = inlined_call_operand.vmem [shape: f32[2,8,128], index: 6, kind: output, shape index: {}]  }
   0x1   :  { %11098 = sst [smem:[#allocation16_spill]] %s11087_s2 }
   0x2   :  { %11099 = sst [smem:[#allocation17_spill]] %s11088_s3 }
   0x3   :  { %11100 = sst [smem:[#allocation18_spill]] %s11089_s4 }
   0x4   :  { %11101 = sst [smem:[#allocation19_spill]] %s11091_s6 }
   0x5   :  { %11 = vsyncpa [#allocation3], 0 }
   0x6   :  { %13 = vsyncpa [#allocation3 + $0x1], 0 }
   0x7   :  { %14 = vsyncpa [#allocation5], 0 }
   0x8   :  { %16 = vsyncpa [#allocation5 + $0x1], 0 }
   0x9   :  { %17 = vsyncpa [#allocation8], 0 }
   0xa   :  { %19 = vsyncpa [#allocation8 + $0x1], 0  ;;  %s9120_s21 = smov 0   ;;  %s9122_s22 = smov 0  }
   0xb   :  { %s9124_s23 = smov 0   ;;  %s9126_s24 = smov 0  }
   0xc   :  { %s9128_s25 = smov 0   ;;  %s9130_s26 = smov 0  }
   0xd LB: > { %11102 = sst [smem:[#allocation13_spill]] %s9065_s23  ;;  %s11092_s27 = sadd.s32 4294967295, %s9077_s26   ;;  %s9077_s26 = sphi %s9130_s26, %s25_s26   ;;  %s9073_s25 = sphi %s9128_s25, %s11144_s25   ;;  %s9069_s24 = sphi %s9126_s24, %s11143_s24   ;;  %s9065_s23 = sphi %s9124_s23, %s11139_s23   ;;  %s9061_s22 = sphi %s9122_s22, %s11142_s22   ;;  %s9057_s21 = sphi %s9120_s21, %s11141_s21  }
   0xe   : > { %s37_s28 = sadd.s32 1, %s9073_s25  ;;  %s72_s29 = sadd.s32 1, %s9065_s23 }
   0xf   : > { %p39_p0 = scmp.ge.s32.totalorder %s37_s28, 2  ;;  %p79_p1 = scmp.ne.s32.totalorder %s9065_s23, %s9061_s22 }
  0x10   : > { %p80_p2 = scmp.eq.s32.totalorder %s9077_s26, 0  ;;  %p85_p4 = scmp.ne.s32.totalorder %s9061_s22, %s9057_s21 }
  0x11   : > { %s11146_s28 = smov (%p39_p0, %s37_s28), 0  ;;  %p86_p5 = scmp.eq.s32.totalorder %s11092_s27, 0 }
  0x12   : > { %11103 = sst [smem:[#allocation14_spill]] %s11146_s28  ;;  %p81_p3 = por %p80_p2, %p79_p1 }
  0x13   : > { %s69_s30 = ssub.s32 %s9073_s25, %s11146_s28  ;;  %p9161_p7 = por %p86_p5, %p85_p4 }
  0x14   : > { %p70_p6 = scmp.eq.s32.totalorder %s69_s30, 0  ;;  %p8797_p8 = scmp.lt.s32.totalorder %s9077_s26, 2 }
  0x15   : > { %s9170_s9 = sand.u32 1, %s9065_s23   ;;  %s11093_s11 = sand.u32 1, %s9077_s26  }
  0x16   : > { %s9167_s8 = scalar_select %p70_p6, %s9065_s23, %s72_s29  }
  0x17   : > { %p9172_p9 = pnand %p8797_p8, %p81_p3  ;;  %s8736_s12 = sshll.u32 %s9170_s9, 11 }
  0x18   : > { %11105 = sst [smem:[#allocation15_spill]] %s9167_s8  ;;  %s8767_s13 = sshll.u32 %s9073_s25, 11 }
  0x19   : > { %s11107_s2 = sld [smem:[#allocation16_spill]]  ;;  %s277_s17 = scalar_lea.vmem [#allocation4], %s8736_s12 }
  0x1a   : > { %s285_s18 = sshll.u32 %s277_s17, 4  ;;  %s9184_s20 = scalar_lea.sflag [#allocation5], %s11093_s11  ;;  %s286_s18 = int_to_ptr.vmem [resolvable:$true] %s285_s18 }
  0x1b   : > { %s11094_s21 = smov 1024   ;;  %s11095_s29 = smov 64  }
  0x1c   : > { %s11108_s3 = sld [smem:[#allocation17_spill]]  ;;  %s299_s17 = scalar_lea.vmem [#allocation6], %s8736_s12 }
  0x1d   : > { %p8748_p10 = scmp.ge.s32.totalorder %s9077_s26, 1  ;;  %p357_p11 = scmp.lt.s32.totalorder %s9077_s26, 3 }
  0x1e   : > { %s8742_s11 = sshll.u32 %s9170_s9, 8  ;;  %s11110_s4 = sld [smem:[#allocation18_spill]] }
  0x1f   : > { %s282_s16 = scalar_lea.hbm %s11107_s2, %s8767_s13  ;;  %s8769_s2 = sshll.u32 %s9073_s25, 8 }
  0x20   : > { %s283_s19 = sshll.u32 %s282_s16, 4  ;;  %s307_s16 = sshll.u32 %s299_s17, 4  ;;  %s284_s19 = int_to_ptr.hbm [resolvable:$true] %s283_s19  ;;  %s9195_s16 = int_to_ptr.vmem [resolvable:$true] %s307_s16 }
  0x21   : > { %8787 = dma.hbm_to_vmem [thread:$0]  (!%p9172_p9), %s284_s19, 32768, %s286_s18, %s9184_s20, %s11094_s21, %s11094_s21, %s11095_s29  }
  0x22   : > { %s304_s15 = scalar_lea.hbm %s11108_s3, %s8767_s13  ;;  %p9203_p12 = pnand %p8748_p10, %p357_p11 }
  0x23   : > { %s305_s27 = sshll.u32 %s304_s15, 4  ;;  %s321_s30 = scalar_lea.vmem [#allocation7], %s8742_s11  ;;  %s9197_s27 = int_to_ptr.hbm [resolvable:$true] %s305_s27 }
  0x24   : > { %s326_s19 = scalar_lea.hbm %s11110_s4, %s8769_s2  ;;  %s329_s14 = sshll.u32 %s321_s30, 4  ;;  %s330_s14 = int_to_ptr.vmem [resolvable:$true] %s329_s14 }
  0x25   : > { %s327_s15 = sshll.u32 %s326_s19, 4  ;;  %s11111_s17 = sand.u32 1, %s9077_s26   ;;  %s328_s15 = int_to_ptr.hbm [resolvable:$true] %s327_s15 }
  0x26   : > { %s318_s21 = scalar_lea.sflag [#allocation8], %s11111_s17  ;;  %s9081_s29 = smov 128  }
  0x27   : > { %s9082_s3 = smov 8   ;;  %s8733_s2 = sshll.u32 %s9170_s9, 5 }
  0x28   : > { %8793 = dma.hbm_to_vmem [thread:$0]  (!%p9172_p9), %s328_s15, 4096, %s330_s14, %s318_s21, %s9081_s29, %s9081_s29, %s9082_s3  }
  0x29   : > { %s8766_s11 = sshll.u32 %s9073_s25, 5  ;;  %s255_s4 = scalar_lea.vmem [#allocation2], %s8733_s2 }
  0x2a   : > { %s260_s19 = scalar_lea.hbm %s11086_s1, %s8766_s11  ;;  %s263_s28 = sshll.u32 %s255_s4, 4  ;;  %s264_s28 = int_to_ptr.vmem [resolvable:$true] %s263_s28 }
  0x2b   : > { %s261_s30 = sshll.u32 %s260_s19, 4  ;;  %s252_s17 = scalar_lea.sflag [#allocation3], %s9170_s9  ;;  %s262_s30 = int_to_ptr.hbm [resolvable:$true] %s261_s30 }
  0x2c   : > { %s9083_s8 = smov 256   ;;  %s9084_s23 = smov 16  }
  0x2d   : > { %8784 = dma.hbm_to_vmem [thread:$0]  (!%p9172_p9), %s262_s30, 512, %s264_s28, %s252_s17, %s9083_s8, %s9083_s8, %s9084_s23  }
  0x2e   : > { %s11112_s6 = smov 64   ;;  %s11113_s3 = smov 1024  }
  0x2f   : > { %8790 = dma.hbm_to_vmem [thread:$0]  (!%p9172_p9), %s9197_s27, 32768, %s9195_s16, %s9184_s20, %s11113_s3, %s11113_s3, %s11112_s6  }
  0x30   : > { %s8745_s29 = sshll.u32 %s9170_s9, 6  ;;  %s8770_s14 = sshll.u32 %s9073_s25, 6 }
  0x31   : > { %s348_s2 = scalar_lea.hbm %s11090_s5, %s8770_s14  ;;  %s343_s13 = scalar_lea.vmem [#allocation9], %s8745_s29 }
  0x32   : > { %s350_s4 = sshll.u32 %s348_s2, 4  ;;  %s352_s12 = sshll.u32 %s343_s13, 4  ;;  %s351_s4 = int_to_ptr.hbm [resolvable:$true] %s350_s4  ;;  %s353_s12 = int_to_ptr.vmem [resolvable:$true] %s352_s12 }
  0x33   : > { %8796 = dma.hbm_to_vmem [thread:$0]  (!%p9172_p9), %s351_s4, 1024, %s353_s12, %s318_s21  }
  0x34   : > { %361 = sbr.rel (%p9203_p12) target bundleno = 1780 (0x6f4), region = 44  ;;  %s9240_s23 = sand.u32 (!%p9203_p12), 1, %s9061_s22  }
  0x35   : > { %s8749_s6 = sshll.u32 (!%p9203_p12), %s9240_s23, 5  ;;  %s364_s27 = scalar_lea.sflag (!%p9203_p12), [#allocation3], %s9240_s23 }
  0x36   : > { %s9244_s28 = scalar_lea.vmem (!%p9203_p12), [#allocation2], %s8749_s6 }
  0x39   : > { %9044 = dma.done.wait (%p9161_p7), %s364_s27, 512  }
  0x3a   : > { %9046 = vsyncadd (%p9161_p7), %s364_s27, 4294966784  ;;  %s11114_s8 = sadd.s32 4294967295, %s9077_s26   ;;  %s8750_s10 = sshll.u32 %s9240_s23, 11 }
  0x3b   : > { %s373_s9 = sand.u32 1, %s11114_s8   ;;  %s9253_s21 = scalar_lea.vmem [#allocation4], %s8750_s10 }
  0x3c   : > { %s374_s20 = scalar_lea.sflag [#allocation5], %s373_s9 }
  0x3d   : > { %9048 = dma.done.wait (%p9161_p7), %s374_s20, 65536  }
  0x3e   : > { %9050 = vsyncadd (%p9161_p7), %s374_s20, 4294901760  ;;  %s8752_s16 = sshll.u32 %s9240_s23, 8  ;;  %s9260_s18 = scalar_lea.vmem [#allocation6], %s8750_s10 }
  0x3f   : > { %s394_s19 = scalar_lea.sflag [#allocation8], %s373_s9  ;;  %s9262_s30 = scalar_lea.vmem [#allocation7], %s8752_s16 }
  0x40   : > { %9052 = dma.done.wait (%p9161_p7), %s394_s19, 5120  }
  0x41   : > { %9054 = vsyncadd (%p9161_p7), %s394_s19, 4294962176  ;;  %p466_p13 = scmp.lt.s32.totalorder %s9069_s24, 1  ;;  %v491_v0 = vld [vmem:[%s9244_s28] sm:$0xff]  ;;  %v493_v1 = vld [vmem:[%s9244_s28 + $0x10] sm:$0xff]  ;;  %vm535_vm0 = vcmask 130048   ;;  %s8753_s7 = sshll.u32 %s9240_s23, 6 }
  0x42   : > { %v495_v2 = vunpack.c.0.s8 %v491_v0  ;;  %v503_v3 = vunpack.c.0.s8 %v493_v1  ;;  %v496_v4 = vunpack.c.1.s8 %v491_v0  ;;  %v504_v5 = vunpack.c.1.s8 %v493_v1  ;;  %v492_v11 = vld [vmem:[%s9244_s28 + $0x8] sm:$0xff]  ;;  %v494_v16 = vld [vmem:[%s9244_s28 + $0x18] sm:$0xff]  ;;  %v715_v29 = vld [vmem:[%s9253_s21 + $0xc0] sm:$0xff]  ;;  %s9329_s15 = scalar_lea.vmem [#allocation9], %s8753_s7  ;;  %s11137_s4 = sld [smem:[#allocation19_spill]] }
  0x43   : > { %s11148_s24 = smov (!%p466_p13, %s9069_s24), 1  ;;  %v497_v6 = vunpack.c.2.s8 %v491_v0  ;;  %v505_v7 = vunpack.c.2.s8 %v493_v1  ;;  %v498_v8 = vunpack.c.3.s8 %v491_v0  ;;  %v506_v9 = vunpack.c.3.s8 %v493_v1  ;;  %v747_v38 = vld [vmem:[%s9253_s21 + $0x1c0] sm:$0xff] }
  0x44   : > { %s8754_s17 = sshll.u32 %s11148_s24, 3  ;;  %v511_v12 = vcvt.s32.f32 %v495_v2  ;;  %v519_v13 = vcvt.s32.f32 %v503_v3  ;;  %v512_v14 = vcvt.s32.f32 %v496_v4  ;;  %v520_v15 = vcvt.s32.f32 %v504_v5  ;;  %v779_v51 = vld [vmem:[%s9253_s21 + $0x2c0] sm:$0xff] }
  0x45   : > { %s472_s14 = scalar_lea.vmem %s11085_s0, %s8754_s17  ;;  %v513_v17 = vcvt.s32.f32 %v497_v6  ;;  %v521_v18 = vcvt.s32.f32 %v505_v7  ;;  %v514_v19 = vcvt.s32.f32 %v498_v8  ;;  %v522_v20 = vcvt.s32.f32 %v506_v9  ;;  %v811_v60 = vld [vmem:[%s9253_s21 + $0x3c0] sm:$0xff] }
  0x46   : > { %v489_v10 = vld [vmem:[%s472_s14] sm:$0xff]  ;;  %v527_v21 = vpack.c.bf16 %v519_v13, %v511_v12  ;;  %v528_v22 = vpack.c.bf16 %v520_v15, %v512_v14  ;;  %v499_v24 = vunpack.c.0.s8 %v492_v11  ;;  %v507_v27 = vunpack.c.0.s8 %v494_v16 }
  0x47   : > { %v9282_v23 = vpack.c.bf16 %v489_v10, %v489_v10  ;;  %v529_v25 = vpack.c.bf16 %v521_v18, %v513_v17  ;;  %v530_v26 = vpack.c.bf16 %v522_v20, %v514_v19  ;;  %v500_v28 = vunpack.c.1.s8 %v492_v11  ;;  %v707_v1 = vld [vmem:[%s9253_s21 + $0x80] sm:$0xff] }
  0x48   : > { %546 = vmatpush.bf16.msra.mxu0 %v527_v21  ;;  %559 = vmatpush.bf16.msra.mxu1 %v528_v22  ;;  %v515_v30 = vcvt.s32.f32 %v499_v24  ;;  %v508_v31 = vunpack.c.1.s8 %v494_v16  ;;  %v501_v32 = vunpack.c.2.s8 %v492_v11  ;;  %v509_v33 = vunpack.c.2.s8 %v494_v16  ;;  %v739_v6 = vld [vmem:[%s9253_s21 + $0x180] sm:$0xff]  ;;  %s479_s13 = scalar_lea.vmem %s11137_s4, %s8754_s17 }
  0x49   : > { %572 = vmatpush.bf16.msra.mxu2 %v529_v25  ;;  %585 = vmatpush.bf16.msra.mxu3 %v530_v26  ;;  %v523_v34 = vcvt.s32.f32 %v507_v27  ;;  %v516_v35 = vcvt.s32.f32 %v500_v28  ;;  %v502_v36 = vunpack.c.3.s8 %v492_v11  ;;  %v510_v37 = vunpack.c.3.s8 %v494_v16 }
  0x4a   : > { %v524_v39 = vcvt.s32.f32 %v508_v31  ;;  %v517_v40 = vcvt.s32.f32 %v501_v32  ;;  %v525_v41 = vcvt.s32.f32 %v509_v33  ;;  %v1059_v42 = vunpack.c.2.s8 %v715_v29 }
  0x4b   : > { %8756 = vmatmul.msk.bf16.vlgmr.msra.gmra.mxu0 %vm535_vm0, %v9282_v23  ;;  %8757 = vmatmul.msk.bf16.vlgmr.msra.gmra.mxu1 %vm535_vm0, %v9282_v23  ;;  %v531_v43 = vpack.c.bf16 %v523_v34, %v515_v30  ;;  %v518_v44 = vcvt.s32.f32 %v502_v36  ;;  %v526_v45 = vcvt.s32.f32 %v510_v37  ;;  %v1067_v46 = vunpack.c.3.s8 %v715_v29  ;;  %v771_v36 = vld [vmem:[%s9253_s21 + $0x280] sm:$0xff] }
  0x4c   : > { %8758 = vmatmul.msk.bf16.vlgmr.msra.gmra.mxu2 %vm535_vm0, %v9282_v23  ;;  %8759 = vmatmul.msk.bf16.vlgmr.msra.gmra.mxu3 %vm535_vm0, %v9282_v23  ;;  %v532_v47 = vpack.c.bf16 %v524_v39, %v516_v35  ;;  %v533_v48 = vpack.c.bf16 %v525_v41, %v517_v40  ;;  %v2083_v49 = vcvt.s32.f32 %v1059_v42  ;;  %v1187_v50 = vunpack.c.2.s8 %v747_v38  ;;  %v803_v41 = vld [vmem:[%s9253_s21 + $0x380] sm:$0xff] }
  0x4d   : > { %598 = vmatpush.bf16.msrb.mxu0 %v531_v43  ;;  %v534_v52 = vpack.c.bf16 %v526_v45, %v518_v44  ;;  %v2091_v53 = vcvt.s32.f32 %v1067_v46  ;;  %v1195_v54 = vunpack.c.3.s8 %v747_v38  ;;  %v1043_v55 = vunpack.c.0.s8 %v715_v29  ;;  %v699_v46 = vld [vmem:[%s9253_s21 + $0x40] sm:$0xff] }
  0x4e   : > { %611 = vmatpush.bf16.msrb.mxu1 %v532_v47  ;;  %624 = vmatpush.bf16.msrb.mxu2 %v533_v48  ;;  %v2211_v56 = vcvt.s32.f32 %v1187_v50  ;;  %v1051_v57 = vunpack.c.1.s8 %v715_v29  ;;  %v1171_v58 = vunpack.c.0.s8 %v747_v38  ;;  %v1179_v59 = vunpack.c.1.s8 %v747_v38 }
  0x4f   : > { %637 = vmatpush.bf16.msrb.mxu3 %v534_v52  ;;  %v3051_v61 = vpack.c.bf16 %v2091_v53, %v2083_v49  ;;  %v2219_v62 = vcvt.s32.f32 %v1195_v54  ;;  %v2067_v63 = vcvt.s32.f32 %v1043_v55  ;;  %v1315_v0 = vunpack.c.2.s8 %v779_v51 }
  0x50   : > { %v2075_v2 = vcvt.s32.f32 %v1051_v57  ;;  %v2195_v3 = vcvt.s32.f32 %v1171_v58  ;;  %v2203_v4 = vcvt.s32.f32 %v1179_v59  ;;  %v1323_v5 = vunpack.c.3.s8 %v779_v51 }
  0x51   : > { %3507 = vmatpush.bf16.msra.mxu0 %v3051_v61  ;;  %v3115_v7 = vpack.c.bf16 %v2219_v62, %v2211_v56  ;;  %v2339_v8 = vcvt.s32.f32 %v1315_v0  ;;  %v1443_v9 = vunpack.c.2.s8 %v811_v60  ;;  %v1451_v10 = vunpack.c.3.s8 %v811_v60 }
  0x52   : > { %v3043_v11 = vpack.c.bf16 %v2075_v2, %v2067_v63  ;;  %v3107_v12 = vpack.c.bf16 %v2203_v4, %v2195_v3  ;;  %v2347_v13 = vcvt.s32.f32 %v1323_v5  ;;  %v1027_v14 = vunpack.c.2.s8 %v707_v1 }
  0x53   : > { %3520 = vmatpush.bf16.msra.mxu1 %v3115_v7  ;;  %v2467_v15 = vcvt.s32.f32 %v1443_v9  ;;  %v2475_v16 = vcvt.s32.f32 %v1451_v10  ;;  %v1035_v17 = vunpack.c.3.s8 %v707_v1  ;;  %v1155_v18 = vunpack.c.2.s8 %v739_v6 }
  0x54   : > { %v3179_v19 = vpack.c.bf16 %v2347_v13, %v2339_v8  ;;  %v2051_v20 = vcvt.s32.f32 %v1027_v14  ;;  %v1163_v21 = vunpack.c.3.s8 %v739_v6  ;;  %v1299_v22 = vunpack.c.0.s8 %v779_v51 }
  0x55   : > { %3508 = vmatpush.bf16.msra.mxu0 %v3043_v11  ;;  %v3243_v24 = vpack.c.bf16 %v2475_v16, %v2467_v15  ;;  %v2059_v25 = vcvt.s32.f32 %v1035_v17  ;;  %v2179_v26 = vcvt.s32.f32 %v1155_v18  ;;  %v1307_v27 = vunpack.c.1.s8 %v779_v51  ;;  %v731_v51 = vld [vmem:[%s9253_s21 + $0x140] sm:$0xff] }
  0x56   : > { %3533 = vmatpush.bf16.msra.mxu2 %v3179_v19  ;;  %v2187_v28 = vcvt.s32.f32 %v1163_v21  ;;  %v2323_v29 = vcvt.s32.f32 %v1299_v22  ;;  %v1427_v30 = vunpack.c.0.s8 %v811_v60  ;;  %v1435_v31 = vunpack.c.1.s8 %v811_v60  ;;  %v763_v15 = vld [vmem:[%s9253_s21 + $0x240] sm:$0xff] }
  0x57   : > { %3521 = vmatpush.bf16.msra.mxu1 %v3107_v12  ;;  %3546 = vmatpush.bf16.msra.mxu3 %v3243_v24  ;;  %v3035_v32 = vpack.c.bf16 %v2059_v25, %v2051_v20  ;;  %v2331_v33 = vcvt.s32.f32 %v1307_v27  ;;  %v1011_v34 = vunpack.c.0.s8 %v707_v1  ;;  %v1019_v35 = vunpack.c.1.s8 %v707_v1  ;;  %v795_v20 = vld [vmem:[%s9253_s21 + $0x340] sm:$0xff] }
  0x58   : > { %v3099_v37 = vpack.c.bf16 %v2187_v28, %v2179_v26  ;;  %v2451_v38 = vcvt.s32.f32 %v1427_v30  ;;  %v2459_v39 = vcvt.s32.f32 %v1435_v31  ;;  %v1139_v40 = vunpack.c.0.s8 %v739_v6  ;;  %v691_v26 = vld [vmem:[%s9253_s21] sm:$0xff] }
  0x59   : > { %3509 = vmatpush.bf16.msra.mxu0 %v3035_v32  ;;  %v3171_v42 = vpack.c.bf16 %v2331_v33, %v2323_v29  ;;  %v2035_v43 = vcvt.s32.f32 %v1011_v34  ;;  %v2043_v44 = vcvt.s32.f32 %v1019_v35  ;;  %v1147_v45 = vunpack.c.1.s8 %v739_v6  ;;  %v723_v31 = vld [vmem:[%s9253_s21 + $0x100] sm:$0xff] }
  0x5a   : > { %v3235_v47 = vpack.c.bf16 %v2459_v39, %v2451_v38  ;;  %v2163_v48 = vcvt.s32.f32 %v1139_v40  ;;  %v1283_v49 = vunpack.c.2.s8 %v771_v36  ;;  %v1291_v50 = vunpack.c.3.s8 %v771_v36 }
  0x5b   : > { %8760 = vmatmul.msk.bf16.vlgmr.msrb.gmra.mxu0 %vm535_vm0, %v9282_v23  ;;  %8761 = vmatmul.msk.bf16.vlgmr.msrb.gmra.mxu1 %vm535_vm0, %v9282_v23  ;;  %v3027_v52 = vpack.c.bf16 %v2043_v44, %v2035_v43  ;;  %v2171_v53 = vcvt.s32.f32 %v1147_v45  ;;  %v1411_v54 = vunpack.c.2.s8 %v803_v41  ;;  %v1419_v55 = vunpack.c.3.s8 %v803_v41 }
  0x5c   : > { %8762 = vmatmul.msk.bf16.vlgmr.msrb.gmra.mxu2 %vm535_vm0, %v9282_v23  ;;  %8763 = vmatmul.msk.bf16.vlgmr.msrb.gmra.mxu3 %vm535_vm0, %v9282_v23  ;;  %v2307_v56 = vcvt.s32.f32 %v1283_v49  ;;  %v2315_v57 = vcvt.s32.f32 %v1291_v50  ;;  %v995_v58 = vunpack.c.2.s8 %v699_v46  ;;  %v1003_v59 = vunpack.c.3.s8 %v699_v46 }
  0x5d   : > { %3522 = vmatpush.bf16.msra.mxu1 %v3099_v37  ;;  %3534 = vmatpush.bf16.msra.mxu2 %v3171_v42  ;;  %v3091_v60 = vpack.c.bf16 %v2171_v53, %v2163_v48  ;;  %v2435_v61 = vcvt.s32.f32 %v1411_v54  ;;  %v2443_v62 = vcvt.s32.f32 %v1419_v55  ;;  %v1123_v63 = vunpack.c.2.s8 %v731_v51 }
  0x5e   : > { %3547 = vmatpush.bf16.msra.mxu3 %v3235_v47  ;;  %3510 = vmatpush.bf16.msra.mxu0 %v3027_v52  ;;  %v3163_v0 = vpack.c.bf16 %v2315_v57, %v2307_v56  ;;  %v2019_v1 = vcvt.s32.f32 %v995_v58  ;;  %v2027_v2 = vcvt.s32.f32 %v1003_v59  ;;  %v1131_v3 = vunpack.c.3.s8 %v731_v51 }
  0x5f   : > { %v3227_v4 = vpack.c.bf16 %v2443_v62, %v2435_v61  ;;  %v2147_v5 = vcvt.s32.f32 %v1123_v63  ;;  %v1267_v23 = vunpack.c.0.s8 %v771_v36  ;;  %v1275_v6 = vunpack.c.1.s8 %v771_v36 }
  0x60   : > { %v3019_v7 = vpack.c.bf16 %v2027_v2, %v2019_v1  ;;  %v2155_v8 = vcvt.s32.f32 %v1131_v3  ;;  %v1395_v9 = vunpack.c.0.s8 %v803_v41  ;;  %v1403_v10 = vunpack.c.1.s8 %v803_v41  ;;  %v875_v1 = vld [vmem:[%s9253_s21 + $0x5c0] sm:$0xff] }
  0x61   : > { %3523 = vmatpush.bf16.msra.mxu1 %v3091_v60  ;;  %3535 = vmatpush.bf16.msra.mxu2 %v3163_v0  ;;  %v2291_v11 = vcvt.s32.f32 %v1267_v23  ;;  %v2299_v12 = vcvt.s32.f32 %v1275_v6  ;;  %v979_v13 = vunpack.c.0.s8 %v699_v46  ;;  %v987_v14 = vunpack.c.1.s8 %v699_v46  ;;  %v843_v60 = vld [vmem:[%s9253_s21 + $0x4c0] sm:$0xff] }
  0x62   : > { %3548 = vmatpush.bf16.msra.mxu3 %v3227_v4  ;;  %3511 = vmatpush.bf16.msra.mxu0 %v3019_v7  ;;  %v3083_v16 = vpack.c.bf16 %v2155_v8, %v2147_v5  ;;  %v2419_v17 = vcvt.s32.f32 %v1395_v9  ;;  %v2427_v18 = vcvt.s32.f32 %v1403_v10  ;;  %v1107_v19 = vunpack.c.0.s8 %v731_v51  ;;  %v755_v23 = vld [vmem:[%s9253_s21 + $0x200] sm:$0xff] }
  0x63   : > { %v3155_v21 = vpack.c.bf16 %v2299_v12, %v2291_v11  ;;  %v2003_v22 = vcvt.s32.f32 %v979_v13  ;;  %v2011_v24 = vcvt.s32.f32 %v987_v14  ;;  %v1115_v25 = vunpack.c.1.s8 %v731_v51  ;;  %v787_v10 = vld [vmem:[%s9253_s21 + $0x300] sm:$0xff] }
  0x64   : > { %v3219_v27 = vpack.c.bf16 %v2427_v18, %v2419_v17  ;;  %v2131_v28 = vcvt.s32.f32 %v1107_v19  ;;  %v1251_v29 = vunpack.c.2.s8 %v763_v15  ;;  %v1259_v30 = vunpack.c.3.s8 %v763_v15 }
  0x65   : > { %3524 = vmatpush.bf16.msra.mxu1 %v3083_v16  ;;  %3536 = vmatpush.bf16.msra.mxu2 %v3155_v21  ;;  %v3011_v32 = vpack.c.bf16 %v2011_v24, %v2003_v22  ;;  %v2139_v33 = vcvt.s32.f32 %v1115_v25  ;;  %v1379_v34 = vunpack.c.2.s8 %v795_v20  ;;  %v1387_v35 = vunpack.c.3.s8 %v795_v20 }
  0x66   : > { %3549 = vmatpush.bf16.msra.mxu3 %v3219_v27  ;;  %v2275_v36 = vcvt.s32.f32 %v1251_v29  ;;  %v2283_v37 = vcvt.s32.f32 %v1259_v30  ;;  %v963_v38 = vunpack.c.2.s8 %v691_v26  ;;  %v971_v39 = vunpack.c.3.s8 %v691_v26 }
  0x67   : > { %3512 = vmatpush.bf16.msra.mxu0 %v3011_v32  ;;  %v3075_v40 = vpack.c.bf16 %v2139_v33, %v2131_v28  ;;  %v2403_v41 = vcvt.s32.f32 %v1379_v34  ;;  %v2411_v42 = vcvt.s32.f32 %v1387_v35  ;;  %v1091_v43 = vunpack.c.2.s8 %v723_v31 }
  0x68   : > { %v3147_v44 = vpack.c.bf16 %v2283_v37, %v2275_v36  ;;  %v1987_v45 = vcvt.s32.f32 %v963_v38  ;;  %v1995_v46 = vcvt.s32.f32 %v971_v39  ;;  %v1099_v47 = vunpack.c.3.s8 %v723_v31 }
  0x69   : > { %3525 = vmatpush.bf16.msra.mxu1 %v3075_v40  ;;  %v3211_v48 = vpack.c.bf16 %v2411_v42, %v2403_v41  ;;  %v2115_v49 = vcvt.s32.f32 %v1091_v43  ;;  %v1235_v50 = vunpack.c.0.s8 %v763_v15  ;;  %v1243_v51 = vunpack.c.1.s8 %v763_v15  ;;  %v907_v40 = vld [vmem:[%s9253_s21 + $0x6c0] sm:$0xff] }
  0x6a   : > { %3537 = vmatpush.bf16.msra.mxu2 %v3147_v44  ;;  %v3003_v52 = vpack.c.bf16 %v1995_v46, %v1987_v45  ;;  %v2123_v53 = vcvt.s32.f32 %v1099_v47  ;;  %v1363_v54 = vunpack.c.0.s8 %v795_v20  ;;  %v1371_v55 = vunpack.c.1.s8 %v795_v20  ;;  %v939_v45 = vld [vmem:[%s9253_s21 + $0x7c0] sm:$0xff] }
  0x6b   : > { %3550 = vmatpush.bf16.msra.mxu3 %v3211_v48  ;;  %v2259_v56 = vcvt.s32.f32 %v1235_v50  ;;  %v2267_v57 = vcvt.s32.f32 %v1243_v51  ;;  %v947_v58 = vunpack.c.0.s8 %v691_v26  ;;  %v955_v59 = vunpack.c.1.s8 %v691_v26  ;;  %v835_v50 = vld [vmem:[%s9253_s21 + $0x480] sm:$0xff] }
  0x6c   : > { %3513 = vmatpush.bf16.msra.mxu0 %v3003_v52  ;;  %v3067_v61 = vpack.c.bf16 %v2123_v53, %v2115_v49  ;;  %v2387_v62 = vcvt.s32.f32 %v1363_v54  ;;  %v2395_v63 = vcvt.s32.f32 %v1371_v55  ;;  %v1075_v0 = vunpack.c.0.s8 %v723_v31  ;;  %v867_v55 = vld [vmem:[%s9253_s21 + $0x580] sm:$0xff] }
  0x6d   : > { %v3139_v2 = vpack.c.bf16 %v2267_v57, %v2259_v56  ;;  %v1971_v3 = vcvt.s32.f32 %v947_v58  ;;  %v1979_v4 = vcvt.s32.f32 %v955_v59  ;;  %v1083_v5 = vunpack.c.1.s8 %v723_v31 }
  0x6e   : > { %3526 = vmatpush.bf16.msra.mxu1 %v3067_v61  ;;  %v3203_v6 = vpack.c.bf16 %v2395_v63, %v2387_v62  ;;  %v2099_v7 = vcvt.s32.f32 %v1075_v0  ;;  %v1571_v8 = vunpack.c.2.s8 %v843_v60  ;;  %v1579_v9 = vunpack.c.3.s8 %v843_v60 }
  0x6f   : > { %3538 = vmatpush.bf16.msra.mxu2 %v3139_v2  ;;  %v2995_v11 = vpack.c.bf16 %v1979_v4, %v1971_v3  ;;  %v2107_v12 = vcvt.s32.f32 %v1083_v5  ;;  %v1699_v13 = vunpack.c.2.s8 %v875_v1  ;;  %v1707_v14 = vunpack.c.3.s8 %v875_v1 }
  0x70   : > { %3551 = vmatpush.bf16.msra.mxu3 %v3203_v6  ;;  %v2595_v15 = vcvt.s32.f32 %v1571_v8  ;;  %v2603_v16 = vcvt.s32.f32 %v1579_v9  ;;  %v1219_v17 = vunpack.c.2.s8 %v755_v23  ;;  %v1227_v18 = vunpack.c.3.s8 %v755_v23 }
  0x71   : > { %3514 = vmatpush.bf16.msra.mxu0 %v2995_v11  ;;  %v3059_v19 = vpack.c.bf16 %v2107_v12, %v2099_v7  ;;  %v2723_v20 = vcvt.s32.f32 %v1699_v13  ;;  %v2731_v21 = vcvt.s32.f32 %v1707_v14  ;;  %v1347_v22 = vunpack.c.2.s8 %v787_v10 }
  0x72   : > { %v3307_v24 = vpack.c.bf16 %v2603_v16, %v2595_v15  ;;  %v2243_v25 = vcvt.s32.f32 %v1219_v17  ;;  %v2251_v26 = vcvt.s32.f32 %v1227_v18  ;;  %v1355_v27 = vunpack.c.3.s8 %v787_v10 }
  0x73   : > { %3527 = vmatpush.bf16.msra.mxu1 %v3059_v19  ;;  %v3371_v28 = vpack.c.bf16 %v2731_v21, %v2723_v20  ;;  %v2371_v29 = vcvt.s32.f32 %v1347_v22  ;;  %v1555_v30 = vunpack.c.0.s8 %v843_v60  ;;  %v1563_v31 = vunpack.c.1.s8 %v843_v60  ;;  %v899_v19 = vld [vmem:[%s9253_s21 + $0x680] sm:$0xff] }
  0x74   : > { %v3131_v32 = vpack.c.bf16 %v2251_v26, %v2243_v25  ;;  %v2379_v33 = vcvt.s32.f32 %v1355_v27  ;;  %v1683_v34 = vunpack.c.0.s8 %v875_v1  ;;  %v1691_v35 = vunpack.c.1.s8 %v875_v1  ;;  %v931_v25 = vld [vmem:[%s9253_s21 + $0x780] sm:$0xff] }
  0x75   : > { %3559 = vmatpush.bf16.msrb.mxu0 %v3307_v24  ;;  %v2579_v36 = vcvt.s32.f32 %v1555_v30  ;;  %v2587_v37 = vcvt.s32.f32 %v1563_v31  ;;  %v1203_v38 = vunpack.c.0.s8 %v755_v23  ;;  %v1211_v39 = vunpack.c.1.s8 %v755_v23  ;;  %v827_v30 = vld [vmem:[%s9253_s21 + $0x440] sm:$0xff] }
  0x76   : > { %3539 = vmatpush.bf16.msra.mxu2 %v3131_v32  ;;  %v3195_v41 = vpack.c.bf16 %v2379_v33, %v2371_v29  ;;  %v2707_v42 = vcvt.s32.f32 %v1683_v34  ;;  %v2715_v43 = vcvt.s32.f32 %v1691_v35  ;;  %v1331_v44 = vunpack.c.0.s8 %v787_v10  ;;  %v859_v35 = vld [vmem:[%s9253_s21 + $0x540] sm:$0xff] }
  0x77   : > { %3572 = vmatpush.bf16.msrb.mxu1 %v3371_v28  ;;  %v3299_v46 = vpack.c.bf16 %v2587_v37, %v2579_v36  ;;  %v2227_v47 = vcvt.s32.f32 %v1203_v38  ;;  %v2235_v48 = vcvt.s32.f32 %v1211_v39  ;;  %v1339_v49 = vunpack.c.1.s8 %v787_v10 }
  0x78   : > { %3552 = vmatpush.bf16.msra.mxu3 %v3195_v41  ;;  %v3363_v51 = vpack.c.bf16 %v2715_v43, %v2707_v42  ;;  %v2355_v52 = vcvt.s32.f32 %v1331_v44  ;;  %v1827_v53 = vunpack.c.2.s8 %v907_v40  ;;  %v1835_v54 = vunpack.c.3.s8 %v907_v40 }
  0x79   : > { %3560 = vmatpush.bf16.msrb.mxu0 %v3299_v46  ;;  %v3123_v56 = vpack.c.bf16 %v2235_v48, %v2227_v47  ;;  %v2363_v57 = vcvt.s32.f32 %v1339_v49  ;;  %v1955_v58 = vunpack.c.2.s8 %v939_v45  ;;  %v1963_v59 = vunpack.c.3.s8 %v939_v45 }
  0x7a   : > { %v2851_v60 = vcvt.s32.f32 %v1827_v53  ;;  %v2859_v61 = vcvt.s32.f32 %v1835_v54  ;;  %v1539_v62 = vunpack.c.2.s8 %v835_v50  ;;  %v1547_v63 = vunpack.c.3.s8 %v835_v50 }
  0x7b   : > { %3573 = vmatpush.bf16.msrb.mxu1 %v3363_v51  ;;  %3540 = vmatpush.bf16.msra.mxu2 %v3123_v56  ;;  %v3187_v0 = vpack.c.bf16 %v2363_v57, %v2355_v52  ;;  %v2979_v1 = vcvt.s32.f32 %v1955_v58  ;;  %v2987_v2 = vcvt.s32.f32 %v1963_v59  ;;  %v1667_v3 = vunpack.c.2.s8 %v867_v55 }
  0x7c   : > { %v3435_v4 = vpack.c.bf16 %v2859_v61, %v2851_v60  ;;  %v2563_v5 = vcvt.s32.f32 %v1539_v62  ;;  %v2571_v23 = vcvt.s32.f32 %v1547_v63  ;;  %v1675_v6 = vunpack.c.3.s8 %v867_v55 }
  0x7d   : > { %3553 = vmatpush.bf16.msra.mxu3 %v3187_v0  ;;  %v3499_v7 = vpack.c.bf16 %v2987_v2, %v2979_v1  ;;  %v2691_v8 = vcvt.s32.f32 %v1667_v3  ;;  %v1811_v9 = vunpack.c.0.s8 %v907_v40  ;;  %v1819_v10 = vunpack.c.1.s8 %v907_v40 }
  0x7e   : > { %v3291_v11 = vpack.c.bf16 %v2571_v23, %v2563_v5  ;;  %v2699_v12 = vcvt.s32.f32 %v1675_v6  ;;  %v1939_v13 = vunpack.c.0.s8 %v939_v45  ;;  %v1947_v14 = vunpack.c.1.s8 %v939_v45  ;;  %v891_v6 = vld [vmem:[%s9253_s21 + $0x640] sm:$0xff] }
  0x7f   : > { %3585 = vmatpush.bf16.msrb.mxu2 %v3435_v4  ;;  %v2835_v15 = vcvt.s32.f32 %v1811_v9  ;;  %v2843_v16 = vcvt.s32.f32 %v1819_v10  ;;  %v1523_v17 = vunpack.c.0.s8 %v835_v50  ;;  %v1531_v18 = vunpack.c.1.s8 %v835_v50 }
  0x80   : > { %3561 = vmatpush.bf16.msrb.mxu0 %v3291_v11  ;;  %v3355_v20 = vpack.c.bf16 %v2699_v12, %v2691_v8  ;;  %v2963_v21 = vcvt.s32.f32 %v1939_v13  ;;  %v2971_v22 = vcvt.s32.f32 %v1947_v14  ;;  %v1651_v24 = vunpack.c.0.s8 %v867_v55  ;;  %v9332_v8 = vld [vmem:[%s9329_s15] sm:$0xff] }
  0x81   : > { %3598 = vmatpush.bf16.msrb.mxu3 %v3499_v7  ;;  %v3427_v26 = vpack.c.bf16 %v2843_v16, %v2835_v15  ;;  %v2547_v27 = vcvt.s32.f32 %v1523_v17  ;;  %v2555_v28 = vcvt.s32.f32 %v1531_v18  ;;  %v1659_v29 = vunpack.c.1.s8 %v867_v55  ;;  %v923_v7 = vld [vmem:[%s9253_s21 + $0x740] sm:$0xff]  ;;  %v9336_v18 = vld [vmem:[%s9329_s15 + $0x8] sm:$0xff] }
  0x82   : > { %3574 = vmatpush.bf16.msrb.mxu1 %v3355_v20  ;;  %v3491_v31 = vpack.c.bf16 %v2971_v22, %v2963_v21  ;;  %v2675_v32 = vcvt.s32.f32 %v1651_v24  ;;  %v1795_v33 = vunpack.c.2.s8 %v899_v19  ;;  %v1803_v34 = vunpack.c.3.s8 %v899_v19  ;;  %v819_v17 = vld [vmem:[%s9253_s21 + $0x400] sm:$0xff] }
  0x83   : > { %3586 = vmatpush.bf16.msrb.mxu2 %v3427_v26  ;;  %v3283_v36 = vpack.c.bf16 %v2555_v28, %v2547_v27  ;;  %v2683_v37 = vcvt.s32.f32 %v1659_v29  ;;  %v1923_v38 = vunpack.c.2.s8 %v931_v25  ;;  %v1931_v39 = vunpack.c.3.s8 %v931_v25  ;;  %v851_v24 = vld [vmem:[%s9253_s21 + $0x500] sm:$0xff] }
  0x84   : > { %v2819_v40 = vcvt.s32.f32 %v1795_v33  ;;  %v2827_v41 = vcvt.s32.f32 %v1803_v34  ;;  %v1507_v42 = vunpack.c.2.s8 %v827_v30  ;;  %v1515_v43 = vunpack.c.3.s8 %v827_v30 }
  0x85   : > { %3599 = vmatpush.bf16.msrb.mxu3 %v3491_v31  ;;  %3562 = vmatpush.bf16.msrb.mxu0 %v3283_v36  ;;  %v3347_v44 = vpack.c.bf16 %v2683_v37, %v2675_v32  ;;  %v2947_v45 = vcvt.s32.f32 %v1923_v38  ;;  %v2955_v46 = vcvt.s32.f32 %v1931_v39  ;;  %v1635_v47 = vunpack.c.2.s8 %v859_v35 }
  0x86   : > { %v3419_v48 = vpack.c.bf16 %v2827_v41, %v2819_v40  ;;  %v2531_v49 = vcvt.s32.f32 %v1507_v42  ;;  %v2539_v50 = vcvt.s32.f32 %v1515_v43  ;;  %v1643_v51 = vunpack.c.3.s8 %v859_v35 }
  0x87   : > { %3575 = vmatpush.bf16.msrb.mxu1 %v3347_v44  ;;  %v3483_v52 = vpack.c.bf16 %v2955_v46, %v2947_v45  ;;  %v2659_v53 = vcvt.s32.f32 %v1635_v47  ;;  %v1779_v54 = vunpack.c.0.s8 %v899_v19  ;;  %v1787_v55 = vunpack.c.1.s8 %v899_v19  ;;  %v9344_v46 = vld [vmem:[%s9329_s15 + $0x10] sm:$0xff]  ;;  %v9347_v47 = vld [vmem:[%s9329_s15 + $0x18] sm:$0xff] }
  0x88   : > { %3587 = vmatpush.bf16.msrb.mxu2 %v3419_v48  ;;  %v3275_v56 = vpack.c.bf16 %v2539_v50, %v2531_v49  ;;  %v2667_v57 = vcvt.s32.f32 %v1643_v51  ;;  %v1907_v58 = vunpack.c.0.s8 %v931_v25  ;;  %v1915_v59 = vunpack.c.1.s8 %v931_v25 }
  0x89   : > { %3600 = vmatpush.bf16.msrb.mxu3 %v3483_v52  ;;  %v2803_v60 = vcvt.s32.f32 %v1779_v54  ;;  %v2811_v61 = vcvt.s32.f32 %v1787_v55  ;;  %v1491_v3 = vunpack.c.0.s8 %v827_v30  ;;  %v1499_v4 = vunpack.c.1.s8 %v827_v30  ;;  %v716_v55 = vld [vmem:[%s9253_s21 + $0xc8] sm:$0xff] }
  0x8a   : > { %3563 = vmatpush.bf16.msrb.mxu0 %v3275_v56  ;;  %v3339_v62 = vpack.c.bf16 %v2667_v57, %v2659_v53  ;;  %v2931_v63 = vcvt.s32.f32 %v1907_v58  ;;  %v2939_v0 = vcvt.s32.f32 %v1915_v59  ;;  %v1619_v5 = vunpack.c.0.s8 %v859_v35 }
  0x8b   : > { %v3411_v1 = vpack.c.bf16 %v2811_v61, %v2803_v60  ;;  %v1627_v23 = vunpack.c.1.s8 %v859_v35  ;;  %v2515_v9 = vcvt.s32.f32 %v1491_v3  ;;  %v2523_v10 = vcvt.s32.f32 %v1499_v4  ;;  %v748_v60 = vld [vmem:[%s9253_s21 + $0x1c8] sm:$0xff]  ;;  %v883_v61 = vld [vmem:[%s9253_s21 + $0x600] sm:$0xff] }
  0x8c   : > { %3576 = vmatpush.bf16.msrb.mxu1 %v3339_v62  ;;  %v3475_v2 = vpack.c.bf16 %v2939_v0, %v2931_v63  ;;  %v2643_v11 = vcvt.s32.f32 %v1619_v5  ;;  %v1763_v13 = vunpack.c.2.s8 %v891_v6  ;;  %v1771_v14 = vunpack.c.3.s8 %v891_v6 }
  0x8d   : > { %3588 = vmatpush.bf16.msrb.mxu2 %v3411_v1  ;;  %v2651_v12 = vcvt.s32.f32 %v1627_v23  ;;  %v1891_v15 = vunpack.c.2.s8 %v923_v7  ;;  %v1899_v16 = vunpack.c.3.s8 %v923_v7  ;;  %v3267_v19 = vpack.c.bf16 %v2523_v10, %v2515_v9  ;;  %v915_v10 = vld [vmem:[%s9253_s21 + $0x700] sm:$0xff] }
  0x8e   : > { %3601 = vmatpush.bf16.msrb.mxu3 %v3475_v2  ;;  %v1475_v21 = vunpack.c.2.s8 %v819_v17  ;;  %v1483_v22 = vunpack.c.3.s8 %v819_v17  ;;  %v643_v25 = vperm.slane %v9332_v8, 0  ;;  %v644_v26 = vperm.slane %v9336_v18, 0 }
  0x8f   : > { %v3331_v20 = vpack.c.bf16 %v2651_v12, %v2643_v11  ;;  %v2787_v27 = vcvt.s32.f32 %v1763_v13  ;;  %v2795_v28 = vcvt.s32.f32 %v1771_v14  ;;  %v659_v29 = vperm.slane %v9332_v8, 1  ;;  %3564 = vmatpush.bf16.msrb.mxu0 %v3267_v19 }
  0x90   : > { %v2915_v30 = vcvt.s32.f32 %v1891_v15  ;;  %v2923_v31 = vcvt.s32.f32 %v1899_v16  ;;  %v2499_v32 = vcvt.s32.f32 %v1475_v21  ;;  %v660_v33 = vperm.slane %v9336_v18, 1 }
  0x91   : > { %3577 = vmatpush.bf16.msrb.mxu1 %v3331_v20  ;;  %v3403_v34 = vpack.c.bf16 %v2795_v28, %v2787_v27  ;;  %v2507_v35 = vcvt.s32.f32 %v1483_v22  ;;  %v1603_v36 = vunpack.c.2.s8 %v851_v24  ;;  %v1611_v38 = vunpack.c.3.s8 %v851_v24 }
  0x92   : > { %v3467_v37 = vpack.c.bf16 %v2923_v31, %v2915_v30  ;;  %v1747_v39 = vunpack.c.0.s8 %v891_v6  ;;  %v1755_v40 = vunpack.c.1.s8 %v891_v6  ;;  %v1875_v43 = vunpack.c.0.s8 %v923_v7 }
  0x93   : > { %3589 = vmatpush.bf16.msrb.mxu2 %v3403_v34  ;;  %v3259_v41 = vpack.c.bf16 %v2507_v35, %v2499_v32  ;;  %v2627_v42 = vcvt.s32.f32 %v1603_v36  ;;  %v1883_v44 = vunpack.c.1.s8 %v923_v7  ;;  %v2635_v45 = vcvt.s32.f32 %v1611_v38 }
  0x94   : > { %3602 = vmatpush.bf16.msrb.mxu3 %v3467_v37  ;;  %v2771_v48 = vcvt.s32.f32 %v1747_v39  ;;  %v2779_v49 = vcvt.s32.f32 %v1755_v40  ;;  %v1459_v50 = vunpack.c.0.s8 %v819_v17  ;;  %v645_v51 = vperm.slane %v9344_v46, 0 }
  0x95   : > { %3565 = vmatpush.bf16.msrb.mxu0 %v3259_v41  ;;  %v646_v52 = vperm.slane %v9347_v47, 0  ;;  %v2899_v53 = vcvt.s32.f32 %v1875_v43  ;;  %v2907_v54 = vcvt.s32.f32 %v1883_v44  ;;  %v3323_v56 = vpack.c.bf16 %v2635_v45, %v2627_v42  ;;  %v780_v41 = vld [vmem:[%s9253_s21 + $0x2c8] sm:$0xff] }
  0x96   : > { %v3395_v57 = vpack.c.bf16 %v2779_v49, %v2771_v48  ;;  %v1467_v58 = vunpack.c.1.s8 %v819_v17  ;;  %v2483_v59 = vcvt.s32.f32 %v1459_v50  ;;  %v661_v62 = vperm.slane %v9344_v46, 1  ;;  %v812_v48 = vld [vmem:[%s9253_s21 + $0x3c8] sm:$0xff] }
  0x97   : > { %v662_v63 = vperm.slane %v9347_v47, 1  ;;  %v3459_v0 = vpack.c.bf16 %v2907_v54, %v2899_v53  ;;  %v1587_v1 = vunpack.c.0.s8 %v851_v24  ;;  %3578 = vmatpush.bf16.msrb.mxu1 %v3323_v56  ;;  %v1595_v3 = vunpack.c.1.s8 %v851_v24 }
  0x98   : > { %3590 = vmatpush.bf16.msrb.mxu2 %v3395_v57  ;;  %v2491_v2 = vcvt.s32.f32 %v1467_v58  ;;  %v1060_v4 = vunpack.c.2.s8 %v716_v55  ;;  %v1068_v5 = vunpack.c.3.s8 %v716_v55  ;;  %v1188_v6 = vunpack.c.2.s8 %v748_v60 }
  0x99   : > { %3603 = vmatpush.bf16.msrb.mxu3 %v3459_v0  ;;  %v2611_v23 = vcvt.s32.f32 %v1587_v1  ;;  %v1196_v7 = vunpack.c.3.s8 %v748_v60  ;;  %v1731_v9 = vunpack.c.2.s8 %v883_v61  ;;  %v2619_v12 = vcvt.s32.f32 %v1595_v3  ;;  %v708_v3 = vld [vmem:[%s9253_s21 + $0x88] sm:$0xff] }
  0x9a   : > { %v3251_v11 = vpack.c.bf16 %v2491_v2, %v2483_v59  ;;  %v9357_v13 = vcvt.s32.f32 %v1060_v4  ;;  %v9359_v14 = vcvt.s32.f32 %v1068_v5  ;;  %v9361_v15 = vcvt.s32.f32 %v1188_v6  ;;  %v9387_v2 = vld [vmem:[%s9329_s15 + $0x28] sm:$0xff] }
  0x9b   : > { %v9363_v16 = vcvt.s32.f32 %v1196_v7  ;;  %v1739_v17 = vunpack.c.3.s8 %v883_v61  ;;  %v2755_v19 = vcvt.s32.f32 %v1731_v9  ;;  %v3315_v20 = vpack.c.bf16 %v2619_v12, %v2611_v23  ;;  %v740_v7 = vld [vmem:[%s9253_s21 + $0x188] sm:$0xff] }
  0x9c   : > { %3566 = vmatpush.bf16.msrb.mxu0 %v3251_v11  ;;  %v3052_v21 = vpack.c.bf16 %v9359_v14, %v9357_v13  ;;  %v1859_v22 = vunpack.c.2.s8 %v915_v10  ;;  %v1867_v24 = vunpack.c.3.s8 %v915_v10  ;;  %v1044_v30 = vunpack.c.0.s8 %v716_v55  ;;  %v732_v12 = vld [vmem:[%s9253_s21 + $0x148] sm:$0xff] }
  0x9d   : > { %v3116_v27 = vpack.c.bf16 %v9363_v16, %v9361_v15  ;;  %v2763_v28 = vcvt.s32.f32 %v1739_v17  ;;  %v1052_v31 = vunpack.c.1.s8 %v716_v55  ;;  %3579 = vmatpush.bf16.msrb.mxu1 %v3315_v20  ;;  %v1172_v35 = vunpack.c.0.s8 %v748_v60  ;;  %v9382_v55 = vld [vmem:[%s9329_s15 + $0x20] sm:$0xff]  ;;  %v9537_v13 = vld [vmem:[%s9253_s21 + $0x348] sm:$0xff] }
  0x9e   : > { %v2883_v32 = vcvt.s32.f32 %v1859_v22  ;;  %v2891_v34 = vcvt.s32.f32 %v1867_v24  ;;  %v1180_v36 = vunpack.c.1.s8 %v748_v60  ;;  %v9369_v38 = vcvt.s32.f32 %v1044_v30 }
  0x9f   : > { %v3387_v37 = vpack.c.bf16 %v2763_v28, %v2755_v19  ;;  %v9371_v39 = vcvt.s32.f32 %v1052_v31  ;;  %v1715_v40 = vunpack.c.0.s8 %v883_v61  ;;  %v9374_v43 = vcvt.s32.f32 %v1172_v35 }
  0xa0   : > { %v3451_v42 = vpack.c.bf16 %v2891_v34, %v2883_v32  ;;  %v9376_v44 = vcvt.s32.f32 %v1180_v36  ;;  %v1723_v45 = vunpack.c.1.s8 %v883_v61  ;;  %v1843_v53 = vunpack.c.0.s8 %v915_v10 }
  0xa1   : > { %3591 = vmatpush.bf16.msrb.mxu2 %v3387_v37  ;;  %v3044_v49 = vpack.c.bf16 %v9371_v39, %v9369_v38  ;;  %v2739_v50 = vcvt.s32.f32 %v1715_v40  ;;  %v1851_v54 = vunpack.c.1.s8 %v915_v10  ;;  %v1316_v58 = vunpack.c.2.s8 %v780_v41 }
  0xa2   : > { %3604 = vmatpush.bf16.msrb.mxu3 %v3451_v42  ;;  %v3108_v56 = vpack.c.bf16 %v9376_v44, %v9374_v43  ;;  %v2747_v57 = vcvt.s32.f32 %v1723_v45  ;;  %v1324_v59 = vunpack.c.3.s8 %v780_v41  ;;  %v2867_v60 = vcvt.s32.f32 %v1843_v53 }
  0xa3   : > { %v2875_v61 = vcvt.s32.f32 %v1851_v54  ;;  %v1444_v0 = vunpack.c.2.s8 %v812_v48  ;;  %v1452_v1 = vunpack.c.3.s8 %v812_v48  ;;  %v9390_v5 = vcvt.s32.f32 %v1316_v58  ;;  %v9422_v58 = vld [vmem:[%s9329_s15 + $0x30] sm:$0xff] }
  0xa4   : > { %v3379_v4 = vpack.c.bf16 %v2747_v57, %v2739_v50  ;;  %v9392_v23 = vcvt.s32.f32 %v1324_v59  ;;  %v1028_v22 = vunpack.c.2.s8 %v708_v3  ;;  %v1036_v28 = vunpack.c.3.s8 %v708_v3 }
  0xa5   : > { %v3443_v9 = vpack.c.bf16 %v2875_v61, %v2867_v60  ;;  %v9396_v10 = vcvt.s32.f32 %v1444_v0  ;;  %v9398_v11 = vcvt.s32.f32 %v1452_v1  ;;  %v1156_v30 = vunpack.c.2.s8 %v740_v7 }
  0xa6   : > { %3592 = vmatpush.bf16.msrb.mxu2 %v3379_v4  ;;  %v1164_v31 = vunpack.c.3.s8 %v740_v7  ;;  %v9407_v32 = vcvt.s32.f32 %v1028_v22  ;;  %v1300_v34 = vunpack.c.0.s8 %v780_v41  ;;  %v1308_v35 = vunpack.c.1.s8 %v780_v41  ;;  %v772_v22 = vld [vmem:[%s9253_s21 + $0x288] sm:$0xff] }
  0xa7   : > { %3605 = vmatpush.bf16.msrb.mxu3 %v3443_v9  ;;  %v1428_v36 = vunpack.c.0.s8 %v812_v48  ;;  %v9409_v37 = vcvt.s32.f32 %v1036_v28  ;;  %v9411_v40 = vcvt.s32.f32 %v1156_v30  ;;  %v1436_v45 = vunpack.c.1.s8 %v812_v48  ;;  %v9431_v48 = vld [vmem:[%s9329_s15 + $0x38] sm:$0xff]  ;;  %v9439_v28 = vld [vmem:[%s9253_s21 + $0x388] sm:$0xff] }
  0xa8   : > { %v9413_v42 = vcvt.s32.f32 %v1164_v31  ;;  %v9415_v50 = vcvt.s32.f32 %v1300_v34  ;;  %v9417_v53 = vcvt.s32.f32 %v1308_v35  ;;  %v1012_v57 = vunpack.c.0.s8 %v708_v3 }
  0xa9   : > { %v9419_v54 = vcvt.s32.f32 %v1428_v36  ;;  %v9428_v60 = vcvt.s32.f32 %v1436_v45  ;;  %v1020_v61 = vunpack.c.1.s8 %v708_v3  ;;  %v1140_v4 = vunpack.c.0.s8 %v740_v7 }
  0xaa   : > { %v9435_v1 = vcvt.s32.f32 %v1012_v57  ;;  %v1148_v9 = vunpack.c.1.s8 %v740_v7  ;;  %v9454_v57 = vld [vmem:[%s9253_s21 + $0x48] sm:$0xff]  ;;  %v1284_v30 = vunpack.c.2.s8 %v772_v22  ;;  %v1292_v3 = vunpack.c.3.s8 %v772_v22 }
  0xab   : > { %v9443_v31 = vcvt.s32.f32 %v1020_v61  ;;  %v9447_v35 = vcvt.s32.f32 %v1140_v4  ;;  %v1412_v34 = vunpack.c.2.s8 %v9439_v28  ;;  %v1420_v45 = vunpack.c.3.s8 %v9439_v28 }
  0xac   : > { %v9449_v36 = vcvt.s32.f32 %v1148_v9  ;;  %v9467_v59 = vcvt.s32.f32 %v1284_v30  ;;  %v9469_v41 = vcvt.s32.f32 %v1292_v3  ;;  %v996_v19 = vunpack.c.2.s8 %v9454_v57 }
  0xad   : > { %v9471_v61 = vcvt.s32.f32 %v1412_v34  ;;  %v1124_v3 = vunpack.c.2.s8 %v732_v12  ;;  %v1132_v34 = vunpack.c.3.s8 %v732_v12  ;;  %v1388_v38 = vunpack.c.3.s8 %v9537_v13 }
  0xae   : > { %v9483_v7 = vcvt.s32.f32 %v996_v19  ;;  %v11119_v46 = vpack.c.bf16 %v9409_v37, %v9407_v32 }
  0xaf   : > { %v9489_v18 = vcvt.s32.f32 %v1124_v3 }
  0xc8   : > { %v548_v0 = vpop.f32.mrf.mxu0  ;;  %v561_v20 = vpop.f32.mrf.mxu1 }
  0xc9   : > { %v651_v4 = vmul.f32 %v643_v25, %v548_v0  ;;  %v652_v9 = vmul.f32 %v644_v26, %v561_v20  ;;  %v9478_v20 = vcvt.s32.f32 %v1420_v45  ;;  %v1004_v0 = vunpack.c.3.s8 %v9454_v57 }
  0xca   : > { %v1268_v45 = vunpack.c.0.s8 %v772_v22 }
  0xcb   : > { %v667_v25 = vadd.f32 %v659_v29, %v651_v4  ;;  %v668_v26 = vadd.f32 %v660_v33, %v652_v9  ;;  %v3228_v8 = vpack.c.bf16 %v9478_v20, %v9471_v61  ;;  %v9487_v29 = vcvt.s32.f32 %v1004_v0  ;;  %v9686_v20 = vld [vmem:[%s9253_s21 + $0x208] sm:$0xff] }
  0xcc   : > { %v9491_v33 = vcvt.s32.f32 %v1132_v34  ;;  %v1276_v4 = vunpack.c.1.s8 %v772_v22 }
  0xcd   : > { %v675_v6 = vmax.f32 %v667_v25, 0.0  ;;  %v676_v24 = vmax.f32 %v668_v26, 0.0  ;;  %v1396_v26 = vunpack.c.0.s8 %v9439_v28 }
  0xce   : > { %v9510_v25 = vcvt.s32.f32 %v1276_v4  ;;  %v1108_v4 = vunpack.c.0.s8 %v732_v12 }
  0xcf   : > { %v9493_v9 = vpack.c.bf16 %v675_v6, %v675_v6  ;;  %v9495_v30 = vpack.c.bf16 %v676_v24, %v676_v24  ;;  %v574_v19 = vpop.f32.mrf.mxu2  ;;  %v587_v17 = vpop.f32.mrf.mxu3  ;;  %v3084_v6 = vpack.c.bf16 %v9491_v33, %v9489_v18  ;;  %v9506_v24 = vcvt.s32.f32 %v1268_v45 }
  0xd0   : > { %v653_v0 = vmul.f32 %v645_v51, %v574_v19  ;;  %v654_v3 = vmul.f32 %v646_v52, %v587_v17  ;;  %v550_v34 = vpop.f32.mrf.mxu0  ;;  %v563_v22 = vpop.f32.mrf.mxu1  ;;  %v1404_v51 = vunpack.c.1.s8 %v9439_v28  ;;  %v9513_v19 = vcvt.s32.f32 %v1396_v26  ;;  %v9528_v26 = vld [vmem:[%s9253_s21 + $0x248] sm:$0xff] }
  0xd1   : > { %3515 = vmatmul.bf16.vlgmr.msra.gmra.mxu0 %v9493_v9  ;;  %3528 = vmatmul.bf16.vlgmr.msra.gmra.mxu1 %v9495_v30  ;;  %v980_v52 = vunpack.c.0.s8 %v9454_v57  ;;  %v988_v28 = vunpack.c.1.s8 %v9454_v57  ;;  %v9550_v34 = vld [vmem:[%s9253_s21 + $0x8] sm:$0xff]  ;;  %v1236_v37 = vunpack.c.0.s8 %v9528_v26 }
  0xd2   : > { %v669_v17 = vadd.f32 %v661_v62, %v653_v0  ;;  %v670_v45 = vadd.f32 %v662_v63, %v654_v3  ;;  %3611 = vmatpush.bf16.msra.mxu0 %v3052_v21  ;;  %3624 = vmatpush.bf16.msra.mxu1 %v3116_v27  ;;  %v9532_v47 = vcvt.s32.f32 %v1404_v51  ;;  %v1116_v63 = vunpack.c.1.s8 %v732_v12  ;;  %v9553_v12 = vld [vmem:[%s9253_s21 + $0x108] sm:$0xff] }
  0xd3   : > { %v9534_v62 = vcvt.s32.f32 %v980_v52  ;;  %v9539_v16 = vcvt.s32.f32 %v988_v28  ;;  %v9541_v21 = vcvt.s32.f32 %v1108_v4  ;;  %v1252_v0 = vunpack.c.2.s8 %v9528_v26 }
  0xd4   : > { %v677_v14 = vmax.f32 %v669_v17, 0.0  ;;  %v678_v15 = vmax.f32 %v670_v45, 0.0  ;;  %v9545_v57 = vcvt.s32.f32 %v1116_v63  ;;  %v1260_v3 = vunpack.c.3.s8 %v9528_v26 }
  0xd5   : > { %v1380_v17 = vunpack.c.2.s8 %v9537_v13  ;;  %v9570_v63 = vcvt.s32.f32 %v1252_v0  ;;  %v11115_v0 = vpack.c.bf16 %v9392_v23, %v9390_v5  ;;  %v9594_v27 = vcvt.s32.f32 %v1388_v38 }
  0xd6   : > { %v9555_v22 = vpack.c.bf16 %v677_v14, %v677_v14  ;;  %v9557_v51 = vpack.c.bf16 %v678_v15, %v678_v15  ;;  %3612 = vmatpush.bf16.msra.mxu0 %v3044_v49  ;;  %3625 = vmatpush.bf16.msra.mxu1 %v3108_v56  ;;  %v9572_v14 = vcvt.s32.f32 %v1260_v3  ;;  %v964_v49 = vunpack.c.2.s8 %v9550_v34 }
  0xd7   : > { %v576_v45 = vpop.f32.mrf.mxu2  ;;  %v589_v28 = vpop.f32.mrf.mxu3  ;;  %v9577_v44 = vcvt.s32.f32 %v1380_v17  ;;  %v972_v56 = vunpack.c.3.s8 %v9550_v34  ;;  %v1092_v15 = vunpack.c.2.s8 %v9553_v12  ;;  %v11116_v3 = vpack.c.bf16 %v9398_v11, %v9396_v10 }
  0xd8   : > { %3541 = vmatmul.bf16.vlgmr.msra.gmra.mxu2 %v9555_v22  ;;  %3554 = vmatmul.bf16.vlgmr.msra.gmra.mxu3 %v9557_v51  ;;  %v600_v39 = vpop.f32.mrf.mxu0  ;;  %v613_v43 = vpop.f32.mrf.mxu1  ;;  %v11117_v45 = vperm.slane %v9382_v55, 0  ;;  %v11118_v17 = vperm.slane %v9387_v2, 0  ;;  %v3148_v52 = vpack.c.bf16 %v9572_v14, %v9570_v63  ;;  %v11120_v5 = vpack.c.bf16 %v9413_v42, %v9411_v40 }
  0xd9   : > { %3637 = vmatpush.bf16.msra.mxu2 %v11115_v0  ;;  %3650 = vmatpush.bf16.msra.mxu3 %v11116_v3  ;;  %v9602_v23 = vcvt.s32.f32 %v964_v49  ;;  %v9604_v10 = vcvt.s32.f32 %v972_v56  ;;  %v1100_v11 = vunpack.c.3.s8 %v9553_v12  ;;  %v11122_v0 = vperm.slane %v9387_v2, 1 }
  0xda   : > { %v655_v28 = vmul.f32 %v11117_v45, %v600_v39  ;;  %v656_v4 = vmul.f32 %v11118_v17, %v613_v43  ;;  %3613 = vmatpush.bf16.msra.mxu0 %v11119_v46  ;;  %3626 = vmatpush.bf16.msra.mxu1 %v11120_v5  ;;  %v9607_v39 = vcvt.s32.f32 %v1092_v15  ;;  %v11121_v43 = vperm.slane %v9382_v55, 1 }
  0xdb   : > { %v3212_v32 = vpack.c.bf16 %v9594_v27, %v9577_v44  ;;  %v3004_v40 = vpack.c.bf16 %v9604_v10, %v9602_v23  ;;  %v9618_v42 = vcvt.s32.f32 %v1100_v11  ;;  %v1244_v46 = vunpack.c.1.s8 %v9528_v26  ;;  %v940_v44 = vld [vmem:[%s9253_s21 + $0x7c8] sm:$0xff] }
  0xdc   : > { %v671_v38 = vadd.f32 %v11121_v43, %v655_v28  ;;  %v672_v3 = vadd.f32 %v11122_v0, %v656_v4  ;;  %v1364_v49 = vunpack.c.0.s8 %v9537_v13  ;;  %v11123_v2 = vpack.c.bf16 %v9417_v53, %v9415_v50 }
  0xdd   : > { %v11124_v4 = vpack.c.bf16 %v9428_v60, %v9419_v54  ;;  %v9628_v15 = vcvt.s32.f32 %v1236_v37  ;;  %v1372_v45 = vunpack.c.1.s8 %v9537_v13  ;;  %v11125_v26 = vpack.c.bf16 %v9443_v31, %v9435_v1 }
  0xde   : > { %v679_v56 = vmax.f32 %v671_v38, 0.0  ;;  %v680_v55 = vmax.f32 %v672_v3, 0.0  ;;  %3638 = vmatpush.bf16.msra.mxu2 %v11123_v2  ;;  %v11126_v28 = vpack.c.bf16 %v9449_v36, %v9447_v35  ;;  %v3068_v50 = vpack.c.bf16 %v9618_v42, %v9607_v39  ;;  %v9652_v36 = vld [vmem:[%s9253_s21 + $0x4c8] sm:$0xff] }
  0xdf   : > { %3651 = vmatpush.bf16.msra.mxu3 %v11124_v4  ;;  %3614 = vmatpush.bf16.msra.mxu0 %v11125_v26  ;;  %v9639_v53 = vcvt.s32.f32 %v1244_v46  ;;  %v9641_v54 = vcvt.s32.f32 %v1364_v49  ;;  %v948_v60 = vunpack.c.0.s8 %v9550_v34  ;;  %v626_v1 = vpop.f32.mrf.mxu2  ;;  %v639_v31 = vpop.f32.mrf.mxu3  ;;  %v9648_v5 = vcvt.s32.f32 %v1372_v45  ;;  %v9663_v49 = vld [vmem:[%s9253_s21 + $0x5c8] sm:$0xff] }
  0xe0   : > { %3627 = vmatpush.bf16.msra.mxu1 %v11126_v28  ;;  %v9644_v17 = vpack.c.bf16 %v679_v56, %v679_v56  ;;  %v9646_v13 = vpack.c.bf16 %v680_v55, %v680_v55  ;;  %v956_v35 = vunpack.c.1.s8 %v9550_v34  ;;  %v11127_v11 = vperm.slane %v9422_v58, 0  ;;  %v602_v37 = vpop.f32.mrf.mxu0  ;;  %v615_v56 = vpop.f32.mrf.mxu1  ;;  %v868_v42 = vld [vmem:[%s9253_s21 + $0x588] sm:$0xff] }
  0xe1   : > { %v11128_v38 = vperm.slane %v9431_v48, 0  ;;  %v3140_v3 = vpack.c.bf16 %v9639_v53, %v9628_v15  ;;  %v9660_v46 = vcvt.s32.f32 %v948_v60  ;;  %v11129_v34 = vpack.c.bf16 %v9469_v41, %v9467_v59 }
  0xe2   : > { %v657_v43 = vmul.f32 %v11127_v11, %v626_v1  ;;  %v3204_v55 = vpack.c.bf16 %v9648_v5, %v9641_v54  ;;  %v9673_v2 = vcvt.s32.f32 %v956_v35  ;;  %v1076_v4 = vunpack.c.0.s8 %v9553_v12  ;;  %3567 = vmatmul.bf16.vlgmr.msrb.gmra.mxu0 %v9644_v17  ;;  %3580 = vmatmul.bf16.vlgmr.msrb.gmra.mxu1 %v9646_v13 }
  0xe3   : > { %v658_v0 = vmul.f32 %v11128_v38, %v639_v31  ;;  %3639 = vmatpush.bf16.msra.mxu2 %v11129_v34  ;;  %3652 = vmatpush.bf16.msra.mxu3 %v3228_v8  ;;  %v1084_v45 = vunpack.c.1.s8 %v9553_v12  ;;  %v11130_v26 = vperm.slane %v9422_v58, 1  ;;  %v11131_v60 = vperm.slane %v9431_v48, 1 }
  0xe4   : > { %v1572_v59 = vunpack.c.2.s8 %v9652_v36  ;;  %v1580_v61 = vunpack.c.3.s8 %v9652_v36  ;;  %v11132_v8 = vpack.c.bf16 %v9487_v29, %v9483_v7  ;;  %3628 = vmatpush.bf16.msra.mxu1 %v3084_v6  ;;  %v2996_v58 = vpack.c.bf16 %v9673_v2, %v9660_v46  ;;  %v788_v7 = vld [vmem:[%s9253_s21 + $0x308] sm:$0xff] }
  0xe5   : > { %v673_v28 = vadd.f32 %v11130_v26, %v657_v43  ;;  %v674_v41 = vadd.f32 %v11131_v60, %v658_v0  ;;  %v9696_v48 = vcvt.s32.f32 %v1076_v4  ;;  %v9698_v12 = vcvt.s32.f32 %v1084_v45 }
  0xe6   : > { %3615 = vmatpush.bf16.msra.mxu0 %v11132_v8  ;;  %v1700_v1 = vunpack.c.2.s8 %v9663_v49  ;;  %v9701_v11 = vcvt.s32.f32 %v1572_v59  ;;  %v9703_v43 = vcvt.s32.f32 %v1580_v61  ;;  %v11133_v29 = vpack.c.bf16 %v9510_v25, %v9506_v24 }
  0xe7   : > { %v681_v31 = vmax.f32 %v673_v28, 0.0  ;;  %v682_v35 = vmax.f32 %v674_v41, 0.0  ;;  %v11134_v18 = vpack.c.bf16 %v9532_v47, %v9513_v19  ;;  %v3060_v33 = vpack.c.bf16 %v9698_v12, %v9696_v48  ;;  %v628_v34 = vpop.f32.mrf.mxu2  ;;  %v641_v4 = vpop.f32.mrf.mxu3  ;;  %v908_v48 = vld [vmem:[%s9253_s21 + $0x6c8] sm:$0xff] }
  0xe8   : > { %3640 = vmatpush.bf16.msra.mxu2 %v11133_v29  ;;  %v1708_v6 = vunpack.c.3.s8 %v9663_v49  ;;  %v2724_v38 = vcvt.s32.f32 %v1700_v1  ;;  %v1220_v0 = vunpack.c.2.s8 %v9686_v20  ;;  %v3308_v25 = vpack.c.bf16 %v9703_v43, %v9701_v11  ;;  %v836_v43 = vld [vmem:[%s9253_s21 + $0x488] sm:$0xff] }
  0xe9   : > { %3653 = vmatpush.bf16.msra.mxu3 %v11134_v18  ;;  %v9716_v37 = vpack.c.bf16 %v681_v31, %v681_v31  ;;  %v9718_v56 = vpack.c.bf16 %v682_v35, %v682_v35  ;;  %v1228_v24 = vunpack.c.3.s8 %v9686_v20  ;;  %v11135_v19 = vpack.c.bf16 %v9539_v16, %v9534_v62 }
  0xea   : > { %v11136_v47 = vpack.c.bf16 %v9545_v57, %v9541_v21  ;;  %v2732_v45 = vcvt.s32.f32 %v1708_v6  ;;  %v2244_v26 = vcvt.s32.f32 %v1220_v0  ;;  %v1348_v28 = vunpack.c.2.s8 %v788_v7 }
  0xeb   : > { %3616 = vmatpush.bf16.msra.mxu0 %v11135_v19  ;;  %v1356_v60 = vunpack.c.3.s8 %v788_v7  ;;  %3593 = vmatmul.bf16.vlgmr.msrb.gmra.mxu2 %v9716_v37  ;;  %v2252_v41 = vcvt.s32.f32 %v1228_v24  ;;  %v1556_v59 = vunpack.c.0.s8 %v9652_v36  ;;  %v1564_v62 = vunpack.c.1.s8 %v9652_v36 }
  0xec   : > { %3629 = vmatpush.bf16.msra.mxu1 %v11136_v47  ;;  %3606 = vmatmul.bf16.vlgmr.msrb.gmra.mxu3 %v9718_v56  ;;  %v1684_v16 = vunpack.c.0.s8 %v9663_v49  ;;  %v3372_v21 = vpack.c.bf16 %v2732_v45, %v2724_v38  ;;  %v2372_v57 = vcvt.s32.f32 %v1348_v28  ;;  %v1692_v8 = vunpack.c.1.s8 %v9663_v49 }
  0xed   : > { %3641 = vmatpush.bf16.msra.mxu2 %v3148_v52  ;;  %3654 = vmatpush.bf16.msra.mxu3 %v3212_v32  ;;  %v2380_v61 = vcvt.s32.f32 %v1356_v60  ;;  %v3132_v12 = vpack.c.bf16 %v2252_v41, %v2244_v26  ;;  %v2580_v36 = vcvt.s32.f32 %v1556_v59  ;;  %v2588_v1 = vcvt.s32.f32 %v1564_v62  ;;  %v900_v41 = vld [vmem:[%s9253_s21 + $0x688] sm:$0xff] }
  0xee   : > { %v2708_v31 = vcvt.s32.f32 %v1684_v16  ;;  %v2716_v52 = vcvt.s32.f32 %v1692_v8  ;;  %v1204_v63 = vunpack.c.0.s8 %v9686_v20  ;;  %v1212_v14 = vunpack.c.1.s8 %v9686_v20 }
  0xef   : > { %3617 = vmatpush.bf16.msra.mxu0 %v3004_v40  ;;  %v3196_v27 = vpack.c.bf16 %v2380_v61, %v2372_v57  ;;  %v3300_v32 = vpack.c.bf16 %v2588_v1, %v2580_v36  ;;  %v1332_v49 = vunpack.c.0.s8 %v788_v7  ;;  %v1340_v35 = vunpack.c.1.s8 %v788_v7  ;;  %v932_v57 = vld [vmem:[%s9253_s21 + $0x788] sm:$0xff] }
  0xf0   : > { %3630 = vmatpush.bf16.msra.mxu1 %v3068_v50  ;;  %v1828_v11 = vunpack.c.2.s8 %v908_v48  ;;  %v3364_v23 = vpack.c.bf16 %v2716_v52, %v2708_v31  ;;  %v2228_v10 = vcvt.s32.f32 %v1204_v63  ;;  %v2236_v39 = vcvt.s32.f32 %v1212_v14  ;;  %v828_v36 = vld [vmem:[%s9253_s21 + $0x448] sm:$0xff] }
  0xf1   : > { %3642 = vmatpush.bf16.msra.mxu2 %v3140_v3  ;;  %3655 = vmatpush.bf16.msra.mxu3 %v3204_v55  ;;  %v1836_v40 = vunpack.c.3.s8 %v908_v48  ;;  %v2356_v50 = vcvt.s32.f32 %v1332_v49  ;;  %v2364_v20 = vcvt.s32.f32 %v1340_v35  ;;  %v1956_v18 = vunpack.c.2.s8 %v940_v44  ;;  %v860_v49 = vld [vmem:[%s9253_s21 + $0x548] sm:$0xff] }
  0xf2   : > { %v2852_v29 = vcvt.s32.f32 %v1828_v11  ;;  %v3124_v15 = vpack.c.bf16 %v2236_v39, %v2228_v10  ;;  %v1964_v3 = vunpack.c.3.s8 %v940_v44  ;;  %v1540_v7 = vunpack.c.2.s8 %v836_v43 }
  0xf3   : > { %3618 = vmatpush.bf16.msra.mxu0 %v2996_v58  ;;  %v2860_v53 = vcvt.s32.f32 %v1836_v40  ;;  %v3188_v54 = vpack.c.bf16 %v2364_v20, %v2356_v50  ;;  %v2980_v5 = vcvt.s32.f32 %v1956_v18  ;;  %v1548_v55 = vunpack.c.3.s8 %v836_v43 }
  0xf4   : > { %3631 = vmatpush.bf16.msra.mxu1 %v3060_v33  ;;  %v1668_v6 = vunpack.c.2.s8 %v868_v42  ;;  %v2988_v0 = vcvt.s32.f32 %v1964_v3  ;;  %v2564_v24 = vcvt.s32.f32 %v1540_v7  ;;  %v1676_v19 = vunpack.c.3.s8 %v868_v42 }
  0xf5   : > { %3643 = vmatpush.bf16.msra.mxu2 %v3132_v12  ;;  %3656 = vmatpush.bf16.msra.mxu3 %v3196_v27  ;;  %v3436_v38 = vpack.c.bf16 %v2860_v53, %v2852_v29  ;;  %v2572_v46 = vcvt.s32.f32 %v1548_v55  ;;  %v1812_v58 = vunpack.c.0.s8 %v908_v48  ;;  %v1820_v33 = vunpack.c.1.s8 %v908_v48 }
  0xf6   : > { %3619 = vmatmul.bf16.vlgmr.msra.gmra.mxu0 %v9493_v9  ;;  %v2692_v2 = vcvt.s32.f32 %v1668_v6  ;;  %v2700_v47 = vcvt.s32.f32 %v1676_v19  ;;  %v1940_v34 = vunpack.c.0.s8 %v940_v44  ;;  %v1948_v4 = vunpack.c.1.s8 %v940_v44 }
  0xf7   : > { %3663 = vmatpush.bf16.msrb.mxu0 %v3308_v25  ;;  %3632 = vmatmul.bf16.vlgmr.msra.gmra.mxu1 %v9495_v30  ;;  %v3500_v25 = vpack.c.bf16 %v2988_v0, %v2980_v5  ;;  %v3292_v45 = vpack.c.bf16 %v2572_v46, %v2564_v24  ;;  %v2836_v26 = vcvt.s32.f32 %v1812_v58  ;;  %v2844_v28 = vcvt.s32.f32 %v1820_v33  ;;  %v892_v46 = vld [vmem:[%s9253_s21 + $0x648] sm:$0xff] }
  0xf8   : > { %3676 = vmatpush.bf16.msrb.mxu1 %v3372_v21  ;;  %v1524_v60 = vunpack.c.0.s8 %v836_v43  ;;  %v3356_v59 = vpack.c.bf16 %v2700_v47, %v2692_v2  ;;  %v2964_v62 = vcvt.s32.f32 %v1940_v34  ;;  %v2972_v16 = vcvt.s32.f32 %v1948_v4  ;;  %v924_v47 = vld [vmem:[%s9253_s21 + $0x748] sm:$0xff] }
  0xf9   : > { %3644 = vmatpush.bf16.msra.mxu2 %v3124_v15  ;;  %3657 = vmatpush.bf16.msra.mxu3 %v3188_v54  ;;  %v1532_v21 = vunpack.c.1.s8 %v836_v43  ;;  %v3428_v61 = vpack.c.bf16 %v2844_v28, %v2836_v26  ;;  %v1652_v48 = vunpack.c.0.s8 %v868_v42  ;;  %v1660_v12 = vunpack.c.1.s8 %v868_v42  ;;  %v820_v28 = vld [vmem:[%s9253_s21 + $0x408] sm:$0xff] }
  0xfa   : > { %v2548_v8 = vcvt.s32.f32 %v1524_v60  ;;  %v3492_v1 = vpack.c.bf16 %v2972_v16, %v2964_v62  ;;  %v1796_v27 = vunpack.c.2.s8 %v900_v41  ;;  %v1804_v52 = vunpack.c.3.s8 %v900_v41 }
  0xfb   : > { %3664 = vmatpush.bf16.msrb.mxu0 %v3300_v32  ;;  %v2556_v31 = vcvt.s32.f32 %v1532_v21  ;;  %v2676_v63 = vcvt.s32.f32 %v1652_v48  ;;  %v2684_v14 = vcvt.s32.f32 %v1660_v12  ;;  %v1924_v44 = vunpack.c.2.s8 %v932_v57 }
  0xfc   : > { %3677 = vmatpush.bf16.msrb.mxu1 %v3364_v23  ;;  %v1932_v32 = vunpack.c.3.s8 %v932_v57  ;;  %3645 = vmatmul.bf16.vlgmr.msra.gmra.mxu2 %v9555_v22  ;;  %v2820_v11 = vcvt.s32.f32 %v1796_v27  ;;  %v2828_v43 = vcvt.s32.f32 %v1804_v52  ;;  %v1508_v23 = vunpack.c.2.s8 %v828_v36 }
  0xfd   : > { %3689 = vmatpush.bf16.msrb.mxu2 %v3436_v38  ;;  %3702 = vmatpush.bf16.msrb.mxu3 %v3500_v25  ;;  %v3284_v35 = vpack.c.bf16 %v2556_v31, %v2548_v8  ;;  %v3348_v10 = vpack.c.bf16 %v2684_v14, %v2676_v63  ;;  %v2948_v39 = vcvt.s32.f32 %v1924_v44  ;;  %v1516_v42 = vunpack.c.3.s8 %v828_v36  ;;  %v852_v8 = vld [vmem:[%s9253_s21 + $0x508] sm:$0xff] }
  0xfe   : > { %3658 = vmatmul.bf16.vlgmr.msra.gmra.mxu3 %v9557_v51  ;;  %v2956_v40 = vcvt.s32.f32 %v1932_v32  ;;  %v3420_v50 = vpack.c.bf16 %v2828_v43, %v2820_v11  ;;  %v2532_v20 = vcvt.s32.f32 %v1508_v23  ;;  %v1636_v29 = vunpack.c.2.s8 %v860_v49 }
  0xff   : > { %3665 = vmatpush.bf16.msrb.mxu0 %v3292_v45  ;;  %v1644_v18 = vunpack.c.3.s8 %v860_v49  ;;  %v2540_v53 = vcvt.s32.f32 %v1516_v42  ;;  %v1780_v3 = vunpack.c.0.s8 %v900_v41  ;;  %v1788_v7 = vunpack.c.1.s8 %v900_v41 }
 0x100   : > { %3678 = vmatpush.bf16.msrb.mxu1 %v3356_v59  ;;  %v3484_v15 = vpack.c.bf16 %v2956_v40, %v2948_v39  ;;  %v2660_v54 = vcvt.s32.f32 %v1636_v29  ;;  %v1908_v55 = vunpack.c.0.s8 %v932_v57  ;;  %v1916_v6 = vunpack.c.1.s8 %v932_v57 }
 0x101   : > { %3690 = vmatpush.bf16.msrb.mxu2 %v3428_v61  ;;  %3703 = vmatpush.bf16.msrb.mxu3 %v3492_v1  ;;  %v2668_v5 = vcvt.s32.f32 %v1644_v18  ;;  %v3276_v38 = vpack.c.bf16 %v2540_v53, %v2532_v20  ;;  %v2804_v0 = vcvt.s32.f32 %v1780_v3  ;;  %v2812_v24 = vcvt.s32.f32 %v1788_v7 }
 0x102   : > { %v1492_v19 = vunpack.c.0.s8 %v828_v36  ;;  %v2932_v58 = vcvt.s32.f32 %v1908_v55  ;;  %v2940_v33 = vcvt.s32.f32 %v1916_v6  ;;  %v1500_v25 = vunpack.c.1.s8 %v828_v36 }
 0x103   : > { %3666 = vmatpush.bf16.msrb.mxu0 %v3284_v35  ;;  %v3340_v2 = vpack.c.bf16 %v2668_v5, %v2660_v54  ;;  %v3412_v34 = vpack.c.bf16 %v2812_v24, %v2804_v0  ;;  %v1620_v45 = vunpack.c.0.s8 %v860_v49  ;;  %v1628_v26 = vunpack.c.1.s8 %v860_v49  ;;  %v749_v5 = vld [vmem:[%s9253_s21 + $0x1d0] sm:$0xff]  ;;  %v884_v24 = vld [vmem:[%s9253_s21 + $0x608] sm:$0xff] }
 0x104   : > { %3679 = vmatpush.bf16.msrb.mxu1 %v3348_v10  ;;  %v2516_v4 = vcvt.s32.f32 %v1492_v19  ;;  %v3476_v60 = vpack.c.bf16 %v2940_v33, %v2932_v58  ;;  %v2524_v41 = vcvt.s32.f32 %v1500_v25  ;;  %v1764_v59 = vunpack.c.2.s8 %v892_v46 }
 0x105   : > { %3691 = vmatpush.bf16.msrb.mxu2 %v3420_v50  ;;  %3704 = vmatpush.bf16.msrb.mxu3 %v3484_v15  ;;  %v1772_v62 = vunpack.c.3.s8 %v892_v46  ;;  %v2644_v16 = vcvt.s32.f32 %v1620_v45  ;;  %v2652_v21 = vcvt.s32.f32 %v1628_v26  ;;  %v1892_v57 = vunpack.c.2.s8 %v924_v47  ;;  %v717_v15 = vld [vmem:[%s9253_s21 + $0xd0] sm:$0xff] }
 0x106   : > { %v1900_v61 = vunpack.c.3.s8 %v924_v47  ;;  %v3268_v48 = vpack.c.bf16 %v2524_v41, %v2516_v4  ;;  %v2788_v12 = vcvt.s32.f32 %v1764_v59  ;;  %v1476_v1 = vunpack.c.2.s8 %v820_v28  ;;  %v916_v4 = vld [vmem:[%s9253_s21 + $0x708] sm:$0xff] }
 0x107   : > { %3667 = vmatpush.bf16.msrb.mxu0 %v3276_v38  ;;  %v2796_v36 = vcvt.s32.f32 %v1772_v62  ;;  %v3332_v31 = vpack.c.bf16 %v2652_v21, %v2644_v16  ;;  %v2916_v27 = vcvt.s32.f32 %v1892_v57  ;;  %v1484_v63 = vunpack.c.3.s8 %v820_v28 }
 0x108   : > { %3680 = vmatpush.bf16.msrb.mxu1 %v3340_v2  ;;  %v2924_v52 = vcvt.s32.f32 %v1900_v61  ;;  %v2500_v44 = vcvt.s32.f32 %v1476_v1  ;;  %v1604_v32 = vunpack.c.2.s8 %v852_v8  ;;  %v1612_v49 = vunpack.c.3.s8 %v852_v8 }
 0x109   : > { %3692 = vmatpush.bf16.msrb.mxu2 %v3412_v34  ;;  %3705 = vmatpush.bf16.msrb.mxu3 %v3476_v60  ;;  %v3404_v14 = vpack.c.bf16 %v2796_v36, %v2788_v12  ;;  %v2508_v11 = vcvt.s32.f32 %v1484_v63  ;;  %v1748_v43 = vunpack.c.0.s8 %v892_v46  ;;  %v1756_v23 = vunpack.c.1.s8 %v892_v46 }
 0x10a   : > { %v3468_v35 = vpack.c.bf16 %v2924_v52, %v2916_v27  ;;  %v2628_v10 = vcvt.s32.f32 %v1604_v32  ;;  %v2636_v39 = vcvt.s32.f32 %v1612_v49  ;;  %v1876_v40 = vunpack.c.0.s8 %v924_v47 }
 0x10b   : > { %3668 = vmatpush.bf16.msrb.mxu0 %v3268_v48  ;;  %v1884_v42 = vunpack.c.1.s8 %v924_v47  ;;  %v3260_v50 = vpack.c.bf16 %v2508_v11, %v2500_v44  ;;  %v2772_v20 = vcvt.s32.f32 %v1748_v43  ;;  %v2780_v29 = vcvt.s32.f32 %v1756_v23 }
 0x10c   : > { %3681 = vmatpush.bf16.msrb.mxu1 %v3332_v31  ;;  %v1460_v18 = vunpack.c.0.s8 %v820_v28  ;;  %v3324_v53 = vpack.c.bf16 %v2636_v39, %v2628_v10  ;;  %v2900_v3 = vcvt.s32.f32 %v1876_v40  ;;  %v1468_v54 = vunpack.c.1.s8 %v820_v28  ;;  %v813_v39 = vld [vmem:[%s9253_s21 + $0x3d0] sm:$0xff] }
 0x10d   : > { %3693 = vmatpush.bf16.msrb.mxu2 %v3404_v14  ;;  %3706 = vmatpush.bf16.msrb.mxu3 %v3468_v35  ;;  %v2908_v7 = vcvt.s32.f32 %v1884_v42  ;;  %v3396_v55 = vpack.c.bf16 %v2780_v29, %v2772_v20  ;;  %v1588_v38 = vunpack.c.0.s8 %v852_v8  ;;  %v1596_v0 = vunpack.c.1.s8 %v852_v8  ;;  %v781_v35 = vld [vmem:[%s9253_s21 + $0x2d0] sm:$0xff] }
 0x10e   : > { %v2484_v6 = vcvt.s32.f32 %v1460_v18  ;;  %v2492_v46 = vcvt.s32.f32 %v1468_v54  ;;  %v1061_v2 = vunpack.c.2.s8 %v717_v15  ;;  %v1069_v58 = vunpack.c.3.s8 %v717_v15  ;;  %v709_v29 = vld [vmem:[%s9253_s21 + $0x90] sm:$0xff] }
 0x10f   : > { %3669 = vmatpush.bf16.msrb.mxu0 %v3260_v50  ;;  %v3460_v19 = vpack.c.bf16 %v2908_v7, %v2900_v3  ;;  %v2612_v33 = vcvt.s32.f32 %v1588_v38  ;;  %v2620_v25 = vcvt.s32.f32 %v1596_v0  ;;  %v1189_v47 = vunpack.c.2.s8 %v749_v5 }
 0x110   : > { %3682 = vmatpush.bf16.msrb.mxu1 %v3324_v53  ;;  %v1197_v34 = vunpack.c.3.s8 %v749_v5  ;;  %v3252_v45 = vpack.c.bf16 %v2492_v46, %v2484_v6  ;;  %v2085_v26 = vcvt.s32.f32 %v1061_v2  ;;  %v2093_v28 = vcvt.s32.f32 %v1069_v58  ;;  %v741_v6 = vld [vmem:[%s9253_s21 + $0x190] sm:$0xff] }
 0x111   : > { %3694 = vmatpush.bf16.msrb.mxu2 %v3396_v55  ;;  %3707 = vmatpush.bf16.msrb.mxu3 %v3460_v19  ;;  %v1732_v60 = vunpack.c.2.s8 %v884_v24  ;;  %v3316_v41 = vpack.c.bf16 %v2620_v25, %v2612_v33  ;;  %v2213_v59 = vcvt.s32.f32 %v1189_v47  ;;  %v1740_v16 = vunpack.c.3.s8 %v884_v24 }
 0x112   : > { %v2221_v62 = vcvt.s32.f32 %v1197_v34  ;;  %v3053_v21 = vpack.c.bf16 %v2093_v28, %v2085_v26  ;;  %v1860_v61 = vunpack.c.2.s8 %v916_v4  ;;  %v1868_v8 = vunpack.c.3.s8 %v916_v4 }
 0x113   : > { %3670 = vmatpush.bf16.msrb.mxu0 %v3252_v45  ;;  %v2756_v57 = vcvt.s32.f32 %v1732_v60  ;;  %v2764_v12 = vcvt.s32.f32 %v1740_v16  ;;  %v1045_v36 = vunpack.c.0.s8 %v717_v15  ;;  %v1053_v1 = vunpack.c.1.s8 %v717_v15 }
 0x114   : > { %3683 = vmatpush.bf16.msrb.mxu1 %v3316_v41  ;;  %v3117_v48 = vpack.c.bf16 %v2221_v62, %v2213_v59  ;;  %v2884_v31 = vcvt.s32.f32 %v1860_v61  ;;  %v2892_v27 = vcvt.s32.f32 %v1868_v8  ;;  %v1173_v52 = vunpack.c.0.s8 %v749_v5 }
 0x115   : > { %v1181_v63 = vunpack.c.1.s8 %v749_v5  ;;  %v3388_v14 = vpack.c.bf16 %v2764_v12, %v2756_v57  ;;  %v2069_v44 = vcvt.s32.f32 %v1045_v36  ;;  %v2077_v32 = vcvt.s32.f32 %v1053_v1 }
 0x116   : > { %3671 = vmatmul.bf16.vlgmr.msrb.gmra.mxu0 %v9644_v17  ;;  %v1716_v49 = vunpack.c.0.s8 %v884_v24  ;;  %v3452_v11 = vpack.c.bf16 %v2892_v27, %v2884_v31  ;;  %v2197_v43 = vcvt.s32.f32 %v1173_v52  ;;  %v1724_v10 = vunpack.c.1.s8 %v884_v24  ;;  %v805_v27 = vld [vmem:[%s9253_s21 + $0x390] sm:$0xff] }
 0x117   : > { %3715 = vmatpush.bf16.msra.mxu0 %v3053_v21  ;;  %3684 = vmatmul.bf16.vlgmr.msrb.gmra.mxu1 %v9646_v13  ;;  %v2205_v23 = vcvt.s32.f32 %v1181_v63  ;;  %v3045_v40 = vpack.c.bf16 %v2077_v32, %v2069_v44  ;;  %v1844_v50 = vunpack.c.0.s8 %v916_v4  ;;  %v1852_v20 = vunpack.c.1.s8 %v916_v4  ;;  %v701_v32 = vld [vmem:[%s9253_s21 + $0x50] sm:$0xff] }
 0x118   : > { %3728 = vmatpush.bf16.msra.mxu1 %v3117_v48  ;;  %3695 = vmatpush.bf16.msrb.mxu2 %v3388_v14  ;;  %v2740_v42 = vcvt.s32.f32 %v1716_v49  ;;  %v2748_v15 = vcvt.s32.f32 %v1724_v10  ;;  %v1317_v53 = vunpack.c.2.s8 %v781_v35  ;;  %v1325_v3 = vunpack.c.3.s8 %v781_v35  ;;  %v773_v48 = vld [vmem:[%s9253_s21 + $0x290] sm:$0xff] }
 0x119   : > { %3708 = vmatpush.bf16.msrb.mxu3 %v3452_v11  ;;  %v3109_v18 = vpack.c.bf16 %v2205_v23, %v2197_v43  ;;  %v2868_v7 = vcvt.s32.f32 %v1844_v50  ;;  %v2876_v54 = vcvt.s32.f32 %v1852_v20  ;;  %v1445_v5 = vunpack.c.2.s8 %v813_v39 }
 0x11a   : > { %v1453_v55 = vunpack.c.3.s8 %v813_v39  ;;  %v3380_v38 = vpack.c.bf16 %v2748_v15, %v2740_v42  ;;  %v2341_v0 = vcvt.s32.f32 %v1317_v53  ;;  %v2349_v24 = vcvt.s32.f32 %v1325_v3  ;;  %v733_v42 = vld [vmem:[%s9253_s21 + $0x150] sm:$0xff] }
 0x11b   : > { %3716 = vmatpush.bf16.msra.mxu0 %v3045_v40  ;;  %v1029_v19 = vunpack.c.2.s8 %v709_v29  ;;  %v3444_v46 = vpack.c.bf16 %v2876_v54, %v2868_v7  ;;  %v2469_v2 = vcvt.s32.f32 %v1445_v5  ;;  %v1037_v33 = vunpack.c.3.s8 %v709_v29 }
 0x11c   : > { %3729 = vmatpush.bf16.msra.mxu1 %v3109_v18  ;;  %v2477_v58 = vcvt.s32.f32 %v1453_v55  ;;  %3696 = vmatpush.bf16.msrb.mxu2 %v3380_v38  ;;  %v3181_v25 = vpack.c.bf16 %v2349_v24, %v2341_v0  ;;  %v1157_v34 = vunpack.c.2.s8 %v741_v6  ;;  %v1165_v4 = vunpack.c.3.s8 %v741_v6 }
 0x11d   : > { %v2053_v47 = vcvt.s32.f32 %v1029_v19  ;;  %3709 = vmatpush.bf16.msrb.mxu3 %v3444_v46  ;;  %v2061_v26 = vcvt.s32.f32 %v1037_v33  ;;  %v1301_v28 = vunpack.c.0.s8 %v781_v35  ;;  %v1309_v60 = vunpack.c.1.s8 %v781_v35 }
 0x11e   : > { %v3245_v45 = vpack.c.bf16 %v2477_v58, %v2469_v2  ;;  %v2181_v41 = vcvt.s32.f32 %v1157_v34  ;;  %v2189_v59 = vcvt.s32.f32 %v1165_v4  ;;  %v1429_v62 = vunpack.c.0.s8 %v813_v39 }
 0x11f   : > { %v1437_v16 = vunpack.c.1.s8 %v813_v39  ;;  %3697 = vmatmul.bf16.vlgmr.msrb.gmra.mxu2 %v9716_v37  ;;  %v3037_v21 = vpack.c.bf16 %v2061_v26, %v2053_v47  ;;  %v2325_v57 = vcvt.s32.f32 %v1301_v28  ;;  %v2333_v61 = vcvt.s32.f32 %v1309_v60 }
 0x120   : > { %3741 = vmatpush.bf16.msra.mxu2 %v3181_v25  ;;  %v1013_v8 = vunpack.c.0.s8 %v709_v29  ;;  %3710 = vmatmul.bf16.vlgmr.msrb.gmra.mxu3 %v9718_v56  ;;  %v3101_v12 = vpack.c.bf16 %v2189_v59, %v2181_v41  ;;  %v2453_v36 = vcvt.s32.f32 %v1429_v62  ;;  %v1021_v31 = vunpack.c.1.s8 %v709_v29  ;;  %v797_v59 = vld [vmem:[%s9253_s21 + $0x350] sm:$0xff] }
 0x121   : > { %3754 = vmatpush.bf16.msra.mxu3 %v3245_v45  ;;  %v2461_v1 = vcvt.s32.f32 %v1437_v16  ;;  %3717 = vmatpush.bf16.msra.mxu0 %v3037_v21  ;;  %v3173_v52 = vpack.c.bf16 %v2333_v61, %v2325_v57  ;;  %v1141_v14 = vunpack.c.0.s8 %v741_v6  ;;  %v1149_v44 = vunpack.c.1.s8 %v741_v6  ;;  %v765_v45 = vld [vmem:[%s9253_s21 + $0x250] sm:$0xff] }
 0x122   : > { %v2037_v63 = vcvt.s32.f32 %v1013_v8  ;;  %3730 = vmatpush.bf16.msra.mxu1 %v3101_v12  ;;  %v2045_v35 = vcvt.s32.f32 %v1021_v31  ;;  %v1285_v11 = vunpack.c.2.s8 %v773_v48  ;;  %v1293_v43 = vunpack.c.3.s8 %v773_v48  ;;  %v693_v61 = vld [vmem:[%s9253_s21 + $0x10] sm:$0xff] }
 0x123   : > { %v3237_v49 = vpack.c.bf16 %v2461_v1, %v2453_v36  ;;  %v2165_v23 = vcvt.s32.f32 %v1141_v14  ;;  %v2173_v10 = vcvt.s32.f32 %v1149_v44  ;;  %v1413_v39 = vunpack.c.2.s8 %v805_v27 }
 0x124   : > { %3742 = vmatpush.bf16.msra.mxu2 %v3173_v52  ;;  %v1421_v40 = vunpack.c.3.s8 %v805_v27  ;;  %v3029_v50 = vpack.c.bf16 %v2045_v35, %v2037_v63  ;;  %v2309_v20 = vcvt.s32.f32 %v1285_v11  ;;  %v2317_v29 = vcvt.s32.f32 %v1293_v43  ;;  %v725_v63 = vld [vmem:[%s9253_s21 + $0x110] sm:$0xff] }
 0x125   : > { %3755 = vmatpush.bf16.msra.mxu3 %v3237_v49  ;;  %v997_v18 = vunpack.c.2.s8 %v701_v32  ;;  %v3093_v15 = vpack.c.bf16 %v2173_v10, %v2165_v23  ;;  %v2437_v53 = vcvt.s32.f32 %v1413_v39  ;;  %v1005_v7 = vunpack.c.3.s8 %v701_v32 }
 0x126   : > { %v2445_v3 = vcvt.s32.f32 %v1421_v40  ;;  %3718 = vmatpush.bf16.msra.mxu0 %v3029_v50  ;;  %v3165_v54 = vpack.c.bf16 %v2317_v29, %v2309_v20  ;;  %v1125_v55 = vunpack.c.2.s8 %v733_v42  ;;  %v1133_v6 = vunpack.c.3.s8 %v733_v42 }
 0x127   : > { %v2021_v5 = vcvt.s32.f32 %v997_v18  ;;  %3731 = vmatpush.bf16.msra.mxu1 %v3093_v15  ;;  %v2029_v0 = vcvt.s32.f32 %v1005_v7  ;;  %v1269_v24 = vunpack.c.0.s8 %v773_v48  ;;  %v1277_v19 = vunpack.c.1.s8 %v773_v48 }
 0x128   : > { %v3229_v38 = vpack.c.bf16 %v2445_v3, %v2437_v53  ;;  %3743 = vmatpush.bf16.msra.mxu2 %v3165_v54  ;;  %v2149_v46 = vcvt.s32.f32 %v1125_v55  ;;  %v2157_v2 = vcvt.s32.f32 %v1133_v6  ;;  %v1397_v58 = vunpack.c.0.s8 %v805_v27 }
 0x129   : > { %v1405_v33 = vunpack.c.1.s8 %v805_v27  ;;  %v3021_v25 = vpack.c.bf16 %v2029_v0, %v2021_v5  ;;  %v2293_v47 = vcvt.s32.f32 %v1269_v24  ;;  %v2301_v34 = vcvt.s32.f32 %v1277_v19 }
 0x12a   : > { %3756 = vmatpush.bf16.msra.mxu3 %v3229_v38  ;;  %v981_v4 = vunpack.c.0.s8 %v701_v32  ;;  %v3085_v26 = vpack.c.bf16 %v2157_v2, %v2149_v46  ;;  %v2421_v28 = vcvt.s32.f32 %v1397_v58  ;;  %v989_v41 = vunpack.c.1.s8 %v701_v32  ;;  %v845_v38 = vld [vmem:[%s9253_s21 + $0x4d0] sm:$0xff] }
 0x12b   : > { %v2429_v60 = vcvt.s32.f32 %v1405_v33  ;;  %3719 = vmatpush.bf16.msra.mxu0 %v3021_v25  ;;  %v3157_v62 = vpack.c.bf16 %v2301_v34, %v2293_v47  ;;  %v1109_v21 = vunpack.c.0.s8 %v733_v42  ;;  %v1117_v57 = vunpack.c.1.s8 %v733_v42  ;;  %v877_v2 = vld [vmem:[%s9253_s21 + $0x5d0] sm:$0xff] }
 0x12c   : > { %v2005_v16 = vcvt.s32.f32 %v981_v4  ;;  %3732 = vmatpush.bf16.msra.mxu1 %v3085_v26  ;;  %v2013_v48 = vcvt.s32.f32 %v989_v41  ;;  %v1253_v12 = vunpack.c.2.s8 %v765_v45  ;;  %v1261_v36 = vunpack.c.3.s8 %v765_v45  ;;  %v757_v34 = vld [vmem:[%s9253_s21 + $0x210] sm:$0xff] }
 0x12d   : > { %v3221_v8 = vpack.c.bf16 %v2429_v60, %v2421_v28  ;;  %3744 = vmatpush.bf16.msra.mxu2 %v3157_v62  ;;  %v2133_v1 = vcvt.s32.f32 %v1109_v21  ;;  %v2141_v31 = vcvt.s32.f32 %v1117_v57  ;;  %v1381_v27 = vunpack.c.2.s8 %v797_v59 }
 0x12e   : > { %v1389_v52 = vunpack.c.3.s8 %v797_v59  ;;  %v3013_v14 = vpack.c.bf16 %v2013_v48, %v2005_v16  ;;  %v2277_v44 = vcvt.s32.f32 %v1253_v12  ;;  %v2285_v32 = vcvt.s32.f32 %v1261_v36  ;;  %v789_v16 = vld [vmem:[%s9253_s21 + $0x310] sm:$0xff] }
 0x12f   : > { %3757 = vmatpush.bf16.msra.mxu3 %v3221_v8  ;;  %v965_v49 = vunpack.c.2.s8 %v693_v61  ;;  %v3077_v35 = vpack.c.bf16 %v2141_v31, %v2133_v1  ;;  %v2405_v11 = vcvt.s32.f32 %v1381_v27  ;;  %v973_v23 = vunpack.c.3.s8 %v693_v61 }
 0x130   : > { %v2413_v43 = vcvt.s32.f32 %v1389_v52  ;;  %3720 = vmatpush.bf16.msra.mxu0 %v3013_v14  ;;  %v3149_v10 = vpack.c.bf16 %v2285_v32, %v2277_v44  ;;  %v1093_v40 = vunpack.c.2.s8 %v725_v63  ;;  %v1101_v42 = vunpack.c.3.s8 %v725_v63 }
 0x131   : > { %v1989_v39 = vcvt.s32.f32 %v965_v49  ;;  %3733 = vmatpush.bf16.msra.mxu1 %v3077_v35  ;;  %v1997_v20 = vcvt.s32.f32 %v973_v23  ;;  %v1237_v29 = vunpack.c.0.s8 %v765_v45  ;;  %v1245_v18 = vunpack.c.1.s8 %v765_v45 }
 0x132   : > { %v3213_v50 = vpack.c.bf16 %v2413_v43, %v2405_v11  ;;  %3745 = vmatpush.bf16.msra.mxu2 %v3149_v10  ;;  %v2117_v15 = vcvt.s32.f32 %v1093_v40  ;;  %v2125_v53 = vcvt.s32.f32 %v1101_v42  ;;  %v1365_v3 = vunpack.c.0.s8 %v797_v59 }
 0x133   : > { %v1373_v7 = vunpack.c.1.s8 %v797_v59  ;;  %v3005_v54 = vpack.c.bf16 %v1997_v20, %v1989_v39  ;;  %v2261_v5 = vcvt.s32.f32 %v1237_v29  ;;  %v2269_v55 = vcvt.s32.f32 %v1245_v18 }
 0x134   : > { %3758 = vmatpush.bf16.msra.mxu3 %v3213_v50  ;;  %v949_v6 = vunpack.c.0.s8 %v693_v61  ;;  %v3069_v0 = vpack.c.bf16 %v2125_v53, %v2117_v15  ;;  %v2389_v24 = vcvt.s32.f32 %v1365_v3  ;;  %v957_v46 = vunpack.c.1.s8 %v693_v61  ;;  %v909_v50 = vld [vmem:[%s9253_s21 + $0x6d0] sm:$0xff] }
 0x135   : > { %v2397_v19 = vcvt.s32.f32 %v1373_v7  ;;  %3721 = vmatpush.bf16.msra.mxu0 %v3005_v54  ;;  %v3141_v58 = vpack.c.bf16 %v2269_v55, %v2261_v5  ;;  %v1077_v25 = vunpack.c.0.s8 %v725_v63  ;;  %v1085_v47 = vunpack.c.1.s8 %v725_v63  ;;  %v941_v53 = vld [vmem:[%s9253_s21 + $0x7d0] sm:$0xff] }
 0x136   : > { %v1973_v33 = vcvt.s32.f32 %v949_v6  ;;  %3734 = vmatpush.bf16.msra.mxu1 %v3069_v0  ;;  %v1981_v45 = vcvt.s32.f32 %v957_v46  ;;  %v1573_v26 = vunpack.c.2.s8 %v845_v38  ;;  %v1581_v28 = vunpack.c.3.s8 %v845_v38  ;;  %v837_v55 = vld [vmem:[%s9253_s21 + $0x490] sm:$0xff] }
 0x137   : > { %v3205_v4 = vpack.c.bf16 %v2397_v19, %v2389_v24  ;;  %3746 = vmatpush.bf16.msra.mxu2 %v3141_v58  ;;  %v2101_v60 = vcvt.s32.f32 %v1077_v25  ;;  %v2109_v41 = vcvt.s32.f32 %v1085_v47  ;;  %v1701_v59 = vunpack.c.2.s8 %v877_v2 }
 0x138   : > { %v1709_v62 = vunpack.c.3.s8 %v877_v2  ;;  %v2997_v21 = vpack.c.bf16 %v1981_v45, %v1973_v33  ;;  %v2597_v57 = vcvt.s32.f32 %v1573_v26  ;;  %v2605_v61 = vcvt.s32.f32 %v1581_v28  ;;  %v869_v33 = vld [vmem:[%s9253_s21 + $0x590] sm:$0xff] }
 0x139   : > { %3759 = vmatpush.bf16.msra.mxu3 %v3205_v4  ;;  %v1221_v8 = vunpack.c.2.s8 %v757_v34  ;;  %v3061_v48 = vpack.c.bf16 %v2109_v41, %v2101_v60  ;;  %v2725_v12 = vcvt.s32.f32 %v1701_v59  ;;  %v1229_v1 = vunpack.c.3.s8 %v757_v34 }
 0x13a   : > { %v2733_v36 = vcvt.s32.f32 %v1709_v62  ;;  %3722 = vmatpush.bf16.msra.mxu0 %v2997_v21  ;;  %v3309_v31 = vpack.c.bf16 %v2605_v61, %v2597_v57  ;;  %v1349_v52 = vunpack.c.2.s8 %v789_v16  ;;  %v1357_v63 = vunpack.c.3.s8 %v789_v16 }
 0x13b   : > { %v2245_v27 = vcvt.s32.f32 %v1221_v8  ;;  %3735 = vmatpush.bf16.msra.mxu1 %v3061_v48  ;;  %v2253_v44 = vcvt.s32.f32 %v1229_v1  ;;  %v1557_v32 = vunpack.c.0.s8 %v845_v38  ;;  %v1565_v49 = vunpack.c.1.s8 %v845_v38 }
 0x13c   : > { %v3373_v14 = vpack.c.bf16 %v2733_v36, %v2725_v12  ;;  %v2373_v35 = vcvt.s32.f32 %v1349_v52  ;;  %v2381_v11 = vcvt.s32.f32 %v1357_v63  ;;  %v1685_v43 = vunpack.c.0.s8 %v877_v2 }
 0x13d   : > { %v1693_v23 = vunpack.c.1.s8 %v877_v2  ;;  %v3133_v10 = vpack.c.bf16 %v2253_v44, %v2245_v27  ;;  %3723 = vmatmul.bf16.vlgmr.msra.gmra.mxu0 %v9493_v9  ;;  %v2581_v39 = vcvt.s32.f32 %v1557_v32  ;;  %v2589_v40 = vcvt.s32.f32 %v1565_v49 }
 0x13e   : > { %3767 = vmatpush.bf16.msrb.mxu0 %v3309_v31  ;;  %v1205_v42 = vunpack.c.0.s8 %v757_v34  ;;  %v3197_v20 = vpack.c.bf16 %v2381_v11, %v2373_v35  ;;  %3736 = vmatmul.bf16.vlgmr.msra.gmra.mxu1 %v9495_v30  ;;  %v2709_v29 = vcvt.s32.f32 %v1685_v43  ;;  %v1213_v15 = vunpack.c.1.s8 %v757_v34  ;;  %v933_v11 = vld [vmem:[%s9253_s21 + $0x790] sm:$0xff] }
 0x13f   : > { %3780 = vmatpush.bf16.msrb.mxu1 %v3373_v14  ;;  %v2717_v18 = vcvt.s32.f32 %v1693_v23  ;;  %3747 = vmatpush.bf16.msra.mxu2 %v3133_v10  ;;  %v3301_v3 = vpack.c.bf16 %v2589_v40, %v2581_v39  ;;  %v1333_v54 = vunpack.c.0.s8 %v789_v16  ;;  %v1341_v5 = vunpack.c.1.s8 %v789_v16  ;;  %v901_v14 = vld [vmem:[%s9253_s21 + $0x690] sm:$0xff] }
 0x140   : > { %v2229_v7 = vcvt.s32.f32 %v1205_v42  ;;  %3760 = vmatpush.bf16.msra.mxu3 %v3197_v20  ;;  %v2237_v38 = vcvt.s32.f32 %v1213_v15  ;;  %v1829_v0 = vunpack.c.2.s8 %v909_v50  ;;  %v1837_v24 = vunpack.c.3.s8 %v909_v50  ;;  %v829_v40 = vld [vmem:[%s9253_s21 + $0x450] sm:$0xff] }
 0x141   : > { %v3365_v6 = vpack.c.bf16 %v2717_v18, %v2709_v29  ;;  %v2357_v19 = vcvt.s32.f32 %v1333_v54  ;;  %v2365_v46 = vcvt.s32.f32 %v1341_v5  ;;  %v1957_v2 = vunpack.c.2.s8 %v941_v53 }
 0x142   : > { %3768 = vmatpush.bf16.msrb.mxu0 %v3301_v3  ;;  %v1965_v58 = vunpack.c.3.s8 %v941_v53  ;;  %v3125_v25 = vpack.c.bf16 %v2237_v38, %v2229_v7  ;;  %v2853_v47 = vcvt.s32.f32 %v1829_v0  ;;  %v2861_v34 = vcvt.s32.f32 %v1837_v24  ;;  %v861_v7 = vld [vmem:[%s9253_s21 + $0x550] sm:$0xff] }
 0x143   : > { %3781 = vmatpush.bf16.msrb.mxu1 %v3365_v6  ;;  %v1541_v4 = vunpack.c.2.s8 %v837_v55  ;;  %v3189_v45 = vpack.c.bf16 %v2365_v46, %v2357_v19  ;;  %v2981_v26 = vcvt.s32.f32 %v1957_v2  ;;  %v1549_v60 = vunpack.c.3.s8 %v837_v55 }
 0x144   : > { %v2989_v28 = vcvt.s32.f32 %v1965_v58  ;;  %3748 = vmatpush.bf16.msra.mxu2 %v3125_v25  ;;  %v3437_v41 = vpack.c.bf16 %v2861_v34, %v2853_v47  ;;  %v1669_v62 = vunpack.c.2.s8 %v869_v33  ;;  %v1677_v16 = vunpack.c.3.s8 %v869_v33 }
 0x145   : > { %v2565_v59 = vcvt.s32.f32 %v1541_v4  ;;  %3761 = vmatpush.bf16.msra.mxu3 %v3189_v45  ;;  %v2573_v57 = vcvt.s32.f32 %v1549_v60  ;;  %v1813_v61 = vunpack.c.0.s8 %v909_v50  ;;  %v1821_v8 = vunpack.c.1.s8 %v909_v50 }
 0x146   : > { %v3501_v21 = vpack.c.bf16 %v2989_v28, %v2981_v26  ;;  %v2693_v48 = vcvt.s32.f32 %v1669_v62  ;;  %v2701_v12 = vcvt.s32.f32 %v1677_v16  ;;  %v1941_v36 = vunpack.c.0.s8 %v941_v53 }
 0x147   : > { %v1949_v1 = vunpack.c.1.s8 %v941_v53  ;;  %3749 = vmatmul.bf16.vlgmr.msra.gmra.mxu2 %v9555_v22  ;;  %v3293_v31 = vpack.c.bf16 %v2573_v57, %v2565_v59  ;;  %v2837_v27 = vcvt.s32.f32 %v1813_v61  ;;  %v2845_v52 = vcvt.s32.f32 %v1821_v8 }
 0x148   : > { %3793 = vmatpush.bf16.msrb.mxu2 %v3437_v41  ;;  %v1525_v63 = vunpack.c.0.s8 %v837_v55  ;;  %3762 = vmatmul.bf16.vlgmr.msra.gmra.mxu3 %v9557_v51  ;;  %v3357_v44 = vpack.c.bf16 %v2701_v12, %v2693_v48  ;;  %v2965_v32 = vcvt.s32.f32 %v1941_v36  ;;  %v1533_v35 = vunpack.c.1.s8 %v837_v55  ;;  %v925_v12 = vld [vmem:[%s9253_s21 + $0x750] sm:$0xff] }
 0x149   : > { %3806 = vmatpush.bf16.msrb.mxu3 %v3501_v21  ;;  %v2973_v49 = vcvt.s32.f32 %v1949_v1  ;;  %3769 = vmatpush.bf16.msrb.mxu0 %v3293_v31  ;;  %v3429_v43 = vpack.c.bf16 %v2845_v52, %v2837_v27  ;;  %v1653_v10 = vunpack.c.0.s8 %v869_v33  ;;  %v1661_v39 = vunpack.c.1.s8 %v869_v33  ;;  %v893_v21 = vld [vmem:[%s9253_s21 + $0x650] sm:$0xff] }
 0x14a   : > { %v2549_v23 = vcvt.s32.f32 %v1525_v63  ;;  %3782 = vmatpush.bf16.msrb.mxu1 %v3357_v44  ;;  %v2557_v50 = vcvt.s32.f32 %v1533_v35  ;;  %v1797_v20 = vunpack.c.2.s8 %v901_v14  ;;  %v1805_v29 = vunpack.c.3.s8 %v901_v14 }
 0x14b   : > { %v3493_v42 = vpack.c.bf16 %v2973_v49, %v2965_v32  ;;  %v2677_v18 = vcvt.s32.f32 %v1653_v10  ;;  %v2685_v15 = vcvt.s32.f32 %v1661_v39  ;;  %v1925_v53 = vunpack.c.2.s8 %v933_v11  ;;  %v853_v39 = vld [vmem:[%s9253_s21 + $0x510] sm:$0xff] }
 0x14c   : > { %3794 = vmatpush.bf16.msrb.mxu2 %v3429_v43  ;;  %v1933_v3 = vunpack.c.3.s8 %v933_v11  ;;  %v3285_v54 = vpack.c.bf16 %v2557_v50, %v2549_v23  ;;  %v2821_v5 = vcvt.s32.f32 %v1797_v20  ;;  %v2829_v55 = vcvt.s32.f32 %v1805_v29 }
 0x14d   : > { %3807 = vmatpush.bf16.msrb.mxu3 %v3493_v42  ;;  %v1509_v6 = vunpack.c.2.s8 %v829_v40  ;;  %v3349_v38 = vpack.c.bf16 %v2685_v15, %v2677_v18  ;;  %v2949_v0 = vcvt.s32.f32 %v1925_v53  ;;  %v1517_v19 = vunpack.c.3.s8 %v829_v40 }
 0x14e   : > { %v2957_v24 = vcvt.s32.f32 %v1933_v3  ;;  %3770 = vmatpush.bf16.msrb.mxu0 %v3285_v54  ;;  %v3421_v46 = vpack.c.bf16 %v2829_v55, %v2821_v5  ;;  %v1637_v58 = vunpack.c.2.s8 %v861_v7  ;;  %v1645_v33 = vunpack.c.3.s8 %v861_v7  ;;  %v9812_v36 = vpop.f32.mrf.mxu0  ;;  %v9814_v1 = vpop.f32.mrf.mxu1 }
 0x14f   : > { %v2533_v2 = vcvt.s32.f32 %v1509_v6  ;;  %3783 = vmatpush.bf16.msrb.mxu1 %v3349_v38  ;;  %v2541_v47 = vcvt.s32.f32 %v1517_v19  ;;  %v1781_v34 = vunpack.c.0.s8 %v901_v14  ;;  %v1789_v4 = vunpack.c.1.s8 %v901_v14  ;;  %v821_v14 = vld [vmem:[%s9253_s21 + $0x410] sm:$0xff] }
 0x150   : > { %v3485_v25 = vpack.c.bf16 %v2957_v24, %v2949_v0  ;;  %3795 = vmatpush.bf16.msrb.mxu2 %v3421_v46  ;;  %v2661_v45 = vcvt.s32.f32 %v1637_v58  ;;  %v2669_v26 = vcvt.s32.f32 %v1645_v33  ;;  %v1909_v28 = vunpack.c.0.s8 %v933_v11 }
 0x151   : > { %v1917_v60 = vunpack.c.1.s8 %v933_v11  ;;  %v3277_v41 = vpack.c.bf16 %v2541_v47, %v2533_v2  ;;  %v2805_v59 = vcvt.s32.f32 %v1781_v34  ;;  %v2813_v62 = vcvt.s32.f32 %v1789_v4 }
 0x152   : > { %3808 = vmatpush.bf16.msrb.mxu3 %v3485_v25  ;;  %v1493_v16 = vunpack.c.0.s8 %v829_v40  ;;  %v3341_v57 = vpack.c.bf16 %v2669_v26, %v2661_v45  ;;  %v2933_v61 = vcvt.s32.f32 %v1909_v28  ;;  %v1501_v48 = vunpack.c.1.s8 %v829_v40  ;;  %v718_v45 = vld [vmem:[%s9253_s21 + $0xd8] sm:$0xff] }
 0x153   : > { %v2941_v8 = vcvt.s32.f32 %v1917_v60  ;;  %3771 = vmatpush.bf16.msrb.mxu0 %v3277_v41  ;;  %v3413_v31 = vpack.c.bf16 %v2813_v62, %v2805_v59  ;;  %v1621_v52 = vunpack.c.0.s8 %v861_v7  ;;  %v1629_v63 = vunpack.c.1.s8 %v861_v7  ;;  %v750_v59 = vld [vmem:[%s9253_s21 + $0x1d8] sm:$0xff] }
 0x154   : > { %v2517_v27 = vcvt.s32.f32 %v1493_v16  ;;  %3784 = vmatpush.bf16.msrb.mxu1 %v3341_v57  ;;  %v2525_v32 = vcvt.s32.f32 %v1501_v48  ;;  %v1765_v49 = vunpack.c.2.s8 %v893_v21  ;;  %v1773_v35 = vunpack.c.3.s8 %v893_v21 }
 0x155   : > { %v3477_v44 = vpack.c.bf16 %v2941_v8, %v2933_v61  ;;  %3796 = vmatpush.bf16.msrb.mxu2 %v3413_v31  ;;  %v2645_v11 = vcvt.s32.f32 %v1621_v52  ;;  %v2653_v43 = vcvt.s32.f32 %v1629_v63  ;;  %v1893_v23 = vunpack.c.2.s8 %v925_v12  ;;  %v885_v61 = vld [vmem:[%s9253_s21 + $0x610] sm:$0xff] }
 0x156   : > { %v1901_v10 = vunpack.c.3.s8 %v925_v12  ;;  %v3269_v40 = vpack.c.bf16 %v2525_v32, %v2517_v27  ;;  %v2789_v42 = vcvt.s32.f32 %v1765_v49  ;;  %v2797_v50 = vcvt.s32.f32 %v1773_v35  ;;  %v3518_v58 = vpop.f32.mrf.mxu0  ;;  %v3531_v33 = vpop.f32.mrf.mxu1  ;;  %v917_v32 = vld [vmem:[%s9253_s21 + $0x710] sm:$0xff] }
 0x157   : > { %3809 = vmatpush.bf16.msrb.mxu3 %v3477_v44  ;;  %v1477_v20 = vunpack.c.2.s8 %v821_v14  ;;  %v3333_v29 = vpack.c.bf16 %v2653_v43, %v2645_v11  ;;  %v2917_v18 = vcvt.s32.f32 %v1893_v23  ;;  %v1485_v53 = vunpack.c.3.s8 %v821_v14 }
 0x158   : > { %v2925_v15 = vcvt.s32.f32 %v1901_v10  ;;  %3772 = vmatpush.bf16.msrb.mxu0 %v3269_v40  ;;  %v3405_v3 = vpack.c.bf16 %v2797_v50, %v2789_v42  ;;  %v1605_v54 = vunpack.c.2.s8 %v853_v39  ;;  %v1613_v5 = vunpack.c.3.s8 %v853_v39 }
 0x159   : > { %v2501_v7 = vcvt.s32.f32 %v1477_v20  ;;  %3785 = vmatpush.bf16.msrb.mxu1 %v3333_v29  ;;  %v2509_v6 = vcvt.s32.f32 %v1485_v53  ;;  %v1749_v38 = vunpack.c.0.s8 %v893_v21  ;;  %v1757_v0 = vunpack.c.1.s8 %v893_v21 }
 0x15a   : > { %v3469_v55 = vpack.c.bf16 %v2925_v15, %v2917_v18  ;;  %3797 = vmatpush.bf16.msrb.mxu2 %v3405_v3  ;;  %v2629_v24 = vcvt.s32.f32 %v1605_v54  ;;  %v2637_v19 = vcvt.s32.f32 %v1613_v5  ;;  %v1877_v46 = vunpack.c.0.s8 %v925_v12 }
 0x15b   : > { %v1885_v2 = vunpack.c.1.s8 %v925_v12  ;;  %v3261_v25 = vpack.c.bf16 %v2509_v6, %v2501_v7  ;;  %v2773_v47 = vcvt.s32.f32 %v1749_v38  ;;  %v2781_v34 = vcvt.s32.f32 %v1757_v0  ;;  %v9822_v40 = vpop.f32.mrf.mxu2  ;;  %v9824_v42 = vpop.f32.mrf.mxu3 }
 0x15c   : > { %3810 = vmatpush.bf16.msrb.mxu3 %v3469_v55  ;;  %v1461_v4 = vunpack.c.0.s8 %v821_v14  ;;  %v3325_v26 = vpack.c.bf16 %v2637_v19, %v2629_v24  ;;  %v2901_v28 = vcvt.s32.f32 %v1877_v46  ;;  %v1469_v41 = vunpack.c.1.s8 %v821_v14  ;;  %v9828_v46 = vld [vmem:[%s9253_s21 + $0x2d8] sm:$0xff] }
 0x15d   : > { %v2909_v60 = vcvt.s32.f32 %v1885_v2  ;;  %3773 = vmatpush.bf16.msrb.mxu0 %v3261_v25  ;;  %v3397_v62 = vpack.c.bf16 %v2781_v34, %v2773_v47  ;;  %v1589_v21 = vunpack.c.0.s8 %v853_v39  ;;  %v1597_v57 = vunpack.c.1.s8 %v853_v39  ;;  %v814_v47 = vld [vmem:[%s9253_s21 + $0x3d8] sm:$0xff] }
 0x15e   : > { %v2485_v16 = vcvt.s32.f32 %v1461_v4  ;;  %3786 = vmatpush.bf16.msrb.mxu1 %v3325_v26  ;;  %v2493_v48 = vcvt.s32.f32 %v1469_v41  ;;  %v1062_v12 = vunpack.c.2.s8 %v718_v45  ;;  %v1070_v31 = vunpack.c.3.s8 %v718_v45  ;;  %v710_v41 = vld [vmem:[%s9253_s21 + $0x98] sm:$0xff] }
 0x15f   : > { %v3461_v8 = vpack.c.bf16 %v2909_v60, %v2901_v28  ;;  %3798 = vmatpush.bf16.msrb.mxu2 %v3397_v62  ;;  %v2613_v27 = vcvt.s32.f32 %v1589_v21  ;;  %v2621_v52 = vcvt.s32.f32 %v1597_v57  ;;  %v1190_v63 = vunpack.c.2.s8 %v750_v59  ;;  %v9832_v34 = vpop.f32.mrf.mxu0  ;;  %v9834_v4 = vpop.f32.mrf.mxu1 }
 0x160   : > { %v1198_v44 = vunpack.c.3.s8 %v750_v59  ;;  %v3253_v14 = vpack.c.bf16 %v2493_v48, %v2485_v16  ;;  %v2086_v49 = vcvt.s32.f32 %v1062_v12  ;;  %v2094_v35 = vcvt.s32.f32 %v1070_v31  ;;  %v742_v12 = vld [vmem:[%s9253_s21 + $0x198] sm:$0xff] }
 0x161   : > { %3811 = vmatpush.bf16.msrb.mxu3 %v3461_v8  ;;  %v1733_v11 = vunpack.c.2.s8 %v885_v61  ;;  %v3317_v43 = vpack.c.bf16 %v2621_v52, %v2613_v27  ;;  %v2214_v23 = vcvt.s32.f32 %v1190_v63  ;;  %v1741_v39 = vunpack.c.3.s8 %v885_v61 }
 0x162   : > { %v2222_v10 = vcvt.s32.f32 %v1198_v44  ;;  %3774 = vmatpush.bf16.msrb.mxu0 %v3253_v14  ;;  %v3054_v50 = vpack.c.bf16 %v2094_v35, %v2086_v49  ;;  %v1861_v29 = vunpack.c.2.s8 %v917_v32  ;;  %v1869_v18 = vunpack.c.3.s8 %v917_v32 }
 0x163   : > { %v2757_v20 = vcvt.s32.f32 %v1733_v11  ;;  %3787 = vmatpush.bf16.msrb.mxu1 %v3317_v43  ;;  %v2765_v53 = vcvt.s32.f32 %v1741_v39  ;;  %v1046_v3 = vunpack.c.0.s8 %v718_v45  ;;  %v1054_v7 = vunpack.c.1.s8 %v718_v45  ;;  %v3544_v31 = vpop.f32.mrf.mxu2  ;;  %v3557_v27 = vpop.f32.mrf.mxu3 }
 0x164   : > { %v3118_v15 = vpack.c.bf16 %v2222_v10, %v2214_v23  ;;  %v2885_v54 = vcvt.s32.f32 %v1861_v29  ;;  %v2893_v5 = vcvt.s32.f32 %v1869_v18  ;;  %v1174_v55 = vunpack.c.0.s8 %v750_v59 }
 0x165   : > { %v1182_v6 = vunpack.c.1.s8 %v750_v59  ;;  %v3389_v38 = vpack.c.bf16 %v2765_v53, %v2757_v20  ;;  %3775 = vmatmul.bf16.vlgmr.msrb.gmra.mxu0 %v9644_v17  ;;  %v2070_v0 = vcvt.s32.f32 %v1046_v3  ;;  %v2078_v24 = vcvt.s32.f32 %v1054_v7 }
 0x166   : > { %3819 = vmatpush.bf16.msra.mxu0 %v3054_v50  ;;  %v1717_v19 = vunpack.c.0.s8 %v885_v61  ;;  %v3453_v2 = vpack.c.bf16 %v2893_v5, %v2885_v54  ;;  %3788 = vmatmul.bf16.vlgmr.msrb.gmra.mxu1 %v9646_v13  ;;  %v2198_v58 = vcvt.s32.f32 %v1174_v55  ;;  %v1725_v25 = vunpack.c.1.s8 %v885_v61 }
 0x167   : > { %3832 = vmatpush.bf16.msra.mxu1 %v3118_v15  ;;  %v2206_v33 = vcvt.s32.f32 %v1182_v6  ;;  %3799 = vmatpush.bf16.msrb.mxu2 %v3389_v38  ;;  %v3046_v45 = vpack.c.bf16 %v2078_v24, %v2070_v0  ;;  %v1845_v28 = vunpack.c.0.s8 %v917_v32  ;;  %v1853_v60 = vunpack.c.1.s8 %v917_v32  ;;  %v3570_v54 = vpop.f32.mrf.mxu0  ;;  %v3583_v5 = vpop.f32.mrf.mxu1 }
 0x168   : > { %v2741_v26 = vcvt.s32.f32 %v1717_v19  ;;  %3812 = vmatpush.bf16.msrb.mxu3 %v3453_v2  ;;  %v2749_v62 = vcvt.s32.f32 %v1725_v25  ;;  %v1318_v16 = vunpack.c.2.s8 %v9828_v46  ;;  %v1326_v21 = vunpack.c.3.s8 %v9828_v46 }
 0x169   : > { %v3110_v59 = vpack.c.bf16 %v2206_v33, %v2198_v58  ;;  %v2869_v57 = vcvt.s32.f32 %v1845_v28  ;;  %v2877_v61 = vcvt.s32.f32 %v1853_v60  ;;  %v1446_v8 = vunpack.c.2.s8 %v814_v47 }
 0x16a   : > { %3820 = vmatpush.bf16.msra.mxu0 %v3046_v45  ;;  %v1454_v48 = vunpack.c.3.s8 %v814_v47  ;;  %v3381_v52 = vpack.c.bf16 %v2749_v62, %v2741_v26  ;;  %v2342_v63 = vcvt.s32.f32 %v1318_v16  ;;  %v2350_v44 = vcvt.s32.f32 %v1326_v21 }
 0x16b   : > { %3833 = vmatpush.bf16.msra.mxu1 %v3110_v59  ;;  %v1030_v32 = vunpack.c.2.s8 %v710_v41  ;;  %v3445_v14 = vpack.c.bf16 %v2877_v61, %v2869_v57  ;;  %v2470_v49 = vcvt.s32.f32 %v1446_v8  ;;  %v1038_v11 = vunpack.c.3.s8 %v710_v41  ;;  %v702_v59 = vld [vmem:[%s9253_s21 + $0x58] sm:$0xff] }
 0x16c   : > { %v2478_v35 = vcvt.s32.f32 %v1454_v48  ;;  %3800 = vmatpush.bf16.msrb.mxu2 %v3381_v52  ;;  %v3182_v43 = vpack.c.bf16 %v2350_v44, %v2342_v63  ;;  %v1158_v10 = vunpack.c.2.s8 %v742_v12  ;;  %v1166_v39 = vunpack.c.3.s8 %v742_v12  ;;  %v734_v61 = vld [vmem:[%s9253_s21 + $0x158] sm:$0xff] }
 0x16d   : > { %v2054_v23 = vcvt.s32.f32 %v1030_v32  ;;  %3813 = vmatpush.bf16.msrb.mxu3 %v3445_v14  ;;  %v2062_v20 = vcvt.s32.f32 %v1038_v11  ;;  %v9842_v29 = vadd.f32 %v9814_v1, %v9812_v36  ;;  %v1302_v18 = vunpack.c.0.s8 %v9828_v46  ;;  %v774_v36 = vld [vmem:[%s9253_s21 + $0x298] sm:$0xff] }
 0x16e   : > { %v3246_v50 = vpack.c.bf16 %v2478_v35, %v2470_v49  ;;  %v2182_v15 = vcvt.s32.f32 %v1158_v10  ;;  %v2190_v53 = vcvt.s32.f32 %v1166_v39  ;;  %v1310_v3 = vunpack.c.1.s8 %v9828_v46  ;;  %v806_v46 = vld [vmem:[%s9253_s21 + $0x398] sm:$0xff]  ;;  %v9855_v54 = vpop.f32.mrf.mxu2 }
 0x16f   : > { %v1430_v7 = vunpack.c.0.s8 %v814_v47  ;;  %3801 = vmatmul.bf16.vlgmr.msrb.gmra.mxu2 %v9716_v37  ;;  %v3038_v55 = vpack.c.bf16 %v2062_v20, %v2054_v23  ;;  %v2326_v6 = vcvt.s32.f32 %v1302_v18  ;;  %v1438_v38 = vunpack.c.1.s8 %v814_v47  ;;  %v9857_v5 = vpop.f32.mrf.mxu3 }
 0x170   : > { %3845 = vmatpush.bf16.msra.mxu2 %v3182_v43  ;;  %v1014_v0 = vunpack.c.0.s8 %v710_v41  ;;  %3814 = vmatmul.bf16.vlgmr.msrb.gmra.mxu3 %v9718_v56  ;;  %v3102_v1 = vpack.c.bf16 %v2190_v53, %v2182_v15  ;;  %v2334_v24 = vcvt.s32.f32 %v1310_v3  ;;  %v1022_v2 = vunpack.c.1.s8 %v710_v41 }
 0x171   : > { %3858 = vmatpush.bf16.msra.mxu3 %v3246_v50  ;;  %v2454_v19 = vcvt.s32.f32 %v1430_v7  ;;  %3821 = vmatpush.bf16.msra.mxu0 %v3038_v55  ;;  %v2462_v58 = vcvt.s32.f32 %v1438_v38  ;;  %v1142_v25 = vunpack.c.0.s8 %v742_v12  ;;  %v1150_v45 = vunpack.c.1.s8 %v742_v12  ;;  %v9853_v7 = vld [vmem:[%s9253_s21 + $0x258] sm:$0xff] }
 0x172   : > { %v2038_v33 = vcvt.s32.f32 %v1014_v0  ;;  %3834 = vmatpush.bf16.msra.mxu1 %v3102_v1  ;;  %v3174_v26 = vpack.c.bf16 %v2334_v24, %v2326_v6  ;;  %v2046_v28 = vcvt.s32.f32 %v1022_v2  ;;  %v1286_v47 = vunpack.c.2.s8 %v774_v36  ;;  %v798_v2 = vld [vmem:[%s9253_s21 + $0x358] sm:$0xff] }
 0x173   : > { %v1294_v60 = vunpack.c.3.s8 %v774_v36  ;;  %v3238_v62 = vpack.c.bf16 %v2462_v58, %v2454_v19  ;;  %v2166_v16 = vcvt.s32.f32 %v1142_v25  ;;  %v2174_v21 = vcvt.s32.f32 %v1150_v45  ;;  %v694_v45 = vld [vmem:[%s9253_s21 + $0x18] sm:$0xff] }
 0x174   : > { %v1414_v57 = vunpack.c.2.s8 %v806_v46  ;;  %3846 = vmatpush.bf16.msra.mxu2 %v3174_v26  ;;  %v3030_v41 = vpack.c.bf16 %v2046_v28, %v2038_v33  ;;  %v2310_v8 = vcvt.s32.f32 %v1286_v47  ;;  %v1422_v31 = vunpack.c.3.s8 %v806_v46 }
 0x175   : > { %v2318_v48 = vcvt.s32.f32 %v1294_v60  ;;  %3859 = vmatpush.bf16.msra.mxu3 %v3238_v62  ;;  %v3094_v27 = vpack.c.bf16 %v2174_v21, %v2166_v16  ;;  %v998_v12 = vunpack.c.2.s8 %v702_v59  ;;  %v1006_v63 = vunpack.c.3.s8 %v702_v59 }
 0x176   : > { %v2438_v52 = vcvt.s32.f32 %v1414_v57  ;;  %3822 = vmatpush.bf16.msra.mxu0 %v3030_v41  ;;  %v2446_v32 = vcvt.s32.f32 %v1422_v31  ;;  %v1126_v14 = vunpack.c.2.s8 %v734_v61  ;;  %v1134_v49 = vunpack.c.3.s8 %v734_v61 }
 0x177   : > { %v3166_v44 = vpack.c.bf16 %v2318_v48, %v2310_v8  ;;  %3835 = vmatpush.bf16.msra.mxu1 %v3094_v27  ;;  %v2022_v35 = vcvt.s32.f32 %v998_v12  ;;  %v2030_v11 = vcvt.s32.f32 %v1006_v63  ;;  %v1270_v43 = vunpack.c.0.s8 %v774_v36  ;;  %v9869_v48 = vpop.f32.mrf.mxu1 }
 0x178   : > { %v1278_v23 = vunpack.c.1.s8 %v774_v36  ;;  %v3230_v10 = vpack.c.bf16 %v2446_v32, %v2438_v52  ;;  %v2150_v39 = vcvt.s32.f32 %v1126_v14  ;;  %v2158_v50 = vcvt.s32.f32 %v1134_v49  ;;  %v3596_v14 = vpop.f32.mrf.mxu2  ;;  %v3609_v49 = vpop.f32.mrf.mxu3 }
 0x179   : > { %3847 = vmatpush.bf16.msra.mxu2 %v3166_v44  ;;  %v1398_v20 = vunpack.c.0.s8 %v806_v46  ;;  %v3022_v18 = vpack.c.bf16 %v2030_v11, %v2022_v35  ;;  %v2294_v15 = vcvt.s32.f32 %v1270_v43  ;;  %v1406_v3 = vunpack.c.1.s8 %v806_v46 }
 0x17a   : > { %v2302_v53 = vcvt.s32.f32 %v1278_v23  ;;  %3860 = vmatpush.bf16.msra.mxu3 %v3230_v10  ;;  %v3086_v55 = vpack.c.bf16 %v2158_v50, %v2150_v39  ;;  %v982_v38 = vunpack.c.0.s8 %v702_v59  ;;  %v990_v0 = vunpack.c.1.s8 %v702_v59  ;;  %v726_v59 = vld [vmem:[%s9253_s21 + $0x118] sm:$0xff] }
 0x17b   : > { %v2422_v6 = vcvt.s32.f32 %v1398_v20  ;;  %3823 = vmatpush.bf16.msra.mxu0 %v3022_v18  ;;  %v2430_v1 = vcvt.s32.f32 %v1406_v3  ;;  %v1110_v24 = vunpack.c.0.s8 %v734_v61  ;;  %v1118_v19 = vunpack.c.1.s8 %v734_v61  ;;  %v846_v18 = vld [vmem:[%s9253_s21 + $0x4d8] sm:$0xff] }
 0x17c   : > { %v3158_v36 = vpack.c.bf16 %v2302_v53, %v2294_v15  ;;  %3836 = vmatpush.bf16.msra.mxu1 %v3086_v55  ;;  %v2006_v46 = vcvt.s32.f32 %v982_v38  ;;  %v2014_v58 = vcvt.s32.f32 %v990_v0  ;;  %v3543_v33 = vadd.f32 %v9822_v40, %v9842_v29  ;;  %v9867_v29 = vpop.f32.mrf.mxu0 }
 0x17d   : > { %v1254_v25 = vunpack.c.2.s8 %v9853_v7  ;;  %v3222_v26 = vpack.c.bf16 %v2430_v1, %v2422_v6  ;;  %v2134_v28 = vcvt.s32.f32 %v1110_v24  ;;  %v2142_v47 = vcvt.s32.f32 %v1118_v19  ;;  %v878_v24 = vld [vmem:[%s9253_s21 + $0x5d8] sm:$0xff] }
 0x17e   : > { %3848 = vmatpush.bf16.msra.mxu2 %v3158_v36  ;;  %v1262_v60 = vunpack.c.3.s8 %v9853_v7  ;;  %v3014_v62 = vpack.c.bf16 %v2014_v58, %v2006_v46  ;;  %v3556_v16 = vadd.f32 %v9824_v42, %v3543_v33  ;;  %v1382_v57 = vunpack.c.2.s8 %v798_v2 }
 0x17f   : > { %v2278_v21 = vcvt.s32.f32 %v1254_v25  ;;  %3861 = vmatpush.bf16.msra.mxu3 %v3222_v26  ;;  %v3078_v61 = vpack.c.bf16 %v2142_v47, %v2134_v28  ;;  %v1390_v8 = vunpack.c.3.s8 %v798_v2  ;;  %v966_v40 = vunpack.c.2.s8 %v694_v45  ;;  %v758_v25 = vld [vmem:[%s9253_s21 + $0x218] sm:$0xff]  ;;  %v3635_v28 = vpop.f32.mrf.mxu1 }
 0x180   : > { %v2286_v41 = vcvt.s32.f32 %v1262_v60  ;;  %3824 = vmatpush.bf16.msra.mxu0 %v3014_v62  ;;  %v2406_v31 = vcvt.s32.f32 %v1382_v57  ;;  %v974_v27 = vunpack.c.3.s8 %v694_v45  ;;  %v1094_v52 = vunpack.c.2.s8 %v726_v59 }
 0x181   : > { %v1102_v12 = vunpack.c.3.s8 %v726_v59  ;;  %3837 = vmatpush.bf16.msra.mxu1 %v3078_v61  ;;  %v2414_v42 = vcvt.s32.f32 %v1390_v8  ;;  %v1990_v44 = vcvt.s32.f32 %v966_v40  ;;  %v3569_v32 = vadd.f32 %v9832_v34, %v3556_v16 }
 0x182   : > { %v3150_v63 = vpack.c.bf16 %v2286_v41, %v2278_v21  ;;  %v1998_v35 = vcvt.s32.f32 %v974_v27  ;;  %v2118_v11 = vcvt.s32.f32 %v1094_v52  ;;  %v1238_v23 = vunpack.c.0.s8 %v9853_v7 }
 0x183   : > { %v2126_v43 = vcvt.s32.f32 %v1102_v12  ;;  %v3214_v10 = vpack.c.bf16 %v2414_v42, %v2406_v31  ;;  %v9874_v39 = vadd.f32 %v9834_v4, %v3569_v32  ;;  %v1246_v50 = vunpack.c.1.s8 %v9853_v7 }
 0x184   : > { %3849 = vmatpush.bf16.msra.mxu2 %v3150_v63  ;;  %v1366_v20 = vunpack.c.0.s8 %v798_v2  ;;  %v3006_v15 = vpack.c.bf16 %v1998_v35, %v1990_v44  ;;  %v2262_v34 = vcvt.s32.f32 %v1238_v23  ;;  %v1374_v3 = vunpack.c.1.s8 %v798_v2  ;;  %v790_v2 = vld [vmem:[%s9253_s21 + $0x318] sm:$0xff]  ;;  %v3622_v26 = vpop.f32.mrf.mxu0 }
 0x185   : > { %v3070_v53 = vpack.c.bf16 %v2126_v43, %v2118_v11  ;;  %3862 = vmatpush.bf16.msra.mxu3 %v3214_v10  ;;  %v2270_v55 = vcvt.s32.f32 %v1246_v50  ;;  %v950_v38 = vunpack.c.0.s8 %v694_v45  ;;  %v958_v0 = vunpack.c.1.s8 %v694_v45  ;;  %v9893_v26 = vld [vmem:[%s9253_s21 + $0x498] sm:$0xff] }
 0x186   : > { %v2390_v6 = vcvt.s32.f32 %v1366_v20  ;;  %3825 = vmatpush.bf16.msra.mxu0 %v3006_v15  ;;  %v2398_v4 = vcvt.s32.f32 %v1374_v3  ;;  %v1078_v36 = vunpack.c.0.s8 %v726_v59  ;;  %v1086_v1 = vunpack.c.1.s8 %v726_v59  ;;  %v910_v20 = vld [vmem:[%s9253_s21 + $0x6d8] sm:$0xff] }
 0x187   : > { %3838 = vmatpush.bf16.msra.mxu1 %v3070_v53  ;;  %v1574_v7 = vunpack.c.2.s8 %v846_v18  ;;  %v3142_v19 = vpack.c.bf16 %v2270_v55, %v2262_v34  ;;  %v1974_v46 = vcvt.s32.f32 %v950_v38  ;;  %v1982_v58 = vcvt.s32.f32 %v958_v0  ;;  %v9884_v55 = vld [vmem:[%s9253_s21 + $0x7d8] sm:$0xff]  ;;  %v9888_v38 = vpop.f32.mrf.mxu3 }
 0x188   : > { %v1582_v33 = vunpack.c.3.s8 %v846_v18  ;;  %v3206_v47 = vpack.c.bf16 %v2398_v4, %v2390_v6  ;;  %v2102_v60 = vcvt.s32.f32 %v1078_v36  ;;  %v2110_v62 = vcvt.s32.f32 %v1086_v1  ;;  %v9886_v6 = vpop.f32.mrf.mxu2 }
 0x189   : > { %v2598_v16 = vcvt.s32.f32 %v1574_v7  ;;  %3850 = vmatpush.bf16.msra.mxu2 %v3142_v19  ;;  %v2998_v45 = vpack.c.bf16 %v1982_v58, %v1974_v46  ;;  %v1702_v57 = vunpack.c.2.s8 %v878_v24  ;;  %v1710_v61 = vunpack.c.3.s8 %v878_v24 }
 0x18a   : > { %v2606_v21 = vcvt.s32.f32 %v1582_v33  ;;  %3863 = vmatpush.bf16.msra.mxu3 %v3206_v47  ;;  %v3062_v59 = vpack.c.bf16 %v2110_v62, %v2102_v60  ;;  %v1222_v41 = vunpack.c.2.s8 %v758_v25  ;;  %v1230_v8 = vunpack.c.3.s8 %v758_v25  ;;  %v870_v62 = vld [vmem:[%s9253_s21 + $0x598] sm:$0xff] }
 0x18b   : > { %v1350_v40 = vunpack.c.2.s8 %v790_v2  ;;  %3826 = vmatpush.bf16.msra.mxu0 %v2998_v45  ;;  %v2726_v27 = vcvt.s32.f32 %v1702_v57  ;;  %v2734_v52 = vcvt.s32.f32 %v1710_v61  ;;  %v1358_v12 = vunpack.c.3.s8 %v790_v2  ;;  %v8852_v57 = vld [vmem:[%s9329_s15] sm:$0xff] }
 0x18c   : > { %v3310_v31 = vpack.c.bf16 %v2606_v21, %v2598_v16  ;;  %3839 = vmatpush.bf16.msra.mxu1 %v3062_v59  ;;  %v2246_v63 = vcvt.s32.f32 %v1222_v41  ;;  %v2254_v42 = vcvt.s32.f32 %v1230_v8  ;;  %v1558_v32 = vunpack.c.0.s8 %v846_v18 }
 0x18d   : > { %v2374_v44 = vcvt.s32.f32 %v1350_v40  ;;  %v3374_v14 = vpack.c.bf16 %v2734_v52, %v2726_v27  ;;  %v2382_v49 = vcvt.s32.f32 %v1358_v12  ;;  %v1566_v35 = vunpack.c.1.s8 %v846_v18 }
 0x18e   : > { %v1686_v11 = vunpack.c.0.s8 %v878_v24  ;;  %v3134_v43 = vpack.c.bf16 %v2254_v42, %v2246_v63  ;;  %3827 = vmatmul.bf16.vlgmr.msra.gmra.mxu0 %v9493_v9  ;;  %v2582_v23 = vcvt.s32.f32 %v1558_v32  ;;  %v1694_v10 = vunpack.c.1.s8 %v878_v24 }
 0x18f   : > { %3871 = vmatpush.bf16.msrb.mxu0 %v3310_v31  ;;  %v1206_v50 = vunpack.c.0.s8 %v758_v25  ;;  %v3198_v15 = vpack.c.bf16 %v2382_v49, %v2374_v44  ;;  %v2590_v53 = vcvt.s32.f32 %v1566_v35  ;;  %v1214_v3 = vunpack.c.1.s8 %v758_v25  ;;  %3840 = vmatmul.bf16.vlgmr.msra.gmra.mxu1 %v9495_v30  ;;  %v3661_v32 = vpop.f32.mrf.mxu3 }
 0x190   : > { %3884 = vmatpush.bf16.msrb.mxu1 %v3374_v14  ;;  %v2710_v34 = vcvt.s32.f32 %v1686_v11  ;;  %3851 = vmatpush.bf16.msra.mxu2 %v3134_v43  ;;  %v2718_v18 = vcvt.s32.f32 %v1694_v10  ;;  %v1334_v4 = vunpack.c.0.s8 %v790_v2  ;;  %v1342_v36 = vunpack.c.1.s8 %v790_v2 }
 0x191   : > { %v2230_v0 = vcvt.s32.f32 %v1206_v50  ;;  %3864 = vmatpush.bf16.msra.mxu3 %v3198_v15  ;;  %v3302_v1 = vpack.c.bf16 %v2590_v53, %v2582_v23  ;;  %v2238_v7 = vcvt.s32.f32 %v1214_v3  ;;  %v1830_v24 = vunpack.c.2.s8 %v910_v20 }
 0x192   : > { %v1838_v19 = vunpack.c.3.s8 %v910_v20  ;;  %v3366_v46 = vpack.c.bf16 %v2718_v18, %v2710_v34  ;;  %v2358_v58 = vcvt.s32.f32 %v1334_v4  ;;  %v2366_v33 = vcvt.s32.f32 %v1342_v36  ;;  %v902_v34 = vld [vmem:[%s9253_s21 + $0x698] sm:$0xff] }
 0x193   : > { %v1958_v25 = vunpack.c.2.s8 %v9884_v55  ;;  %3872 = vmatpush.bf16.msrb.mxu0 %v3302_v1  ;;  %v3126_v28 = vpack.c.bf16 %v2238_v7, %v2230_v0  ;;  %v2854_v47 = vcvt.s32.f32 %v1830_v24  ;;  %v1966_v2 = vunpack.c.3.s8 %v9884_v55  ;;  %v934_v24 = vld [vmem:[%s9253_s21 + $0x798] sm:$0xff] }
 0x194   : > { %v2862_v60 = vcvt.s32.f32 %v1838_v19  ;;  %3885 = vmatpush.bf16.msrb.mxu1 %v3366_v46  ;;  %v3190_v16 = vpack.c.bf16 %v2366_v33, %v2358_v58  ;;  %v3595_v21 = vadd.f32 %v9855_v54, %v9874_v39  ;;  %v4339_v61 = vperm.slane %v8852_v57, 2  ;;  %v3648_v39 = vpop.f32.mrf.mxu2  ;;  %v830_v58 = vld [vmem:[%s9253_s21 + $0x458] sm:$0xff] }
 0x195   : > { %v2982_v45 = vcvt.s32.f32 %v1958_v25  ;;  %3852 = vmatpush.bf16.msra.mxu2 %v3126_v28  ;;  %v2990_v41 = vcvt.s32.f32 %v1966_v2  ;;  %v4355_v8 = vperm.slane %v8852_v57, 3  ;;  %v1542_v40 = vunpack.c.2.s8 %v9893_v26 }
 0x196   : > { %v3438_v59 = vpack.c.bf16 %v2862_v60, %v2854_v47  ;;  %3865 = vmatpush.bf16.msra.mxu3 %v3190_v16  ;;  %v3608_v31 = vadd.f32 %v9857_v5, %v3595_v21  ;;  %v1550_v27 = vunpack.c.3.s8 %v9893_v26  ;;  %v1670_v52 = vunpack.c.2.s8 %v870_v62  ;;  %v862_v60 = vld [vmem:[%s9253_s21 + $0x558] sm:$0xff] }
 0x197   : > { %v1678_v12 = vunpack.c.3.s8 %v870_v62  ;;  %v3502_v63 = vpack.c.bf16 %v2990_v41, %v2982_v45  ;;  %v2566_v42 = vcvt.s32.f32 %v1542_v40  ;;  %v1814_v44 = vunpack.c.0.s8 %v910_v20 }
 0x198   : > { %v1822_v54 = vunpack.c.1.s8 %v910_v20  ;;  %v4347_v14 = vmul.f32 %v4339_v61, %v3608_v31  ;;  %3853 = vmatmul.bf16.vlgmr.msra.gmra.mxu2 %v9555_v22  ;;  %v2574_v49 = vcvt.s32.f32 %v1550_v27  ;;  %v2694_v35 = vcvt.s32.f32 %v1670_v52 }
 0x199   : > { %3897 = vmatpush.bf16.msrb.mxu2 %v3438_v59  ;;  %v2702_v11 = vcvt.s32.f32 %v1678_v12  ;;  %v2838_v5 = vcvt.s32.f32 %v1814_v44  ;;  %v1942_v23 = vunpack.c.0.s8 %v9884_v55  ;;  %v1950_v10 = vunpack.c.1.s8 %v9884_v55  ;;  %3866 = vmatmul.bf16.vlgmr.msra.gmra.mxu3 %v9557_v51 }
 0x19a   : > { %3910 = vmatpush.bf16.msrb.mxu3 %v3502_v63  ;;  %v2846_v43 = vcvt.s32.f32 %v1822_v54  ;;  %v4363_v50 = vadd.f32 %v4355_v8, %v4347_v14  ;;  %v3294_v20 = vpack.c.bf16 %v2574_v49, %v2566_v42  ;;  %v9909_v53 = vadd.f32 %v9869_v48, %v9867_v29 }
 0x19b   : > { %v3358_v15 = vpack.c.bf16 %v2702_v11, %v2694_v35  ;;  %v2966_v18 = vcvt.s32.f32 %v1942_v23  ;;  %v2974_v0 = vcvt.s32.f32 %v1950_v10  ;;  %v1526_v4 = vunpack.c.0.s8 %v9893_v26  ;;  %v894_v35 = vld [vmem:[%s9253_s21 + $0x658] sm:$0xff] }
 0x19c   : > { %v3430_v3 = vpack.c.bf16 %v2846_v43, %v2838_v5  ;;  %v4371_v36 = vmax.f32 %v4363_v50, 0.0  ;;  %3873 = vmatpush.bf16.msrb.mxu0 %v3294_v20  ;;  %v1534_v55 = vunpack.c.1.s8 %v9893_v26  ;;  %v1654_v1 = vunpack.c.0.s8 %v870_v62 }
 0x19d   : > { %3886 = vmatpush.bf16.msrb.mxu1 %v3358_v15  ;;  %v1662_v7 = vunpack.c.1.s8 %v870_v62  ;;  %v3494_v19 = vpack.c.bf16 %v2974_v0, %v2966_v18  ;;  %v2550_v29 = vcvt.s32.f32 %v1526_v4  ;;  %v1798_v48 = vunpack.c.2.s8 %v902_v34 }
 0x19e   : > { %3898 = vmatpush.bf16.msrb.mxu2 %v3430_v3  ;;  %v1806_v46 = vunpack.c.3.s8 %v902_v34  ;;  %v9916_v33 = vpack.c.bf16 %v4371_v36, %v4371_v36  ;;  %v2558_v25 = vcvt.s32.f32 %v1534_v55  ;;  %v2678_v28 = vcvt.s32.f32 %v1654_v1  ;;  %v822_v36 = vld [vmem:[%s9253_s21 + $0x418] sm:$0xff] }
 0x19f   : > { %v2686_v47 = vcvt.s32.f32 %v1662_v7  ;;  %3911 = vmatpush.bf16.msrb.mxu3 %v3494_v19  ;;  %v2822_v2 = vcvt.s32.f32 %v1798_v48  ;;  %v1926_v45 = vunpack.c.2.s8 %v934_v24  ;;  %v1934_v26 = vunpack.c.3.s8 %v934_v24  ;;  %v854_v19 = vld [vmem:[%s9253_s21 + $0x518] sm:$0xff]  ;;  %v9925_v48 = vpop.f32.mrf.mxu1 }
 0x1a0   : > { %v2830_v16 = vcvt.s32.f32 %v1806_v46  ;;  %v3286_v21 = vpack.c.bf16 %v2558_v25, %v2550_v29  ;;  %v1510_v57 = vunpack.c.2.s8 %v830_v58  ;;  %v1518_v61 = vunpack.c.3.s8 %v830_v58  ;;  %v9923_v29 = vpop.f32.mrf.mxu0 }
 0x1a1   : > { %v3350_v62 = vpack.c.bf16 %v2686_v47, %v2678_v28  ;;  %v2950_v41 = vcvt.s32.f32 %v1926_v45  ;;  %v2958_v8 = vcvt.s32.f32 %v1934_v26  ;;  %v1638_v40 = vunpack.c.2.s8 %v862_v60 }
 0x1a2   : > { %v3422_v59 = vpack.c.bf16 %v2830_v16, %v2822_v2  ;;  %3874 = vmatpush.bf16.msrb.mxu0 %v3286_v21  ;;  %v2534_v31 = vcvt.s32.f32 %v1510_v57  ;;  %v2542_v27 = vcvt.s32.f32 %v1518_v61  ;;  %v1646_v52 = vunpack.c.3.s8 %v862_v60 }
 0x1a3   : > { %3887 = vmatpush.bf16.msrb.mxu1 %v3350_v62  ;;  %v1782_v12 = vunpack.c.0.s8 %v902_v34  ;;  %v3486_v63 = vpack.c.bf16 %v2958_v8, %v2950_v41  ;;  %v2662_v42 = vcvt.s32.f32 %v1638_v40  ;;  %v1790_v44 = vunpack.c.1.s8 %v902_v34  ;;  %v926_v34 = vld [vmem:[%s9253_s21 + $0x758] sm:$0xff] }
 0x1a4   : > { %3899 = vmatpush.bf16.msrb.mxu2 %v3422_v59  ;;  %v1910_v54 = vunpack.c.0.s8 %v934_v24  ;;  %v3278_v39 = vpack.c.bf16 %v2542_v27, %v2534_v31  ;;  %v2670_v32 = vcvt.s32.f32 %v1646_v52  ;;  %v1918_v49 = vunpack.c.1.s8 %v934_v24 }
 0x1a5   : > { %v2806_v14 = vcvt.s32.f32 %v1782_v12  ;;  %3912 = vmatpush.bf16.msrb.mxu3 %v3486_v63  ;;  %v2814_v11 = vcvt.s32.f32 %v1790_v44  ;;  %v1494_v43 = vunpack.c.0.s8 %v830_v58  ;;  %v1502_v23 = vunpack.c.1.s8 %v830_v58 }
 0x1a6   : > { %v2934_v5 = vcvt.s32.f32 %v1910_v54  ;;  %3875 = vmatpush.bf16.msrb.mxu0 %v3278_v39  ;;  %v3342_v10 = vpack.c.bf16 %v2670_v32, %v2662_v42  ;;  %v2942_v50 = vcvt.s32.f32 %v1918_v49  ;;  %v1622_v20 = vunpack.c.0.s8 %v862_v60  ;;  %v719_v54 = vld [vmem:[%s9253_s21 + $0xe0] sm:$0xff] }
 0x1a7   : > { %v1630_v15 = vunpack.c.1.s8 %v862_v60  ;;  %v3414_v3 = vpack.c.bf16 %v2814_v11, %v2806_v14  ;;  %v2518_v18 = vcvt.s32.f32 %v1494_v43  ;;  %v2526_v0 = vcvt.s32.f32 %v1502_v23  ;;  %v751_v11 = vld [vmem:[%s9253_s21 + $0x1e0] sm:$0xff]  ;;  %v3687_v43 = vpop.f32.mrf.mxu1 }
 0x1a8   : > { %v1766_v4 = vunpack.c.2.s8 %v894_v35  ;;  %3888 = vmatpush.bf16.msrb.mxu1 %v3342_v10  ;;  %v3478_v55 = vpack.c.bf16 %v2942_v50, %v2934_v5  ;;  %v2646_v1 = vcvt.s32.f32 %v1622_v20  ;;  %v1774_v24 = vunpack.c.3.s8 %v894_v35  ;;  %v3674_v5 = vpop.f32.mrf.mxu0  ;;  %v886_v20 = vld [vmem:[%s9253_s21 + $0x618] sm:$0xff] }
 0x1a9   : > { %v2654_v7 = vcvt.s32.f32 %v1630_v15  ;;  %3900 = vmatpush.bf16.msrb.mxu2 %v3414_v3  ;;  %v3270_v46 = vpack.c.bf16 %v2526_v0, %v2518_v18  ;;  %v1894_v25 = vunpack.c.2.s8 %v926_v34  ;;  %v1902_v28 = vunpack.c.3.s8 %v926_v34  ;;  %v918_v0 = vld [vmem:[%s9253_s21 + $0x718] sm:$0xff]  ;;  %v9945_v5 = vld [vmem:[%s9253_s21 + $0xa0] sm:$0xff] }
 0x1aa   : > { %v2790_v58 = vcvt.s32.f32 %v1766_v4  ;;  %3913 = vmatpush.bf16.msrb.mxu3 %v3478_v55  ;;  %v2798_v60 = vcvt.s32.f32 %v1774_v24  ;;  %v3647_v2 = vadd.f32 %v9886_v6, %v9909_v53  ;;  %v1478_v16 = vunpack.c.2.s8 %v822_v36 }
 0x1ab   : > { %v3334_v47 = vpack.c.bf16 %v2654_v7, %v2646_v1  ;;  %3876 = vmatpush.bf16.msrb.mxu0 %v3270_v46  ;;  %v2918_v45 = vcvt.s32.f32 %v1894_v25  ;;  %v2926_v26 = vcvt.s32.f32 %v1902_v28  ;;  %v1486_v21 = vunpack.c.3.s8 %v822_v36 }
 0x1ac   : > { %v1606_v62 = vunpack.c.2.s8 %v854_v19  ;;  %v3406_v57 = vpack.c.bf16 %v2798_v60, %v2790_v58  ;;  %v9930_v61 = vadd.f32 %v9888_v38, %v3647_v2  ;;  %v2502_v59 = vcvt.s32.f32 %v1478_v16 }
 0x1ad   : > { %3889 = vmatpush.bf16.msrb.mxu1 %v3334_v47  ;;  %v1614_v41 = vunpack.c.3.s8 %v854_v19  ;;  %v3470_v8 = vpack.c.bf16 %v2926_v26, %v2918_v45  ;;  %v2510_v40 = vcvt.s32.f32 %v1486_v21  ;;  %v1750_v27 = vunpack.c.0.s8 %v894_v35 }
 0x1ae   : > { %v2630_v31 = vcvt.s32.f32 %v1606_v62  ;;  %3901 = vmatpush.bf16.msrb.mxu2 %v3406_v57  ;;  %v1758_v53 = vunpack.c.1.s8 %v894_v35  ;;  %v1878_v52 = vunpack.c.0.s8 %v926_v34  ;;  %v1886_v12 = vunpack.c.1.s8 %v926_v34 }
 0x1af   : > { %v2638_v6 = vcvt.s32.f32 %v1614_v41  ;;  %3914 = vmatpush.bf16.msrb.mxu3 %v3470_v8  ;;  %v3262_v63 = vpack.c.bf16 %v2510_v40, %v2502_v59  ;;  %v2774_v42 = vcvt.s32.f32 %v1750_v27  ;;  %v1462_v44 = vunpack.c.0.s8 %v822_v36  ;;  %v9938_v27 = vpop.f32.mrf.mxu3 }
 0x1b0   : > { %v1470_v38 = vunpack.c.1.s8 %v822_v36  ;;  %v2782_v32 = vcvt.s32.f32 %v1758_v53  ;;  %v2902_v14 = vcvt.s32.f32 %v1878_v52  ;;  %v2910_v49 = vcvt.s32.f32 %v1886_v12 }
 0x1b1   : > { %v3326_v39 = vpack.c.bf16 %v2638_v6, %v2630_v31  ;;  %3877 = vmatpush.bf16.msrb.mxu0 %v3262_v63  ;;  %v2486_v23 = vcvt.s32.f32 %v1462_v44  ;;  %v1590_v10 = vunpack.c.0.s8 %v854_v19  ;;  %v1598_v50 = vunpack.c.1.s8 %v854_v19  ;;  %v9936_v31 = vpop.f32.mrf.mxu2  ;;  %v783_v63 = vld [vmem:[%s9253_s21 + $0x2e0] sm:$0xff] }
 0x1b2   : > { %v2494_v35 = vcvt.s32.f32 %v1470_v38  ;;  %v3398_v15 = vpack.c.bf16 %v2782_v32, %v2774_v42  ;;  %v3462_v34 = vpack.c.bf16 %v2910_v49, %v2902_v14  ;;  %v1063_v3 = vunpack.c.2.s8 %v719_v54 }
 0x1b3   : > { %3890 = vmatpush.bf16.msrb.mxu1 %v3326_v39  ;;  %v1071_v18 = vunpack.c.3.s8 %v719_v54  ;;  %v2614_v36 = vcvt.s32.f32 %v1590_v10  ;;  %v2622_v55 = vcvt.s32.f32 %v1598_v50  ;;  %v1191_v1 = vunpack.c.2.s8 %v751_v11  ;;  %v815_v39 = vld [vmem:[%s9253_s21 + $0x3e0] sm:$0xff] }
 0x1b4   : > { %v3254_v4 = vpack.c.bf16 %v2494_v35, %v2486_v23  ;;  %3902 = vmatpush.bf16.msrb.mxu2 %v3398_v15  ;;  %3915 = vmatpush.bf16.msrb.mxu3 %v3462_v34  ;;  %v2087_v7 = vcvt.s32.f32 %v1063_v3  ;;  %v1199_v46 = vunpack.c.3.s8 %v751_v11  ;;  %v1734_v58 = vunpack.c.2.s8 %v886_v20  ;;  %v743_v3 = vld [vmem:[%s9253_s21 + $0x1a0] sm:$0xff] }
 0x1b5   : > { %v2095_v24 = vcvt.s32.f32 %v1071_v18  ;;  %v3318_v25 = vpack.c.bf16 %v2622_v55, %v2614_v36  ;;  %v2215_v19 = vcvt.s32.f32 %v1191_v1  ;;  %v1742_v28 = vunpack.c.3.s8 %v886_v20 }
 0x1b6   : > { %3878 = vmatpush.bf16.msrb.mxu0 %v3254_v4  ;;  %v1862_v47 = vunpack.c.2.s8 %v918_v0  ;;  %v2223_v2 = vcvt.s32.f32 %v1199_v46  ;;  %v2758_v16 = vcvt.s32.f32 %v1734_v58  ;;  %v1870_v45 = vunpack.c.3.s8 %v918_v0 }
 0x1b7   : > { %v3055_v60 = vpack.c.bf16 %v2095_v24, %v2087_v7  ;;  %3891 = vmatpush.bf16.msrb.mxu1 %v3318_v25  ;;  %v2766_v26 = vcvt.s32.f32 %v1742_v28  ;;  %v1047_v62 = vunpack.c.0.s8 %v719_v54  ;;  %v1055_v57 = vunpack.c.1.s8 %v719_v54 }
 0x1b8   : > { %v2886_v21 = vcvt.s32.f32 %v1862_v47  ;;  %v3119_v59 = vpack.c.bf16 %v2223_v2, %v2215_v19  ;;  %v2894_v41 = vcvt.s32.f32 %v1870_v45  ;;  %v1175_v8 = vunpack.c.0.s8 %v751_v11  ;;  %v3713_v47 = vpop.f32.mrf.mxu3 }
 0x1b9   : > { %v1183_v40 = vunpack.c.1.s8 %v751_v11  ;;  %v3390_v6 = vpack.c.bf16 %v2766_v26, %v2758_v16  ;;  %3879 = vmatmul.bf16.vlgmr.msrb.gmra.mxu0 %v9644_v17  ;;  %v2071_v53 = vcvt.s32.f32 %v1047_v62  ;;  %v2079_v52 = vcvt.s32.f32 %v1055_v57  ;;  %v3700_v28 = vpop.f32.mrf.mxu2 }
 0x1ba   : > { %3923 = vmatpush.bf16.msra.mxu0 %v3055_v60  ;;  %v1718_v12 = vunpack.c.0.s8 %v886_v20  ;;  %v3454_v42 = vpack.c.bf16 %v2894_v41, %v2886_v21  ;;  %v2199_v44 = vcvt.s32.f32 %v1175_v8  ;;  %v1726_v54 = vunpack.c.1.s8 %v886_v20  ;;  %3892 = vmatmul.bf16.vlgmr.msrb.gmra.mxu1 %v9646_v13 }
 0x1bb   : > { %3936 = vmatpush.bf16.msra.mxu1 %v3119_v59  ;;  %v2207_v38 = vcvt.s32.f32 %v1183_v40  ;;  %3903 = vmatpush.bf16.msrb.mxu2 %v3390_v6  ;;  %v3047_v32 = vpack.c.bf16 %v2079_v52, %v2071_v53  ;;  %v1846_v49 = vunpack.c.0.s8 %v918_v0  ;;  %v1854_v11 = vunpack.c.1.s8 %v918_v0  ;;  %v775_v6 = vld [vmem:[%s9253_s21 + $0x2a0] sm:$0xff] }
 0x1bc   : > { %v2742_v14 = vcvt.s32.f32 %v1718_v12  ;;  %3916 = vmatpush.bf16.msrb.mxu3 %v3454_v42  ;;  %v2750_v23 = vcvt.s32.f32 %v1726_v54  ;;  %v1319_v35 = vunpack.c.2.s8 %v783_v63  ;;  %v1327_v10 = vunpack.c.3.s8 %v783_v63  ;;  %v807_v42 = vld [vmem:[%s9253_s21 + $0x3a0] sm:$0xff] }
 0x1bd   : > { %v3111_v43 = vpack.c.bf16 %v2207_v38, %v2199_v44  ;;  %v2870_v50 = vcvt.s32.f32 %v1846_v49  ;;  %v2878_v15 = vcvt.s32.f32 %v1854_v11  ;;  %v1447_v20 = vunpack.c.2.s8 %v815_v39 }
 0x1be   : > { %3924 = vmatpush.bf16.msra.mxu0 %v3047_v32  ;;  %v1455_v34 = vunpack.c.3.s8 %v815_v39  ;;  %v3382_v18 = vpack.c.bf16 %v2750_v23, %v2742_v14  ;;  %v2343_v4 = vcvt.s32.f32 %v1319_v35  ;;  %v2351_v36 = vcvt.s32.f32 %v1327_v10  ;;  %v703_v32 = vld [vmem:[%s9253_s21 + $0x60] sm:$0xff] }
 0x1bf   : > { %3937 = vmatpush.bf16.msra.mxu1 %v3111_v43  ;;  %v1031_v55 = vunpack.c.2.s8 %v9945_v5  ;;  %v3446_v0 = vpack.c.bf16 %v2878_v15, %v2870_v50  ;;  %v2471_v1 = vcvt.s32.f32 %v1447_v20  ;;  %v1039_v24 = vunpack.c.3.s8 %v9945_v5  ;;  %v735_v10 = vld [vmem:[%s9253_s21 + $0x160] sm:$0xff] }
 0x1c0   : > { %v2479_v7 = vcvt.s32.f32 %v1455_v34  ;;  %3904 = vmatpush.bf16.msrb.mxu2 %v3382_v18  ;;  %v3183_v46 = vpack.c.bf16 %v2351_v36, %v2343_v4  ;;  %v1159_v25 = vunpack.c.2.s8 %v743_v3  ;;  %v1167_v19 = vunpack.c.3.s8 %v743_v3 }
 0x1c1   : > { %v2055_v58 = vcvt.s32.f32 %v1031_v55  ;;  %3917 = vmatpush.bf16.msrb.mxu3 %v3446_v0  ;;  %v2063_v2 = vcvt.s32.f32 %v1039_v24  ;;  %v1303_v16 = vunpack.c.0.s8 %v783_v63  ;;  %v1311_v45 = vunpack.c.1.s8 %v783_v63 }
 0x1c2   : > { %v3247_v60 = vpack.c.bf16 %v2479_v7, %v2471_v1  ;;  %v2183_v26 = vcvt.s32.f32 %v1159_v25  ;;  %v2191_v21 = vcvt.s32.f32 %v1167_v19  ;;  %v1431_v62 = vunpack.c.0.s8 %v815_v39 }
 0x1c3   : > { %v1439_v57 = vunpack.c.1.s8 %v815_v39  ;;  %3905 = vmatmul.bf16.vlgmr.msrb.gmra.mxu2 %v9716_v37  ;;  %v3039_v59 = vpack.c.bf16 %v2063_v2, %v2055_v58  ;;  %v2327_v41 = vcvt.s32.f32 %v1303_v16  ;;  %v2335_v8 = vcvt.s32.f32 %v1311_v45  ;;  %v767_v45 = vld [vmem:[%s9253_s21 + $0x260] sm:$0xff] }
 0x1c4   : > { %3949 = vmatpush.bf16.msra.mxu2 %v3183_v46  ;;  %v3673_v40 = vadd.f32 %v9923_v29, %v9930_v61  ;;  %3918 = vmatmul.bf16.vlgmr.msrb.gmra.mxu3 %v9718_v56  ;;  %v3103_v53 = vpack.c.bf16 %v2191_v21, %v2183_v26  ;;  %v2455_v52 = vcvt.s32.f32 %v1431_v62  ;;  %v1015_v63 = vunpack.c.0.s8 %v9945_v5 }
 0x1c5   : > { %3962 = vmatpush.bf16.msra.mxu3 %v3247_v60  ;;  %v2463_v12 = vcvt.s32.f32 %v1439_v57  ;;  %3925 = vmatpush.bf16.msra.mxu0 %v3039_v59  ;;  %v3175_v44 = vpack.c.bf16 %v2335_v8, %v2327_v41  ;;  %v1023_v54 = vunpack.c.1.s8 %v9945_v5  ;;  %v1143_v39 = vunpack.c.0.s8 %v743_v3 }
 0x1c6   : > { %v9958_v38 = vadd.f32 %v9925_v48, %v3673_v40  ;;  %3938 = vmatpush.bf16.msra.mxu1 %v3103_v53  ;;  %v2039_v61 = vcvt.s32.f32 %v1015_v63  ;;  %v1151_v14 = vunpack.c.1.s8 %v743_v3  ;;  %v1287_v49 = vunpack.c.2.s8 %v775_v6 }
 0x1c7   : > { %v3239_v29 = vpack.c.bf16 %v2463_v12, %v2455_v52  ;;  %v2047_v11 = vcvt.s32.f32 %v1023_v54  ;;  %v2167_v43 = vcvt.s32.f32 %v1143_v39  ;;  %v1295_v23 = vunpack.c.3.s8 %v775_v6 }
 0x1c8   : > { %3950 = vmatpush.bf16.msra.mxu2 %v3175_v44  ;;  %v1415_v35 = vunpack.c.2.s8 %v807_v42  ;;  %v2175_v50 = vcvt.s32.f32 %v1151_v14  ;;  %v2311_v15 = vcvt.s32.f32 %v1287_v49  ;;  %v1423_v48 = vunpack.c.3.s8 %v807_v42 }
 0x1c9   : > { %3963 = vmatpush.bf16.msra.mxu3 %v3239_v29  ;;  %v999_v20 = vunpack.c.2.s8 %v703_v32  ;;  %v3031_v34 = vpack.c.bf16 %v2047_v11, %v2039_v61  ;;  %v2319_v5 = vcvt.s32.f32 %v1295_v23  ;;  %v1007_v4 = vunpack.c.3.s8 %v703_v32  ;;  %v695_v29 = vld [vmem:[%s9253_s21 + $0x20] sm:$0xff] }
 0x1ca   : > { %v2439_v18 = vcvt.s32.f32 %v1415_v35  ;;  %v3095_v36 = vpack.c.bf16 %v2175_v50, %v2167_v43  ;;  %v2447_v55 = vcvt.s32.f32 %v1423_v48  ;;  %v1127_v3 = vunpack.c.2.s8 %v735_v10  ;;  %v9967_v11 = vld [vmem:[%s9253_s21 + $0x120] sm:$0xff]  ;;  %v9974_v48 = vpop.f32.mrf.mxu1 }
 0x1cb   : > { %v2023_v0 = vcvt.s32.f32 %v999_v20  ;;  %3926 = vmatpush.bf16.msra.mxu0 %v3031_v34  ;;  %v3167_v1 = vpack.c.bf16 %v2319_v5, %v2311_v15  ;;  %v2031_v7 = vcvt.s32.f32 %v1007_v4  ;;  %v1135_v24 = vunpack.c.3.s8 %v735_v10  ;;  %v9972_v15 = vpop.f32.mrf.mxu0 }
 0x1cc   : > { %v1271_v46 = vunpack.c.0.s8 %v775_v6  ;;  %3939 = vmatpush.bf16.msra.mxu1 %v3095_v36  ;;  %v3231_v58 = vpack.c.bf16 %v2447_v55, %v2439_v18  ;;  %v2151_v25 = vcvt.s32.f32 %v1127_v3  ;;  %v1279_v19 = vunpack.c.1.s8 %v775_v6  ;;  %v799_v6 = vld [vmem:[%s9253_s21 + $0x360] sm:$0xff] }
 0x1cd   : > { %v1399_v28 = vunpack.c.0.s8 %v807_v42  ;;  %3951 = vmatpush.bf16.msra.mxu2 %v3167_v1  ;;  %v3023_v47 = vpack.c.bf16 %v2031_v7, %v2023_v0  ;;  %v2159_v60 = vcvt.s32.f32 %v1135_v24  ;;  %v1407_v16 = vunpack.c.1.s8 %v807_v42 }
 0x1ce   : > { %v2295_v2 = vcvt.s32.f32 %v1271_v46  ;;  %3964 = vmatpush.bf16.msra.mxu3 %v3231_v58  ;;  %v2303_v26 = vcvt.s32.f32 %v1279_v19  ;;  %v983_v62 = vunpack.c.0.s8 %v703_v32  ;;  %v991_v57 = vunpack.c.1.s8 %v703_v32 }
 0x1cf   : > { %v2423_v21 = vcvt.s32.f32 %v1399_v28  ;;  %3927 = vmatpush.bf16.msra.mxu0 %v3023_v47  ;;  %v3087_v59 = vpack.c.bf16 %v2159_v60, %v2151_v25  ;;  %v2431_v41 = vcvt.s32.f32 %v1407_v16  ;;  %v1111_v8 = vunpack.c.0.s8 %v735_v10 }
 0x1d0   : > { %v1119_v40 = vunpack.c.1.s8 %v735_v10  ;;  %v3159_v53 = vpack.c.bf16 %v2303_v26, %v2295_v2  ;;  %v2007_v52 = vcvt.s32.f32 %v983_v62  ;;  %v2015_v12 = vcvt.s32.f32 %v991_v57  ;;  %v8853_v10 = vld [vmem:[%s9329_s15 + $0x8] sm:$0xff]  ;;  %v847_v26 = vld [vmem:[%s9253_s21 + $0x4e0] sm:$0xff] }
 0x1d1   : > { %v1255_v63 = vunpack.c.2.s8 %v767_v45  ;;  %3940 = vmatpush.bf16.msra.mxu1 %v3087_v59  ;;  %v3223_v42 = vpack.c.bf16 %v2431_v41, %v2423_v21  ;;  %v2135_v44 = vcvt.s32.f32 %v1111_v8  ;;  %v1263_v39 = vunpack.c.3.s8 %v767_v45  ;;  %v879_v41 = vld [vmem:[%s9253_s21 + $0x5e0] sm:$0xff] }
 0x1d2   : > { %v2143_v54 = vcvt.s32.f32 %v1119_v40  ;;  %3952 = vmatpush.bf16.msra.mxu2 %v3159_v53  ;;  %v3015_v32 = vpack.c.bf16 %v2015_v12, %v2007_v52  ;;  %v1383_v14 = vunpack.c.2.s8 %v799_v6  ;;  %v1391_v49 = vunpack.c.3.s8 %v799_v6 }
 0x1d3   : > { %v2279_v61 = vcvt.s32.f32 %v1255_v63  ;;  %3965 = vmatpush.bf16.msra.mxu3 %v3223_v42  ;;  %v2287_v23 = vcvt.s32.f32 %v1263_v39  ;;  %v3699_v35 = vadd.f32 %v9936_v31, %v9958_v38  ;;  %v4340_v50 = vperm.slane %v8853_v10, 2  ;;  %v3726_v52 = vpop.f32.mrf.mxu0 }
 0x1d4   : > { %v3079_v43 = vpack.c.bf16 %v2143_v54, %v2135_v44  ;;  %3928 = vmatpush.bf16.msra.mxu0 %v3015_v32  ;;  %v2407_v20 = vcvt.s32.f32 %v1383_v14  ;;  %v2415_v34 = vcvt.s32.f32 %v1391_v49  ;;  %v4356_v5 = vperm.slane %v8853_v10, 3  ;;  %v759_v54 = vld [vmem:[%s9253_s21 + $0x220] sm:$0xff] }
 0x1d5   : > { %v967_v18 = vunpack.c.2.s8 %v695_v29  ;;  %v3151_v4 = vpack.c.bf16 %v2287_v23, %v2279_v61  ;;  %v3712_v36 = vadd.f32 %v9938_v27, %v3699_v35  ;;  %v975_v55 = vunpack.c.3.s8 %v695_v29  ;;  %v791_v14 = vld [vmem:[%s9253_s21 + $0x320] sm:$0xff] }
 0x1d6   : > { %3941 = vmatpush.bf16.msra.mxu1 %v3079_v43  ;;  %v1095_v0 = vunpack.c.2.s8 %v9967_v11  ;;  %v3215_v3 = vpack.c.bf16 %v2415_v34, %v2407_v20  ;;  %v1103_v38 = vunpack.c.3.s8 %v9967_v11  ;;  %v1239_v1 = vunpack.c.0.s8 %v767_v45 }
 0x1d7   : > { %v1991_v31 = vcvt.s32.f32 %v967_v18  ;;  %3953 = vmatpush.bf16.msra.mxu2 %v3151_v4  ;;  %v4348_v7 = vmul.f32 %v4340_v50, %v3712_v36  ;;  %v1999_v24 = vcvt.s32.f32 %v975_v55  ;;  %v1247_v58 = vunpack.c.1.s8 %v767_v45 }
 0x1d8   : > { %v2119_v46 = vcvt.s32.f32 %v1095_v0  ;;  %3966 = vmatpush.bf16.msra.mxu3 %v3215_v3  ;;  %v2127_v25 = vcvt.s32.f32 %v1103_v38  ;;  %v2263_v19 = vcvt.s32.f32 %v1239_v1  ;;  %v1367_v28 = vunpack.c.0.s8 %v799_v6 }
 0x1d9   : > { %v1375_v27 = vunpack.c.1.s8 %v799_v6  ;;  %v4364_v47 = vadd.f32 %v4356_v5, %v4348_v7  ;;  %v3007_v60 = vpack.c.bf16 %v1999_v24, %v1991_v31  ;;  %v2271_v2 = vcvt.s32.f32 %v1247_v58  ;;  %v3739_v6 = vpop.f32.mrf.mxu1  ;;  %v9987_v24 = vpop.f32.mrf.mxu2 }
 0x1da   : > { %v951_v16 = vunpack.c.0.s8 %v695_v29  ;;  %v3071_v21 = vpack.c.bf16 %v2127_v25, %v2119_v46  ;;  %v2391_v62 = vcvt.s32.f32 %v1367_v28  ;;  %v959_v59 = vunpack.c.1.s8 %v695_v29  ;;  %v9989_v46 = vpop.f32.mrf.mxu3 }
 0x1db   : > { %v2399_v57 = vcvt.s32.f32 %v1375_v27  ;;  %v4372_v8 = vmax.f32 %v4364_v47, 0.0  ;;  %3929 = vmatpush.bf16.msra.mxu0 %v3007_v60  ;;  %v3143_v40 = vpack.c.bf16 %v2271_v2, %v2263_v19  ;;  %v1079_v53 = vunpack.c.0.s8 %v9967_v11  ;;  %v911_v27 = vld [vmem:[%s9253_s21 + $0x6e0] sm:$0xff] }
 0x1dc   : > { %v1975_v45 = vcvt.s32.f32 %v951_v16  ;;  %3942 = vmatpush.bf16.msra.mxu1 %v3071_v21  ;;  %v1983_v63 = vcvt.s32.f32 %v959_v59  ;;  %v1087_v42 = vunpack.c.1.s8 %v9967_v11  ;;  %v1575_v44 = vunpack.c.2.s8 %v847_v26  ;;  %v943_v59 = vld [vmem:[%s9253_s21 + $0x7e0] sm:$0xff] }
 0x1dd   : > { %v3207_v12 = vpack.c.bf16 %v2399_v57, %v2391_v62  ;;  %v9984_v39 = vpack.c.bf16 %v4372_v8, %v4372_v8  ;;  %3954 = vmatpush.bf16.msra.mxu2 %v3143_v40  ;;  %v2103_v29 = vcvt.s32.f32 %v1079_v53  ;;  %v1583_v32 = vunpack.c.3.s8 %v847_v26  ;;  %v839_v53 = vld [vmem:[%s9253_s21 + $0x4a0] sm:$0xff] }
 0x1de   : > { %v1703_v61 = vunpack.c.2.s8 %v879_v41  ;;  %v2999_v49 = vpack.c.bf16 %v1983_v63, %v1975_v45  ;;  %v2111_v43 = vcvt.s32.f32 %v1087_v42  ;;  %v2599_v23 = vcvt.s32.f32 %v1575_v44  ;;  %v871_v42 = vld [vmem:[%s9253_s21 + $0x5a0] sm:$0xff] }
 0x1df   : > { %3967 = vmatpush.bf16.msra.mxu3 %v3207_v12  ;;  %v1711_v35 = vunpack.c.3.s8 %v879_v41  ;;  %v2607_v10 = vcvt.s32.f32 %v1583_v32  ;;  %v1223_v20 = vunpack.c.2.s8 %v759_v54  ;;  %v1231_v34 = vunpack.c.3.s8 %v759_v54 }
 0x1e0   : > { %v2727_v50 = vcvt.s32.f32 %v1703_v61  ;;  %3930 = vmatpush.bf16.msra.mxu0 %v2999_v49  ;;  %v3063_v11 = vpack.c.bf16 %v2111_v43, %v2103_v29  ;;  %v1351_v18 = vunpack.c.2.s8 %v791_v14  ;;  %v1359_v4 = vunpack.c.3.s8 %v791_v14 }
 0x1e1   : > { %v2735_v5 = vcvt.s32.f32 %v1711_v35  ;;  %v3311_v36 = vpack.c.bf16 %v2607_v10, %v2599_v23  ;;  %v2247_v55 = vcvt.s32.f32 %v1223_v20  ;;  %v2255_v0 = vcvt.s32.f32 %v1231_v34  ;;  %v3752_v20 = vpop.f32.mrf.mxu2 }
 0x1e2   : > { %v1559_v3 = vunpack.c.0.s8 %v847_v26  ;;  %3943 = vmatpush.bf16.msra.mxu1 %v3063_v11  ;;  %v2375_v38 = vcvt.s32.f32 %v1351_v18  ;;  %v2383_v1 = vcvt.s32.f32 %v1359_v4  ;;  %v1567_v7 = vunpack.c.1.s8 %v847_v26  ;;  %v3765_v34 = vpop.f32.mrf.mxu3 }
 0x1e3   : > { %v3375_v31 = vpack.c.bf16 %v2735_v5, %v2727_v50  ;;  %v3135_v58 = vpack.c.bf16 %v2255_v0, %v2247_v55  ;;  %v1687_v19 = vunpack.c.0.s8 %v879_v41  ;;  %v1695_v28 = vunpack.c.1.s8 %v879_v41  ;;  %3931 = vmatmul.bf16.vlgmr.msra.gmra.mxu0 %v9493_v9 }
 0x1e4   : > { %3975 = vmatpush.bf16.msrb.mxu0 %v3311_v36  ;;  %v2583_v25 = vcvt.s32.f32 %v1559_v3  ;;  %v3199_v47 = vpack.c.bf16 %v2383_v1, %v2375_v38  ;;  %v2591_v60 = vcvt.s32.f32 %v1567_v7  ;;  %v1207_v2 = vunpack.c.0.s8 %v759_v54 }
 0x1e5   : > { %v1215_v16 = vunpack.c.1.s8 %v759_v54  ;;  %3955 = vmatpush.bf16.msra.mxu2 %v3135_v58  ;;  %3944 = vmatmul.bf16.vlgmr.msra.gmra.mxu1 %v9495_v30  ;;  %v2711_v26 = vcvt.s32.f32 %v1687_v19  ;;  %v2719_v21 = vcvt.s32.f32 %v1695_v28  ;;  %v1335_v62 = vunpack.c.0.s8 %v791_v14  ;;  %v903_v58 = vld [vmem:[%s9253_s21 + $0x6a0] sm:$0xff] }
 0x1e6   : > { %3988 = vmatpush.bf16.msrb.mxu1 %v3375_v31  ;;  %v1343_v57 = vunpack.c.1.s8 %v791_v14  ;;  %3968 = vmatpush.bf16.msra.mxu3 %v3199_v47  ;;  %v3303_v41 = vpack.c.bf16 %v2591_v60, %v2583_v25  ;;  %v2231_v8 = vcvt.s32.f32 %v1207_v2  ;;  %v1831_v45 = vunpack.c.2.s8 %v911_v27 }
 0x1e7   : > { %v2239_v40 = vcvt.s32.f32 %v1215_v16  ;;  %v3367_v52 = vpack.c.bf16 %v2719_v21, %v2711_v26  ;;  %v2359_v6 = vcvt.s32.f32 %v1335_v62  ;;  %v1839_v63 = vunpack.c.3.s8 %v911_v27  ;;  %v935_v26 = vld [vmem:[%s9253_s21 + $0x7a0] sm:$0xff] }
 0x1e8   : > { %v2367_v12 = vcvt.s32.f32 %v1343_v57  ;;  %3976 = vmatpush.bf16.msrb.mxu0 %v3303_v41  ;;  %v2855_v54 = vcvt.s32.f32 %v1831_v45  ;;  %v1959_v29 = vunpack.c.2.s8 %v943_v59  ;;  %v1967_v32 = vunpack.c.3.s8 %v943_v59  ;;  %v831_v41 = vld [vmem:[%s9253_s21 + $0x460] sm:$0xff] }
 0x1e9   : > { %v3127_v44 = vpack.c.bf16 %v2239_v40, %v2231_v8  ;;  %v2863_v14 = vcvt.s32.f32 %v1839_v63  ;;  %v1543_v49 = vunpack.c.2.s8 %v839_v53  ;;  %v1551_v43 = vunpack.c.3.s8 %v839_v53  ;;  %v863_v45 = vld [vmem:[%s9253_s21 + $0x560] sm:$0xff] }
 0x1ea   : > { %3989 = vmatpush.bf16.msrb.mxu1 %v3367_v52  ;;  %v3191_v61 = vpack.c.bf16 %v2367_v12, %v2359_v6  ;;  %v2983_v23 = vcvt.s32.f32 %v1959_v29  ;;  %v2991_v35 = vcvt.s32.f32 %v1967_v32  ;;  %v1671_v10 = vunpack.c.2.s8 %v871_v42 }
 0x1eb   : > { %3956 = vmatpush.bf16.msra.mxu2 %v3127_v44  ;;  %v1679_v50 = vunpack.c.3.s8 %v871_v42  ;;  %v3439_v11 = vpack.c.bf16 %v2863_v14, %v2855_v54  ;;  %v2567_v5 = vcvt.s32.f32 %v1543_v49  ;;  %v2575_v18 = vcvt.s32.f32 %v1551_v43 }
 0x1ec   : > { %3969 = vmatpush.bf16.msra.mxu3 %v3191_v61  ;;  %v1815_v4 = vunpack.c.0.s8 %v911_v27  ;;  %v3503_v36 = vpack.c.bf16 %v2991_v35, %v2983_v23  ;;  %v2695_v55 = vcvt.s32.f32 %v1671_v10  ;;  %v1823_v3 = vunpack.c.1.s8 %v911_v27 }
 0x1ed   : > { %v2703_v0 = vcvt.s32.f32 %v1679_v50  ;;  %v3295_v31 = vpack.c.bf16 %v2575_v18, %v2567_v5  ;;  %v1943_v1 = vunpack.c.0.s8 %v943_v59  ;;  %v1951_v7 = vunpack.c.1.s8 %v943_v59 }
 0x1ee   : > { %v2839_v38 = vcvt.s32.f32 %v1815_v4  ;;  %3957 = vmatmul.bf16.vlgmr.msra.gmra.mxu2 %v9555_v22  ;;  %v2847_v19 = vcvt.s32.f32 %v1823_v3  ;;  %v10001_v28 = vadd.f32 %v9974_v48, %v9972_v15  ;;  %v1527_v47 = vunpack.c.0.s8 %v839_v53 }
 0x1ef   : > { %4001 = vmatpush.bf16.msrb.mxu2 %v3439_v11  ;;  %v3359_v25 = vpack.c.bf16 %v2703_v0, %v2695_v55  ;;  %3970 = vmatmul.bf16.vlgmr.msra.gmra.mxu3 %v9557_v51  ;;  %v2967_v27 = vcvt.s32.f32 %v1943_v1  ;;  %v2975_v60 = vcvt.s32.f32 %v1951_v7  ;;  %v1535_v2 = vunpack.c.1.s8 %v839_v53 }
 0x1f0   : > { %4014 = vmatpush.bf16.msrb.mxu3 %v3503_v36  ;;  %3977 = vmatpush.bf16.msrb.mxu0 %v3295_v31  ;;  %v1655_v16 = vunpack.c.0.s8 %v871_v42  ;;  %v3431_v21 = vpack.c.bf16 %v2847_v19, %v2839_v38  ;;  %v2551_v62 = vcvt.s32.f32 %v1527_v47  ;;  %v1663_v57 = vunpack.c.1.s8 %v871_v42  ;;  %v895_v31 = vld [vmem:[%s9253_s21 + $0x660] sm:$0xff] }
 0x1f1   : > { %3990 = vmatpush.bf16.msrb.mxu1 %v3359_v25  ;;  %v1799_v59 = vunpack.c.2.s8 %v903_v58  ;;  %v3495_v8 = vpack.c.bf16 %v2975_v60, %v2967_v27  ;;  %v2559_v40 = vcvt.s32.f32 %v1535_v2  ;;  %v1807_v48 = vunpack.c.3.s8 %v903_v58  ;;  %v927_v19 = vld [vmem:[%s9253_s21 + $0x760] sm:$0xff] }
 0x1f2   : > { %v2679_v15 = vcvt.s32.f32 %v1655_v16  ;;  %v2687_v52 = vcvt.s32.f32 %v1663_v57  ;;  %v1927_v12 = vunpack.c.2.s8 %v935_v26  ;;  %v1935_v63 = vunpack.c.3.s8 %v935_v26  ;;  %v823_v2 = vld [vmem:[%s9253_s21 + $0x420] sm:$0xff] }
 0x1f3   : > { %4002 = vmatpush.bf16.msrb.mxu2 %v3431_v21  ;;  %v2823_v6 = vcvt.s32.f32 %v1799_v59  ;;  %v3287_v53 = vpack.c.bf16 %v2559_v40, %v2551_v62  ;;  %v2831_v44 = vcvt.s32.f32 %v1807_v48  ;;  %v1511_v54 = vunpack.c.2.s8 %v831_v41  ;;  %v855_v40 = vld [vmem:[%s9253_s21 + $0x520] sm:$0xff]  ;;  %v10013_v48 = vpop.f32.mrf.mxu1 }
 0x1f4   : > { %4015 = vmatpush.bf16.msrb.mxu3 %v3495_v8  ;;  %v1519_v29 = vunpack.c.3.s8 %v831_v41  ;;  %v3351_v32 = vpack.c.bf16 %v2687_v52, %v2679_v15  ;;  %v2951_v61 = vcvt.s32.f32 %v1927_v12  ;;  %v2959_v42 = vcvt.s32.f32 %v1935_v63  ;;  %v10011_v15 = vpop.f32.mrf.mxu0 }
 0x1f5   : > { %v1639_v14 = vunpack.c.2.s8 %v863_v45  ;;  %3978 = vmatpush.bf16.msrb.mxu0 %v3287_v53  ;;  %v3423_v49 = vpack.c.bf16 %v2831_v44, %v2823_v6  ;;  %v2535_v43 = vcvt.s32.f32 %v1511_v54  ;;  %v1647_v35 = vunpack.c.3.s8 %v863_v45 }
 0x1f6   : > { %v2543_v23 = vcvt.s32.f32 %v1519_v29  ;;  %3991 = vmatpush.bf16.msrb.mxu1 %v3351_v32  ;;  %v3487_v10 = vpack.c.bf16 %v2959_v42, %v2951_v61  ;;  %v1783_v20 = vunpack.c.0.s8 %v903_v58  ;;  %v1791_v34 = vunpack.c.1.s8 %v903_v58 }
 0x1f7   : > { %v2663_v50 = vcvt.s32.f32 %v1639_v14  ;;  %4003 = vmatpush.bf16.msrb.mxu2 %v3423_v49  ;;  %v2671_v5 = vcvt.s32.f32 %v1647_v35  ;;  %v1911_v18 = vunpack.c.0.s8 %v935_v26  ;;  %v1919_v4 = vunpack.c.1.s8 %v935_v26 }
 0x1f8   : > { %v3279_v11 = vpack.c.bf16 %v2543_v23, %v2535_v43  ;;  %4016 = vmatpush.bf16.msrb.mxu3 %v3487_v10  ;;  %v2807_v36 = vcvt.s32.f32 %v1783_v20  ;;  %v2815_v55 = vcvt.s32.f32 %v1791_v34  ;;  %v1495_v0 = vunpack.c.0.s8 %v831_v41 }
 0x1f9   : > { %v1503_v3 = vunpack.c.1.s8 %v831_v41  ;;  %v3343_v38 = vpack.c.bf16 %v2671_v5, %v2663_v50  ;;  %v2935_v1 = vcvt.s32.f32 %v1911_v18  ;;  %v2943_v7 = vcvt.s32.f32 %v1919_v4 }
 0x1fa   : > { %3979 = vmatpush.bf16.msrb.mxu0 %v3279_v11  ;;  %v1623_v25 = vunpack.c.0.s8 %v863_v45  ;;  %v3415_v58 = vpack.c.bf16 %v2815_v55, %v2807_v36  ;;  %v2519_v47 = vcvt.s32.f32 %v1495_v0  ;;  %v1631_v60 = vunpack.c.1.s8 %v863_v45  ;;  %v720_v11 = vld [vmem:[%s9253_s21 + $0xe8] sm:$0xff] }
 0x1fb   : > { %v2527_v27 = vcvt.s32.f32 %v1503_v3  ;;  %3992 = vmatpush.bf16.msrb.mxu1 %v3343_v38  ;;  %v3479_v16 = vpack.c.bf16 %v2943_v7, %v2935_v1  ;;  %v1767_v21 = vunpack.c.2.s8 %v895_v31  ;;  %v1775_v62 = vunpack.c.3.s8 %v895_v31  ;;  %v752_v55 = vld [vmem:[%s9253_s21 + $0x1e8] sm:$0xff]  ;;  %v887_v1 = vld [vmem:[%s9253_s21 + $0x620] sm:$0xff] }
 0x1fc   : > { %v2647_v26 = vcvt.s32.f32 %v1623_v25  ;;  %4004 = vmatpush.bf16.msrb.mxu2 %v3415_v58  ;;  %v2655_v59 = vcvt.s32.f32 %v1631_v60  ;;  %v1895_v41 = vunpack.c.2.s8 %v927_v19  ;;  %v1903_v8 = vunpack.c.3.s8 %v927_v19  ;;  %v3778_v7 = vpop.f32.mrf.mxu0  ;;  %v3791_v25 = vpop.f32.mrf.mxu1 }
 0x1fd   : > { %v3271_v57 = vpack.c.bf16 %v2527_v27, %v2519_v47  ;;  %4017 = vmatpush.bf16.msrb.mxu3 %v3479_v16  ;;  %v2791_v52 = vcvt.s32.f32 %v1767_v21  ;;  %v2799_v6 = vcvt.s32.f32 %v1775_v62  ;;  %v3751_v45 = vadd.f32 %v9987_v24, %v10001_v28  ;;  %v712_v25 = vld [vmem:[%s9253_s21 + $0xa8] sm:$0xff] }
 0x1fe   : > { %v1479_v12 = vunpack.c.2.s8 %v823_v2  ;;  %v3335_v63 = vpack.c.bf16 %v2655_v59, %v2647_v26  ;;  %v2919_v53 = vcvt.s32.f32 %v1895_v41  ;;  %v2927_v44 = vcvt.s32.f32 %v1903_v8 }
 0x1ff   : > { %3980 = vmatpush.bf16.msrb.mxu0 %v3271_v57  ;;  %v1487_v54 = vunpack.c.3.s8 %v823_v2  ;;  %v3407_v29 = vpack.c.bf16 %v2799_v6, %v2791_v52  ;;  %v10018_v32 = vadd.f32 %v9989_v46, %v3751_v45  ;;  %v1607_v42 = vunpack.c.2.s8 %v855_v40 }
 0x200   : > { %v2503_v61 = vcvt.s32.f32 %v1479_v12  ;;  %3993 = vmatpush.bf16.msrb.mxu1 %v3335_v63  ;;  %v3471_v14 = vpack.c.bf16 %v2927_v44, %v2919_v53  ;;  %v1615_v43 = vunpack.c.3.s8 %v855_v40  ;;  %v1751_v23 = vunpack.c.0.s8 %v895_v31 }
 0x201   : > { %v2511_v49 = vcvt.s32.f32 %v1487_v54  ;;  %4005 = vmatpush.bf16.msrb.mxu2 %v3407_v29  ;;  %v2631_v24 = vcvt.s32.f32 %v1607_v42  ;;  %v1759_v28 = vunpack.c.1.s8 %v895_v31  ;;  %v1879_v35 = vunpack.c.0.s8 %v927_v19 }
 0x202   : > { %v1887_v10 = vunpack.c.1.s8 %v927_v19  ;;  %4018 = vmatpush.bf16.msrb.mxu3 %v3471_v14  ;;  %v2639_v20 = vcvt.s32.f32 %v1615_v43  ;;  %v2775_v46 = vcvt.s32.f32 %v1751_v23  ;;  %v1463_v34 = vunpack.c.0.s8 %v823_v2  ;;  %v10024_v23 = vpop.f32.mrf.mxu2 }
 0x203   : > { %v3263_v50 = vpack.c.bf16 %v2511_v49, %v2503_v61  ;;  %v2783_v5 = vcvt.s32.f32 %v1759_v28  ;;  %v2903_v18 = vcvt.s32.f32 %v1879_v35  ;;  %v1471_v36 = vunpack.c.1.s8 %v823_v2  ;;  %v919_v2 = vld [vmem:[%s9253_s21 + $0x720] sm:$0xff] }
 0x204   : > { %v2911_v4 = vcvt.s32.f32 %v1887_v10  ;;  %v3327_v0 = vpack.c.bf16 %v2639_v20, %v2631_v24  ;;  %v2487_v3 = vcvt.s32.f32 %v1463_v34  ;;  %v1591_v38 = vunpack.c.0.s8 %v855_v40  ;;  %v10026_v24 = vpop.f32.mrf.mxu3  ;;  %v784_v20 = vld [vmem:[%s9253_s21 + $0x2e8] sm:$0xff] }
 0x205   : > { %3981 = vmatpush.bf16.msrb.mxu0 %v3263_v50  ;;  %v1599_v31 = vunpack.c.1.s8 %v855_v40  ;;  %v3399_v19 = vpack.c.bf16 %v2783_v5, %v2775_v46  ;;  %v2495_v47 = vcvt.s32.f32 %v1471_v36  ;;  %v1064_v27 = vunpack.c.2.s8 %v720_v11 }
 0x206   : > { %v3463_v58 = vpack.c.bf16 %v2911_v4, %v2903_v18  ;;  %3994 = vmatpush.bf16.msrb.mxu1 %v3327_v0  ;;  %v2615_v60 = vcvt.s32.f32 %v1591_v38  ;;  %v1072_v26 = vunpack.c.3.s8 %v720_v11  ;;  %v1192_v21 = vunpack.c.2.s8 %v752_v55  ;;  %v816_v18 = vld [vmem:[%s9253_s21 + $0x3e8] sm:$0xff] }
 0x207   : > { %v2623_v16 = vcvt.s32.f32 %v1599_v31  ;;  %4006 = vmatpush.bf16.msrb.mxu2 %v3399_v19  ;;  %v3255_v62 = vpack.c.bf16 %v2495_v47, %v2487_v3  ;;  %v2088_v57 = vcvt.s32.f32 %v1064_v27  ;;  %v1200_v59 = vunpack.c.3.s8 %v752_v55  ;;  %v744_v27 = vld [vmem:[%s9253_s21 + $0x1a8] sm:$0xff] }
 0x208   : > { %4019 = vmatpush.bf16.msrb.mxu3 %v3463_v58  ;;  %v1735_v41 = vunpack.c.2.s8 %v887_v1  ;;  %v2096_v40 = vcvt.s32.f32 %v1072_v26  ;;  %v2216_v52 = vcvt.s32.f32 %v1192_v21  ;;  %v1743_v6 = vunpack.c.3.s8 %v887_v1 }
 0x209   : > { %v3319_v8 = vpack.c.bf16 %v2623_v16, %v2615_v60  ;;  %3982 = vmatpush.bf16.msrb.mxu0 %v3255_v62  ;;  %v2224_v45 = vcvt.s32.f32 %v1200_v59  ;;  %v1863_v63 = vunpack.c.2.s8 %v919_v2  ;;  %v1871_v53 = vunpack.c.3.s8 %v919_v2 }
 0x20a   : > { %v2759_v12 = vcvt.s32.f32 %v1735_v41  ;;  %v3056_v44 = vpack.c.bf16 %v2096_v40, %v2088_v57  ;;  %v2767_v54 = vcvt.s32.f32 %v1743_v6  ;;  %v1048_v29 = vunpack.c.0.s8 %v720_v11  ;;  %v3804_v6 = vpop.f32.mrf.mxu2 }
 0x20b   : > { %3995 = vmatpush.bf16.msrb.mxu1 %v3319_v8  ;;  %v1056_v61 = vunpack.c.1.s8 %v720_v11  ;;  %v3120_v42 = vpack.c.bf16 %v2224_v45, %v2216_v52  ;;  %v2887_v14 = vcvt.s32.f32 %v1863_v63  ;;  %v2895_v49 = vcvt.s32.f32 %v1871_v53 }
 0x20c   : > { %v1176_v43 = vunpack.c.0.s8 %v752_v55  ;;  %v3391_v28 = vpack.c.bf16 %v2767_v54, %v2759_v12  ;;  %v2072_v35 = vcvt.s32.f32 %v1048_v29  ;;  %v1184_v50 = vunpack.c.1.s8 %v752_v55  ;;  %3983 = vmatmul.bf16.vlgmr.msrb.gmra.mxu0 %v9644_v17  ;;  %v3817_v45 = vpop.f32.mrf.mxu3 }
 0x20d   : > { %4027 = vmatpush.bf16.msra.mxu0 %v3056_v44  ;;  %v2080_v10 = vcvt.s32.f32 %v1056_v61  ;;  %v3455_v46 = vpack.c.bf16 %v2895_v49, %v2887_v14  ;;  %v1719_v11 = vunpack.c.0.s8 %v887_v1  ;;  %v1727_v5 = vunpack.c.1.s8 %v887_v1 }
 0x20e   : > { %v2200_v34 = vcvt.s32.f32 %v1176_v43  ;;  %4007 = vmatpush.bf16.msrb.mxu2 %v3391_v28  ;;  %3996 = vmatmul.bf16.vlgmr.msrb.gmra.mxu1 %v9646_v13  ;;  %v2208_v36 = vcvt.s32.f32 %v1184_v50  ;;  %v1847_v0 = vunpack.c.0.s8 %v919_v2  ;;  %v1855_v3 = vunpack.c.1.s8 %v919_v2 }
 0x20f   : > { %4040 = vmatpush.bf16.msra.mxu1 %v3120_v42  ;;  %v3048_v4 = vpack.c.bf16 %v2080_v10, %v2072_v35  ;;  %4020 = vmatpush.bf16.msrb.mxu3 %v3455_v46  ;;  %v2743_v55 = vcvt.s32.f32 %v1719_v11  ;;  %v2751_v38 = vcvt.s32.f32 %v1727_v5  ;;  %v1320_v31 = vunpack.c.2.s8 %v784_v20  ;;  %v776_v35 = vld [vmem:[%s9253_s21 + $0x2a8] sm:$0xff] }
 0x210   : > { %v1328_v7 = vunpack.c.3.s8 %v784_v20  ;;  %v3112_v19 = vpack.c.bf16 %v2208_v36, %v2200_v34  ;;  %v2871_v58 = vcvt.s32.f32 %v1847_v0  ;;  %v2879_v47 = vcvt.s32.f32 %v1855_v3  ;;  %v808_v36 = vld [vmem:[%s9253_s21 + $0x3a8] sm:$0xff] }
 0x211   : > { %4028 = vmatpush.bf16.msra.mxu0 %v3048_v4  ;;  %v1448_v1 = vunpack.c.2.s8 %v816_v18  ;;  %v3383_v60 = vpack.c.bf16 %v2751_v38, %v2743_v55  ;;  %v2344_v16 = vcvt.s32.f32 %v1320_v31  ;;  %v1456_v21 = vunpack.c.3.s8 %v816_v18  ;;  %v704_v38 = vld [vmem:[%s9253_s21 + $0x68] sm:$0xff] }
 0x212   : > { %v2352_v26 = vcvt.s32.f32 %v1328_v7  ;;  %v3447_v62 = vpack.c.bf16 %v2879_v47, %v2871_v58  ;;  %v1032_v2 = vunpack.c.2.s8 %v712_v25  ;;  %v1040_v59 = vunpack.c.3.s8 %v712_v25 }
 0x213   : > { %4041 = vmatpush.bf16.msra.mxu1 %v3112_v19  ;;  %v2472_v57 = vcvt.s32.f32 %v1448_v1  ;;  %4008 = vmatpush.bf16.msrb.mxu2 %v3383_v60  ;;  %v2480_v8 = vcvt.s32.f32 %v1456_v21  ;;  %v1160_v40 = vunpack.c.2.s8 %v744_v27  ;;  %v1168_v52 = vunpack.c.3.s8 %v744_v27  ;;  %v736_v19 = vld [vmem:[%s9253_s21 + $0x168] sm:$0xff] }
 0x214   : > { %v3184_v41 = vpack.c.bf16 %v2352_v26, %v2344_v16  ;;  %4021 = vmatpush.bf16.msrb.mxu3 %v3447_v62  ;;  %v2056_v12 = vcvt.s32.f32 %v1032_v2  ;;  %v2064_v63 = vcvt.s32.f32 %v1040_v59  ;;  %v1304_v53 = vunpack.c.0.s8 %v784_v20 }
 0x215   : > { %v1312_v44 = vunpack.c.1.s8 %v784_v20  ;;  %v3248_v54 = vpack.c.bf16 %v2480_v8, %v2472_v57  ;;  %v2184_v29 = vcvt.s32.f32 %v1160_v40  ;;  %v2192_v61 = vcvt.s32.f32 %v1168_v52 }
 0x216   : > { %v1432_v42 = vunpack.c.0.s8 %v816_v18  ;;  %4009 = vmatmul.bf16.vlgmr.msrb.gmra.mxu2 %v9716_v37  ;;  %v3040_v14 = vpack.c.bf16 %v2064_v63, %v2056_v12  ;;  %v2328_v49 = vcvt.s32.f32 %v1304_v53  ;;  %v1440_v28 = vunpack.c.1.s8 %v816_v18 }
 0x217   : > { %4053 = vmatpush.bf16.msra.mxu2 %v3184_v41  ;;  %v2336_v43 = vcvt.s32.f32 %v1312_v44  ;;  %v3104_v10 = vpack.c.bf16 %v2192_v61, %v2184_v29  ;;  %v3777_v20 = vadd.f32 %v10011_v15, %v10018_v32  ;;  %v1016_v46 = vunpack.c.0.s8 %v712_v25  ;;  %4022 = vmatmul.bf16.vlgmr.msrb.gmra.mxu3 %v9718_v56 }
 0x218   : > { %4066 = vmatpush.bf16.msra.mxu3 %v3248_v54  ;;  %v2456_v50 = vcvt.s32.f32 %v1432_v42  ;;  %4029 = vmatpush.bf16.msra.mxu0 %v3040_v14  ;;  %v2464_v11 = vcvt.s32.f32 %v1440_v28  ;;  %v1024_v5 = vunpack.c.1.s8 %v712_v25  ;;  %v1144_v4 = vunpack.c.0.s8 %v744_v27  ;;  %v768_v14 = vld [vmem:[%s9253_s21 + $0x268] sm:$0xff] }
 0x219   : > { %v3176_v34 = vpack.c.bf16 %v2336_v43, %v2328_v49  ;;  %4042 = vmatpush.bf16.msra.mxu1 %v3104_v10  ;;  %v10041_v18 = vadd.f32 %v10013_v48, %v3777_v20  ;;  %v2040_v0 = vcvt.s32.f32 %v1016_v46  ;;  %v1152_v3 = vunpack.c.1.s8 %v744_v27 }
 0x21a   : > { %v1288_v55 = vunpack.c.2.s8 %v776_v35  ;;  %v3240_v15 = vpack.c.bf16 %v2464_v11, %v2456_v50  ;;  %v2048_v32 = vcvt.s32.f32 %v1024_v5  ;;  %v2168_v31 = vcvt.s32.f32 %v1144_v4  ;;  %v800_v50 = vld [vmem:[%s9253_s21 + $0x368] sm:$0xff] }
 0x21b   : > { %4054 = vmatpush.bf16.msra.mxu2 %v3176_v34  ;;  %v1296_v7 = vunpack.c.3.s8 %v776_v35  ;;  %v2176_v58 = vcvt.s32.f32 %v1152_v3  ;;  %v1416_v1 = vunpack.c.2.s8 %v808_v36  ;;  %v1424_v25 = vunpack.c.3.s8 %v808_v36 }
 0x21c   : > { %v2312_v47 = vcvt.s32.f32 %v1288_v55  ;;  %4067 = vmatpush.bf16.msra.mxu3 %v3240_v15  ;;  %v3032_v60 = vpack.c.bf16 %v2048_v32, %v2040_v0  ;;  %v1000_v26 = vunpack.c.2.s8 %v704_v38  ;;  %v1008_v48 = vunpack.c.3.s8 %v704_v38  ;;  %v696_v15 = vld [vmem:[%s9253_s21 + $0x28] sm:$0xff] }
 0x21d   : > { %v2320_v16 = vcvt.s32.f32 %v1296_v7  ;;  %v3096_v21 = vpack.c.bf16 %v2176_v58, %v2168_v31  ;;  %v2440_v62 = vcvt.s32.f32 %v1416_v1  ;;  %v2448_v27 = vcvt.s32.f32 %v1424_v25  ;;  %v10052_v1 = vpop.f32.mrf.mxu0  ;;  %v10054_v25 = vpop.f32.mrf.mxu1 }
 0x21e   : > { %v1128_v57 = vunpack.c.2.s8 %v736_v19  ;;  %4030 = vmatpush.bf16.msra.mxu0 %v3032_v60  ;;  %v2024_v59 = vcvt.s32.f32 %v1000_v26  ;;  %v2032_v41 = vcvt.s32.f32 %v1008_v48  ;;  %v1136_v8 = vunpack.c.3.s8 %v736_v19 }
 0x21f   : > { %v3168_v2 = vpack.c.bf16 %v2320_v16, %v2312_v47  ;;  %4043 = vmatpush.bf16.msra.mxu1 %v3096_v21  ;;  %v3232_v40 = vpack.c.bf16 %v2448_v27, %v2440_v62  ;;  %v1272_v6 = vunpack.c.0.s8 %v776_v35  ;;  %v1280_v45 = vunpack.c.1.s8 %v776_v35  ;;  %v728_v47 = vld [vmem:[%s9253_s21 + $0x128] sm:$0xff] }
 0x220   : > { %v2152_v52 = vcvt.s32.f32 %v1128_v57  ;;  %v3024_v12 = vpack.c.bf16 %v2032_v41, %v2024_v59  ;;  %v2160_v63 = vcvt.s32.f32 %v1136_v8  ;;  %v1400_v53 = vunpack.c.0.s8 %v808_v36 }
 0x221   : > { %4055 = vmatpush.bf16.msra.mxu2 %v3168_v2  ;;  %v1408_v44 = vunpack.c.1.s8 %v808_v36  ;;  %4068 = vmatpush.bf16.msra.mxu3 %v3232_v40  ;;  %v2296_v54 = vcvt.s32.f32 %v1272_v6  ;;  %v2304_v29 = vcvt.s32.f32 %v1280_v45  ;;  %v984_v61 = vunpack.c.0.s8 %v704_v38 }
 0x222   : > { %v992_v42 = vunpack.c.1.s8 %v704_v38  ;;  %4031 = vmatpush.bf16.msra.mxu0 %v3024_v12  ;;  %v3088_v49 = vpack.c.bf16 %v2160_v63, %v2152_v52  ;;  %v2424_v43 = vcvt.s32.f32 %v1400_v53  ;;  %v1112_v10 = vunpack.c.0.s8 %v736_v19 }
 0x223   : > { %v2432_v28 = vcvt.s32.f32 %v1408_v44  ;;  %v3160_v35 = vpack.c.bf16 %v2304_v29, %v2296_v54  ;;  %v2008_v20 = vcvt.s32.f32 %v984_v61  ;;  %v1120_v34 = vunpack.c.1.s8 %v736_v19  ;;  %v8854_v19 = vld [vmem:[%s9329_s15 + $0x10] sm:$0xff]  ;;  %v848_v29 = vld [vmem:[%s9253_s21 + $0x4e8] sm:$0xff] }
 0x224   : > { %v2016_v46 = vcvt.s32.f32 %v992_v42  ;;  %4044 = vmatpush.bf16.msra.mxu1 %v3088_v49  ;;  %v2136_v5 = vcvt.s32.f32 %v1112_v10  ;;  %v1256_v4 = vunpack.c.2.s8 %v768_v14  ;;  %v1264_v36 = vunpack.c.3.s8 %v768_v14 }
 0x225   : > { %v3224_v11 = vpack.c.bf16 %v2432_v28, %v2424_v43  ;;  %4056 = vmatpush.bf16.msra.mxu2 %v3160_v35  ;;  %v2144_v3 = vcvt.s32.f32 %v1120_v34  ;;  %v1384_v55 = vunpack.c.2.s8 %v800_v50  ;;  %v1392_v38 = vunpack.c.3.s8 %v800_v50  ;;  %v3843_v34 = vpop.f32.mrf.mxu1 }
 0x226   : > { %v3016_v0 = vpack.c.bf16 %v2016_v46, %v2008_v20  ;;  %v2280_v32 = vcvt.s32.f32 %v1256_v4  ;;  %v2288_v31 = vcvt.s32.f32 %v1264_v36  ;;  %v3803_v7 = vadd.f32 %v10024_v23, %v10041_v18  ;;  %v880_v20 = vld [vmem:[%s9253_s21 + $0x5e8] sm:$0xff]  ;;  %v3830_v46 = vpop.f32.mrf.mxu0 }
 0x227   : > { %4069 = vmatpush.bf16.msra.mxu3 %v3224_v11  ;;  %v4341_v58 = vperm.slane %v8854_v19, 2  ;;  %v3080_v60 = vpack.c.bf16 %v2144_v3, %v2136_v5  ;;  %v2408_v16 = vcvt.s32.f32 %v1384_v55  ;;  %v2416_v26 = vcvt.s32.f32 %v1392_v38  ;;  %v760_v36 = vld [vmem:[%s9253_s21 + $0x228] sm:$0xff] }
 0x228   : > { %4032 = vmatpush.bf16.msra.mxu0 %v3016_v0  ;;  %v4357_v48 = vperm.slane %v8854_v19, 3  ;;  %v3152_v21 = vpack.c.bf16 %v2288_v31, %v2280_v32  ;;  %v3816_v62 = vadd.f32 %v10026_v24, %v3803_v7  ;;  %v968_v27 = vunpack.c.2.s8 %v696_v15  ;;  %v840_v46 = vld [vmem:[%s9253_s21 + $0x4a8] sm:$0xff] }
 0x229   : > { %v976_v57 = vunpack.c.3.s8 %v696_v15  ;;  %4045 = vmatpush.bf16.msra.mxu1 %v3080_v60  ;;  %v3216_v2 = vpack.c.bf16 %v2416_v26, %v2408_v16  ;;  %v1096_v23 = vunpack.c.2.s8 %v728_v47  ;;  %v1104_v18 = vunpack.c.3.s8 %v728_v47 }
 0x22a   : > { %v1240_v59 = vunpack.c.0.s8 %v768_v14  ;;  %4057 = vmatpush.bf16.msra.mxu2 %v3152_v21  ;;  %v4349_v41 = vmul.f32 %v4341_v58, %v3816_v62  ;;  %v1992_v8 = vcvt.s32.f32 %v968_v27  ;;  %v1248_v52 = vunpack.c.1.s8 %v768_v14 }
 0x22b   : > { %v2000_v40 = vcvt.s32.f32 %v976_v57  ;;  %4070 = vmatpush.bf16.msra.mxu3 %v3216_v2  ;;  %v2120_v6 = vcvt.s32.f32 %v1096_v23  ;;  %v2128_v45 = vcvt.s32.f32 %v1104_v18  ;;  %v1368_v63 = vunpack.c.0.s8 %v800_v50 }
 0x22c   : > { %v2264_v12 = vcvt.s32.f32 %v1240_v59  ;;  %v4365_v24 = vadd.f32 %v4357_v48, %v4349_v41  ;;  %v2272_v44 = vcvt.s32.f32 %v1248_v52  ;;  %v1376_v54 = vunpack.c.1.s8 %v800_v50  ;;  %v10065_v52 = vpop.f32.mrf.mxu3 }
 0x22d   : > { %v3008_v53 = vpack.c.bf16 %v2000_v40, %v1992_v8  ;;  %v3072_v61 = vpack.c.bf16 %v2128_v45, %v2120_v6  ;;  %v2392_v42 = vcvt.s32.f32 %v1368_v63  ;;  %v952_v49 = vunpack.c.0.s8 %v696_v15  ;;  %v10063_v40 = vpop.f32.mrf.mxu2 }
 0x22e   : > { %v960_v43 = vunpack.c.1.s8 %v696_v15  ;;  %v4373_v28 = vmax.f32 %v4365_v24, 0.0  ;;  %v3144_v10 = vpack.c.bf16 %v2272_v44, %v2264_v12  ;;  %v2400_v14 = vcvt.s32.f32 %v1376_v54  ;;  %v792_v15 = vld [vmem:[%s9253_s21 + $0x328] sm:$0xff] }
 0x22f   : > { %4033 = vmatpush.bf16.msra.mxu0 %v3008_v53  ;;  %v1080_v35 = vunpack.c.0.s8 %v728_v47  ;;  %4046 = vmatpush.bf16.msra.mxu1 %v3072_v61  ;;  %v1976_v11 = vcvt.s32.f32 %v952_v49  ;;  %v1088_v4 = vunpack.c.1.s8 %v728_v47  ;;  %v1576_v50 = vunpack.c.2.s8 %v848_v29  ;;  %v912_v24 = vld [vmem:[%s9253_s21 + $0x6e8] sm:$0xff] }
 0x230   : > { %v1984_v5 = vcvt.s32.f32 %v960_v43  ;;  %v10060_v0 = vpack.c.bf16 %v4373_v28, %v4373_v28  ;;  %4058 = vmatpush.bf16.msra.mxu2 %v3144_v10  ;;  %v3208_v3 = vpack.c.bf16 %v2400_v14, %v2392_v42  ;;  %v1584_v38 = vunpack.c.3.s8 %v848_v29  ;;  %v944_v28 = vld [vmem:[%s9253_s21 + $0x7e8] sm:$0xff] }
 0x231   : > { %v2104_v55 = vcvt.s32.f32 %v1080_v35  ;;  %v2112_v31 = vcvt.s32.f32 %v1088_v4  ;;  %v2600_v7 = vcvt.s32.f32 %v1576_v50  ;;  %v1704_v19 = vunpack.c.2.s8 %v880_v20  ;;  %v872_v50 = vld [vmem:[%s9253_s21 + $0x5a8] sm:$0xff] }
 0x232   : > { %v3000_v32 = vpack.c.bf16 %v1984_v5, %v1976_v11  ;;  %4071 = vmatpush.bf16.msra.mxu3 %v3208_v3  ;;  %v2608_v58 = vcvt.s32.f32 %v1584_v38  ;;  %v1712_v60 = vunpack.c.3.s8 %v880_v20  ;;  %v1224_v16 = vunpack.c.2.s8 %v760_v36 }
 0x233   : > { %v1232_v26 = vunpack.c.3.s8 %v760_v36  ;;  %v3064_v47 = vpack.c.bf16 %v2112_v31, %v2104_v55  ;;  %v2728_v48 = vcvt.s32.f32 %v1704_v19  ;;  %v1352_v21 = vunpack.c.2.s8 %v792_v15 }
 0x234   : > { %4034 = vmatpush.bf16.msra.mxu0 %v3000_v32  ;;  %v1360_v62 = vunpack.c.3.s8 %v792_v15  ;;  %v3312_v27 = vpack.c.bf16 %v2608_v58, %v2600_v7  ;;  %v2736_v57 = vcvt.s32.f32 %v1712_v60  ;;  %v2248_v2 = vcvt.s32.f32 %v1224_v16 }
 0x235   : > { %v2256_v23 = vcvt.s32.f32 %v1232_v26  ;;  %4047 = vmatpush.bf16.msra.mxu1 %v3064_v47  ;;  %v2376_v18 = vcvt.s32.f32 %v1352_v21  ;;  %v1560_v41 = vunpack.c.0.s8 %v848_v29  ;;  %v1568_v8 = vunpack.c.1.s8 %v848_v29  ;;  %v3856_v26 = vpop.f32.mrf.mxu2  ;;  %v3869_v47 = vpop.f32.mrf.mxu3 }
 0x236   : > { %v2384_v59 = vcvt.s32.f32 %v1360_v62  ;;  %v3376_v6 = vpack.c.bf16 %v2736_v57, %v2728_v48  ;;  %v1688_v12 = vunpack.c.0.s8 %v880_v20  ;;  %v1696_v63 = vunpack.c.1.s8 %v880_v20 }
 0x237   : > { %v3136_v45 = vpack.c.bf16 %v2256_v23, %v2248_v2  ;;  %4035 = vmatmul.bf16.vlgmr.msra.gmra.mxu0 %v9493_v9  ;;  %v2584_v44 = vcvt.s32.f32 %v1560_v41  ;;  %v2592_v54 = vcvt.s32.f32 %v1568_v8  ;;  %v1208_v61 = vunpack.c.0.s8 %v760_v36 }
 0x238   : > { %4079 = vmatpush.bf16.msrb.mxu0 %v3312_v27  ;;  %v3200_v53 = vpack.c.bf16 %v2384_v59, %v2376_v18  ;;  %v2712_v29 = vcvt.s32.f32 %v1688_v12  ;;  %v2720_v42 = vcvt.s32.f32 %v1696_v63  ;;  %v1216_v49 = vunpack.c.1.s8 %v760_v36  ;;  %4048 = vmatmul.bf16.vlgmr.msra.gmra.mxu1 %v9495_v30 }
 0x239   : > { %4092 = vmatpush.bf16.msrb.mxu1 %v3376_v6  ;;  %4059 = vmatpush.bf16.msra.mxu2 %v3136_v45  ;;  %v1336_v43 = vunpack.c.0.s8 %v792_v15  ;;  %v3304_v10 = vpack.c.bf16 %v2592_v54, %v2584_v44  ;;  %v2232_v14 = vcvt.s32.f32 %v1208_v61  ;;  %v1344_v35 = vunpack.c.1.s8 %v792_v15  ;;  %v904_v44 = vld [vmem:[%s9253_s21 + $0x6a8] sm:$0xff] }
 0x23a   : > { %4072 = vmatpush.bf16.msra.mxu3 %v3200_v53  ;;  %v1832_v20 = vunpack.c.2.s8 %v912_v24  ;;  %v3368_v34 = vpack.c.bf16 %v2720_v42, %v2712_v29  ;;  %v2240_v11 = vcvt.s32.f32 %v1216_v49  ;;  %v1840_v4 = vunpack.c.3.s8 %v912_v24  ;;  %v936_v42 = vld [vmem:[%s9253_s21 + $0x7a8] sm:$0xff] }
 0x23b   : > { %v2360_v5 = vcvt.s32.f32 %v1336_v43  ;;  %v2368_v3 = vcvt.s32.f32 %v1344_v35  ;;  %v1960_v38 = vunpack.c.2.s8 %v944_v28  ;;  %v1968_v36 = vunpack.c.3.s8 %v944_v28 }
 0x23c   : > { %4080 = vmatpush.bf16.msrb.mxu0 %v3304_v10  ;;  %v2856_v55 = vcvt.s32.f32 %v1832_v20  ;;  %v3128_v32 = vpack.c.bf16 %v2240_v11, %v2232_v14  ;;  %v2864_v31 = vcvt.s32.f32 %v1840_v4  ;;  %v1544_v7 = vunpack.c.2.s8 %v840_v46  ;;  %v832_v14 = vld [vmem:[%s9253_s21 + $0x468] sm:$0xff] }
 0x23d   : > { %4093 = vmatpush.bf16.msrb.mxu1 %v3368_v34  ;;  %v1552_v19 = vunpack.c.3.s8 %v840_v46  ;;  %v3192_v58 = vpack.c.bf16 %v2368_v3, %v2360_v5  ;;  %v2984_v60 = vcvt.s32.f32 %v1960_v38  ;;  %v2992_v15 = vcvt.s32.f32 %v1968_v36  ;;  %v864_v3 = vld [vmem:[%s9253_s21 + $0x568] sm:$0xff] }
 0x23e   : > { %v1672_v16 = vunpack.c.2.s8 %v872_v50  ;;  %4060 = vmatpush.bf16.msra.mxu2 %v3128_v32  ;;  %v3440_v48 = vpack.c.bf16 %v2864_v31, %v2856_v55  ;;  %v2568_v21 = vcvt.s32.f32 %v1544_v7  ;;  %v1680_v27 = vunpack.c.3.s8 %v872_v50 }
 0x23f   : > { %v2576_v62 = vcvt.s32.f32 %v1552_v19  ;;  %4073 = vmatpush.bf16.msra.mxu3 %v3192_v58  ;;  %v3504_v57 = vpack.c.bf16 %v2992_v15, %v2984_v60  ;;  %v1816_v23 = vunpack.c.0.s8 %v912_v24  ;;  %v1824_v18 = vunpack.c.1.s8 %v912_v24 }
 0x240   : > { %v2696_v2 = vcvt.s32.f32 %v1672_v16  ;;  %v2704_v41 = vcvt.s32.f32 %v1680_v27  ;;  %v1944_v8 = vunpack.c.0.s8 %v944_v28  ;;  %v1952_v6 = vunpack.c.1.s8 %v944_v28 }
 0x241   : > { %v3296_v59 = vpack.c.bf16 %v2576_v62, %v2568_v21  ;;  %4061 = vmatmul.bf16.vlgmr.msra.gmra.mxu2 %v9555_v22  ;;  %v2840_v45 = vcvt.s32.f32 %v1816_v23  ;;  %v2848_v12 = vcvt.s32.f32 %v1824_v18  ;;  %v10076_v63 = vadd.f32 %v10054_v25, %v10052_v1 }
 0x242   : > { %4105 = vmatpush.bf16.msrb.mxu2 %v3440_v48  ;;  %v1528_v53 = vunpack.c.0.s8 %v840_v46  ;;  %4074 = vmatmul.bf16.vlgmr.msra.gmra.mxu3 %v9557_v51  ;;  %v3360_v24 = vpack.c.bf16 %v2704_v41, %v2696_v2  ;;  %v2968_v54 = vcvt.s32.f32 %v1944_v8  ;;  %v2976_v61 = vcvt.s32.f32 %v1952_v6  ;;  %v896_v41 = vld [vmem:[%s9253_s21 + $0x668] sm:$0xff] }
 0x243   : > { %4118 = vmatpush.bf16.msrb.mxu3 %v3504_v57  ;;  %4081 = vmatpush.bf16.msrb.mxu0 %v3296_v59  ;;  %v1536_v29 = vunpack.c.1.s8 %v840_v46  ;;  %v3432_v49 = vpack.c.bf16 %v2848_v12, %v2840_v45  ;;  %v1656_v28 = vunpack.c.0.s8 %v872_v50  ;;  %v1664_v10 = vunpack.c.1.s8 %v872_v50 }
 0x244   : > { %v2552_v43 = vcvt.s32.f32 %v1528_v53  ;;  %4094 = vmatpush.bf16.msrb.mxu1 %v3360_v24  ;;  %v3496_v35 = vpack.c.bf16 %v2976_v61, %v2968_v54  ;;  %v1800_v25 = vunpack.c.2.s8 %v904_v44  ;;  %v1808_v20 = vunpack.c.3.s8 %v904_v44  ;;  %v928_v53 = vld [vmem:[%s9253_s21 + $0x768] sm:$0xff] }
 0x245   : > { %v2560_v1 = vcvt.s32.f32 %v1536_v29  ;;  %v2680_v34 = vcvt.s32.f32 %v1656_v28  ;;  %v2688_v11 = vcvt.s32.f32 %v1664_v10  ;;  %v1928_v5 = vunpack.c.2.s8 %v936_v42  ;;  %v824_v28 = vld [vmem:[%s9253_s21 + $0x428] sm:$0xff] }
 0x246   : > { %4106 = vmatpush.bf16.msrb.mxu2 %v3432_v49  ;;  %v1936_v4 = vunpack.c.3.s8 %v936_v42  ;;  %v2824_v55 = vcvt.s32.f32 %v1800_v25  ;;  %v2832_v38 = vcvt.s32.f32 %v1808_v20  ;;  %v1512_v36 = vunpack.c.2.s8 %v832_v14  ;;  %v856_v20 = vld [vmem:[%s9253_s21 + $0x528] sm:$0xff] }
 0x247   : > { %4119 = vmatpush.bf16.msrb.mxu3 %v3496_v35  ;;  %v3288_v46 = vpack.c.bf16 %v2560_v1, %v2552_v43  ;;  %v3352_v32 = vpack.c.bf16 %v2688_v11, %v2680_v34  ;;  %v2952_v31 = vcvt.s32.f32 %v1928_v5  ;;  %v1520_v7 = vunpack.c.3.s8 %v832_v14  ;;  %v10089_v34 = vpop.f32.mrf.mxu1 }
 0x248   : > { %v2960_v50 = vcvt.s32.f32 %v1936_v4  ;;  %v3424_v19 = vpack.c.bf16 %v2832_v38, %v2824_v55  ;;  %v2536_v58 = vcvt.s32.f32 %v1512_v36  ;;  %v1640_v60 = vunpack.c.2.s8 %v864_v3 }
 0x249   : > { %4082 = vmatpush.bf16.msrb.mxu0 %v3288_v46  ;;  %v1648_v15 = vunpack.c.3.s8 %v864_v3  ;;  %4095 = vmatpush.bf16.msrb.mxu1 %v3352_v32  ;;  %v2544_v26 = vcvt.s32.f32 %v1520_v7  ;;  %v1784_v47 = vunpack.c.0.s8 %v904_v44  ;;  %v1792_v48 = vunpack.c.1.s8 %v904_v44 }
 0x24a   : > { %v3488_v16 = vpack.c.bf16 %v2960_v50, %v2952_v31  ;;  %4107 = vmatpush.bf16.msrb.mxu2 %v3424_v19  ;;  %v2664_v21 = vcvt.s32.f32 %v1640_v60  ;;  %v1912_v27 = vunpack.c.0.s8 %v936_v42  ;;  %v1920_v57 = vunpack.c.1.s8 %v936_v42 }
 0x24b   : > { %v2672_v62 = vcvt.s32.f32 %v1648_v15  ;;  %v3280_v2 = vpack.c.bf16 %v2544_v26, %v2536_v58  ;;  %v2808_v23 = vcvt.s32.f32 %v1784_v47  ;;  %v2816_v18 = vcvt.s32.f32 %v1792_v48 }
 0x24c   : > { %4120 = vmatpush.bf16.msrb.mxu3 %v3488_v16  ;;  %v1496_v59 = vunpack.c.0.s8 %v832_v14  ;;  %v2936_v6 = vcvt.s32.f32 %v1912_v27  ;;  %v2944_v45 = vcvt.s32.f32 %v1920_v57  ;;  %v1504_v12 = vunpack.c.1.s8 %v832_v14  ;;  %v10087_v14 = vpop.f32.mrf.mxu0 }
 0x24d   : > { %v3344_v8 = vpack.c.bf16 %v2672_v62, %v2664_v21  ;;  %4083 = vmatpush.bf16.msrb.mxu0 %v3280_v2  ;;  %v3416_v44 = vpack.c.bf16 %v2816_v18, %v2808_v23  ;;  %v1624_v54 = vunpack.c.0.s8 %v864_v3  ;;  %v1632_v61 = vunpack.c.1.s8 %v864_v3  ;;  %v721_v62 = vld [vmem:[%s9253_s21 + $0xf0] sm:$0xff] }
 0x24e   : > { %v2520_v24 = vcvt.s32.f32 %v1496_v59  ;;  %v3480_v29 = vpack.c.bf16 %v2944_v45, %v2936_v6  ;;  %v2528_v42 = vcvt.s32.f32 %v1504_v12  ;;  %v1768_v49 = vunpack.c.2.s8 %v896_v41  ;;  %v753_v18 = vld [vmem:[%s9253_s21 + $0x1f0] sm:$0xff] }
 0x24f   : > { %4096 = vmatpush.bf16.msrb.mxu1 %v3344_v8  ;;  %v1776_v43 = vunpack.c.3.s8 %v896_v41  ;;  %4108 = vmatpush.bf16.msrb.mxu2 %v3416_v44  ;;  %v2648_v10 = vcvt.s32.f32 %v1624_v54  ;;  %v2656_v35 = vcvt.s32.f32 %v1632_v61  ;;  %v1896_v1 = vunpack.c.2.s8 %v928_v53  ;;  %v888_v61 = vld [vmem:[%s9253_s21 + $0x628] sm:$0xff] }
 0x250   : > { %v1904_v25 = vunpack.c.3.s8 %v928_v53  ;;  %4121 = vmatpush.bf16.msrb.mxu3 %v3480_v29  ;;  %v3272_v11 = vpack.c.bf16 %v2528_v42, %v2520_v24  ;;  %v2792_v5 = vcvt.s32.f32 %v1768_v49  ;;  %v3855_v3 = vadd.f32 %v10063_v40, %v10076_v63 }
 0x251   : > { %v2800_v4 = vcvt.s32.f32 %v1776_v43  ;;  %v3336_v46 = vpack.c.bf16 %v2656_v35, %v2648_v10  ;;  %v2920_v55 = vcvt.s32.f32 %v1896_v1  ;;  %v1480_v36 = vunpack.c.2.s8 %v824_v28 }
 0x252   : > { %v2928_v38 = vcvt.s32.f32 %v1904_v25  ;;  %4084 = vmatpush.bf16.msrb.mxu0 %v3272_v11  ;;  %v10094_v31 = vadd.f32 %v10065_v52, %v3855_v3  ;;  %v1488_v50 = vunpack.c.3.s8 %v824_v28  ;;  %v1608_v7 = vunpack.c.2.s8 %v856_v20 }
 0x253   : > { %v3408_v32 = vpack.c.bf16 %v2800_v4, %v2792_v5  ;;  %4097 = vmatpush.bf16.msrb.mxu1 %v3336_v46  ;;  %v2504_v58 = vcvt.s32.f32 %v1480_v36  ;;  %v1616_v60 = vunpack.c.3.s8 %v856_v20  ;;  %v1752_v15 = vunpack.c.0.s8 %v896_v41 }
 0x254   : > { %v3472_v19 = vpack.c.bf16 %v2928_v38, %v2920_v55  ;;  %v2512_v40 = vcvt.s32.f32 %v1488_v50  ;;  %v2632_v63 = vcvt.s32.f32 %v1608_v7  ;;  %v1760_v16 = vunpack.c.1.s8 %v896_v41  ;;  %v3882_v12 = vpop.f32.mrf.mxu0  ;;  %v3895_v41 = vpop.f32.mrf.mxu1 }
 0x255   : > { %4109 = vmatpush.bf16.msrb.mxu2 %v3408_v32  ;;  %v1880_v26 = vunpack.c.0.s8 %v928_v53  ;;  %v2640_v47 = vcvt.s32.f32 %v1616_v60  ;;  %v2776_v48 = vcvt.s32.f32 %v1752_v15  ;;  %v1888_v21 = vunpack.c.1.s8 %v928_v53 }
 0x256   : > { %4122 = vmatpush.bf16.msrb.mxu3 %v3472_v19  ;;  %v1464_v52 = vunpack.c.0.s8 %v824_v28  ;;  %v3264_v27 = vpack.c.bf16 %v2512_v40, %v2504_v58  ;;  %v2784_v57 = vcvt.s32.f32 %v1760_v16  ;;  %v1472_v23 = vunpack.c.1.s8 %v824_v28  ;;  %v920_v28 = vld [vmem:[%s9253_s21 + $0x728] sm:$0xff]  ;;  %v10100_v40 = vpop.f32.mrf.mxu2 }
 0x257   : > { %v2904_v2 = vcvt.s32.f32 %v1880_v26  ;;  %v3328_v59 = vpack.c.bf16 %v2640_v47, %v2632_v63  ;;  %v2912_v8 = vcvt.s32.f32 %v1888_v21  ;;  %v1592_v45 = vunpack.c.0.s8 %v856_v20  ;;  %v10102_v63 = vpop.f32.mrf.mxu3  ;;  %v785_v21 = vld [vmem:[%s9253_s21 + $0x2f0] sm:$0xff] }
 0x258   : > { %v2488_v6 = vcvt.s32.f32 %v1464_v52  ;;  %4085 = vmatpush.bf16.msrb.mxu0 %v3264_v27  ;;  %v3400_v44 = vpack.c.bf16 %v2784_v57, %v2776_v48  ;;  %v2496_v24 = vcvt.s32.f32 %v1472_v23  ;;  %v1600_v54 = vunpack.c.1.s8 %v856_v20 }
 0x259   : > { %v1065_v53 = vunpack.c.2.s8 %v721_v62  ;;  %4098 = vmatpush.bf16.msrb.mxu1 %v3328_v59  ;;  %v3464_v29 = vpack.c.bf16 %v2912_v8, %v2904_v2  ;;  %v2616_v42 = vcvt.s32.f32 %v1592_v45  ;;  %v1073_v49 = vunpack.c.3.s8 %v721_v62 }
 0x25a   : > { %v1193_v43 = vunpack.c.2.s8 %v753_v18  ;;  %4110 = vmatpush.bf16.msrb.mxu2 %v3400_v44  ;;  %v3256_v10 = vpack.c.bf16 %v2496_v24, %v2488_v6  ;;  %v2624_v35 = vcvt.s32.f32 %v1600_v54  ;;  %v1201_v25 = vunpack.c.3.s8 %v753_v18  ;;  %v817_v6 = vld [vmem:[%s9253_s21 + $0x3f0] sm:$0xff] }
 0x25b   : > { %v2089_v1 = vcvt.s32.f32 %v1065_v53  ;;  %4123 = vmatpush.bf16.msrb.mxu3 %v3464_v29  ;;  %v2097_v11 = vcvt.s32.f32 %v1073_v49  ;;  %v1736_v4 = vunpack.c.2.s8 %v888_v61  ;;  %v1744_v3 = vunpack.c.3.s8 %v888_v61  ;;  %v713_v44 = vld [vmem:[%s9253_s21 + $0xb0] sm:$0xff] }
 0x25c   : > { %v2217_v5 = vcvt.s32.f32 %v1193_v43  ;;  %4086 = vmatpush.bf16.msrb.mxu0 %v3256_v10  ;;  %v3320_v20 = vpack.c.bf16 %v2624_v35, %v2616_v42  ;;  %v2225_v46 = vcvt.s32.f32 %v1201_v25  ;;  %v1864_v55 = vunpack.c.2.s8 %v920_v28 }
 0x25d   : > { %v1872_v38 = vunpack.c.3.s8 %v920_v28  ;;  %v3057_v36 = vpack.c.bf16 %v2097_v11, %v2089_v1  ;;  %v2760_v32 = vcvt.s32.f32 %v1736_v4  ;;  %v2768_v50 = vcvt.s32.f32 %v1744_v3 }
 0x25e   : > { %v1049_v7 = vunpack.c.0.s8 %v721_v62  ;;  %4099 = vmatpush.bf16.msrb.mxu1 %v3320_v20  ;;  %v3121_v19 = vpack.c.bf16 %v2225_v46, %v2217_v5  ;;  %v2888_v58 = vcvt.s32.f32 %v1864_v55  ;;  %v1057_v15 = vunpack.c.1.s8 %v721_v62  ;;  %v3908_v20 = vpop.f32.mrf.mxu2 }
 0x25f   : > { %v2896_v60 = vcvt.s32.f32 %v1872_v38  ;;  %v3392_v16 = vpack.c.bf16 %v2768_v50, %v2760_v32  ;;  %v1177_v47 = vunpack.c.0.s8 %v753_v18  ;;  %v1185_v48 = vunpack.c.1.s8 %v753_v18  ;;  %4087 = vmatmul.bf16.vlgmr.msrb.gmra.mxu0 %v9644_v17  ;;  %v3921_v46 = vpop.f32.mrf.mxu3 }
 0x260   : > { %4131 = vmatpush.bf16.msra.mxu0 %v3057_v36  ;;  %v2073_v26 = vcvt.s32.f32 %v1049_v7  ;;  %v2081_v27 = vcvt.s32.f32 %v1057_v15  ;;  %v1720_v57 = vunpack.c.0.s8 %v888_v61  ;;  %v1728_v2 = vunpack.c.1.s8 %v888_v61  ;;  %v745_v61 = vld [vmem:[%s9253_s21 + $0x1b0] sm:$0xff] }
 0x261   : > { %v3456_v52 = vpack.c.bf16 %v2896_v60, %v2888_v58  ;;  %4111 = vmatpush.bf16.msrb.mxu2 %v3392_v16  ;;  %4100 = vmatmul.bf16.vlgmr.msrb.gmra.mxu1 %v9646_v13  ;;  %v2201_v62 = vcvt.s32.f32 %v1177_v47  ;;  %v2209_v23 = vcvt.s32.f32 %v1185_v48  ;;  %v1848_v59 = vunpack.c.0.s8 %v920_v28 }
 0x262   : > { %4144 = vmatpush.bf16.msra.mxu1 %v3121_v19  ;;  %v1856_v8 = vunpack.c.1.s8 %v920_v28  ;;  %v3049_v18 = vpack.c.bf16 %v2081_v27, %v2073_v26  ;;  %v2744_v45 = vcvt.s32.f32 %v1720_v57  ;;  %v2752_v12 = vcvt.s32.f32 %v1728_v2  ;;  %v777_v57 = vld [vmem:[%s9253_s21 + $0x2b0] sm:$0xff] }
 0x263   : > { %4124 = vmatpush.bf16.msrb.mxu3 %v3456_v52  ;;  %v1321_v41 = vunpack.c.2.s8 %v785_v21  ;;  %v3113_v24 = vpack.c.bf16 %v2209_v23, %v2201_v62  ;;  %v2872_v54 = vcvt.s32.f32 %v1848_v59  ;;  %v1329_v29 = vunpack.c.3.s8 %v785_v21  ;;  %v809_v59 = vld [vmem:[%s9253_s21 + $0x3b0] sm:$0xff] }
 0x264   : > { %v2880_v53 = vcvt.s32.f32 %v1856_v8  ;;  %4132 = vmatpush.bf16.msra.mxu0 %v3049_v18  ;;  %v3384_v42 = vpack.c.bf16 %v2752_v12, %v2744_v45  ;;  %v1449_v43 = vunpack.c.2.s8 %v817_v6  ;;  %v1457_v10 = vunpack.c.3.s8 %v817_v6  ;;  %v705_v12 = vld [vmem:[%s9253_s21 + $0x70] sm:$0xff] }
 0x265   : > { %v2345_v49 = vcvt.s32.f32 %v1321_v41  ;;  %v2353_v28 = vcvt.s32.f32 %v1329_v29  ;;  %v1033_v1 = vunpack.c.2.s8 %v713_v44  ;;  %v1041_v25 = vunpack.c.3.s8 %v713_v44 }
 0x266   : > { %4145 = vmatpush.bf16.msra.mxu1 %v3113_v24  ;;  %v3448_v35 = vpack.c.bf16 %v2880_v53, %v2872_v54  ;;  %4112 = vmatpush.bf16.msrb.mxu2 %v3384_v42  ;;  %v2473_v11 = vcvt.s32.f32 %v1449_v43  ;;  %v2481_v5 = vcvt.s32.f32 %v1457_v10  ;;  %v1161_v4 = vunpack.c.2.s8 %v745_v61  ;;  %v737_v42 = vld [vmem:[%s9253_s21 + $0x170] sm:$0xff] }
 0x267   : > { %v1169_v3 = vunpack.c.3.s8 %v745_v61  ;;  %v3185_v55 = vpack.c.bf16 %v2353_v28, %v2345_v49  ;;  %v2057_v38 = vcvt.s32.f32 %v1033_v1  ;;  %v2065_v36 = vcvt.s32.f32 %v1041_v25 }
 0x268   : > { %4125 = vmatpush.bf16.msrb.mxu3 %v3448_v35  ;;  %v1305_v32 = vunpack.c.0.s8 %v785_v21  ;;  %v3249_v50 = vpack.c.bf16 %v2481_v5, %v2473_v11  ;;  %v2185_v7 = vcvt.s32.f32 %v1161_v4  ;;  %v1313_v58 = vunpack.c.1.s8 %v785_v21 }
 0x269   : > { %v2193_v19 = vcvt.s32.f32 %v1169_v3  ;;  %v3041_v60 = vpack.c.bf16 %v2065_v36, %v2057_v38  ;;  %v1433_v16 = vunpack.c.0.s8 %v817_v6  ;;  %v1441_v26 = vunpack.c.1.s8 %v817_v6  ;;  %4113 = vmatmul.bf16.vlgmr.msrb.gmra.mxu2 %v9716_v37 }
 0x26a   : > { %4157 = vmatpush.bf16.msra.mxu2 %v3185_v55  ;;  %v2329_v15 = vcvt.s32.f32 %v1305_v32  ;;  %v2337_v48 = vcvt.s32.f32 %v1313_v58  ;;  %v3881_v52 = vadd.f32 %v10087_v14, %v10094_v31  ;;  %v1017_v27 = vunpack.c.0.s8 %v713_v44 }
 0x26b   : > { %v3105_v47 = vpack.c.bf16 %v2193_v19, %v2185_v7  ;;  %4126 = vmatmul.bf16.vlgmr.msrb.gmra.mxu3 %v9718_v56  ;;  %4133 = vmatpush.bf16.msra.mxu0 %v3041_v60  ;;  %v2457_v21 = vcvt.s32.f32 %v1433_v16  ;;  %v2465_v2 = vcvt.s32.f32 %v1441_v26  ;;  %v1025_v62 = vunpack.c.1.s8 %v713_v44 }
 0x26c   : > { %4170 = vmatpush.bf16.msra.mxu3 %v3249_v50  ;;  %v1145_v23 = vunpack.c.0.s8 %v745_v61  ;;  %v3177_v8 = vpack.c.bf16 %v2337_v48, %v2329_v15  ;;  %v10117_v6 = vadd.f32 %v10089_v34, %v3881_v52  ;;  %v2041_v18 = vcvt.s32.f32 %v1017_v27  ;;  %v769_v15 = vld [vmem:[%s9253_s21 + $0x270] sm:$0xff] }
 0x26d   : > { %4146 = vmatpush.bf16.msra.mxu1 %v3105_v47  ;;  %v1153_v45 = vunpack.c.1.s8 %v745_v61  ;;  %v3241_v14 = vpack.c.bf16 %v2465_v2, %v2457_v21  ;;  %v2049_v31 = vcvt.s32.f32 %v1025_v62  ;;  %v1289_v24 = vunpack.c.2.s8 %v777_v57  ;;  %v801_v52 = vld [vmem:[%s9253_s21 + $0x370] sm:$0xff] }
 0x26e   : > { %v2169_v41 = vcvt.s32.f32 %v1145_v23  ;;  %4158 = vmatpush.bf16.msra.mxu2 %v3177_v8  ;;  %v1297_v53 = vunpack.c.3.s8 %v777_v57  ;;  %v1417_v29 = vunpack.c.2.s8 %v809_v59  ;;  %v1425_v44 = vunpack.c.3.s8 %v809_v59 }
 0x26f   : > { %v2177_v54 = vcvt.s32.f32 %v1153_v45  ;;  %v3033_v49 = vpack.c.bf16 %v2049_v31, %v2041_v18  ;;  %v2313_v43 = vcvt.s32.f32 %v1289_v24  ;;  %v1001_v10 = vunpack.c.2.s8 %v705_v12 }
 0x270   : > { %4171 = vmatpush.bf16.msra.mxu3 %v3241_v14  ;;  %v1009_v35 = vunpack.c.3.s8 %v705_v12  ;;  %v2321_v28 = vcvt.s32.f32 %v1297_v53  ;;  %v2441_v1 = vcvt.s32.f32 %v1417_v29  ;;  %v2449_v61 = vcvt.s32.f32 %v1425_v44  ;;  %v729_v29 = vld [vmem:[%s9253_s21 + $0x130] sm:$0xff]  ;;  %v10127_v44 = vpop.f32.mrf.mxu0 }
 0x271   : > { %v3097_v34 = vpack.c.bf16 %v2177_v54, %v2169_v41  ;;  %4134 = vmatpush.bf16.msra.mxu0 %v3033_v49  ;;  %v2025_v25 = vcvt.s32.f32 %v1001_v10  ;;  %v1129_v5 = vunpack.c.2.s8 %v737_v42  ;;  %v1137_v4 = vunpack.c.3.s8 %v737_v42 }
 0x272   : > { %v2033_v11 = vcvt.s32.f32 %v1009_v35  ;;  %v3169_v3 = vpack.c.bf16 %v2321_v28, %v2313_v43  ;;  %v3233_v20 = vpack.c.bf16 %v2449_v61, %v2441_v1  ;;  %v1273_v46 = vunpack.c.0.s8 %v777_v57  ;;  %v8855_v35 = vld [vmem:[%s9329_s15 + $0x18] sm:$0xff] }
 0x273   : > { %4147 = vmatpush.bf16.msra.mxu1 %v3097_v34  ;;  %v1281_v55 = vunpack.c.1.s8 %v777_v57  ;;  %v2153_v36 = vcvt.s32.f32 %v1129_v5  ;;  %v2161_v32 = vcvt.s32.f32 %v1137_v4  ;;  %v1401_v50 = vunpack.c.0.s8 %v809_v59 }
 0x274   : > { %v3025_v38 = vpack.c.bf16 %v2033_v11, %v2025_v25  ;;  %4159 = vmatpush.bf16.msra.mxu2 %v3169_v3  ;;  %4172 = vmatpush.bf16.msra.mxu3 %v3233_v20  ;;  %v2297_v7 = vcvt.s32.f32 %v1273_v46  ;;  %v1409_v58 = vunpack.c.1.s8 %v809_v59  ;;  %v985_v60 = vunpack.c.0.s8 %v705_v12 }
 0x275   : > { %v2305_v19 = vcvt.s32.f32 %v1281_v55  ;;  %v3089_v16 = vpack.c.bf16 %v2161_v32, %v2153_v36  ;;  %v2425_v26 = vcvt.s32.f32 %v1401_v50  ;;  %v993_v47 = vunpack.c.1.s8 %v705_v12  ;;  %v697_v12 = vld [vmem:[%s9253_s21 + $0x30] sm:$0xff] }
 0x276   : > { %4135 = vmatpush.bf16.msra.mxu0 %v3025_v38  ;;  %v1113_v48 = vunpack.c.0.s8 %v737_v42  ;;  %v2433_v57 = vcvt.s32.f32 %v1409_v58  ;;  %v2009_v21 = vcvt.s32.f32 %v985_v60  ;;  %v1121_v2 = vunpack.c.1.s8 %v737_v42  ;;  %v10129_v42 = vpop.f32.mrf.mxu1  ;;  %v849_v58 = vld [vmem:[%s9253_s21 + $0x4f0] sm:$0xff] }
 0x277   : > { %v3161_v27 = vpack.c.bf16 %v2305_v19, %v2297_v7  ;;  %4148 = vmatpush.bf16.msra.mxu1 %v3089_v16  ;;  %v2017_v62 = vcvt.s32.f32 %v993_v47  ;;  %v1257_v8 = vunpack.c.2.s8 %v769_v15  ;;  %v1265_v18 = vunpack.c.3.s8 %v769_v15 }
 0x278   : > { %v2137_v23 = vcvt.s32.f32 %v1113_v48  ;;  %v3225_v59 = vpack.c.bf16 %v2433_v57, %v2425_v26  ;;  %v2145_v45 = vcvt.s32.f32 %v1121_v2  ;;  %v1385_v14 = vunpack.c.2.s8 %v801_v52  ;;  %v3934_v2 = vpop.f32.mrf.mxu0 }
 0x279   : > { %4160 = vmatpush.bf16.msra.mxu2 %v3161_v27  ;;  %v1393_v31 = vunpack.c.3.s8 %v801_v52  ;;  %v3017_v41 = vpack.c.bf16 %v2017_v62, %v2009_v21  ;;  %v2281_v24 = vcvt.s32.f32 %v1257_v8  ;;  %v2289_v54 = vcvt.s32.f32 %v1265_v18  ;;  %v881_v21 = vld [vmem:[%s9253_s21 + $0x5f0] sm:$0xff] }
 0x27a   : > { %v3907_v53 = vadd.f32 %v10100_v40, %v10117_v6  ;;  %4173 = vmatpush.bf16.msra.mxu3 %v3225_v59  ;;  %v3081_v49 = vpack.c.bf16 %v2145_v45, %v2137_v23  ;;  %v2409_v43 = vcvt.s32.f32 %v1385_v14  ;;  %v4342_v34 = vperm.slane %v8855_v35, 2  ;;  %v761_v59 = vld [vmem:[%s9253_s21 + $0x230] sm:$0xff] }
 0x27b   : > { %v2417_v10 = vcvt.s32.f32 %v1393_v31  ;;  %4136 = vmatpush.bf16.msra.mxu0 %v3017_v41  ;;  %v3153_v28 = vpack.c.bf16 %v2289_v54, %v2281_v24  ;;  %v4358_v61 = vperm.slane %v8855_v35, 3  ;;  %v969_v25 = vunpack.c.2.s8 %v697_v12  ;;  %v793_v24 = vld [vmem:[%s9253_s21 + $0x330] sm:$0xff] }
 0x27c   : > { %v3920_v1 = vadd.f32 %v10102_v63, %v3907_v53  ;;  %4149 = vmatpush.bf16.msra.mxu1 %v3081_v49  ;;  %v977_v40 = vunpack.c.3.s8 %v697_v12  ;;  %v1097_v6 = vunpack.c.2.s8 %v729_v29  ;;  %v1105_v5 = vunpack.c.3.s8 %v729_v29 }
 0x27d   : > { %v3217_v11 = vpack.c.bf16 %v2417_v10, %v2409_v43  ;;  %4161 = vmatpush.bf16.msra.mxu2 %v3153_v28  ;;  %v1993_v3 = vcvt.s32.f32 %v969_v25  ;;  %v1241_v20 = vunpack.c.0.s8 %v769_v15  ;;  %v1249_v46 = vunpack.c.1.s8 %v769_v15 }
 0x27e   : > { %v4350_v4 = vmul.f32 %v4342_v34, %v3920_v1  ;;  %v2001_v55 = vcvt.s32.f32 %v977_v40  ;;  %v2121_v38 = vcvt.s32.f32 %v1097_v6  ;;  %v2129_v36 = vcvt.s32.f32 %v1105_v5  ;;  %v3947_v62 = vpop.f32.mrf.mxu1 }
 0x27f   : > { %4174 = vmatpush.bf16.msra.mxu3 %v3217_v11  ;;  %v1369_v32 = vunpack.c.0.s8 %v801_v52  ;;  %v2265_v50 = vcvt.s32.f32 %v1241_v20  ;;  %v2273_v7 = vcvt.s32.f32 %v1249_v46  ;;  %v1377_v19 = vunpack.c.1.s8 %v801_v52  ;;  %v10148_v62 = vld [vmem:[%s9253_s21 + $0x4b0] sm:$0xff] }
 0x280   : > { %v4366_v63 = vadd.f32 %v4358_v61, %v4350_v4  ;;  %v3009_v60 = vpack.c.bf16 %v2001_v55, %v1993_v3  ;;  %v3073_v16 = vpack.c.bf16 %v2129_v36, %v2121_v38  ;;  %v953_v47 = vunpack.c.0.s8 %v697_v12 }
 0x281   : > { %v2393_v26 = vcvt.s32.f32 %v1369_v32  ;;  %v3145_v27 = vpack.c.bf16 %v2273_v7, %v2265_v50  ;;  %v2401_v57 = vcvt.s32.f32 %v1377_v19  ;;  %v961_v15 = vunpack.c.1.s8 %v697_v12  ;;  %v10139_v32 = vpop.f32.mrf.mxu2 }
 0x282   : > { %v4374_v48 = vmax.f32 %v4366_v63, 0.0  ;;  %4137 = vmatpush.bf16.msra.mxu0 %v3009_v60  ;;  %4150 = vmatpush.bf16.msra.mxu1 %v3073_v16  ;;  %v1977_v23 = vcvt.s32.f32 %v953_v47  ;;  %v1081_v8 = vunpack.c.0.s8 %v729_v29  ;;  %v1089_v18 = vunpack.c.1.s8 %v729_v29  ;;  %v10141_v63 = vpop.f32.mrf.mxu3  ;;  %v913_v16 = vld [vmem:[%s9253_s21 + $0x6f0] sm:$0xff] }
 0x283   : > { %v1577_v52 = vunpack.c.2.s8 %v849_v58  ;;  %4162 = vmatpush.bf16.msra.mxu2 %v3145_v27  ;;  %v3209_v14 = vpack.c.bf16 %v2401_v57, %v2393_v26  ;;  %v1985_v31 = vcvt.s32.f32 %v961_v15  ;;  %v1585_v41 = vunpack.c.3.s8 %v849_v58  ;;  %v945_v27 = vld [vmem:[%s9253_s21 + $0x7f0] sm:$0xff] }
 0x284   : > { %v10136_v45 = vpack.c.bf16 %v4374_v48, %v4374_v48  ;;  %v2105_v54 = vcvt.s32.f32 %v1081_v8  ;;  %v2113_v12 = vcvt.s32.f32 %v1089_v18  ;;  %v1705_v49 = vunpack.c.2.s8 %v881_v21 }
 0x285   : > { %v2601_v53 = vcvt.s32.f32 %v1577_v52  ;;  %4175 = vmatpush.bf16.msra.mxu3 %v3209_v14  ;;  %v3001_v43 = vpack.c.bf16 %v1985_v31, %v1977_v23  ;;  %v2609_v10 = vcvt.s32.f32 %v1585_v41  ;;  %v1713_v35 = vunpack.c.3.s8 %v881_v21 }
 0x286   : > { %v1225_v34 = vunpack.c.2.s8 %v761_v59  ;;  %v3065_v28 = vpack.c.bf16 %v2113_v12, %v2105_v54  ;;  %v2729_v29 = vcvt.s32.f32 %v1705_v49  ;;  %v1233_v1 = vunpack.c.3.s8 %v761_v59  ;;  %v873_v54 = vld [vmem:[%s9253_s21 + $0x5b0] sm:$0xff] }
 0x287   : > { %v1353_v61 = vunpack.c.2.s8 %v793_v24  ;;  %4138 = vmatpush.bf16.msra.mxu0 %v3001_v43  ;;  %v3313_v25 = vpack.c.bf16 %v2609_v10, %v2601_v53  ;;  %v2737_v11 = vcvt.s32.f32 %v1713_v35  ;;  %v1361_v6 = vunpack.c.3.s8 %v793_v24 }
 0x288   : > { %v2249_v40 = vcvt.s32.f32 %v1225_v34  ;;  %4151 = vmatpush.bf16.msra.mxu1 %v3065_v28  ;;  %v2257_v5 = vcvt.s32.f32 %v1233_v1  ;;  %v1561_v3 = vunpack.c.0.s8 %v849_v58  ;;  %v1569_v20 = vunpack.c.1.s8 %v849_v58 }
 0x289   : > { %v2377_v4 = vcvt.s32.f32 %v1353_v61  ;;  %v3377_v46 = vpack.c.bf16 %v2737_v11, %v2729_v29  ;;  %v2385_v55 = vcvt.s32.f32 %v1361_v6  ;;  %v1689_v38 = vunpack.c.0.s8 %v881_v21 }
 0x28a   : > { %v1697_v36 = vunpack.c.1.s8 %v881_v21  ;;  %v3137_v50 = vpack.c.bf16 %v2257_v5, %v2249_v40  ;;  %4139 = vmatmul.bf16.vlgmr.msra.gmra.mxu0 %v9493_v9  ;;  %v2585_v7 = vcvt.s32.f32 %v1561_v3  ;;  %v2593_v19 = vcvt.s32.f32 %v1569_v20  ;;  %v3973_v11 = vpop.f32.mrf.mxu3 }
 0x28b   : > { %4183 = vmatpush.bf16.msrb.mxu0 %v3313_v25  ;;  %v1209_v60 = vunpack.c.0.s8 %v761_v59  ;;  %v3201_v58 = vpack.c.bf16 %v2385_v55, %v2377_v4  ;;  %v2713_v26 = vcvt.s32.f32 %v1689_v38  ;;  %v1217_v48 = vunpack.c.1.s8 %v761_v59  ;;  %4152 = vmatmul.bf16.vlgmr.msra.gmra.mxu1 %v9495_v30  ;;  %v3960_v25 = vpop.f32.mrf.mxu2 }
 0x28c   : > { %4196 = vmatpush.bf16.msrb.mxu1 %v3377_v46  ;;  %v2721_v47 = vcvt.s32.f32 %v1697_v36  ;;  %4163 = vmatpush.bf16.msra.mxu2 %v3137_v50  ;;  %v3305_v57 = vpack.c.bf16 %v2593_v19, %v2585_v7  ;;  %v1337_v21 = vunpack.c.0.s8 %v793_v24  ;;  %v1345_v2 = vunpack.c.1.s8 %v793_v24  ;;  %v905_v19 = vld [vmem:[%s9253_s21 + $0x6b0] sm:$0xff] }
 0x28d   : > { %v2233_v15 = vcvt.s32.f32 %v1209_v60  ;;  %4176 = vmatpush.bf16.msra.mxu3 %v3201_v58  ;;  %v2241_v8 = vcvt.s32.f32 %v1217_v48  ;;  %v1833_v18 = vunpack.c.2.s8 %v913_v16  ;;  %v1841_v52 = vunpack.c.3.s8 %v913_v16 }
 0x28e   : > { %v3369_v23 = vpack.c.bf16 %v2721_v47, %v2713_v26  ;;  %v2361_v14 = vcvt.s32.f32 %v1337_v21  ;;  %v2369_v31 = vcvt.s32.f32 %v1345_v2  ;;  %v1961_v59 = vunpack.c.2.s8 %v945_v27  ;;  %v937_v47 = vld [vmem:[%s9253_s21 + $0x7b0] sm:$0xff] }
 0x28f   : > { %4184 = vmatpush.bf16.msrb.mxu0 %v3305_v57  ;;  %v1969_v41 = vunpack.c.3.s8 %v945_v27  ;;  %v3129_v12 = vpack.c.bf16 %v2241_v8, %v2233_v15  ;;  %v2857_v53 = vcvt.s32.f32 %v1833_v18  ;;  %v2865_v49 = vcvt.s32.f32 %v1841_v52  ;;  %v833_v21 = vld [vmem:[%s9253_s21 + $0x470] sm:$0xff] }
 0x290   : > { %4197 = vmatpush.bf16.msrb.mxu1 %v3369_v23  ;;  %v1545_v43 = vunpack.c.2.s8 %v10148_v62  ;;  %v3193_v24 = vpack.c.bf16 %v2369_v31, %v2361_v14  ;;  %v2985_v10 = vcvt.s32.f32 %v1961_v59  ;;  %v1553_v34 = vunpack.c.3.s8 %v10148_v62  ;;  %v865_v31 = vld [vmem:[%s9253_s21 + $0x570] sm:$0xff] }
 0x291   : > { %v2993_v35 = vcvt.s32.f32 %v1969_v41  ;;  %4164 = vmatpush.bf16.msra.mxu2 %v3129_v12  ;;  %v3441_v28 = vpack.c.bf16 %v2865_v49, %v2857_v53  ;;  %v1673_v1 = vunpack.c.2.s8 %v873_v54  ;;  %v1681_v61 = vunpack.c.3.s8 %v873_v54 }
 0x292   : > { %v2569_v29 = vcvt.s32.f32 %v1545_v43  ;;  %4177 = vmatpush.bf16.msra.mxu3 %v3193_v24  ;;  %v2577_v6 = vcvt.s32.f32 %v1553_v34  ;;  %v1817_v5 = vunpack.c.0.s8 %v913_v16  ;;  %v1825_v4 = vunpack.c.1.s8 %v913_v16 }
 0x293   : > { %v3505_v40 = vpack.c.bf16 %v2993_v35, %v2985_v10  ;;  %v2697_v3 = vcvt.s32.f32 %v1673_v1  ;;  %v2705_v20 = vcvt.s32.f32 %v1681_v61  ;;  %v1945_v46 = vunpack.c.0.s8 %v945_v27 }
 0x294   : > { %v1953_v55 = vunpack.c.1.s8 %v945_v27  ;;  %4165 = vmatmul.bf16.vlgmr.msra.gmra.mxu2 %v9555_v22  ;;  %v3297_v38 = vpack.c.bf16 %v2577_v6, %v2569_v29  ;;  %v2841_v36 = vcvt.s32.f32 %v1817_v5  ;;  %v2849_v50 = vcvt.s32.f32 %v1825_v4 }
 0x295   : > { %4209 = vmatpush.bf16.msrb.mxu2 %v3441_v28  ;;  %v10156_v7 = vadd.f32 %v10129_v42, %v10127_v44  ;;  %4178 = vmatmul.bf16.vlgmr.msra.gmra.mxu3 %v9557_v51  ;;  %v3361_v60 = vpack.c.bf16 %v2705_v20, %v2697_v3  ;;  %v2969_v16 = vcvt.s32.f32 %v1945_v46  ;;  %v1529_v26 = vunpack.c.0.s8 %v10148_v62  ;;  %v897_v46 = vld [vmem:[%s9253_s21 + $0x670] sm:$0xff] }
 0x296   : > { %4222 = vmatpush.bf16.msrb.mxu3 %v3505_v40  ;;  %v2977_v58 = vcvt.s32.f32 %v1953_v55  ;;  %4185 = vmatpush.bf16.msrb.mxu0 %v3297_v38  ;;  %v3433_v48 = vpack.c.bf16 %v2849_v50, %v2841_v36  ;;  %v1537_v27 = vunpack.c.1.s8 %v10148_v62  ;;  %v1657_v57 = vunpack.c.0.s8 %v873_v54 }
 0x297   : > { %v1665_v15 = vunpack.c.1.s8 %v873_v54  ;;  %4198 = vmatpush.bf16.msrb.mxu1 %v3361_v60  ;;  %v2553_v42 = vcvt.s32.f32 %v1529_v26  ;;  %v1801_v2 = vunpack.c.2.s8 %v905_v19  ;;  %v1809_v23 = vunpack.c.3.s8 %v905_v19  ;;  %v929_v60 = vld [vmem:[%s9253_s21 + $0x770] sm:$0xff] }
 0x298   : > { %v3497_v44 = vpack.c.bf16 %v2977_v58, %v2969_v16  ;;  %v2561_v8 = vcvt.s32.f32 %v1537_v27  ;;  %v2681_v18 = vcvt.s32.f32 %v1657_v57  ;;  %v1929_v14 = vunpack.c.2.s8 %v937_v47 }
 0x299   : > { %4210 = vmatpush.bf16.msrb.mxu2 %v3433_v48  ;;  %v2689_v52 = vcvt.s32.f32 %v1665_v15  ;;  %v2825_v59 = vcvt.s32.f32 %v1801_v2  ;;  %v2833_v41 = vcvt.s32.f32 %v1809_v23  ;;  %v1937_v12 = vunpack.c.3.s8 %v937_v47  ;;  %v825_v15 = vld [vmem:[%s9253_s21 + $0x430] sm:$0xff] }
 0x29a   : > { %4223 = vmatpush.bf16.msrb.mxu3 %v3497_v44  ;;  %v1513_v53 = vunpack.c.2.s8 %v833_v21  ;;  %v3289_v62 = vpack.c.bf16 %v2561_v8, %v2553_v42  ;;  %v2953_v54 = vcvt.s32.f32 %v1929_v14  ;;  %v1521_v43 = vunpack.c.3.s8 %v833_v21  ;;  %v857_v8 = vld [vmem:[%s9253_s21 + $0x530] sm:$0xff] }
 0x29b   : > { %v3353_v49 = vpack.c.bf16 %v2689_v52, %v2681_v18  ;;  %v3425_v24 = vpack.c.bf16 %v2833_v41, %v2825_v59  ;;  %v2961_v10 = vcvt.s32.f32 %v1937_v12  ;;  %v1641_v34 = vunpack.c.2.s8 %v865_v31  ;;  %v10171_v18 = vpop.f32.mrf.mxu1 }
 0x29c   : > { %v2537_v35 = vcvt.s32.f32 %v1513_v53  ;;  %4186 = vmatpush.bf16.msrb.mxu0 %v3289_v62  ;;  %v2545_v28 = vcvt.s32.f32 %v1521_v43  ;;  %v1649_v29 = vunpack.c.3.s8 %v865_v31  ;;  %v1785_v1 = vunpack.c.0.s8 %v905_v19 }
 0x29d   : > { %4199 = vmatpush.bf16.msrb.mxu1 %v3353_v49  ;;  %v1793_v61 = vunpack.c.1.s8 %v905_v19  ;;  %4211 = vmatpush.bf16.msrb.mxu2 %v3425_v24  ;;  %v3489_v25 = vpack.c.bf16 %v2961_v10, %v2953_v54  ;;  %v2665_v11 = vcvt.s32.f32 %v1641_v34  ;;  %v1913_v40 = vunpack.c.0.s8 %v937_v47 }
 0x29e   : > { %v1921_v6 = vunpack.c.1.s8 %v937_v47  ;;  %v3281_v5 = vpack.c.bf16 %v2545_v28, %v2537_v35  ;;  %v2673_v4 = vcvt.s32.f32 %v1649_v29  ;;  %v2809_v3 = vcvt.s32.f32 %v1785_v1 }
 0x29f   : > { %v2817_v20 = vcvt.s32.f32 %v1793_v61  ;;  %4224 = vmatpush.bf16.msrb.mxu3 %v3489_v25  ;;  %v2937_v55 = vcvt.s32.f32 %v1913_v40  ;;  %v1497_v36 = vunpack.c.0.s8 %v833_v21  ;;  %v1505_v50 = vunpack.c.1.s8 %v833_v21  ;;  %v10169_v21 = vpop.f32.mrf.mxu0 }
 0x2a0   : > { %v2945_v38 = vcvt.s32.f32 %v1921_v6  ;;  %4187 = vmatpush.bf16.msrb.mxu0 %v3281_v5  ;;  %v3345_v19 = vpack.c.bf16 %v2673_v4, %v2665_v11  ;;  %v1625_v58 = vunpack.c.0.s8 %v865_v31  ;;  %v1633_v26 = vunpack.c.1.s8 %v865_v31 }
 0x2a1   : > { %v3417_v16 = vpack.c.bf16 %v2817_v20, %v2809_v3  ;;  %v2521_v47 = vcvt.s32.f32 %v1497_v36  ;;  %v2529_v27 = vcvt.s32.f32 %v1505_v50  ;;  %v1769_v57 = vunpack.c.2.s8 %v897_v46  ;;  %v722_v3 = vld [vmem:[%s9253_s21 + $0xf8] sm:$0xff] }
 0x2a2   : > { %v3481_v48 = vpack.c.bf16 %v2945_v38, %v2937_v55  ;;  %4200 = vmatpush.bf16.msrb.mxu1 %v3345_v19  ;;  %v2649_v44 = vcvt.s32.f32 %v1625_v58  ;;  %v2657_v42 = vcvt.s32.f32 %v1633_v26  ;;  %v1777_v2 = vunpack.c.3.s8 %v897_v46  ;;  %v754_v50 = vld [vmem:[%s9253_s21 + $0x1f8] sm:$0xff] }
 0x2a3   : > { %4212 = vmatpush.bf16.msrb.mxu2 %v3417_v16  ;;  %v1897_v23 = vunpack.c.2.s8 %v929_v60  ;;  %v3273_v52 = vpack.c.bf16 %v2529_v27, %v2521_v47  ;;  %v2793_v14 = vcvt.s32.f32 %v1769_v57  ;;  %v1905_v31 = vunpack.c.3.s8 %v929_v60  ;;  %v3999_v19 = vpop.f32.mrf.mxu1 }
 0x2a4   : > { %4225 = vmatpush.bf16.msrb.mxu3 %v3481_v48  ;;  %v3959_v59 = vadd.f32 %v10139_v32, %v10156_v7  ;;  %v3337_v41 = vpack.c.bf16 %v2657_v42, %v2649_v44  ;;  %v2801_v12 = vcvt.s32.f32 %v1777_v2  ;;  %v1481_v62 = vunpack.c.2.s8 %v825_v15  ;;  %v889_v48 = vld [vmem:[%s9253_s21 + $0x630] sm:$0xff] }
 0x2a5   : > { %v2921_v53 = vcvt.s32.f32 %v1897_v23  ;;  %4188 = vmatpush.bf16.msrb.mxu0 %v3273_v52  ;;  %v2929_v49 = vcvt.s32.f32 %v1905_v31  ;;  %v1489_v43 = vunpack.c.3.s8 %v825_v15  ;;  %v1609_v24 = vunpack.c.2.s8 %v857_v8  ;;  %v921_v44 = vld [vmem:[%s9253_s21 + $0x730] sm:$0xff] }
 0x2a6   : > { %v10176_v54 = vadd.f32 %v10141_v63, %v3959_v59  ;;  %4201 = vmatpush.bf16.msrb.mxu1 %v3337_v41  ;;  %v3409_v10 = vpack.c.bf16 %v2801_v12, %v2793_v14  ;;  %v2505_v35 = vcvt.s32.f32 %v1481_v62  ;;  %v1617_v34 = vunpack.c.3.s8 %v857_v8 }
 0x2a7   : > { %v1753_v28 = vunpack.c.0.s8 %v897_v46  ;;  %v3473_v29 = vpack.c.bf16 %v2929_v49, %v2921_v53  ;;  %v2513_v1 = vcvt.s32.f32 %v1489_v43  ;;  %v2633_v32 = vcvt.s32.f32 %v1609_v24 }
 0x2a8   : > { %v1761_v7 = vunpack.c.1.s8 %v897_v46  ;;  %4213 = vmatpush.bf16.msrb.mxu2 %v3409_v10  ;;  %v2641_v61 = vcvt.s32.f32 %v1617_v34  ;;  %v1881_v11 = vunpack.c.0.s8 %v929_v60  ;;  %v1889_v40 = vunpack.c.1.s8 %v929_v60  ;;  %v3986_v46 = vpop.f32.mrf.mxu0 }
 0x2a9   : > { %v2777_v25 = vcvt.s32.f32 %v1753_v28  ;;  %4226 = vmatpush.bf16.msrb.mxu3 %v3473_v29  ;;  %v3265_v63 = vpack.c.bf16 %v2513_v1, %v2505_v35  ;;  %v1465_v5 = vunpack.c.0.s8 %v825_v15  ;;  %v1473_v4 = vunpack.c.1.s8 %v825_v15 }
 0x2aa   : > { %v2785_v6 = vcvt.s32.f32 %v1761_v7  ;;  %v3329_v20 = vpack.c.bf16 %v2641_v61, %v2633_v32  ;;  %v2905_v55 = vcvt.s32.f32 %v1881_v11  ;;  %v2913_v38 = vcvt.s32.f32 %v1889_v40  ;;  %v10184_v11 = vpop.f32.mrf.mxu3 }
 0x2ab   : > { %v1593_v36 = vunpack.c.0.s8 %v857_v8  ;;  %4189 = vmatpush.bf16.msrb.mxu0 %v3265_v63  ;;  %v2489_v58 = vcvt.s32.f32 %v1465_v5  ;;  %v2497_v26 = vcvt.s32.f32 %v1473_v4  ;;  %v1601_v60 = vunpack.c.1.s8 %v857_v8  ;;  %v786_v4 = vld [vmem:[%s9253_s21 + $0x2f8] sm:$0xff] }
 0x2ac   : > { %v3401_v16 = vpack.c.bf16 %v2785_v6, %v2777_v25  ;;  %4202 = vmatpush.bf16.msrb.mxu1 %v3329_v20  ;;  %v3465_v47 = vpack.c.bf16 %v2913_v38, %v2905_v55  ;;  %v1066_v57 = vunpack.c.2.s8 %v722_v3  ;;  %v1074_v15 = vunpack.c.3.s8 %v722_v3  ;;  %v10182_v25 = vpop.f32.mrf.mxu2 }
 0x2ad   : > { %v2617_v27 = vcvt.s32.f32 %v1593_v36  ;;  %v3257_v42 = vpack.c.bf16 %v2497_v26, %v2489_v58  ;;  %v2625_v2 = vcvt.s32.f32 %v1601_v60  ;;  %v1194_v23 = vunpack.c.2.s8 %v754_v50  ;;  %v818_v36 = vld [vmem:[%s9253_s21 + $0x3f8] sm:$0xff] }
 0x2ae   : > { %4214 = vmatpush.bf16.msrb.mxu2 %v3401_v16  ;;  %v1202_v52 = vunpack.c.3.s8 %v754_v50  ;;  %4227 = vmatpush.bf16.msrb.mxu3 %v3465_v47  ;;  %v2090_v14 = vcvt.s32.f32 %v1066_v57  ;;  %v2098_v31 = vcvt.s32.f32 %v1074_v15  ;;  %v1737_v59 = vunpack.c.2.s8 %v889_v48  ;;  %v714_v58 = vld [vmem:[%s9253_s21 + $0xb8] sm:$0xff] }
 0x2af   : > { %v1745_v41 = vunpack.c.3.s8 %v889_v48  ;;  %4190 = vmatpush.bf16.msrb.mxu0 %v3257_v42  ;;  %v3321_v12 = vpack.c.bf16 %v2625_v2, %v2617_v27  ;;  %v2218_v8 = vcvt.s32.f32 %v1194_v23  ;;  %v1865_v62 = vunpack.c.2.s8 %v921_v44  ;;  %v10192_v27 = vld [vmem:[%s9253_s21 + $0x1b8] sm:$0xff] }
 0x2b0   : > { %v2226_v53 = vcvt.s32.f32 %v1202_v52  ;;  %v3058_v49 = vpack.c.bf16 %v2098_v31, %v2090_v14  ;;  %v2761_v43 = vcvt.s32.f32 %v1737_v59  ;;  %v1873_v10 = vunpack.c.3.s8 %v921_v44 }
 0x2b1   : > { %v2769_v24 = vcvt.s32.f32 %v1745_v41  ;;  %4203 = vmatpush.bf16.msrb.mxu1 %v3321_v12  ;;  %v2889_v34 = vcvt.s32.f32 %v1865_v62  ;;  %v1050_v28 = vunpack.c.0.s8 %v722_v3  ;;  %v1058_v29 = vunpack.c.1.s8 %v722_v3 }
 0x2b2   : > { %v3122_v35 = vpack.c.bf16 %v2226_v53, %v2218_v8  ;;  %v2897_v32 = vcvt.s32.f32 %v1873_v10  ;;  %v1178_v7 = vunpack.c.0.s8 %v754_v50  ;;  %v1186_v61 = vunpack.c.1.s8 %v754_v50  ;;  %4191 = vmatmul.bf16.vlgmr.msrb.gmra.mxu0 %v9644_v17 }
 0x2b3   : > { %4235 = vmatpush.bf16.msra.mxu0 %v3058_v49  ;;  %v3393_v1 = vpack.c.bf16 %v2769_v24, %v2761_v43  ;;  %v2074_v40 = vcvt.s32.f32 %v1050_v28  ;;  %v2082_v63 = vcvt.s32.f32 %v1058_v29  ;;  %v1721_v6 = vunpack.c.0.s8 %v889_v48  ;;  %v4025_v24 = vpop.f32.mrf.mxu3 }
 0x2b4   : > { %v1729_v5 = vunpack.c.1.s8 %v889_v48  ;;  %v3457_v3 = vpack.c.bf16 %v2897_v32, %v2889_v34  ;;  %4204 = vmatmul.bf16.vlgmr.msrb.gmra.mxu1 %v9646_v13  ;;  %v2202_v20 = vcvt.s32.f32 %v1178_v7  ;;  %v2210_v55 = vcvt.s32.f32 %v1186_v61  ;;  %v4012_v43 = vpop.f32.mrf.mxu2 }
 0x2b5   : > { %4248 = vmatpush.bf16.msra.mxu1 %v3122_v35  ;;  %4215 = vmatpush.bf16.msrb.mxu2 %v3393_v1  ;;  %v1849_v38 = vunpack.c.0.s8 %v921_v44  ;;  %v3050_v50 = vpack.c.bf16 %v2082_v63, %v2074_v40  ;;  %v2745_v46 = vcvt.s32.f32 %v1721_v6  ;;  %v1857_v16 = vunpack.c.1.s8 %v921_v44 }
 0x2b6   : > { %v2753_v19 = vcvt.s32.f32 %v1729_v5  ;;  %4228 = vmatpush.bf16.msrb.mxu3 %v3457_v3  ;;  %v3114_v26 = vpack.c.bf16 %v2210_v55, %v2202_v20  ;;  %v1322_v47 = vunpack.c.2.s8 %v786_v4  ;;  %v1330_v48 = vunpack.c.3.s8 %v786_v4  ;;  %v778_v5 = vld [vmem:[%s9253_s21 + $0x2b8] sm:$0xff] }
 0x2b7   : > { %v2873_v60 = vcvt.s32.f32 %v1849_v38  ;;  %4236 = vmatpush.bf16.msra.mxu0 %v3050_v50  ;;  %v2881_v15 = vcvt.s32.f32 %v1857_v16  ;;  %v1450_v42 = vunpack.c.2.s8 %v818_v36  ;;  %v1458_v2 = vunpack.c.3.s8 %v818_v36  ;;  %v810_v38 = vld [vmem:[%s9253_s21 + $0x3b8] sm:$0xff] }
 0x2b8   : > { %v3385_v57 = vpack.c.bf16 %v2753_v19, %v2745_v46  ;;  %v2346_v23 = vcvt.s32.f32 %v1322_v47  ;;  %v2354_v52 = vcvt.s32.f32 %v1330_v48  ;;  %v1034_v14 = vunpack.c.2.s8 %v714_v58  ;;  %v706_v16 = vld [vmem:[%s9253_s21 + $0x78] sm:$0xff] }
 0x2b9   : > { %4249 = vmatpush.bf16.msra.mxu1 %v3114_v26  ;;  %v1042_v31 = vunpack.c.3.s8 %v714_v58  ;;  %v3449_v44 = vpack.c.bf16 %v2881_v15, %v2873_v60  ;;  %v2474_v59 = vcvt.s32.f32 %v1450_v42  ;;  %v2482_v41 = vcvt.s32.f32 %v1458_v2  ;;  %v738_v15 = vld [vmem:[%s9253_s21 + $0x178] sm:$0xff] }
 0x2ba   : > { %4216 = vmatpush.bf16.msrb.mxu2 %v3385_v57  ;;  %v1162_v12 = vunpack.c.2.s8 %v10192_v27  ;;  %v3186_v8 = vpack.c.bf16 %v2354_v52, %v2346_v23  ;;  %v2058_v53 = vcvt.s32.f32 %v1034_v14  ;;  %v1170_v49 = vunpack.c.3.s8 %v10192_v27 }
 0x2bb   : > { %v2066_v62 = vcvt.s32.f32 %v1042_v31  ;;  %4229 = vmatpush.bf16.msrb.mxu3 %v3449_v44  ;;  %v3250_v10 = vpack.c.bf16 %v2482_v41, %v2474_v59  ;;  %v1306_v34 = vunpack.c.0.s8 %v786_v4  ;;  %v1314_v28 = vunpack.c.1.s8 %v786_v4 }
 0x2bc   : > { %v2186_v35 = vcvt.s32.f32 %v1162_v12  ;;  %v2194_v1 = vcvt.s32.f32 %v1170_v49  ;;  %v1434_v32 = vunpack.c.0.s8 %v818_v36  ;;  %v1442_v7 = vunpack.c.1.s8 %v818_v36 }
 0x2bd   : > { %v3042_v29 = vpack.c.bf16 %v2066_v62, %v2058_v53  ;;  %4217 = vmatmul.bf16.vlgmr.msrb.gmra.mxu2 %v9716_v37  ;;  %v2330_v61 = vcvt.s32.f32 %v1306_v34  ;;  %v2338_v40 = vcvt.s32.f32 %v1314_v28  ;;  %v3985_v63 = vadd.f32 %v10169_v21, %v10176_v54 }
 0x2be   : > { %4261 = vmatpush.bf16.msra.mxu2 %v3186_v8  ;;  %v1018_v6 = vunpack.c.0.s8 %v714_v58  ;;  %4230 = vmatmul.bf16.vlgmr.msrb.gmra.mxu3 %v9718_v56  ;;  %v3106_v4 = vpack.c.bf16 %v2194_v1, %v2186_v35  ;;  %v2458_v3 = vcvt.s32.f32 %v1434_v32  ;;  %v2466_v20 = vcvt.s32.f32 %v1442_v7  ;;  %v770_v32 = vld [vmem:[%s9253_s21 + $0x278] sm:$0xff] }
 0x2bf   : > { %4274 = vmatpush.bf16.msra.mxu3 %v3250_v10  ;;  %4237 = vmatpush.bf16.msra.mxu0 %v3042_v29  ;;  %v1026_v55 = vunpack.c.1.s8 %v714_v58  ;;  %v3178_v36 = vpack.c.bf16 %v2338_v40, %v2330_v61  ;;  %v10203_v50 = vadd.f32 %v10171_v18, %v3985_v63  ;;  %v1146_v19 = vunpack.c.0.s8 %v10192_v27 }
 0x2c0   : > { %v2042_v46 = vcvt.s32.f32 %v1018_v6  ;;  %4250 = vmatpush.bf16.msra.mxu1 %v3106_v4  ;;  %v3242_v21 = vpack.c.bf16 %v2466_v20, %v2458_v3  ;;  %v1154_v26 = vunpack.c.1.s8 %v10192_v27  ;;  %v1290_v60 = vunpack.c.2.s8 %v778_v5  ;;  %v802_v6 = vld [vmem:[%s9253_s21 + $0x378] sm:$0xff] }
 0x2c1   : > { %v2050_v54 = vcvt.s32.f32 %v1026_v55  ;;  %v2170_v47 = vcvt.s32.f32 %v1146_v19  ;;  %v1298_v48 = vunpack.c.3.s8 %v778_v5  ;;  %v1418_v58 = vunpack.c.2.s8 %v810_v38 }
 0x2c2   : > { %4262 = vmatpush.bf16.msra.mxu2 %v3178_v36  ;;  %v1426_v57 = vunpack.c.3.s8 %v810_v38  ;;  %v2178_v18 = vcvt.s32.f32 %v1154_v26  ;;  %v2314_v2 = vcvt.s32.f32 %v1290_v60  ;;  %v1002_v23 = vunpack.c.2.s8 %v706_v16  ;;  %v698_v60 = vld [vmem:[%s9253_s21 + $0x38] sm:$0xff] }
 0x2c3   : > { %4275 = vmatpush.bf16.msra.mxu3 %v3242_v21  ;;  %v3034_v42 = vpack.c.bf16 %v2050_v54, %v2042_v46  ;;  %v2322_v52 = vcvt.s32.f32 %v1298_v48  ;;  %v2442_v14 = vcvt.s32.f32 %v1418_v58  ;;  %v1010_v44 = vunpack.c.3.s8 %v706_v16 }
 0x2c4   : > { %v2450_v31 = vcvt.s32.f32 %v1426_v57  ;;  %v3098_v59 = vpack.c.bf16 %v2178_v18, %v2170_v47  ;;  %v2026_v41 = vcvt.s32.f32 %v1002_v23  ;;  %v1130_v27 = vunpack.c.2.s8 %v738_v15  ;;  %v730_v57 = vld [vmem:[%s9253_s21 + $0x138] sm:$0xff] }
 0x2c5   : > { %4238 = vmatpush.bf16.msra.mxu0 %v3034_v42  ;;  %v1138_v12 = vunpack.c.3.s8 %v738_v15  ;;  %v3170_v8 = vpack.c.bf16 %v2322_v52, %v2314_v2  ;;  %v2034_v62 = vcvt.s32.f32 %v1010_v44  ;;  %v1274_v49 = vunpack.c.0.s8 %v778_v5  ;;  %v8856_v2 = vld [vmem:[%s9329_s15 + $0x20] sm:$0xff]  ;;  %v10216_v52 = vpop.f32.mrf.mxu0 }
 0x2c6   : > { %v3234_v53 = vpack.c.bf16 %v2450_v31, %v2442_v14  ;;  %4251 = vmatpush.bf16.msra.mxu1 %v3098_v59  ;;  %v2154_v43 = vcvt.s32.f32 %v1130_v27  ;;  %v1282_v10 = vunpack.c.1.s8 %v778_v5  ;;  %v1402_v35 = vunpack.c.0.s8 %v810_v38  ;;  %v10218_v14 = vpop.f32.mrf.mxu1 }
 0x2c7   : > { %v2162_v24 = vcvt.s32.f32 %v1138_v12  ;;  %4263 = vmatpush.bf16.msra.mxu2 %v3170_v8  ;;  %v3026_v34 = vpack.c.bf16 %v2034_v62, %v2026_v41  ;;  %v2298_v28 = vcvt.s32.f32 %v1274_v49  ;;  %v1410_v29 = vunpack.c.1.s8 %v810_v38 }
 0x2c8   : > { %4276 = vmatpush.bf16.msra.mxu3 %v3234_v53  ;;  %v986_v1 = vunpack.c.0.s8 %v706_v16  ;;  %v2306_v61 = vcvt.s32.f32 %v1282_v10  ;;  %v2426_v40 = vcvt.s32.f32 %v1402_v35  ;;  %v994_v63 = vunpack.c.1.s8 %v706_v16 }
 0x2c9   : > { %v3090_v7 = vpack.c.bf16 %v2162_v24, %v2154_v43  ;;  %4239 = vmatpush.bf16.msra.mxu0 %v3026_v34  ;;  %v2434_v4 = vcvt.s32.f32 %v1410_v29  ;;  %v1114_v20 = vunpack.c.0.s8 %v738_v15  ;;  %v1122_v55 = vunpack.c.1.s8 %v738_v15 }
 0x2ca   : > { %v2010_v3 = vcvt.s32.f32 %v986_v1  ;;  %v3162_v5 = vpack.c.bf16 %v2306_v61, %v2298_v28  ;;  %v2018_v36 = vcvt.s32.f32 %v994_v63  ;;  %v1258_v46 = vunpack.c.2.s8 %v770_v32  ;;  %v850_v63 = vld [vmem:[%s9253_s21 + $0x4f8] sm:$0xff] }
 0x2cb   : > { %4252 = vmatpush.bf16.msra.mxu1 %v3090_v7  ;;  %v1266_v19 = vunpack.c.3.s8 %v770_v32  ;;  %v3226_v38 = vpack.c.bf16 %v2434_v4, %v2426_v40  ;;  %v2138_v21 = vcvt.s32.f32 %v1114_v20  ;;  %v2146_v54 = vcvt.s32.f32 %v1122_v55  ;;  %v882_v55 = vld [vmem:[%s9253_s21 + $0x5f8] sm:$0xff] }
 0x2cc   : > { %v1386_v26 = vunpack.c.2.s8 %v802_v6  ;;  %4264 = vmatpush.bf16.msra.mxu2 %v3162_v5  ;;  %v3018_v16 = vpack.c.bf16 %v2018_v36, %v2010_v3  ;;  %v2282_v47 = vcvt.s32.f32 %v1258_v46  ;;  %v1394_v58 = vunpack.c.3.s8 %v802_v6 }
 0x2cd   : > { %v2290_v48 = vcvt.s32.f32 %v1266_v19  ;;  %4277 = vmatpush.bf16.msra.mxu3 %v3226_v38  ;;  %v3082_v15 = vpack.c.bf16 %v2146_v54, %v2138_v21  ;;  %v4011_v18 = vadd.f32 %v10182_v25, %v10203_v50  ;;  %v4343_v23 = vperm.slane %v8856_v2, 2  ;;  %v4038_v38 = vpop.f32.mrf.mxu0 }
 0x2ce   : > { %v2410_v42 = vcvt.s32.f32 %v1386_v26  ;;  %4240 = vmatpush.bf16.msra.mxu0 %v3018_v16  ;;  %v2418_v44 = vcvt.s32.f32 %v1394_v58  ;;  %v4359_v59 = vperm.slane %v8856_v2, 3  ;;  %v970_v41 = vunpack.c.2.s8 %v698_v60 }
 0x2cf   : > { %v3154_v31 = vpack.c.bf16 %v2290_v48, %v2282_v47  ;;  %4253 = vmatpush.bf16.msra.mxu1 %v3082_v15  ;;  %v4024_v27 = vadd.f32 %v10184_v11, %v4011_v18  ;;  %v978_v12 = vunpack.c.3.s8 %v698_v60  ;;  %v1098_v8 = vunpack.c.2.s8 %v730_v57  ;;  %v762_v47 = vld [vmem:[%s9253_s21 + $0x238] sm:$0xff] }
 0x2d0   : > { %v1106_v53 = vunpack.c.3.s8 %v730_v57  ;;  %v3218_v62 = vpack.c.bf16 %v2418_v44, %v2410_v42  ;;  %v1994_v25 = vcvt.s32.f32 %v970_v41  ;;  %v1242_v50 = vunpack.c.0.s8 %v770_v32  ;;  %v794_v42 = vld [vmem:[%s9253_s21 + $0x338] sm:$0xff] }
 0x2d1   : > { %4265 = vmatpush.bf16.msra.mxu2 %v3154_v31  ;;  %v1250_v49 = vunpack.c.1.s8 %v770_v32  ;;  %v4351_v43 = vmul.f32 %v4343_v23, %v4024_v27  ;;  %v2002_v24 = vcvt.s32.f32 %v978_v12  ;;  %v2122_v10 = vcvt.s32.f32 %v1098_v8 }
 0x2d2   : > { %v2130_v35 = vcvt.s32.f32 %v1106_v53  ;;  %4278 = vmatpush.bf16.msra.mxu3 %v3218_v62  ;;  %v2266_v34 = vcvt.s32.f32 %v1242_v50  ;;  %v1370_v29 = vunpack.c.0.s8 %v802_v6  ;;  %v1378_v1 = vunpack.c.1.s8 %v802_v6  ;;  %v4051_v6 = vpop.f32.mrf.mxu1 }
 0x2d3   : > { %v2274_v28 = vcvt.s32.f32 %v1250_v49  ;;  %v4367_v11 = vadd.f32 %v4359_v59, %v4351_v43  ;;  %v3010_v7 = vpack.c.bf16 %v2002_v24, %v1994_v25  ;;  %v954_v40 = vunpack.c.0.s8 %v698_v60  ;;  %v842_v6 = vld [vmem:[%s9253_s21 + $0x4b8] sm:$0xff] }
 0x2d4   : > { %v3074_v61 = vpack.c.bf16 %v2130_v35, %v2122_v10  ;;  %v2394_v3 = vcvt.s32.f32 %v1370_v29  ;;  %v2402_v20 = vcvt.s32.f32 %v1378_v1  ;;  %v962_v32 = vunpack.c.1.s8 %v698_v60 }
 0x2d5   : > { %v3146_v4 = vpack.c.bf16 %v2274_v28, %v2266_v34  ;;  %v4375_v5 = vmax.f32 %v4367_v11, 0.0  ;;  %4241 = vmatpush.bf16.msra.mxu0 %v3010_v7  ;;  %v1978_v36 = vcvt.s32.f32 %v954_v40  ;;  %v1082_v46 = vunpack.c.0.s8 %v730_v57  ;;  %v10227_v34 = vpop.f32.mrf.mxu2  ;;  %v10229_v28 = vpop.f32.mrf.mxu3 }
 0x2d6   : > { %4254 = vmatpush.bf16.msra.mxu1 %v3074_v61  ;;  %v1090_v19 = vunpack.c.1.s8 %v730_v57  ;;  %v3210_v21 = vpack.c.bf16 %v2402_v20, %v2394_v3  ;;  %v1986_v54 = vcvt.s32.f32 %v962_v32  ;;  %v1578_v26 = vunpack.c.2.s8 %v850_v63  ;;  %v914_v61 = vld [vmem:[%s9253_s21 + $0x6f8] sm:$0xff] }
 0x2d7   : > { %4266 = vmatpush.bf16.msra.mxu2 %v3146_v4  ;;  %v1586_v16 = vunpack.c.3.s8 %v850_v63  ;;  %v10224_v48 = vpack.c.bf16 %v4375_v5, %v4375_v5  ;;  %v2106_v58 = vcvt.s32.f32 %v1082_v46  ;;  %v1706_v15 = vunpack.c.2.s8 %v882_v55  ;;  %v946_v20 = vld [vmem:[%s9253_s21 + $0x7f8] sm:$0xff] }
 0x2d8   : > { %v2114_v60 = vcvt.s32.f32 %v1090_v19  ;;  %4279 = vmatpush.bf16.msra.mxu3 %v3210_v21  ;;  %v3002_v18 = vpack.c.bf16 %v1986_v54, %v1978_v36  ;;  %v2602_v2 = vcvt.s32.f32 %v1578_v26  ;;  %v1714_v31 = vunpack.c.3.s8 %v882_v55 }
 0x2d9   : > { %v2610_v23 = vcvt.s32.f32 %v1586_v16  ;;  %v2730_v44 = vcvt.s32.f32 %v1706_v15  ;;  %v1226_v59 = vunpack.c.2.s8 %v762_v47  ;;  %v1234_v41 = vunpack.c.3.s8 %v762_v47 }
 0x2da   : > { %v3066_v57 = vpack.c.bf16 %v2114_v60, %v2106_v58  ;;  %4242 = vmatpush.bf16.msra.mxu0 %v3002_v18  ;;  %v2738_v12 = vcvt.s32.f32 %v1714_v31  ;;  %v1354_v8 = vunpack.c.2.s8 %v794_v42  ;;  %v1362_v53 = vunpack.c.3.s8 %v794_v42 }
 0x2db   : > { %v3314_v27 = vpack.c.bf16 %v2610_v23, %v2602_v2  ;;  %v2250_v62 = vcvt.s32.f32 %v1226_v59  ;;  %v2258_v25 = vcvt.s32.f32 %v1234_v41  ;;  %v1562_v50 = vunpack.c.0.s8 %v850_v63 }
 0x2dc   : > { %4255 = vmatpush.bf16.msra.mxu1 %v3066_v57  ;;  %v1570_v49 = vunpack.c.1.s8 %v850_v63  ;;  %v3378_v43 = vpack.c.bf16 %v2738_v12, %v2730_v44  ;;  %v2378_v24 = vcvt.s32.f32 %v1354_v8  ;;  %v2386_v10 = vcvt.s32.f32 %v1362_v53 }
 0x2dd   : > { %v1690_v35 = vunpack.c.0.s8 %v882_v55  ;;  %v3138_v29 = vpack.c.bf16 %v2258_v25, %v2250_v62  ;;  %4243 = vmatmul.bf16.vlgmr.msra.gmra.mxu0 %v9493_v9  ;;  %v2586_v1 = vcvt.s32.f32 %v1562_v50  ;;  %v1698_v7 = vunpack.c.1.s8 %v882_v55  ;;  %v4064_v41 = vpop.f32.mrf.mxu2 }
 0x2de   : > { %4287 = vmatpush.bf16.msrb.mxu0 %v3314_v27  ;;  %v2594_v11 = vcvt.s32.f32 %v1570_v49  ;;  %v3202_v40 = vpack.c.bf16 %v2386_v10, %v2378_v24  ;;  %v1210_v4 = vunpack.c.0.s8 %v762_v47  ;;  %v1218_v3 = vunpack.c.1.s8 %v762_v47  ;;  %v874_v47 = vld [vmem:[%s9253_s21 + $0x5b8] sm:$0xff]  ;;  %v4077_v27 = vpop.f32.mrf.mxu3 }
 0x2df   : > { %v2714_v63 = vcvt.s32.f32 %v1690_v35  ;;  %4267 = vmatpush.bf16.msra.mxu2 %v3138_v29  ;;  %4256 = vmatmul.bf16.vlgmr.msra.gmra.mxu1 %v9495_v30  ;;  %v2722_v5 = vcvt.s32.f32 %v1698_v7  ;;  %v1338_v36 = vunpack.c.0.s8 %v794_v42  ;;  %v1346_v46 = vunpack.c.1.s8 %v794_v42 }
 0x2e0   : > { %4300 = vmatpush.bf16.msrb.mxu1 %v3378_v43  ;;  %v3306_v32 = vpack.c.bf16 %v2594_v11, %v2586_v1  ;;  %4280 = vmatpush.bf16.msra.mxu3 %v3202_v40  ;;  %v2234_v9 = vcvt.s32.f32 %v1210_v4  ;;  %v2242_v19 = vcvt.s32.f32 %v1218_v3  ;;  %v1834_v55 = vunpack.c.2.s8 %v914_v61  ;;  %v906_v1 = vld [vmem:[%s9253_s21 + $0x6b8] sm:$0xff] }
 0x2e1   : > { %v1842_v38 = vunpack.c.3.s8 %v914_v61  ;;  %v3370_v21 = vpack.c.bf16 %v2722_v5, %v2714_v63  ;;  %v2362_v54 = vcvt.s32.f32 %v1338_v36  ;;  %v2370_v26 = vcvt.s32.f32 %v1346_v46  ;;  %v938_v63 = vld [vmem:[%s9253_s21 + $0x7b8] sm:$0xff] }
 0x2e2   : > { %4288 = vmatpush.bf16.msrb.mxu0 %v3306_v32  ;;  %v1962_v16 = vunpack.c.2.s8 %v946_v20  ;;  %v3130_v58 = vpack.c.bf16 %v2242_v19, %v2234_v9  ;;  %v2858_v60 = vcvt.s32.f32 %v1834_v55  ;;  %v1970_v15 = vunpack.c.3.s8 %v946_v20  ;;  %v834_v9 = vld [vmem:[%s9253_s21 + $0x478] sm:$0xff] }
 0x2e3   : > { %v2866_v30 = vcvt.s32.f32 %v1842_v38  ;;  %v3194_v18 = vpack.c.bf16 %v2370_v26, %v2362_v54  ;;  %v1546_v42 = vunpack.c.2.s8 %v842_v6  ;;  %v1554_v23 = vunpack.c.3.s8 %v842_v6  ;;  %v866_v38 = vld [vmem:[%s9253_s21 + $0x578] sm:$0xff] }
 0x2e4   : > { %4301 = vmatpush.bf16.msrb.mxu1 %v3370_v21  ;;  %v2986_v2 = vcvt.s32.f32 %v1962_v16  ;;  %4268 = vmatpush.bf16.msra.mxu2 %v3130_v58  ;;  %v2994_v57 = vcvt.s32.f32 %v1970_v15  ;;  %v1674_v44 = vunpack.c.2.s8 %v874_v47  ;;  %v1682_v59 = vunpack.c.3.s8 %v874_v47 }
 0x2e5   : > { %v3442_v31 = vpack.c.bf16 %v2866_v30, %v2858_v60  ;;  %4281 = vmatpush.bf16.msra.mxu3 %v3194_v18  ;;  %v2570_v12 = vcvt.s32.f32 %v1546_v42  ;;  %v2578_v8 = vcvt.s32.f32 %v1554_v23  ;;  %v1818_v53 = vunpack.c.0.s8 %v914_v61 }
 0x2e6   : > { %v1826_v62 = vunpack.c.1.s8 %v914_v61  ;;  %v3506_v25 = vpack.c.bf16 %v2994_v57, %v2986_v2  ;;  %v2698_v50 = vcvt.s32.f32 %v1674_v44  ;;  %v2706_v49 = vcvt.s32.f32 %v1682_v59 }
 0x2e7   : > { %v1946_v43 = vunpack.c.0.s8 %v946_v20  ;;  %4269 = vmatmul.bf16.vlgmr.msra.gmra.mxu2 %v9555_v22  ;;  %v3298_v24 = vpack.c.bf16 %v2578_v8, %v2570_v12  ;;  %v2842_v10 = vcvt.s32.f32 %v1818_v53  ;;  %v1954_v29 = vunpack.c.1.s8 %v946_v20 }
 0x2e8   : > { %4313 = vmatpush.bf16.msrb.mxu2 %v3442_v31  ;;  %v2850_v35 = vcvt.s32.f32 %v1826_v62  ;;  %v3362_v11 = vpack.c.bf16 %v2706_v49, %v2698_v50  ;;  %v10241_v61 = vadd.f32 %v10218_v14, %v10216_v52  ;;  %v1530_v40 = vunpack.c.0.s8 %v842_v6  ;;  %4282 = vmatmul.bf16.vlgmr.msra.gmra.mxu3 %v9557_v51  ;;  %v898_v62 = vld [vmem:[%s9253_s21 + $0x678] sm:$0xff] }
 0x2e9   : > { %4326 = vmatpush.bf16.msrb.mxu3 %v3506_v25  ;;  %v2970_v7 = vcvt.s32.f32 %v1946_v43  ;;  %4289 = vmatpush.bf16.msrb.mxu0 %v3298_v24  ;;  %v2978_v4 = vcvt.s32.f32 %v1954_v29  ;;  %v1538_v3 = vunpack.c.1.s8 %v842_v6  ;;  %v1658_v32 = vunpack.c.0.s8 %v874_v47 }
 0x2ea   : > { %v3434_v22 = vpack.c.bf16 %v2850_v35, %v2842_v10  ;;  %4302 = vmatpush.bf16.msrb.mxu1 %v3362_v11  ;;  %v2554_v20 = vcvt.s32.f32 %v1530_v40  ;;  %v1666_v5 = vunpack.c.1.s8 %v874_v47  ;;  %v1802_v36 = vunpack.c.2.s8 %v906_v1 }
 0x2eb   : > { %v1810_v46 = vunpack.c.3.s8 %v906_v1  ;;  %v3498_v19 = vpack.c.bf16 %v2978_v4, %v2970_v7  ;;  %v2562_v52 = vcvt.s32.f32 %v1538_v3  ;;  %v2682_v14 = vcvt.s32.f32 %v1658_v32  ;;  %v826_v4 = vld [vmem:[%s9253_s21 + $0x438] sm:$0xff] }
 0x2ec   : > { %4314 = vmatpush.bf16.msrb.mxu2 %v3434_v22  ;;  %v1930_v55 = vunpack.c.2.s8 %v938_v63  ;;  %v2690_v21 = vcvt.s32.f32 %v1666_v5  ;;  %v2826_v51 = vcvt.s32.f32 %v1802_v36  ;;  %v1938_v26 = vunpack.c.3.s8 %v938_v63  ;;  %v858_v5 = vld [vmem:[%s9253_s21 + $0x538] sm:$0xff]  ;;  %v10251_v36 = vpop.f32.mrf.mxu0 }
 0x2ed   : > { %v2834_v54 = vcvt.s32.f32 %v1810_v46  ;;  %4327 = vmatpush.bf16.msrb.mxu3 %v3498_v19  ;;  %v3290_v16 = vpack.c.bf16 %v2562_v52, %v2554_v20  ;;  %v1514_v58 = vunpack.c.2.s8 %v834_v9  ;;  %v1522_v60 = vunpack.c.3.s8 %v834_v9  ;;  %v10253_v46 = vpop.f32.mrf.mxu1 }
 0x2ee   : > { %v2954_v6 = vcvt.s32.f32 %v1930_v55  ;;  %v3354_v30 = vpack.c.bf16 %v2690_v21, %v2682_v14  ;;  %v2962_v15 = vcvt.s32.f32 %v1938_v26  ;;  %v1642_v18 = vunpack.c.2.s8 %v866_v38 }
 0x2ef   : > { %v3426_v47 = vpack.c.bf16 %v2834_v54, %v2826_v51  ;;  %4290 = vmatpush.bf16.msrb.mxu0 %v3290_v16  ;;  %v2538_v2 = vcvt.s32.f32 %v1514_v58  ;;  %v2546_v42 = vcvt.s32.f32 %v1522_v60  ;;  %v1650_v23 = vunpack.c.3.s8 %v866_v38 }
 0x2f0   : > { %v1786_v31 = vunpack.c.0.s8 %v906_v1  ;;  %4303 = vmatpush.bf16.msrb.mxu1 %v3354_v30  ;;  %v3490_v57 = vpack.c.bf16 %v2962_v15, %v2954_v6  ;;  %v2666_v44 = vcvt.s32.f32 %v1642_v18  ;;  %v1794_v59 = vunpack.c.1.s8 %v906_v1  ;;  %v930_v1 = vld [vmem:[%s9253_s21 + $0x778] sm:$0xff] }
 0x2f1   : > { %4315 = vmatpush.bf16.msrb.mxu2 %v3426_v47  ;;  %v1914_v41 = vunpack.c.0.s8 %v938_v63  ;;  %v3282_v27 = vpack.c.bf16 %v2546_v42, %v2538_v2  ;;  %v2674_v12 = vcvt.s32.f32 %v1650_v23  ;;  %v1922_v53 = vunpack.c.1.s8 %v938_v63 }
 0x2f2   : > { %v2810_v8 = vcvt.s32.f32 %v1786_v31  ;;  %4328 = vmatpush.bf16.msrb.mxu3 %v3490_v57  ;;  %v2818_v25 = vcvt.s32.f32 %v1794_v59  ;;  %v1498_v49 = vunpack.c.0.s8 %v834_v9  ;;  %v1506_v43 = vunpack.c.1.s8 %v834_v9 }
 0x2f3   : > { %v2938_v50 = vcvt.s32.f32 %v1914_v41  ;;  %4291 = vmatpush.bf16.msrb.mxu0 %v3282_v27  ;;  %v3346_v24 = vpack.c.bf16 %v2674_v12, %v2666_v44  ;;  %v2946_v10 = vcvt.s32.f32 %v1922_v53  ;;  %v1626_v35 = vunpack.c.0.s8 %v866_v38  ;;  %v4411_v41 = vld [vmem:[%s9260_s18 + $0xc0] sm:$0xff] }
 0x2f4   : > { %v1634_v29 = vunpack.c.1.s8 %v866_v38  ;;  %v3418_v11 = vpack.c.bf16 %v2818_v25, %v2810_v8  ;;  %v2522_v7 = vcvt.s32.f32 %v1498_v49  ;;  %v2530_v40 = vcvt.s32.f32 %v1506_v43  ;;  %v4443_v25 = vld [vmem:[%s9260_s18 + $0x1c0] sm:$0xff] }
 0x2f5   : > { %v1770_v22 = vunpack.c.2.s8 %v898_v62  ;;  %4304 = vmatpush.bf16.msrb.mxu1 %v3346_v24  ;;  %v3482_v63 = vpack.c.bf16 %v2946_v10, %v2938_v50  ;;  %v2650_v3 = vcvt.s32.f32 %v1626_v35  ;;  %v1778_v20 = vunpack.c.3.s8 %v898_v62  ;;  %v4090_v50 = vpop.f32.mrf.mxu0  ;;  %v4103_v49 = vpop.f32.mrf.mxu1  ;;  %v890_v35 = vld [vmem:[%s9253_s21 + $0x638] sm:$0xff] }
 0x2f6   : > { %v2658_v32 = vcvt.s32.f32 %v1634_v29  ;;  %4316 = vmatpush.bf16.msrb.mxu2 %v3418_v11  ;;  %v3274_v9 = vpack.c.bf16 %v2530_v40, %v2522_v7  ;;  %v1898_v52 = vunpack.c.2.s8 %v930_v1  ;;  %v1906_v14 = vunpack.c.3.s8 %v930_v1  ;;  %v922_v40 = vld [vmem:[%s9253_s21 + $0x738] sm:$0xff] }
 0x2f7   : > { %v2794_v19 = vcvt.s32.f32 %v1770_v22  ;;  %4329 = vmatpush.bf16.msrb.mxu3 %v3482_v63  ;;  %v2802_v38 = vcvt.s32.f32 %v1778_v20  ;;  %v4063_v21 = vadd.f32 %v10227_v34, %v10241_v61  ;;  %v1482_v51 = vunpack.c.2.s8 %v826_v4 }
 0x2f8   : > { %v3338_v55 = vpack.c.bf16 %v2658_v32, %v2650_v3  ;;  %4292 = vmatpush.bf16.msrb.mxu0 %v3274_v9  ;;  %v2922_v54 = vcvt.s32.f32 %v1898_v52  ;;  %v2930_v26 = vcvt.s32.f32 %v1906_v14  ;;  %v1490_v16 = vunpack.c.3.s8 %v826_v4 }
 0x2f9   : > { %v1610_v6 = vunpack.c.2.s8 %v858_v5  ;;  %v3410_v58 = vpack.c.bf16 %v2802_v38, %v2794_v19  ;;  %v10258_v60 = vadd.f32 %v10229_v28, %v4063_v21  ;;  %v2506_v30 = vcvt.s32.f32 %v1482_v51 }
 0x2fa   : > { %4305 = vmatpush.bf16.msrb.mxu1 %v3338_v55  ;;  %v1618_v47 = vunpack.c.3.s8 %v858_v5  ;;  %v3474_v15 = vpack.c.bf16 %v2930_v26, %v2922_v54  ;;  %v2514_v18 = vcvt.s32.f32 %v1490_v16  ;;  %v1754_v42 = vunpack.c.0.s8 %v898_v62 }
 0x2fb   : > { %v2634_v2 = vcvt.s32.f32 %v1610_v6  ;;  %4317 = vmatpush.bf16.msrb.mxu2 %v3410_v58  ;;  %v1762_v61 = vunpack.c.1.s8 %v898_v62  ;;  %v1882_v23 = vunpack.c.0.s8 %v930_v1  ;;  %v1890_v31 = vunpack.c.1.s8 %v930_v1 }
 0x2fc   : > { %v2642_v34 = vcvt.s32.f32 %v1618_v47  ;;  %4330 = vmatpush.bf16.msrb.mxu3 %v3474_v15  ;;  %v3266_v57 = vpack.c.bf16 %v2514_v18, %v2506_v30  ;;  %v2778_v44 = vcvt.s32.f32 %v1754_v42  ;;  %v1466_v59 = vunpack.c.0.s8 %v826_v4  ;;  %v10266_v42 = vpop.f32.mrf.mxu3 }
 0x2fd   : > { %v1474_v28 = vunpack.c.1.s8 %v826_v4  ;;  %v2786_v12 = vcvt.s32.f32 %v1762_v61  ;;  %v2906_v8 = vcvt.s32.f32 %v1882_v23  ;;  %v2914_v53 = vcvt.s32.f32 %v1890_v31 }
 0x2fe   : > { %v3330_v27 = vpack.c.bf16 %v2642_v34, %v2634_v2  ;;  %4293 = vmatpush.bf16.msrb.mxu0 %v3266_v57  ;;  %v2490_v43 = vcvt.s32.f32 %v1466_v59  ;;  %v1594_v24 = vunpack.c.0.s8 %v858_v5  ;;  %v1602_v10 = vunpack.c.1.s8 %v858_v5  ;;  %v10264_v2 = vpop.f32.mrf.mxu2  ;;  %v4475_v57 = vld [vmem:[%s9260_s18 + $0x2c0] sm:$0xff] }
 0x2ff   : > { %v2498_v62 = vcvt.s32.f32 %v1474_v28  ;;  %v3402_v29 = vpack.c.bf16 %v2786_v12, %v2778_v44  ;;  %v3466_v1 = vpack.c.bf16 %v2914_v53, %v2906_v8  ;;  %v4755_v11 = vunpack.c.2.s8 %v4411_v41 }
 0x300   : > { %4306 = vmatpush.bf16.msrb.mxu1 %v3330_v27  ;;  %v4763_v7 = vunpack.c.3.s8 %v4411_v41  ;;  %v2618_v4 = vcvt.s32.f32 %v1594_v24  ;;  %v2626_v63 = vcvt.s32.f32 %v1602_v10  ;;  %v4883_v3 = vunpack.c.2.s8 %v4443_v25  ;;  %v4507_v27 = vld [vmem:[%s9260_s18 + $0x3c0] sm:$0xff] }
 0x301   : > { %v3258_v22 = vpack.c.bf16 %v2498_v62, %v2490_v43  ;;  %4318 = vmatpush.bf16.msrb.mxu2 %v3402_v29  ;;  %4331 = vmatpush.bf16.msrb.mxu3 %v3466_v1  ;;  %v5779_v32 = vcvt.s32.f32 %v4755_v11  ;;  %v4891_v9 = vunpack.c.3.s8 %v4443_v25  ;;  %v1738_v19 = vunpack.c.2.s8 %v890_v35  ;;  %v4435_v1 = vld [vmem:[%s9260_s18 + $0x180] sm:$0xff] }
 0x302   : > { %v5787_v20 = vcvt.s32.f32 %v4763_v7  ;;  %v3322_v52 = vpack.c.bf16 %v2626_v63, %v2618_v4  ;;  %v5907_v5 = vcvt.s32.f32 %v4883_v3  ;;  %v1746_v14 = vunpack.c.3.s8 %v890_v35 }
 0x303   : > { %4294 = vmatpush.bf16.msrb.mxu0 %v3258_v22  ;;  %v1866_v55 = vunpack.c.2.s8 %v922_v40  ;;  %v5915_v21 = vcvt.s32.f32 %v4891_v9  ;;  %v2762_v51 = vcvt.s32.f32 %v1738_v19  ;;  %v1874_v54 = vunpack.c.3.s8 %v922_v40 }
 0x304   : > { %v6747_v38 = vpack.c.bf16 %v5787_v20, %v5779_v32  ;;  %4307 = vmatpush.bf16.msrb.mxu1 %v3322_v52  ;;  %v2770_v26 = vcvt.s32.f32 %v1746_v14  ;;  %v4739_v6 = vunpack.c.0.s8 %v4411_v41  ;;  %v4747_v58 = vunpack.c.1.s8 %v4411_v41 }
 0x305   : > { %v2890_v16 = vcvt.s32.f32 %v1866_v55  ;;  %v6811_v30 = vpack.c.bf16 %v5915_v21, %v5907_v5  ;;  %v2898_v47 = vcvt.s32.f32 %v1874_v54  ;;  %v4867_v15 = vunpack.c.0.s8 %v4443_v25  ;;  %v4129_v5 = vpop.f32.mrf.mxu3 }
 0x306   : > { %v4875_v18 = vunpack.c.1.s8 %v4443_v25  ;;  %v3394_v34 = vpack.c.bf16 %v2770_v26, %v2762_v51  ;;  %4295 = vmatmul.bf16.vlgmr.msrb.gmra.mxu0 %v9644_v17  ;;  %v5763_v61 = vcvt.s32.f32 %v4739_v6  ;;  %v5771_v23 = vcvt.s32.f32 %v4747_v58  ;;  %v10273_v17 = vld [vmem:[%s9260_s18 + $0x80] sm:$0xff]  ;;  %v4116_v52 = vpop.f32.mrf.mxu2 }
 0x307   : > { %7203 = vmatpush.bf16.msra.mxu0 %v6747_v38  ;;  %v1722_v31 = vunpack.c.0.s8 %v890_v35  ;;  %v3458_v44 = vpack.c.bf16 %v2898_v47, %v2890_v16  ;;  %v5891_v59 = vcvt.s32.f32 %v4867_v15  ;;  %v1730_v41 = vunpack.c.1.s8 %v890_v35  ;;  %4308 = vmatmul.bf16.vlgmr.msrb.gmra.mxu1 %v9646_v13  ;;  %v4467_v15 = vld [vmem:[%s9260_s18 + $0x280] sm:$0xff] }
 0x308   : > { %7216 = vmatpush.bf16.msra.mxu1 %v6811_v30  ;;  %v5899_v28 = vcvt.s32.f32 %v4875_v18  ;;  %4319 = vmatpush.bf16.msrb.mxu2 %v3394_v34  ;;  %v6739_v12 = vpack.c.bf16 %v5771_v23, %v5763_v61  ;;  %v1850_v53 = vunpack.c.0.s8 %v922_v40  ;;  %v1858_v25 = vunpack.c.1.s8 %v922_v40  ;;  %v10292_v5 = vld [vmem:[%s9260_s18 + $0x240] sm:$0xff] }
 0x309   : > { %v2746_v8 = vcvt.s32.f32 %v1722_v31  ;;  %4332 = vmatpush.bf16.msrb.mxu3 %v3458_v44  ;;  %v2754_v49 = vcvt.s32.f32 %v1730_v41  ;;  %v5011_v43 = vunpack.c.2.s8 %v4475_v57  ;;  %v5019_v62 = vunpack.c.3.s8 %v4475_v57  ;;  %v4499_v31 = vld [vmem:[%s9260_s18 + $0x380] sm:$0xff] }
 0x30a   : > { %v6803_v50 = vpack.c.bf16 %v5899_v28, %v5891_v59  ;;  %v2874_v24 = vcvt.s32.f32 %v1850_v53  ;;  %v2882_v10 = vcvt.s32.f32 %v1858_v25  ;;  %v5139_v35 = vunpack.c.2.s8 %v4507_v27  ;;  %v4395_v28 = vld [vmem:[%s9260_s18 + $0x40] sm:$0xff] }
 0x30b   : > { %7204 = vmatpush.bf16.msra.mxu0 %v6739_v12  ;;  %v5147_v29 = vunpack.c.3.s8 %v4507_v27  ;;  %v3386_v13 = vpack.c.bf16 %v2754_v49, %v2746_v8  ;;  %v6035_v11 = vcvt.s32.f32 %v5011_v43  ;;  %v6043_v7 = vcvt.s32.f32 %v5019_v62  ;;  %v4427_v25 = vld [vmem:[%s9260_s18 + $0x140] sm:$0xff] }
 0x30c   : > { %7217 = vmatpush.bf16.msra.mxu1 %v6803_v50  ;;  %v4723_v22 = vunpack.c.2.s8 %v10273_v17  ;;  %v3450_v40 = vpack.c.bf16 %v2882_v10, %v2874_v24  ;;  %v6163_v4 = vcvt.s32.f32 %v5139_v35  ;;  %v4731_v3 = vunpack.c.3.s8 %v10273_v17 }
 0x30d   : > { %v6171_v63 = vcvt.s32.f32 %v5147_v29  ;;  %4320 = vmatpush.bf16.msrb.mxu2 %v3386_v13  ;;  %v6875_v32 = vpack.c.bf16 %v6043_v7, %v6035_v11  ;;  %v4851_v9 = vunpack.c.2.s8 %v4435_v1  ;;  %v4859_v19 = vunpack.c.3.s8 %v4435_v1 }
 0x30e   : > { %v5747_v20 = vcvt.s32.f32 %v4723_v22  ;;  %4333 = vmatpush.bf16.msrb.mxu3 %v3450_v40  ;;  %v5755_v55 = vcvt.s32.f32 %v4731_v3  ;;  %v4995_v38 = vunpack.c.0.s8 %v4475_v57  ;;  %v5003_v21 = vunpack.c.1.s8 %v4475_v57 }
 0x30f   : > { %v6939_v14 = vpack.c.bf16 %v6171_v63, %v6163_v4  ;;  %v5875_v51 = vcvt.s32.f32 %v4851_v9  ;;  %v5883_v54 = vcvt.s32.f32 %v4859_v19  ;;  %v5123_v26 = vunpack.c.0.s8 %v4507_v27 }
 0x310   : > { %v5131_v16 = vunpack.c.1.s8 %v4507_v27  ;;  %4321 = vmatmul.bf16.vlgmr.msrb.gmra.mxu2 %v9716_v37  ;;  %v6731_v6 = vpack.c.bf16 %v5755_v55, %v5747_v20  ;;  %v6019_v58 = vcvt.s32.f32 %v4995_v38  ;;  %v6027_v30 = vcvt.s32.f32 %v5003_v21 }
 0x311   : > { %7229 = vmatpush.bf16.msra.mxu2 %v6875_v32  ;;  %v4089_v47 = vadd.f32 %v10251_v36, %v10258_v60  ;;  %4334 = vmatmul.bf16.vlgmr.msrb.gmra.mxu3 %v9718_v56  ;;  %v6795_v18 = vpack.c.bf16 %v5883_v54, %v5875_v51  ;;  %v6147_v34 = vcvt.s32.f32 %v5123_v26  ;;  %v4707_v23 = vunpack.c.0.s8 %v10273_v17 }
 0x312   : > { %7242 = vmatpush.bf16.msra.mxu3 %v6939_v14  ;;  %v6155_v61 = vcvt.s32.f32 %v5131_v16  ;;  %7205 = vmatpush.bf16.msra.mxu0 %v6731_v6  ;;  %v6867_v57 = vpack.c.bf16 %v6027_v30, %v6019_v58  ;;  %v4715_v44 = vunpack.c.1.s8 %v10273_v17  ;;  %v4835_v59 = vunpack.c.0.s8 %v4435_v1  ;;  %v4491_v6 = vld [vmem:[%s9260_s18 + $0x340] sm:$0xff]  ;;  %v10295_v58 = vpop.f32.mrf.mxu0  ;;  %v10297_v30 = vpop.f32.mrf.mxu1 }
 0x313   : > { %v10286_v37 = vadd.f32 %v10253_v46, %v4089_v47  ;;  %7218 = vmatpush.bf16.msra.mxu1 %v6795_v18  ;;  %v5731_v60 = vcvt.s32.f32 %v4707_v23  ;;  %v4843_v56 = vunpack.c.1.s8 %v4435_v1  ;;  %v4979_v41 = vunpack.c.2.s8 %v4467_v15 }
 0x314   : > { %v6931_v36 = vpack.c.bf16 %v6155_v61, %v6147_v34  ;;  %v5739_v27 = vcvt.s32.f32 %v4715_v44  ;;  %v5859_v12 = vcvt.s32.f32 %v4835_v59  ;;  %v4987_v8 = vunpack.c.3.s8 %v4467_v15  ;;  %v4387_v44 = vld [vmem:[%s9260_s18] sm:$0xff] }
 0x315   : > { %7230 = vmatpush.bf16.msra.mxu2 %v6867_v57  ;;  %v5107_v53 = vunpack.c.2.s8 %v4499_v31  ;;  %v5867_v50 = vcvt.s32.f32 %v4843_v56  ;;  %v6003_v49 = vcvt.s32.f32 %v4979_v41  ;;  %v5115_v46 = vunpack.c.3.s8 %v4499_v31  ;;  %v10303_v56 = vld [vmem:[%s9260_s18 + $0x100] sm:$0xff] }
 0x316   : > { %7243 = vmatpush.bf16.msra.mxu3 %v6931_v36  ;;  %v4691_v43 = vunpack.c.2.s8 %v4395_v28  ;;  %v6723_v62 = vpack.c.bf16 %v5739_v27, %v5731_v60  ;;  %v6011_v17 = vcvt.s32.f32 %v4987_v8  ;;  %v4699_v10 = vunpack.c.3.s8 %v4395_v28  ;;  %v8857_v8 = vld [vmem:[%s9329_s15 + $0x28] sm:$0xff] }
 0x317   : > { %v6131_v24 = vcvt.s32.f32 %v5107_v53  ;;  %v6787_v35 = vpack.c.bf16 %v5867_v50, %v5859_v12  ;;  %v6139_v29 = vcvt.s32.f32 %v5115_v46  ;;  %v4819_v1 = vunpack.c.2.s8 %v4427_v25 }
 0x318   : > { %v5715_v13 = vcvt.s32.f32 %v4691_v43  ;;  %7206 = vmatpush.bf16.msra.mxu0 %v6723_v62  ;;  %v6859_v11 = vpack.c.bf16 %v6011_v17, %v6003_v49  ;;  %v5723_v7 = vcvt.s32.f32 %v4699_v10  ;;  %v4827_v22 = vunpack.c.3.s8 %v4427_v25 }
 0x319   : > { %v4963_v40 = vunpack.c.0.s8 %v4467_v15  ;;  %7219 = vmatpush.bf16.msra.mxu1 %v6787_v35  ;;  %v6923_v4 = vpack.c.bf16 %v6139_v29, %v6131_v24  ;;  %v5843_v63 = vcvt.s32.f32 %v4819_v1  ;;  %v4971_v3 = vunpack.c.1.s8 %v4467_v15 }
 0x31a   : > { %v5091_v32 = vunpack.c.0.s8 %v4499_v31  ;;  %7231 = vmatpush.bf16.msra.mxu2 %v6859_v11  ;;  %v6715_v20 = vpack.c.bf16 %v5723_v7, %v5715_v13  ;;  %v5851_v9 = vcvt.s32.f32 %v4827_v22  ;;  %v5099_v52 = vunpack.c.1.s8 %v4499_v31  ;;  %v4142_v7 = vpop.f32.mrf.mxu0  ;;  %v4155_v22 = vpop.f32.mrf.mxu1 }
 0x31b   : > { %v5987_v19 = vcvt.s32.f32 %v4963_v40  ;;  %7244 = vmatpush.bf16.msra.mxu3 %v6923_v4  ;;  %v5995_v14 = vcvt.s32.f32 %v4971_v3  ;;  %v4675_v38 = vunpack.c.0.s8 %v4395_v28  ;;  %v4683_v21 = vunpack.c.1.s8 %v4395_v28 }
 0x31c   : > { %v6115_v55 = vcvt.s32.f32 %v5091_v32  ;;  %7207 = vmatpush.bf16.msra.mxu0 %v6715_v20  ;;  %v6779_v51 = vpack.c.bf16 %v5851_v9, %v5843_v63  ;;  %v6123_v54 = vcvt.s32.f32 %v5099_v52  ;;  %v4803_v26 = vunpack.c.0.s8 %v4427_v25 }
 0x31d   : > { %v4811_v16 = vunpack.c.1.s8 %v4427_v25  ;;  %v6851_v47 = vpack.c.bf16 %v5995_v14, %v5987_v19  ;;  %v5699_v15 = vcvt.s32.f32 %v4675_v38  ;;  %v5707_v18 = vcvt.s32.f32 %v4683_v21  ;;  %v4539_v19 = vld [vmem:[%s9260_s18 + $0x4c0] sm:$0xff] }
 0x31e   : > { %v4947_v34 = vunpack.c.2.s8 %v10292_v5  ;;  %7220 = vmatpush.bf16.msra.mxu1 %v6779_v51  ;;  %v6915_v61 = vpack.c.bf16 %v6123_v54, %v6115_v55  ;;  %v5827_v23 = vcvt.s32.f32 %v4803_v26  ;;  %v4955_v57 = vunpack.c.3.s8 %v10292_v5  ;;  %v4571_v21 = vld [vmem:[%s9260_s18 + $0x5c0] sm:$0xff] }
 0x31f   : > { %v5835_v31 = vcvt.s32.f32 %v4811_v16  ;;  %7232 = vmatpush.bf16.msra.mxu2 %v6851_v47  ;;  %v6707_v59 = vpack.c.bf16 %v5707_v18, %v5699_v15  ;;  %v5075_v36 = vunpack.c.2.s8 %v4491_v6  ;;  %v5083_v60 = vunpack.c.3.s8 %v4491_v6  ;;  %v10316_v16 = vpop.f32.mrf.mxu2 }
 0x320   : > { %v5971_v28 = vcvt.s32.f32 %v4947_v34  ;;  %7245 = vmatpush.bf16.msra.mxu3 %v6915_v61  ;;  %v5979_v27 = vcvt.s32.f32 %v4955_v57  ;;  %v4115_v12 = vadd.f32 %v10264_v2, %v10286_v37  ;;  %v4344_v53 = vperm.slane %v8857_v8, 2  ;;  %v4451_v61 = vld [vmem:[%s9260_s18 + $0x200] sm:$0xff] }
 0x321   : > { %v6771_v41 = vpack.c.bf16 %v5835_v31, %v5827_v23  ;;  %7208 = vmatpush.bf16.msra.mxu0 %v6707_v59  ;;  %v6099_v25 = vcvt.s32.f32 %v5075_v36  ;;  %v6107_v50 = vcvt.s32.f32 %v5083_v60  ;;  %v4360_v49 = vperm.slane %v8857_v8, 3  ;;  %v4483_v59 = vld [vmem:[%s9260_s18 + $0x300] sm:$0xff] }
 0x322   : > { %v4659_v46 = vunpack.c.2.s8 %v4387_v44  ;;  %v6843_v43 = vpack.c.bf16 %v5979_v27, %v5971_v28  ;;  %v4128_v62 = vadd.f32 %v10266_v42, %v4115_v12  ;;  %v4667_v17 = vunpack.c.3.s8 %v4387_v44 }
 0x323   : > { %7221 = vmatpush.bf16.msra.mxu1 %v6771_v41  ;;  %v4787_v24 = vunpack.c.2.s8 %v10303_v56  ;;  %v6907_v10 = vpack.c.bf16 %v6107_v50, %v6099_v25  ;;  %v4795_v29 = vunpack.c.3.s8 %v10303_v56  ;;  %v4931_v2 = vunpack.c.0.s8 %v10292_v5 }
 0x324   : > { %v5683_v35 = vcvt.s32.f32 %v4659_v46  ;;  %7233 = vmatpush.bf16.msra.mxu2 %v6843_v43  ;;  %v4352_v37 = vmul.f32 %v4344_v53, %v4128_v62  ;;  %v5691_v13 = vcvt.s32.f32 %v4667_v17  ;;  %v4939_v11 = vunpack.c.1.s8 %v10292_v5 }
 0x325   : > { %v5811_v1 = vcvt.s32.f32 %v4787_v24  ;;  %7246 = vmatpush.bf16.msra.mxu3 %v6907_v10  ;;  %v5819_v42 = vcvt.s32.f32 %v4795_v29  ;;  %v5955_v40 = vcvt.s32.f32 %v4931_v2  ;;  %v5059_v4 = vunpack.c.0.s8 %v4491_v6 }
 0x326   : > { %v5067_v63 = vunpack.c.1.s8 %v4491_v6  ;;  %v4368_v3 = vadd.f32 %v4360_v49, %v4352_v37  ;;  %v6699_v32 = vpack.c.bf16 %v5691_v13, %v5683_v35  ;;  %v5963_v20 = vcvt.s32.f32 %v4939_v11  ;;  %v10318_v6 = vpop.f32.mrf.mxu3  ;;  %v4603_v11 = vld [vmem:[%s9260_s18 + $0x6c0] sm:$0xff] }
 0x327   : > { %v4643_v9 = vunpack.c.0.s8 %v4387_v44  ;;  %v6763_v52 = vpack.c.bf16 %v5819_v42, %v5811_v1  ;;  %v6083_v14 = vcvt.s32.f32 %v5059_v4  ;;  %v4651_v38 = vunpack.c.1.s8 %v4387_v44  ;;  %v4168_v7 = vpop.f32.mrf.mxu2 }
 0x328   : > { %v6091_v55 = vcvt.s32.f32 %v5067_v63  ;;  %v4376_v5 = vmax.f32 %v4368_v3, 0.0  ;;  %7209 = vmatpush.bf16.msra.mxu0 %v6699_v32  ;;  %v6835_v51 = vpack.c.bf16 %v5963_v20, %v5955_v40  ;;  %v4771_v26 = vunpack.c.0.s8 %v10303_v56 }
 0x329   : > { %v5667_v54 = vcvt.s32.f32 %v4643_v9  ;;  %7222 = vmatpush.bf16.msra.mxu1 %v6763_v52  ;;  %v5675_v15 = vcvt.s32.f32 %v4651_v38  ;;  %v4779_v18 = vunpack.c.1.s8 %v10303_v56  ;;  %v5267_v34 = vunpack.c.2.s8 %v4539_v19 }
 0x32a   : > { %v6899_v47 = vpack.c.bf16 %v6091_v55, %v6083_v14  ;;  %v10322_v23 = vpack.c.bf16 %v4376_v5, %v4376_v5  ;;  %7234 = vmatpush.bf16.msra.mxu2 %v6835_v51  ;;  %v5795_v31 = vcvt.s32.f32 %v4771_v26  ;;  %v5275_v57 = vunpack.c.3.s8 %v4539_v19 }
 0x32b   : > { %v5395_v44 = vunpack.c.2.s8 %v4571_v21  ;;  %v6691_v28 = vpack.c.bf16 %v5675_v15, %v5667_v54  ;;  %v5803_v36 = vcvt.s32.f32 %v4779_v18  ;;  %v6291_v60 = vcvt.s32.f32 %v5267_v34 }
 0x32c   : > { %7247 = vmatpush.bf16.msra.mxu3 %v6899_v47  ;;  %v5403_v41 = vunpack.c.3.s8 %v4571_v21  ;;  %v6299_v27 = vcvt.s32.f32 %v5275_v57  ;;  %v4915_v8 = vunpack.c.2.s8 %v4451_v61  ;;  %v4923_v53 = vunpack.c.3.s8 %v4451_v61 }
 0x32d   : > { %v6419_v12 = vcvt.s32.f32 %v5395_v44  ;;  %7210 = vmatpush.bf16.msra.mxu0 %v6691_v28  ;;  %v6755_v56 = vpack.c.bf16 %v5803_v36, %v5795_v31  ;;  %v5043_v50 = vunpack.c.2.s8 %v4483_v59  ;;  %v5051_v49 = vunpack.c.3.s8 %v4483_v59 }
 0x32e   : > { %v6427_v25 = vcvt.s32.f32 %v5403_v41  ;;  %v7003_v46 = vpack.c.bf16 %v6299_v27, %v6291_v60  ;;  %v5939_v43 = vcvt.s32.f32 %v4915_v8  ;;  %v5947_v62 = vcvt.s32.f32 %v4923_v53  ;;  %v4181_v22 = vpop.f32.mrf.mxu3  ;;  %v4595_v53 = vld [vmem:[%s9260_s18 + $0x680] sm:$0xff] }
 0x32f   : > { %v5251_v17 = vunpack.c.0.s8 %v4539_v19  ;;  %7223 = vmatpush.bf16.msra.mxu1 %v6755_v56  ;;  %v6067_v10 = vcvt.s32.f32 %v5043_v50  ;;  %v6075_v35 = vcvt.s32.f32 %v5051_v49  ;;  %v5259_v29 = vunpack.c.1.s8 %v4539_v19  ;;  %v4531_v19 = vld [vmem:[%s9260_s18 + $0x480] sm:$0xff] }
 0x330   : > { %v7067_v24 = vpack.c.bf16 %v6427_v25, %v6419_v12  ;;  %v6827_v2 = vpack.c.bf16 %v5947_v62, %v5939_v43  ;;  %v5379_v13 = vunpack.c.0.s8 %v4571_v21  ;;  %v5387_v1 = vunpack.c.1.s8 %v4571_v21  ;;  %7211 = vmatmul.bf16.vlgmr.msra.gmra.mxu0 %v9916_v33  ;;  %v4563_v21 = vld [vmem:[%s9260_s18 + $0x580] sm:$0xff] }
 0x331   : > { %7255 = vmatpush.bf16.msrb.mxu0 %v7003_v46  ;;  %v6275_v37 = vcvt.s32.f32 %v5251_v17  ;;  %v6891_v42 = vpack.c.bf16 %v6075_v35, %v6067_v10  ;;  %v6283_v40 = vcvt.s32.f32 %v5259_v29  ;;  %v4899_v4 = vunpack.c.0.s8 %v4451_v61  ;;  %v4523_v46 = vld [vmem:[%s9260_s18 + $0x440] sm:$0xff] }
 0x332   : > { %v4907_v63 = vunpack.c.1.s8 %v4451_v61  ;;  %7235 = vmatpush.bf16.msra.mxu2 %v6827_v2  ;;  %7224 = vmatmul.bf16.vlgmr.msra.gmra.mxu1 %v9984_v39  ;;  %v6403_v3 = vcvt.s32.f32 %v5379_v13  ;;  %v6411_v32 = vcvt.s32.f32 %v5387_v1  ;;  %v5027_v20 = vunpack.c.0.s8 %v4483_v59  ;;  %v4555_v29 = vld [vmem:[%s9260_s18 + $0x540] sm:$0xff]  ;;  %v10339_v2 = vpop.f32.mrf.mxu0 }
 0x333   : > { %7268 = vmatpush.bf16.msrb.mxu1 %v7067_v24  ;;  %v5035_v9 = vunpack.c.1.s8 %v4483_v59  ;;  %7248 = vmatpush.bf16.msra.mxu3 %v6891_v42  ;;  %v6995_v52 = vpack.c.bf16 %v6283_v40, %v6275_v37  ;;  %v5923_v14 = vcvt.s32.f32 %v4899_v4  ;;  %v5523_v38 = vunpack.c.2.s8 %v4603_v11  ;;  %v10341_v37 = vpop.f32.mrf.mxu1 }
 0x334   : > { %v5931_v55 = vcvt.s32.f32 %v4907_v63  ;;  %v7059_v5 = vpack.c.bf16 %v6411_v32, %v6403_v3  ;;  %v6051_v51 = vcvt.s32.f32 %v5027_v20  ;;  %v5531_v26 = vunpack.c.3.s8 %v4603_v11 }
 0x335   : > { %v6059_v54 = vcvt.s32.f32 %v5035_v9  ;;  %7256 = vmatpush.bf16.msrb.mxu0 %v6995_v52  ;;  %v6547_v15 = vcvt.s32.f32 %v5523_v38  ;;  %v5235_v18 = vunpack.c.2.s8 %v4531_v19  ;;  %v5243_v34 = vunpack.c.3.s8 %v4531_v19 }
 0x336   : > { %v6819_v47 = vpack.c.bf16 %v5931_v55, %v5923_v14  ;;  %v6555_v31 = vcvt.s32.f32 %v5531_v26  ;;  %v5363_v57 = vunpack.c.2.s8 %v4563_v21  ;;  %v5371_v44 = vunpack.c.3.s8 %v4563_v21 }
 0x337   : > { %7269 = vmatpush.bf16.msrb.mxu1 %v7059_v5  ;;  %v6883_v61 = vpack.c.bf16 %v6059_v54, %v6051_v51  ;;  %v6259_v59 = vcvt.s32.f32 %v5235_v18  ;;  %v6267_v28 = vcvt.s32.f32 %v5243_v34  ;;  %v10332_v36 = vadd.f32 %v10297_v30, %v10295_v58  ;;  %v4587_v51 = vld [vmem:[%s9260_s18 + $0x640] sm:$0xff] }
 0x338   : > { %7236 = vmatpush.bf16.msra.mxu2 %v6819_v47  ;;  %v5507_v60 = vunpack.c.0.s8 %v4603_v11  ;;  %v7131_v41 = vpack.c.bf16 %v6555_v31, %v6547_v15  ;;  %v6387_v27 = vcvt.s32.f32 %v5363_v57  ;;  %v6395_v12 = vcvt.s32.f32 %v5371_v44  ;;  %v4515_v18 = vld [vmem:[%s9260_s18 + $0x400] sm:$0xff] }
 0x339   : > { %7249 = vmatpush.bf16.msra.mxu3 %v6883_v61  ;;  %v5515_v8 = vunpack.c.1.s8 %v4603_v11  ;;  %v6987_v56 = vpack.c.bf16 %v6267_v28, %v6259_v59  ;;  %v5219_v50 = vunpack.c.0.s8 %v4531_v19  ;;  %v5227_v49 = vunpack.c.1.s8 %v4531_v19  ;;  %v4547_v44 = vld [vmem:[%s9260_s18 + $0x500] sm:$0xff] }
 0x33a   : > { %v6531_v25 = vcvt.s32.f32 %v5507_v60  ;;  %v7051_v43 = vpack.c.bf16 %v6395_v12, %v6387_v27  ;;  %v5347_v17 = vunpack.c.0.s8 %v4563_v21  ;;  %v5355_v24 = vunpack.c.1.s8 %v4563_v21  ;;  %v4194_v27 = vpop.f32.mrf.mxu0 }
 0x33b   : > { %v6539_v62 = vcvt.s32.f32 %v5515_v8  ;;  %7237 = vmatmul.bf16.vlgmr.msra.gmra.mxu2 %v10060_v0  ;;  %v6243_v58 = vcvt.s32.f32 %v5219_v50  ;;  %v6251_v30 = vcvt.s32.f32 %v5227_v49  ;;  %v5491_v10 = vunpack.c.2.s8 %v4595_v53  ;;  %7257 = vmatpush.bf16.msrb.mxu0 %v6987_v56  ;;  %v4207_v12 = vpop.f32.mrf.mxu1 }
 0x33c   : > { %7281 = vmatpush.bf16.msrb.mxu2 %v7131_v41  ;;  %7250 = vmatmul.bf16.vlgmr.msra.gmra.mxu3 %v10136_v45  ;;  %v5499_v35 = vunpack.c.3.s8 %v4595_v53  ;;  %v6371_v1 = vcvt.s32.f32 %v5347_v17  ;;  %v6379_v11 = vcvt.s32.f32 %v5355_v24  ;;  %v5203_v7 = vunpack.c.2.s8 %v4523_v46 }
 0x33d   : > { %7270 = vmatpush.bf16.msrb.mxu1 %v7051_v43  ;;  %v7123_v13 = vpack.c.bf16 %v6539_v62, %v6531_v25  ;;  %v6979_v22 = vpack.c.bf16 %v6251_v30, %v6243_v58  ;;  %v6515_v42 = vcvt.s32.f32 %v5491_v10  ;;  %v5211_v4 = vunpack.c.3.s8 %v4523_v46 }
 0x33e   : > { %v6523_v40 = vcvt.s32.f32 %v5499_v35  ;;  %v7043_v63 = vpack.c.bf16 %v6379_v11, %v6371_v1  ;;  %v6227_v3 = vcvt.s32.f32 %v5203_v7  ;;  %v5331_v32 = vunpack.c.2.s8 %v4555_v29  ;;  %v4412_v1 = vld [vmem:[%s9260_s18 + $0xc8] sm:$0xff] }
 0x33f   : > { %v5339_v20 = vunpack.c.3.s8 %v4555_v29  ;;  %v6235_v19 = vcvt.s32.f32 %v5211_v4  ;;  %v5475_v52 = vunpack.c.0.s8 %v4595_v53  ;;  %v5483_v14 = vunpack.c.1.s8 %v4595_v53  ;;  %7258 = vmatpush.bf16.msrb.mxu0 %v6979_v22 }
 0x340   : > { %7282 = vmatpush.bf16.msrb.mxu2 %v7123_v13  ;;  %v7115_v9 = vpack.c.bf16 %v6523_v40, %v6515_v42  ;;  %v6355_v55 = vcvt.s32.f32 %v5331_v32  ;;  %v5187_v21 = vunpack.c.0.s8 %v4523_v46  ;;  %v5195_v5 = vunpack.c.1.s8 %v4523_v46  ;;  %v10352_v11 = vpop.f32.mrf.mxu2 }
 0x341   : > { %7271 = vmatpush.bf16.msrb.mxu1 %v7043_v63  ;;  %v6363_v38 = vcvt.s32.f32 %v5339_v20  ;;  %v6971_v54 = vpack.c.bf16 %v6235_v19, %v6227_v3  ;;  %v6499_v26 = vcvt.s32.f32 %v5475_v52  ;;  %v6507_v47 = vcvt.s32.f32 %v5483_v14  ;;  %v10354_v7 = vpop.f32.mrf.mxu3  ;;  %v4444_v63 = vld [vmem:[%s9260_s18 + $0x1c8] sm:$0xff]  ;;  %v4579_v19 = vld [vmem:[%s9260_s18 + $0x600] sm:$0xff] }
 0x342   : > { %v5315_v15 = vunpack.c.0.s8 %v4555_v29  ;;  %v6211_v61 = vcvt.s32.f32 %v5187_v21  ;;  %v6219_v31 = vcvt.s32.f32 %v5195_v5  ;;  %v5323_v57 = vunpack.c.1.s8 %v4555_v29 }
 0x343   : > { %v7035_v34 = vpack.c.bf16 %v6363_v38, %v6355_v55  ;;  %v7107_v59 = vpack.c.bf16 %v6507_v47, %v6499_v26  ;;  %v4167_v60 = vadd.f32 %v10316_v16, %v10332_v36  ;;  %v5459_v41 = vunpack.c.2.s8 %v4587_v51  ;;  %7259 = vmatpush.bf16.msrb.mxu0 %v6971_v54 }
 0x344   : > { %7283 = vmatpush.bf16.msrb.mxu2 %v7115_v9  ;;  %v6339_v28 = vcvt.s32.f32 %v5315_v15  ;;  %v6963_v8 = vpack.c.bf16 %v6219_v31, %v6211_v61  ;;  %v6347_v53 = vcvt.s32.f32 %v5323_v57  ;;  %v5467_v56 = vunpack.c.3.s8 %v4587_v51 }
 0x345   : > { %7272 = vmatpush.bf16.msrb.mxu1 %v7035_v34  ;;  %v5171_v25 = vunpack.c.2.s8 %v4515_v18  ;;  %v10349_v50 = vadd.f32 %v10318_v6, %v4167_v60  ;;  %v6483_v49 = vcvt.s32.f32 %v5459_v41  ;;  %v5179_v46 = vunpack.c.3.s8 %v4515_v18  ;;  %v4476_v41 = vld [vmem:[%s9260_s18 + $0x2c8] sm:$0xff] }
 0x346   : > { %v5299_v43 = vunpack.c.2.s8 %v4547_v44  ;;  %v7027_v62 = vpack.c.bf16 %v6347_v53, %v6339_v28  ;;  %v6491_v17 = vcvt.s32.f32 %v5467_v56  ;;  %v5307_v36 = vunpack.c.3.s8 %v4547_v44  ;;  %v4404_v56 = vld [vmem:[%s9260_s18 + $0x88] sm:$0xff] }
 0x347   : > { %v6195_v16 = vcvt.s32.f32 %v5171_v25  ;;  %v6203_v24 = vcvt.s32.f32 %v5179_v46  ;;  %v5443_v30 = vunpack.c.0.s8 %v4587_v51  ;;  %v5451_v10 = vunpack.c.1.s8 %v4587_v51  ;;  %7260 = vmatpush.bf16.msrb.mxu0 %v6963_v8 }
 0x348   : > { %7284 = vmatpush.bf16.msrb.mxu2 %v7107_v59  ;;  %v6323_v58 = vcvt.s32.f32 %v5299_v43  ;;  %v7099_v35 = vpack.c.bf16 %v6491_v17, %v6483_v49  ;;  %v6331_v29 = vcvt.s32.f32 %v5307_v36  ;;  %v5155_v6 = vunpack.c.0.s8 %v4515_v18  ;;  %v4220_v25 = vpop.f32.mrf.mxu2 }
 0x349   : > { %7273 = vmatpush.bf16.msrb.mxu1 %v7027_v62  ;;  %v5163_v13 = vunpack.c.1.s8 %v4515_v18  ;;  %v6955_v22 = vpack.c.bf16 %v6203_v24, %v6195_v16  ;;  %v6467_v42 = vcvt.s32.f32 %v5443_v30  ;;  %v6475_v40 = vcvt.s32.f32 %v5451_v10  ;;  %v4233_v49 = vpop.f32.mrf.mxu3  ;;  %v4436_v30 = vld [vmem:[%s9260_s18 + $0x188] sm:$0xff] }
 0x34a   : > { %v5283_v4 = vunpack.c.0.s8 %v4547_v44  ;;  %v7019_v3 = vpack.c.bf16 %v6331_v29, %v6323_v58  ;;  %v6179_v32 = vcvt.s32.f32 %v5155_v6  ;;  %v5291_v9 = vunpack.c.1.s8 %v4547_v44 }
 0x34b   : > { %v6187_v20 = vcvt.s32.f32 %v5163_v13  ;;  %v7091_v52 = vpack.c.bf16 %v6475_v40, %v6467_v42  ;;  %v4756_v55 = vunpack.c.2.s8 %v4412_v1  ;;  %v4764_v38 = vunpack.c.3.s8 %v4412_v1  ;;  %7261 = vmatpush.bf16.msrb.mxu0 %v6955_v22 }
 0x34c   : > { %7285 = vmatpush.bf16.msrb.mxu2 %v7099_v35  ;;  %v6307_v14 = vcvt.s32.f32 %v5283_v4  ;;  %v6315_v5 = vcvt.s32.f32 %v5291_v9  ;;  %v4884_v51 = vunpack.c.2.s8 %v4444_v63  ;;  %v4892_v54 = vunpack.c.3.s8 %v4444_v63 }
 0x34d   : > { %7274 = vmatpush.bf16.msrb.mxu1 %v7019_v3  ;;  %v6947_v21 = vpack.c.bf16 %v6187_v20, %v6179_v32  ;;  %v5780_v26 = vcvt.s32.f32 %v4756_v55  ;;  %v5788_v47 = vcvt.s32.f32 %v4764_v38  ;;  %v5427_v15 = vunpack.c.2.s8 %v4579_v19 }
 0x34e   : > { %v5435_v18 = vunpack.c.3.s8 %v4579_v19  ;;  %v7011_v34 = vpack.c.bf16 %v6315_v5, %v6307_v14  ;;  %v5908_v61 = vcvt.s32.f32 %v4884_v51  ;;  %v5916_v31 = vcvt.s32.f32 %v4892_v54 }
 0x34f   : > { %v4740_v57 = vunpack.c.0.s8 %v4412_v1  ;;  %v6748_v44 = vpack.c.bf16 %v5788_v47, %v5780_v26  ;;  %v6451_v59 = vcvt.s32.f32 %v5427_v15  ;;  %v4748_v60 = vunpack.c.1.s8 %v4412_v1  ;;  %7262 = vmatpush.bf16.msrb.mxu0 %v6947_v21  ;;  %v4468_v21 = vld [vmem:[%s9260_s18 + $0x288] sm:$0xff] }
 0x350   : > { %7286 = vmatpush.bf16.msrb.mxu2 %v7091_v52  ;;  %v6459_v28 = vcvt.s32.f32 %v5435_v18  ;;  %v6812_v27 = vpack.c.bf16 %v5916_v31, %v5908_v61  ;;  %v4868_v8 = vunpack.c.0.s8 %v4444_v63  ;;  %v4876_v53 = vunpack.c.1.s8 %v4444_v63  ;;  %v4396_v47 = vld [vmem:[%s9260_s18 + $0x48] sm:$0xff] }
 0x351   : > { %7275 = vmatpush.bf16.msrb.mxu1 %v7011_v34  ;;  %v5764_v12 = vcvt.s32.f32 %v4740_v57  ;;  %v5772_v43 = vcvt.s32.f32 %v4748_v60  ;;  %v5411_v62 = vunpack.c.0.s8 %v4579_v19  ;;  %v5419_v17 = vunpack.c.1.s8 %v4579_v19 }
 0x352   : > { %v7083_v46 = vpack.c.bf16 %v6459_v28, %v6451_v59  ;;  %v5892_v16 = vcvt.s32.f32 %v4868_v8  ;;  %v5900_v36 = vcvt.s32.f32 %v4876_v53  ;;  %v5012_v24 = vunpack.c.2.s8 %v4476_v41  ;;  %7263 = vmatmul.bf16.vlgmr.msrb.gmra.mxu0 %v10224_v48 }
 0x353   : > { %7307 = vmatpush.bf16.msra.mxu0 %v6748_v44  ;;  %v5020_v58 = vunpack.c.3.s8 %v4476_v41  ;;  %v6740_v10 = vpack.c.bf16 %v5772_v43, %v5764_v12  ;;  %v6435_v35 = vcvt.s32.f32 %v5411_v62  ;;  %v6443_v29 = vcvt.s32.f32 %v5419_v17  ;;  %v4428_v44 = vld [vmem:[%s9260_s18 + $0x148] sm:$0xff] }
 0x354   : > { %7276 = vmatmul.bf16.vlgmr.msrb.gmra.mxu1 %v10322_v23  ;;  %v4724_v6 = vunpack.c.2.s8 %v4404_v56  ;;  %7287 = vmatpush.bf16.msrb.mxu2 %v7083_v46  ;;  %v6804_v13 = vpack.c.bf16 %v5900_v36, %v5892_v16  ;;  %v6036_v1 = vcvt.s32.f32 %v5012_v24  ;;  %v4732_v42 = vunpack.c.3.s8 %v4404_v56 }
 0x355   : > { %7320 = vmatpush.bf16.msra.mxu1 %v6812_v27  ;;  %v6044_v22 = vcvt.s32.f32 %v5020_v58  ;;  %v7075_v40 = vpack.c.bf16 %v6443_v29, %v6435_v35  ;;  %v4852_v63 = vunpack.c.2.s8 %v4436_v30  ;;  %v4860_v3 = vunpack.c.3.s8 %v4436_v30 }
 0x356   : > { %v5748_v4 = vcvt.s32.f32 %v4724_v6  ;;  %v5756_v20 = vcvt.s32.f32 %v4732_v42  ;;  %v4193_v9 = vadd.f32 %v10339_v2, %v10349_v50  ;;  %v4996_v19 = vunpack.c.0.s8 %v4476_v41 }
 0x357   : > { %7308 = vmatpush.bf16.msra.mxu0 %v6740_v10  ;;  %v6876_v32 = vpack.c.bf16 %v6044_v22, %v6036_v1  ;;  %v5876_v52 = vcvt.s32.f32 %v4852_v63  ;;  %v5884_v14 = vcvt.s32.f32 %v4860_v3  ;;  %v5004_v55 = vunpack.c.1.s8 %v4476_v41  ;;  %v4460_v1 = vld [vmem:[%s9260_s18 + $0x248] sm:$0xff] }
 0x358   : > { %v4708_v38 = vunpack.c.0.s8 %v4404_v56  ;;  %7288 = vmatpush.bf16.msrb.mxu2 %v7075_v40  ;;  %v6732_v5 = vpack.c.bf16 %v5756_v20, %v5748_v4  ;;  %v4206_v51 = vadd.f32 %v10341_v37, %v4193_v9  ;;  %v6020_v54 = vcvt.s32.f32 %v4996_v19  ;;  %v4388_v63 = vld [vmem:[%s9260_s18 + $0x8] sm:$0xff]  ;;  %v8858_v9 = vld [vmem:[%s9329_s15 + $0x30] sm:$0xff] }
 0x359   : > { %7321 = vmatpush.bf16.msra.mxu1 %v6804_v13  ;;  %v4716_v26 = vunpack.c.1.s8 %v4404_v56  ;;  %v6796_v15 = vpack.c.bf16 %v5884_v14, %v5876_v52  ;;  %v6028_v18 = vcvt.s32.f32 %v5004_v55  ;;  %v4836_v61 = vunpack.c.0.s8 %v4436_v30  ;;  %v4420_v52 = vld [vmem:[%s9260_s18 + $0x108] sm:$0xff] }
 0x35a   : > { %v5732_v34 = vcvt.s32.f32 %v4708_v38  ;;  %v4844_v50 = vunpack.c.1.s8 %v4436_v30  ;;  %v4980_v31 = vunpack.c.2.s8 %v4468_v21  ;;  %v4988_v57 = vunpack.c.3.s8 %v4468_v21  ;;  %v10369_v46 = vpop.f32.mrf.mxu0 }
 0x35b   : > { %7309 = vmatpush.bf16.msra.mxu0 %v6732_v5  ;;  %v5740_v2 = vcvt.s32.f32 %v4716_v26  ;;  %v6868_v59 = vpack.c.bf16 %v6028_v18, %v6020_v54  ;;  %v5860_v28 = vcvt.s32.f32 %v4836_v61  ;;  %v4692_v60 = vunpack.c.2.s8 %v4396_v47 }
 0x35c   : > { %7333 = vmatpush.bf16.msra.mxu2 %v6876_v32  ;;  %v4700_v41 = vunpack.c.3.s8 %v4396_v47  ;;  %v5868_v27 = vcvt.s32.f32 %v4844_v50  ;;  %v6004_v12 = vcvt.s32.f32 %v4980_v31  ;;  %v6012_v8 = vcvt.s32.f32 %v4988_v57  ;;  %v10371_v43 = vpop.f32.mrf.mxu1 }
 0x35d   : > { %7322 = vmatpush.bf16.msra.mxu1 %v6796_v15  ;;  %v6724_v37 = vpack.c.bf16 %v5740_v2, %v5732_v34  ;;  %v5716_v53 = vcvt.s32.f32 %v4692_v60  ;;  %v4820_v25 = vunpack.c.2.s8 %v4428_v44  ;;  %v4828_v49 = vunpack.c.3.s8 %v4428_v44 }
 0x35e   : > { %v5724_v56 = vcvt.s32.f32 %v4700_v41  ;;  %v6788_v62 = vpack.c.bf16 %v5868_v27, %v5860_v28  ;;  %v6860_v17 = vpack.c.bf16 %v6012_v8, %v6004_v12  ;;  %v4964_v16 = vunpack.c.0.s8 %v4468_v21  ;;  %v4540_v12 = vld [vmem:[%s9260_s18 + $0x4c8] sm:$0xff] }
 0x35f   : > { %7310 = vmatpush.bf16.msra.mxu0 %v6724_v37  ;;  %v4972_v36 = vunpack.c.1.s8 %v4468_v21  ;;  %v5844_v58 = vcvt.s32.f32 %v4820_v25  ;;  %v5852_v30 = vcvt.s32.f32 %v4828_v49  ;;  %v4676_v10 = vunpack.c.0.s8 %v4396_v47  ;;  %v4572_v49 = vld [vmem:[%s9260_s18 + $0x5c8] sm:$0xff] }
 0x360   : > { %7334 = vmatpush.bf16.msra.mxu2 %v6868_v59  ;;  %v6716_v24 = vpack.c.bf16 %v5724_v56, %v5716_v53  ;;  %v5988_v35 = vcvt.s32.f32 %v4964_v16  ;;  %v4684_v6 = vunpack.c.1.s8 %v4396_v47  ;;  %v4804_v13 = vunpack.c.0.s8 %v4428_v44 }
 0x361   : > { %7323 = vmatpush.bf16.msra.mxu1 %v6788_v62  ;;  %v5996_v29 = vcvt.s32.f32 %v4972_v36  ;;  %v6780_v22 = vpack.c.bf16 %v5852_v30, %v5844_v58  ;;  %v5700_v42 = vcvt.s32.f32 %v4676_v10  ;;  %v4812_v40 = vunpack.c.1.s8 %v4428_v44 }
 0x362   : > { %v4219_v4 = vadd.f32 %v10352_v11, %v4206_v51  ;;  %v5708_v32 = vcvt.s32.f32 %v4684_v6  ;;  %v5828_v20 = vcvt.s32.f32 %v4804_v13  ;;  %v4345_v19 = vperm.slane %v8858_v9, 2  ;;  %v4246_v34 = vpop.f32.mrf.mxu0 }
 0x363   : > { %7311 = vmatpush.bf16.msra.mxu0 %v6716_v24  ;;  %v6852_v3 = vpack.c.bf16 %v5996_v29, %v5988_v35  ;;  %v5836_v14 = vcvt.s32.f32 %v4812_v40  ;;  %v4361_v38 = vperm.slane %v8858_v9, 3  ;;  %v4948_v21 = vunpack.c.2.s8 %v4460_v1  ;;  %v4452_v24 = vld [vmem:[%s9260_s18 + $0x208] sm:$0xff] }
 0x364   : > { %7335 = vmatpush.bf16.msra.mxu2 %v6860_v17  ;;  %v4232_v55 = vadd.f32 %v10354_v7, %v4219_v4  ;;  %v6708_v5 = vpack.c.bf16 %v5708_v32, %v5700_v42  ;;  %v4956_v54 = vunpack.c.3.s8 %v4460_v1  ;;  %v4660_v26 = vunpack.c.2.s8 %v4388_v63  ;;  %v4259_v61 = vpop.f32.mrf.mxu1  ;;  %v4604_v34 = vld [vmem:[%s9260_s18 + $0x6c8] sm:$0xff] }
 0x365   : > { %7324 = vmatpush.bf16.msra.mxu1 %v6780_v22  ;;  %v4668_v47 = vunpack.c.3.s8 %v4388_v63  ;;  %v6772_v11 = vpack.c.bf16 %v5836_v14, %v5828_v20  ;;  %v5972_v15 = vcvt.s32.f32 %v4948_v21  ;;  %v4788_v18 = vunpack.c.2.s8 %v4420_v52 }
 0x366   : > { %v4353_v51 = vmul.f32 %v4345_v19, %v4232_v55  ;;  %v5980_v2 = vcvt.s32.f32 %v4956_v54  ;;  %v5684_v50 = vcvt.s32.f32 %v4660_v26  ;;  %v4796_v7 = vunpack.c.3.s8 %v4420_v52 }
 0x367   : > { %7312 = vmatpush.bf16.msra.mxu0 %v6708_v5  ;;  %v5692_v31 = vcvt.s32.f32 %v4668_v47  ;;  %v5812_v44 = vcvt.s32.f32 %v4788_v18  ;;  %v4932_v59 = vunpack.c.0.s8 %v4460_v1  ;;  %v4940_v28 = vunpack.c.1.s8 %v4460_v1  ;;  %v4635_v47 = vld [vmem:[%s9260_s18 + $0x7c0] sm:$0xff] }
 0x368   : > { %7336 = vmatpush.bf16.msra.mxu2 %v6852_v3  ;;  %v4369_v57 = vadd.f32 %v4361_v38, %v4353_v51  ;;  %v6844_v60 = vpack.c.bf16 %v5980_v2, %v5972_v15  ;;  %v5820_v37 = vcvt.s32.f32 %v4796_v7  ;;  %v4644_v27 = vunpack.c.0.s8 %v4388_v63  ;;  %v4532_v7 = vld [vmem:[%s9260_s18 + $0x488] sm:$0xff] }
 0x369   : > { %7325 = vmatpush.bf16.msra.mxu1 %v6772_v11  ;;  %v6700_v41 = vpack.c.bf16 %v5692_v31, %v5684_v50  ;;  %v5956_v53 = vcvt.s32.f32 %v4932_v59  ;;  %v5964_v56 = vcvt.s32.f32 %v4940_v28  ;;  %v4652_v25 = vunpack.c.1.s8 %v4388_v63 }
 0x36a   : > { %v4377_v8 = vmax.f32 %v4369_v57, 0.0  ;;  %v6764_v62 = vpack.c.bf16 %v5820_v37, %v5812_v44  ;;  %v5668_v17 = vcvt.s32.f32 %v4644_v27  ;;  %v4772_v16 = vunpack.c.0.s8 %v4420_v52  ;;  %v10384_v22 = vpop.f32.mrf.mxu2 }
 0x36b   : > { %7313 = vmatpush.bf16.msra.mxu0 %v6700_v41  ;;  %v4780_v36 = vunpack.c.1.s8 %v4420_v52  ;;  %v6836_v30 = vpack.c.bf16 %v5964_v56, %v5956_v53  ;;  %v5676_v10 = vcvt.s32.f32 %v4652_v25  ;;  %v5268_v35 = vunpack.c.2.s8 %v4540_v12  ;;  %v10386_v42 = vpop.f32.mrf.mxu3 }
 0x36c   : > { %7337 = vmatpush.bf16.msra.mxu2 %v6844_v60  ;;  %v10382_v58 = vpack.c.bf16 %v4377_v8, %v4377_v8  ;;  %v5796_v29 = vcvt.s32.f32 %v4772_v16  ;;  %v5276_v13 = vunpack.c.3.s8 %v4540_v12  ;;  %v5396_v1 = vunpack.c.2.s8 %v4572_v49  ;;  %v4564_v60 = vld [vmem:[%s9260_s18 + $0x588] sm:$0xff] }
 0x36d   : > { %7326 = vmatpush.bf16.msra.mxu1 %v6764_v62  ;;  %v5804_v6 = vcvt.s32.f32 %v4780_v36  ;;  %v6692_v40 = vpack.c.bf16 %v5676_v10, %v5668_v17  ;;  %v6292_v4 = vcvt.s32.f32 %v5268_v35  ;;  %v5404_v63 = vunpack.c.3.s8 %v4572_v49 }
 0x36e   : > { %v4916_v3 = vunpack.c.2.s8 %v4452_v24  ;;  %7289 = vmatmul.bf16.vlgmr.msrb.gmra.mxu2 %v10382_v58  ;;  %v6300_v20 = vcvt.s32.f32 %v5276_v13  ;;  %v6420_v9 = vcvt.s32.f32 %v5396_v1  ;;  %v4924_v19 = vunpack.c.3.s8 %v4452_v24 }
 0x36f   : > { %v6756_v32 = vpack.c.bf16 %v5804_v6, %v5796_v29  ;;  %7314 = vmatpush.bf16.msra.mxu0 %v6692_v40  ;;  %v6428_v52 = vcvt.s32.f32 %v5404_v63  ;;  %v5252_v55 = vunpack.c.0.s8 %v4540_v12  ;;  %v5260_v38 = vunpack.c.1.s8 %v4540_v12 }
 0x370   : > { %7338 = vmatpush.bf16.msra.mxu2 %v6836_v30  ;;  %v5940_v14 = vcvt.s32.f32 %v4916_v3  ;;  %v7004_v21 = vpack.c.bf16 %v6300_v20, %v6292_v4  ;;  %v5948_v5 = vcvt.s32.f32 %v4924_v19  ;;  %v5380_v54 = vunpack.c.0.s8 %v4572_v49 }
 0x371   : > { %7327 = vmatpush.bf16.msra.mxu1 %v6756_v32  ;;  %v5388_v26 = vunpack.c.1.s8 %v4572_v49  ;;  %v7068_v11 = vpack.c.bf16 %v6428_v52, %v6420_v9  ;;  %v6276_v51 = vcvt.s32.f32 %v5252_v55  ;;  %v6284_v15 = vcvt.s32.f32 %v5260_v38 }
 0x372   : > { %v4900_v18 = vunpack.c.0.s8 %v4452_v24  ;;  %v6828_v61 = vpack.c.bf16 %v5948_v5, %v5940_v14  ;;  %v6404_v2 = vcvt.s32.f32 %v5380_v54  ;;  %v4908_v31 = vunpack.c.1.s8 %v4452_v24  ;;  %7315 = vmatmul.bf16.vlgmr.msra.gmra.mxu0 %v9916_v33  ;;  %v4272_v8 = vpop.f32.mrf.mxu2  ;;  %v4627_v14 = vld [vmem:[%s9260_s18 + $0x780] sm:$0xff] }
 0x373   : > { %7359 = vmatpush.bf16.msrb.mxu0 %v7004_v21  ;;  %v6412_v50 = vcvt.s32.f32 %v5388_v26  ;;  %v6996_v57 = vpack.c.bf16 %v6284_v15, %v6276_v51  ;;  %v5651_v59 = vunpack.c.2.s8 %v4635_v47  ;;  %v5659_v28 = vunpack.c.3.s8 %v4635_v47  ;;  %v4285_v53 = vpop.f32.mrf.mxu3  ;;  %v4596_v21 = vld [vmem:[%s9260_s18 + $0x688] sm:$0xff] }
 0x374   : > { %v5924_v44 = vcvt.s32.f32 %v4900_v18  ;;  %7328 = vmatmul.bf16.vlgmr.msra.gmra.mxu1 %v9984_v39  ;;  %7339 = vmatpush.bf16.msra.mxu2 %v6828_v61  ;;  %v5932_v37 = vcvt.s32.f32 %v4908_v31  ;;  %v5524_v27 = vunpack.c.2.s8 %v4604_v34  ;;  %v5532_v12 = vunpack.c.3.s8 %v4604_v34  ;;  %v4556_v61 = vld [vmem:[%s9260_s18 + $0x548] sm:$0xff] }
 0x375   : > { %7372 = vmatpush.bf16.msrb.mxu1 %v7068_v11  ;;  %v7060_v41 = vpack.c.bf16 %v6412_v50, %v6404_v2  ;;  %v6675_v56 = vcvt.s32.f32 %v5651_v59  ;;  %v6683_v25 = vcvt.s32.f32 %v5659_v28  ;;  %v5236_v49 = vunpack.c.2.s8 %v4532_v7 }
 0x376   : > { %v5244_v62 = vunpack.c.3.s8 %v4532_v7  ;;  %v6820_v17 = vpack.c.bf16 %v5932_v37, %v5924_v44  ;;  %v6548_v16 = vcvt.s32.f32 %v5524_v27  ;;  %v6556_v36 = vcvt.s32.f32 %v5532_v12 }
 0x377   : > { %7360 = vmatpush.bf16.msrb.mxu0 %v6996_v57  ;;  %v5364_v24 = vunpack.c.2.s8 %v4564_v60  ;;  %v7195_v30 = vpack.c.bf16 %v6683_v25, %v6675_v56  ;;  %v6260_v10 = vcvt.s32.f32 %v5236_v49  ;;  %v5372_v29 = vunpack.c.3.s8 %v4564_v60 }
 0x378   : > { %v6268_v35 = vcvt.s32.f32 %v5244_v62  ;;  %7340 = vmatpush.bf16.msra.mxu2 %v6820_v17  ;;  %v7132_v6 = vpack.c.bf16 %v6556_v36, %v6548_v16  ;;  %v10397_v1 = vadd.f32 %v10371_v43, %v10369_v46  ;;  %v5635_v40 = vunpack.c.0.s8 %v4635_v47 }
 0x379   : > { %7373 = vmatpush.bf16.msrb.mxu1 %v7060_v41  ;;  %v6388_v13 = vcvt.s32.f32 %v5364_v24  ;;  %7294 = vmatpush.bf16.msrb.mxu3 %v7195_v30  ;;  %v6396_v63 = vcvt.s32.f32 %v5372_v29  ;;  %v5643_v3 = vunpack.c.1.s8 %v4635_v47  ;;  %v5508_v32 = vunpack.c.0.s8 %v4604_v34  ;;  %v4524_v47 = vld [vmem:[%s9260_s18 + $0x448] sm:$0xff] }
 0x37a   : > { %v6988_v4 = vpack.c.bf16 %v6268_v35, %v6260_v10  ;;  %v6659_v20 = vcvt.s32.f32 %v5635_v40  ;;  %v5516_v9 = vunpack.c.1.s8 %v4604_v34  ;;  %v5220_v19 = vunpack.c.0.s8 %v4532_v7 }
 0x37b   : > { %v5228_v52 = vunpack.c.1.s8 %v4532_v7  ;;  %v7052_v55 = vpack.c.bf16 %v6396_v63, %v6388_v13  ;;  %v6667_v38 = vcvt.s32.f32 %v5643_v3  ;;  %v6532_v46 = vcvt.s32.f32 %v5508_v32  ;;  %v4619_v13 = vld [vmem:[%s9260_s18 + $0x740] sm:$0xff]  ;;  %v4588_v32 = vld [vmem:[%s9260_s18 + $0x648] sm:$0xff] }
 0x37c   : > { %7385 = vmatpush.bf16.msrb.mxu2 %v7132_v6  ;;  %7361 = vmatpush.bf16.msrb.mxu0 %v6988_v4  ;;  %v5348_v43 = vunpack.c.0.s8 %v4564_v60  ;;  %v6540_v5 = vcvt.s32.f32 %v5516_v9  ;;  %v6244_v54 = vcvt.s32.f32 %v5220_v19  ;;  %v5356_v11 = vunpack.c.1.s8 %v4564_v60 }
 0x37d   : > { %v6252_v26 = vcvt.s32.f32 %v5228_v52  ;;  %7374 = vmatpush.bf16.msrb.mxu1 %v7052_v55  ;;  %v7187_v51 = vpack.c.bf16 %v6667_v38, %v6659_v20  ;;  %v5619_v18 = vunpack.c.2.s8 %v4627_v14  ;;  %v5627_v34 = vunpack.c.3.s8 %v4627_v14 }
 0x37e   : > { %v6372_v15 = vcvt.s32.f32 %v5348_v43  ;;  %7341 = vmatmul.bf16.vlgmr.msra.gmra.mxu2 %v10060_v0  ;;  %v7124_v2 = vpack.c.bf16 %v6540_v5, %v6532_v46  ;;  %v6380_v31 = vcvt.s32.f32 %v5356_v11  ;;  %v5492_v7 = vunpack.c.2.s8 %v4596_v21  ;;  %v4516_v5 = vld [vmem:[%s9260_s18 + $0x408] sm:$0xff] }
 0x37f   : > { %v6980_v50 = vpack.c.bf16 %v6252_v26, %v6244_v54  ;;  %7295 = vmatpush.bf16.msrb.mxu3 %v7187_v51  ;;  %v6643_v57 = vcvt.s32.f32 %v5619_v18  ;;  %v6651_v44 = vcvt.s32.f32 %v5627_v34  ;;  %v5500_v59 = vunpack.c.3.s8 %v4596_v21  ;;  %v4548_v51 = vld [vmem:[%s9260_s18 + $0x508] sm:$0xff] }
 0x380   : > { %v5204_v28 = vunpack.c.2.s8 %v4524_v47  ;;  %7386 = vmatpush.bf16.msrb.mxu2 %v7124_v2  ;;  %v7044_v60 = vpack.c.bf16 %v6380_v31, %v6372_v15  ;;  %v6516_v41 = vcvt.s32.f32 %v5492_v7  ;;  %v5212_v37 = vunpack.c.3.s8 %v4524_v47 }
 0x381   : > { %7362 = vmatpush.bf16.msrb.mxu0 %v6980_v50  ;;  %v5332_v27 = vunpack.c.2.s8 %v4556_v61  ;;  %v7179_v12 = vpack.c.bf16 %v6651_v44, %v6643_v57  ;;  %v6524_v8 = vcvt.s32.f32 %v5500_v59  ;;  %v5340_v56 = vunpack.c.3.s8 %v4556_v61 }
 0x382   : > { %v6228_v53 = vcvt.s32.f32 %v5204_v28  ;;  %7375 = vmatpush.bf16.msrb.mxu1 %v7044_v60  ;;  %v6236_v25 = vcvt.s32.f32 %v5212_v37  ;;  %v5603_v62 = vunpack.c.0.s8 %v4627_v14  ;;  %v5611_v17 = vunpack.c.1.s8 %v4627_v14 }
 0x383   : > { %v6356_v49 = vcvt.s32.f32 %v5332_v27  ;;  %7296 = vmatpush.bf16.msrb.mxu3 %v7179_v12  ;;  %v7116_v16 = vpack.c.bf16 %v6524_v8, %v6516_v41  ;;  %v6364_v36 = vcvt.s32.f32 %v5340_v56  ;;  %v5476_v24 = vunpack.c.0.s8 %v4596_v21  ;;  %v10406_v20 = vpop.f32.mrf.mxu0 }
 0x384   : > { %v5484_v30 = vunpack.c.1.s8 %v4596_v21  ;;  %v6972_v10 = vpack.c.bf16 %v6236_v25, %v6228_v53  ;;  %v6627_v35 = vcvt.s32.f32 %v5603_v62  ;;  %v6635_v29 = vcvt.s32.f32 %v5611_v17  ;;  %v10408_v9 = vpop.f32.mrf.mxu1  ;;  %v4413_v17 = vld [vmem:[%s9260_s18 + $0xd0] sm:$0xff] }
 0x385   : > { %v5188_v6 = vunpack.c.0.s8 %v4524_v47  ;;  %7387 = vmatpush.bf16.msrb.mxu2 %v7116_v16  ;;  %v7036_v40 = vpack.c.bf16 %v6364_v36, %v6356_v49  ;;  %v6500_v4 = vcvt.s32.f32 %v5476_v24  ;;  %v5196_v3 = vunpack.c.1.s8 %v4524_v47 }
 0x386   : > { %v6508_v63 = vcvt.s32.f32 %v5484_v30  ;;  %7363 = vmatpush.bf16.msrb.mxu0 %v6972_v10  ;;  %v7171_v19 = vpack.c.bf16 %v6635_v29, %v6627_v35  ;;  %v5316_v14 = vunpack.c.0.s8 %v4556_v61  ;;  %v5324_v55 = vunpack.c.1.s8 %v4556_v61  ;;  %v4445_v10 = vld [vmem:[%s9260_s18 + $0x1d0] sm:$0xff] }
 0x387   : > { %v6212_v52 = vcvt.s32.f32 %v5188_v6  ;;  %7376 = vmatpush.bf16.msrb.mxu1 %v7036_v40  ;;  %v6220_v46 = vcvt.s32.f32 %v5196_v3  ;;  %v4271_v43 = vadd.f32 %v10384_v22, %v10397_v1  ;;  %v5587_v21 = vunpack.c.2.s8 %v4619_v13 }
 0x388   : > { %v7108_v38 = vpack.c.bf16 %v6508_v63, %v6500_v4  ;;  %7297 = vmatpush.bf16.msrb.mxu3 %v7171_v19  ;;  %v6340_v54 = vcvt.s32.f32 %v5316_v14  ;;  %v6348_v26 = vcvt.s32.f32 %v5324_v55  ;;  %v5595_v11 = vunpack.c.3.s8 %v4619_v13 }
 0x389   : > { %v5460_v47 = vunpack.c.2.s8 %v4588_v32  ;;  %v6964_v15 = vpack.c.bf16 %v6220_v46, %v6212_v52  ;;  %v10415_v18 = vadd.f32 %v10386_v42, %v4271_v43  ;;  %v6611_v34 = vcvt.s32.f32 %v5587_v21 }
 0x38a   : > { %7388 = vmatpush.bf16.msrb.mxu2 %v7108_v38  ;;  %v5468_v61 = vunpack.c.3.s8 %v4588_v32  ;;  %v7028_v2 = vpack.c.bf16 %v6348_v26, %v6340_v54  ;;  %v6619_v50 = vcvt.s32.f32 %v5595_v11  ;;  %v5172_v7 = vunpack.c.2.s8 %v4516_v5  ;;  %v4580_v38 = vld [vmem:[%s9260_s18 + $0x608] sm:$0xff] }
 0x38b   : > { %v6484_v31 = vcvt.s32.f32 %v5460_v47  ;;  %7364 = vmatpush.bf16.msrb.mxu0 %v6964_v15  ;;  %v5180_v1 = vunpack.c.3.s8 %v4516_v5  ;;  %v5300_v57 = vunpack.c.2.s8 %v4548_v51  ;;  %v5308_v44 = vunpack.c.3.s8 %v4548_v51  ;;  %v4298_v8 = vpop.f32.mrf.mxu0 }
 0x38c   : > { %v6492_v22 = vcvt.s32.f32 %v5468_v61  ;;  %7377 = vmatpush.bf16.msrb.mxu1 %v7028_v2  ;;  %v7163_v59 = vpack.c.bf16 %v6619_v50, %v6611_v34  ;;  %v6196_v28 = vcvt.s32.f32 %v5172_v7  ;;  %v5571_v60 = vunpack.c.0.s8 %v4619_v13  ;;  %v4311_v53 = vpop.f32.mrf.mxu1 }
 0x38d   : > { %v5579_v41 = vunpack.c.1.s8 %v4619_v13  ;;  %v6204_v42 = vcvt.s32.f32 %v5180_v1  ;;  %v6324_v27 = vcvt.s32.f32 %v5300_v57  ;;  %v6332_v12 = vcvt.s32.f32 %v5308_v44 }
 0x38e   : > { %v7100_v37 = vpack.c.bf16 %v6492_v22, %v6484_v31  ;;  %7298 = vmatpush.bf16.msrb.mxu3 %v7163_v59  ;;  %v6595_v56 = vcvt.s32.f32 %v5571_v60  ;;  %v5444_v49 = vunpack.c.0.s8 %v4588_v32  ;;  %v5452_v62 = vunpack.c.1.s8 %v4588_v32  ;;  %v4611_v32 = vld [vmem:[%s9260_s18 + $0x700] sm:$0xff] }
 0x38f   : > { %v6603_v25 = vcvt.s32.f32 %v5579_v41  ;;  %v6956_v16 = vpack.c.bf16 %v6204_v42, %v6196_v28  ;;  %v7020_v36 = vpack.c.bf16 %v6332_v12, %v6324_v27  ;;  %v5156_v24 = vunpack.c.0.s8 %v4516_v5  ;;  %v10426_v27 = vld [vmem:[%s9260_s18 + $0x3c8] sm:$0xff] }
 0x390   : > { %7389 = vmatpush.bf16.msrb.mxu2 %v7100_v37  ;;  %v5164_v30 = vunpack.c.1.s8 %v4516_v5  ;;  %v6468_v29 = vcvt.s32.f32 %v5444_v49  ;;  %v6476_v6 = vcvt.s32.f32 %v5452_v62  ;;  %v5284_v13 = vunpack.c.0.s8 %v4548_v51 }
 0x391   : > { %v7155_v35 = vpack.c.bf16 %v6603_v25, %v6595_v56  ;;  %7365 = vmatpush.bf16.msrb.mxu0 %v6956_v16  ;;  %7378 = vmatpush.bf16.msrb.mxu1 %v7020_v36  ;;  %v6180_v40 = vcvt.s32.f32 %v5156_v24  ;;  %v5292_v63 = vunpack.c.1.s8 %v4548_v51  ;;  %v4757_v3 = vunpack.c.2.s8 %v4413_v17  ;;  %v4477_v16 = vld [vmem:[%s9260_s18 + $0x2d0] sm:$0xff] }
 0x392   : > { %v6188_v4 = vcvt.s32.f32 %v5164_v30  ;;  %v7092_v19 = vpack.c.bf16 %v6476_v6, %v6468_v29  ;;  %v6308_v52 = vcvt.s32.f32 %v5284_v13  ;;  %v4765_v14 = vunpack.c.3.s8 %v4413_v17 }
 0x393   : > { %7299 = vmatpush.bf16.msrb.mxu3 %v7155_v35  ;;  %v4885_v55 = vunpack.c.2.s8 %v4445_v10  ;;  %v6316_v43 = vcvt.s32.f32 %v5292_v63  ;;  %v5781_v21 = vcvt.s32.f32 %v4757_v3  ;;  %v4893_v5 = vunpack.c.3.s8 %v4445_v10  ;;  %v10421_v2 = vpop.f32.mrf.mxu2  ;;  %v4405_v35 = vld [vmem:[%s9260_s18 + $0x90] sm:$0xff] }
 0x394   : > { %v6948_v46 = vpack.c.bf16 %v6188_v4, %v6180_v40  ;;  %7390 = vmatpush.bf16.msrb.mxu2 %v7092_v19  ;;  %v5789_v54 = vcvt.s32.f32 %v4765_v14  ;;  %v5555_v11 = vunpack.c.2.s8 %v4611_v32  ;;  %v5563_v47 = vunpack.c.3.s8 %v4611_v32  ;;  %v10423_v50 = vpop.f32.mrf.mxu3  ;;  %v4437_v4 = vld [vmem:[%s9260_s18 + $0x190] sm:$0xff] }
 0x395   : > { %v5909_v26 = vcvt.s32.f32 %v4885_v55  ;;  %v7012_v15 = vpack.c.bf16 %v6316_v43, %v6308_v52  ;;  %v5917_v51 = vcvt.s32.f32 %v4893_v5  ;;  %v5428_v34 = vunpack.c.2.s8 %v4580_v38 }
 0x396   : > { %7366 = vmatpush.bf16.msrb.mxu0 %v6948_v46  ;;  %v5436_v61 = vunpack.c.3.s8 %v4580_v38  ;;  %v6749_v31 = vpack.c.bf16 %v5789_v54, %v5781_v21  ;;  %v6579_v7 = vcvt.s32.f32 %v5555_v11  ;;  %v6587_v22 = vcvt.s32.f32 %v5563_v47 }
 0x397   : > { %v4741_v1 = vunpack.c.0.s8 %v4413_v17  ;;  %7379 = vmatpush.bf16.msrb.mxu1 %v7012_v15  ;;  %v6813_v57 = vpack.c.bf16 %v5917_v51, %v5909_v26  ;;  %v6452_v44 = vcvt.s32.f32 %v5428_v34  ;;  %v4749_v28 = vunpack.c.1.s8 %v4413_v17 }
 0x398   : > { %v6460_v59 = vcvt.s32.f32 %v5436_v61  ;;  %v7147_v60 = vpack.c.bf16 %v6587_v22, %v6579_v7  ;;  %v4869_v37 = vunpack.c.0.s8 %v4445_v10  ;;  %v4877_v42 = vunpack.c.1.s8 %v4445_v10 }
 0x399   : > { %v5765_v41 = vcvt.s32.f32 %v4741_v1  ;;  %7367 = vmatmul.bf16.vlgmr.msrb.gmra.mxu0 %v10224_v48  ;;  %v5773_v8 = vcvt.s32.f32 %v4749_v28  ;;  %v5539_v53 = vunpack.c.0.s8 %v4611_v32  ;;  %v5547_v56 = vunpack.c.1.s8 %v4611_v32 }
 0x39a   : > { %7411 = vmatpush.bf16.msra.mxu0 %v6749_v31  ;;  %v7084_v12 = vpack.c.bf16 %v6460_v59, %v6452_v44  ;;  %7300 = vmatpush.bf16.msrb.mxu3 %v7147_v60  ;;  %v5893_v25 = vcvt.s32.f32 %v4869_v37  ;;  %v5901_v49 = vcvt.s32.f32 %v4877_v42  ;;  %v5412_v62 = vunpack.c.0.s8 %v4580_v38  ;;  %v4500_v59 = vld [vmem:[%s9260_s18 + $0x388] sm:$0xff] }
 0x39b   : > { %7424 = vmatpush.bf16.msra.mxu1 %v6813_v57  ;;  %v5420_v17 = vunpack.c.1.s8 %v4580_v38  ;;  %v6741_v36 = vpack.c.bf16 %v5773_v8, %v5765_v41  ;;  %v6563_v24 = vcvt.s32.f32 %v5539_v53  ;;  %v6571_v30 = vcvt.s32.f32 %v5547_v56  ;;  %v4324_v52 = vpop.f32.mrf.mxu2 }
 0x39c   : > { %7380 = vmatmul.bf16.vlgmr.msrb.gmra.mxu1 %v10322_v23  ;;  %7391 = vmatpush.bf16.msrb.mxu2 %v7084_v12  ;;  %v5140_v10 = vunpack.c.2.s8 %v10426_v27  ;;  %v6805_v29 = vpack.c.bf16 %v5901_v49, %v5893_v25  ;;  %v6436_v6 = vcvt.s32.f32 %v5412_v62  ;;  %v5148_v40 = vunpack.c.3.s8 %v10426_v27  ;;  %v4337_v14 = vpop.f32.mrf.mxu3  ;;  %v4397_v25 = vld [vmem:[%s9260_s18 + $0x50] sm:$0xff] }
 0x39d   : > { %v6444_v13 = vcvt.s32.f32 %v5420_v17  ;;  %v7139_v63 = vpack.c.bf16 %v6571_v30, %v6563_v24  ;;  %v5013_v32 = vunpack.c.2.s8 %v4477_v16  ;;  %v5021_v19 = vunpack.c.3.s8 %v4477_v16 }
 0x39e   : > { %7412 = vmatpush.bf16.msra.mxu0 %v6741_v36  ;;  %v6164_v3 = vcvt.s32.f32 %v5140_v10  ;;  %v6172_v38 = vcvt.s32.f32 %v5148_v40  ;;  %v4725_v46 = vunpack.c.2.s8 %v4405_v35  ;;  %v4733_v43 = vunpack.c.3.s8 %v4405_v35  ;;  %v4429_v36 = vld [vmem:[%s9260_s18 + $0x150] sm:$0xff] }
 0x39f   : > { %7425 = vmatpush.bf16.msra.mxu1 %v6805_v29  ;;  %v7076_v55 = vpack.c.bf16 %v6444_v13, %v6436_v6  ;;  %7301 = vmatpush.bf16.msrb.mxu3 %v7139_v63  ;;  %v6037_v21 = vcvt.s32.f32 %v5013_v32  ;;  %v6045_v5 = vcvt.s32.f32 %v5021_v19  ;;  %v4853_v54 = vunpack.c.2.s8 %v4437_v4 }
 0x3a0   : > { %v4861_v26 = vunpack.c.3.s8 %v4437_v4  ;;  %v6940_v11 = vpack.c.bf16 %v6172_v38, %v6164_v3  ;;  %v5749_v47 = vcvt.s32.f32 %v4725_v46  ;;  %v5757_v15 = vcvt.s32.f32 %v4733_v43 }
 0x3a1   : > { %7392 = vmatpush.bf16.msrb.mxu2 %v7076_v55  ;;  %v4297_v51 = vadd.f32 %v10406_v20, %v10415_v18  ;;  %v6877_v34 = vpack.c.bf16 %v6045_v5, %v6037_v21  ;;  %v5877_v61 = vcvt.s32.f32 %v4853_v54  ;;  %v5124_v7 = vunpack.c.0.s8 %v10426_v27 }
 0x3a2   : > { %v5885_v31 = vcvt.s32.f32 %v4861_v26  ;;  %v6733_v22 = vpack.c.bf16 %v5757_v15, %v5749_v47  ;;  %v5132_v57 = vunpack.c.1.s8 %v10426_v27  ;;  %v4997_v44 = vunpack.c.0.s8 %v4477_v16 }
 0x3a3   : > { %7346 = vmatpush.bf16.msra.mxu3 %v6940_v11  ;;  %v10439_v1 = vadd.f32 %v10408_v9, %v4297_v51  ;;  %v6148_v60 = vcvt.s32.f32 %v5124_v7  ;;  %v5005_v20 = vunpack.c.1.s8 %v4477_v16  ;;  %v4709_v18 = vunpack.c.0.s8 %v4405_v35  ;;  %v4469_v9 = vld [vmem:[%s9260_s18 + $0x290] sm:$0xff] }
 0x3a4   : > { %v6797_v28 = vpack.c.bf16 %v5885_v31, %v5877_v61  ;;  %7413 = vmatpush.bf16.msra.mxu0 %v6733_v22  ;;  %7393 = vmatmul.bf16.vlgmr.msrb.gmra.mxu2 %v10382_v58  ;;  %v6156_v41 = vcvt.s32.f32 %v5132_v57  ;;  %v6021_v37 = vcvt.s32.f32 %v4997_v44  ;;  %v4717_v42 = vunpack.c.1.s8 %v4405_v35  ;;  %v4492_v57 = vld [vmem:[%s9260_s18 + $0x348] sm:$0xff] }
 0x3a5   : > { %7437 = vmatpush.bf16.msra.mxu2 %v6877_v34  ;;  %v4837_v12 = vunpack.c.0.s8 %v4437_v4  ;;  %v6029_v8 = vcvt.s32.f32 %v5005_v20  ;;  %v5733_v27 = vcvt.s32.f32 %v4709_v18  ;;  %v4845_v53 = vunpack.c.1.s8 %v4437_v4  ;;  %v10449_v20 = vld [vmem:[%s9260_s18 + $0x250] sm:$0xff] }
 0x3a6   : > { %7426 = vmatpush.bf16.msra.mxu1 %v6797_v28  ;;  %v5108_v56 = vunpack.c.2.s8 %v4500_v59  ;;  %v6932_v49 = vpack.c.bf16 %v6156_v41, %v6148_v60  ;;  %v5741_v62 = vcvt.s32.f32 %v4717_v42  ;;  %v5116_v16 = vunpack.c.3.s8 %v4500_v59  ;;  %v8859_v42 = vld [vmem:[%s9329_s15 + $0x38] sm:$0xff] }
 0x3a7   : > { %v5861_v17 = vcvt.s32.f32 %v4837_v12  ;;  %v6869_v24 = vpack.c.bf16 %v6029_v8, %v6021_v37  ;;  %v5869_v30 = vcvt.s32.f32 %v4845_v53  ;;  %v4981_v29 = vunpack.c.2.s8 %v4469_v9 }
 0x3a8   : > { %v6132_v10 = vcvt.s32.f32 %v5108_v56  ;;  %7347 = vmatpush.bf16.msra.mxu3 %v6932_v49  ;;  %v6725_v6 = vpack.c.bf16 %v5741_v62, %v5733_v27  ;;  %v6140_v35 = vcvt.s32.f32 %v5116_v16  ;;  %v4989_v13 = vunpack.c.3.s8 %v4469_v9 }
 0x3a9   : > { %v4693_v40 = vunpack.c.2.s8 %v4397_v25  ;;  %7438 = vmatpush.bf16.msra.mxu2 %v6869_v24  ;;  %v6789_v63 = vpack.c.bf16 %v5869_v30, %v5861_v17  ;;  %v6005_v3 = vcvt.s32.f32 %v4981_v29  ;;  %v4701_v4 = vunpack.c.3.s8 %v4397_v25 }
 0x3aa   : > { %v4821_v32 = vunpack.c.2.s8 %v4429_v36  ;;  %7414 = vmatpush.bf16.msra.mxu0 %v6725_v6  ;;  %v6924_v19 = vpack.c.bf16 %v6140_v35, %v6132_v10  ;;  %v6013_v52 = vcvt.s32.f32 %v4989_v13  ;;  %v4829_v55 = vunpack.c.3.s8 %v4429_v36 }
 0x3ab   : > { %v5717_v14 = vcvt.s32.f32 %v4693_v40  ;;  %7427 = vmatpush.bf16.msra.mxu1 %v6789_v63  ;;  %v5725_v38 = vcvt.s32.f32 %v4701_v4  ;;  %v5092_v43 = vunpack.c.0.s8 %v4500_v59  ;;  %v5100_v21 = vunpack.c.1.s8 %v4500_v59 }
 0x3ac   : > { %v5845_v46 = vcvt.s32.f32 %v4821_v32  ;;  %7348 = vmatpush.bf16.msra.mxu3 %v6924_v19  ;;  %v6861_v5 = vpack.c.bf16 %v6013_v52, %v6005_v3  ;;  %v5853_v54 = vcvt.s32.f32 %v4829_v55  ;;  %v4965_v26 = vunpack.c.0.s8 %v4469_v9 }
 0x3ad   : > { %v4973_v11 = vunpack.c.1.s8 %v4469_v9  ;;  %v6717_v47 = vpack.c.bf16 %v5725_v38, %v5717_v14  ;;  %v6116_v15 = vcvt.s32.f32 %v5092_v43  ;;  %v6124_v51 = vcvt.s32.f32 %v5100_v21  ;;  %v4389_v9 = vld [vmem:[%s9260_s18 + $0x10] sm:$0xff]  ;;  %v10455_v8 = vpop.f32.mrf.mxu0 }
 0x3ae   : > { %v4677_v34 = vunpack.c.0.s8 %v4397_v25  ;;  %7439 = vmatpush.bf16.msra.mxu2 %v6861_v5  ;;  %v6781_v61 = vpack.c.bf16 %v5853_v54, %v5845_v46  ;;  %v5989_v31 = vcvt.s32.f32 %v4965_v26  ;;  %v4685_v22 = vunpack.c.1.s8 %v4397_v25 }
 0x3af   : > { %v5997_v7 = vcvt.s32.f32 %v4973_v11  ;;  %7415 = vmatpush.bf16.msra.mxu0 %v6717_v47  ;;  %v6916_v44 = vpack.c.bf16 %v6124_v51, %v6116_v15  ;;  %v4805_v28 = vunpack.c.0.s8 %v4429_v36  ;;  %v4813_v60 = vunpack.c.1.s8 %v4429_v36  ;;  %v10457_v27 = vpop.f32.mrf.mxu1 }
 0x3b0   : > { %v5701_v59 = vcvt.s32.f32 %v4677_v34  ;;  %7428 = vmatpush.bf16.msra.mxu1 %v6781_v61  ;;  %v5709_v41 = vcvt.s32.f32 %v4685_v22  ;;  %v4323_v37 = vadd.f32 %v10421_v2, %v10439_v1  ;;  %v4346_v12 = vperm.slane %v8859_v42, 2  ;;  %v4421_v1 = vld [vmem:[%s9260_s18 + $0x110] sm:$0xff] }
 0x3b1   : > { %v6853_v18 = vpack.c.bf16 %v5997_v7, %v5989_v31  ;;  %7349 = vmatpush.bf16.msra.mxu3 %v6916_v44  ;;  %v5829_v53 = vcvt.s32.f32 %v4805_v28  ;;  %v5837_v56 = vcvt.s32.f32 %v4813_v60  ;;  %v4362_v25 = vperm.slane %v8859_v42, 3  ;;  %v4541_v61 = vld [vmem:[%s9260_s18 + $0x4d0] sm:$0xff] }
 0x3b2   : > { %v5076_v49 = vunpack.c.2.s8 %v4492_v57  ;;  %v6709_v62 = vpack.c.bf16 %v5709_v41, %v5701_v59  ;;  %v4336_v17 = vadd.f32 %v10423_v50, %v4323_v37  ;;  %v5084_v16 = vunpack.c.3.s8 %v4492_v57  ;;  %v4573_v44 = vld [vmem:[%s9260_s18 + $0x5d0] sm:$0xff]  ;;  %v4484_v41 = vld [vmem:[%s9260_s18 + $0x308] sm:$0xff] }
 0x3b3   : > { %7440 = vmatpush.bf16.msra.mxu2 %v6853_v18  ;;  %v4949_v2 = vunpack.c.2.s8 %v10449_v20  ;;  %v6773_v36 = vpack.c.bf16 %v5837_v56, %v5829_v53  ;;  %v4957_v30 = vunpack.c.3.s8 %v10449_v20  ;;  %v4661_v10 = vunpack.c.2.s8 %v4389_v9 }
 0x3b4   : > { %v6100_v24 = vcvt.s32.f32 %v5076_v49  ;;  %7416 = vmatpush.bf16.msra.mxu0 %v6709_v62  ;;  %v4354_v29 = vmul.f32 %v4346_v12, %v4336_v17  ;;  %v6108_v6 = vcvt.s32.f32 %v5084_v16  ;;  %v4669_v13 = vunpack.c.3.s8 %v4389_v9  ;;  %v4453_v49 = vld [vmem:[%s9260_s18 + $0x210] sm:$0xff] }
 0x3b5   : > { %v5973_v35 = vcvt.s32.f32 %v4949_v2  ;;  %7429 = vmatpush.bf16.msra.mxu1 %v6773_v36  ;;  %v5981_v40 = vcvt.s32.f32 %v4957_v30  ;;  %v5685_v63 = vcvt.s32.f32 %v4661_v10  ;;  %v4789_v3 = vunpack.c.2.s8 %v4421_v1  ;;  %v7214_v26 = vpop.f32.mrf.mxu0 }
 0x3b6   : > { %v4797_v4 = vunpack.c.3.s8 %v4421_v1  ;;  %v4370_v50 = vadd.f32 %v4362_v25, %v4354_v29  ;;  %v6908_v32 = vpack.c.bf16 %v6108_v6, %v6100_v24  ;;  %v5693_v19 = vcvt.s32.f32 %v4669_v13 }
 0x3b7   : > { %v5060_v52 = vunpack.c.0.s8 %v4492_v57  ;;  %v6845_v14 = vpack.c.bf16 %v5981_v40, %v5973_v35  ;;  %v5813_v55 = vcvt.s32.f32 %v4789_v3  ;;  %v5068_v46 = vunpack.c.1.s8 %v4492_v57  ;;  %v7227_v11 = vpop.f32.mrf.mxu1 }
 0x3b8   : > { %v5821_v38 = vcvt.s32.f32 %v4797_v4  ;;  %v4378_v43 = vmax.f32 %v4370_v50, 0.0  ;;  %7350 = vmatpush.bf16.msra.mxu3 %v6908_v32  ;;  %v6701_v21 = vpack.c.bf16 %v5693_v19, %v5685_v63  ;;  %v4933_v54 = vunpack.c.0.s8 %v10449_v20 }
 0x3b9   : > { %v6084_v5 = vcvt.s32.f32 %v5060_v52  ;;  %7441 = vmatpush.bf16.msra.mxu2 %v6845_v14  ;;  %v6092_v15 = vcvt.s32.f32 %v5068_v46  ;;  %v4941_v51 = vunpack.c.1.s8 %v10449_v20  ;;  %v4645_v34 = vunpack.c.0.s8 %v4389_v9 }
 0x3ba   : > { %v6765_v47 = vpack.c.bf16 %v5821_v38, %v5813_v55  ;;  %v10466_v31 = vpack.c.bf16 %v4378_v43, %v4378_v43  ;;  %7417 = vmatpush.bf16.msra.mxu0 %v6701_v21  ;;  %v5957_v7 = vcvt.s32.f32 %v4933_v54  ;;  %v4653_v22 = vunpack.c.1.s8 %v4389_v9  ;;  %v4636_v21 = vld [vmem:[%s9260_s18 + $0x7c8] sm:$0xff] }
 0x3bb   : > { %v4773_v57 = vunpack.c.0.s8 %v4421_v1  ;;  %v6900_v59 = vpack.c.bf16 %v6092_v15, %v6084_v5  ;;  %v5965_v28 = vcvt.s32.f32 %v4941_v51  ;;  %v5669_v60 = vcvt.s32.f32 %v4645_v34 }
 0x3bc   : > { %7430 = vmatpush.bf16.msra.mxu1 %v6765_v47  ;;  %v4781_v18 = vunpack.c.1.s8 %v4421_v1  ;;  %v5677_v37 = vcvt.s32.f32 %v4653_v22  ;;  %v5269_v12 = vunpack.c.2.s8 %v4541_v61  ;;  %v5277_v20 = vunpack.c.3.s8 %v4541_v61  ;;  %7302 = vmatmul.bf16.vlgmr.msrb.gmra.mxu3 %v10466_v31  ;;  %v4605_v47 = vld [vmem:[%s9260_s18 + $0x6d0] sm:$0xff] }
 0x3bd   : > { %v5797_v42 = vcvt.s32.f32 %v4773_v57  ;;  %7351 = vmatpush.bf16.msra.mxu3 %v6900_v59  ;;  %v6837_v53 = vpack.c.bf16 %v5965_v28, %v5957_v7  ;;  %v5397_v25 = vunpack.c.2.s8 %v4573_v44  ;;  %v5405_v9 = vunpack.c.3.s8 %v4573_v44  ;;  %v4533_v7 = vld [vmem:[%s9260_s18 + $0x490] sm:$0xff] }
 0x3be   : > { %v5805_v56 = vcvt.s32.f32 %v4781_v18  ;;  %v6693_v62 = vpack.c.bf16 %v5677_v37, %v5669_v60  ;;  %v6293_v17 = vcvt.s32.f32 %v5269_v12  ;;  %v6301_v16 = vcvt.s32.f32 %v5277_v20  ;;  %v10472_v10 = vpop.f32.mrf.mxu2 }
 0x3bf   : > { %v5044_v2 = vunpack.c.2.s8 %v4484_v41  ;;  %7442 = vmatpush.bf16.msra.mxu2 %v6837_v53  ;;  %v6421_v1 = vcvt.s32.f32 %v5397_v25  ;;  %v6429_v24 = vcvt.s32.f32 %v5405_v9  ;;  %v5052_v30 = vunpack.c.3.s8 %v4484_v41  ;;  %v10474_v29 = vpop.f32.mrf.mxu3 }
 0x3c0   : > { %v6757_v36 = vpack.c.bf16 %v5805_v56, %v5797_v42  ;;  %7418 = vmatpush.bf16.msra.mxu0 %v6693_v62  ;;  %v7005_v6 = vpack.c.bf16 %v6301_v16, %v6293_v17  ;;  %v4917_v13 = vunpack.c.2.s8 %v4453_v49  ;;  %v4925_v40 = vunpack.c.3.s8 %v4453_v49  ;;  %v4565_v42 = vld [vmem:[%s9260_s18 + $0x590] sm:$0xff] }
 0x3c1   : > { %v6068_v35 = vcvt.s32.f32 %v5044_v2  ;;  %v7069_v63 = vpack.c.bf16 %v6429_v24, %v6421_v1  ;;  %v6076_v3 = vcvt.s32.f32 %v5052_v30  ;;  %v5253_v4 = vunpack.c.0.s8 %v4541_v61 }
 0x3c2   : > { %7431 = vmatpush.bf16.msra.mxu1 %v6757_v36  ;;  %v5261_v50 = vunpack.c.1.s8 %v4541_v61  ;;  %v5941_v32 = vcvt.s32.f32 %v4917_v13  ;;  %v5949_v19 = vcvt.s32.f32 %v4925_v40  ;;  %v5381_v52 = vunpack.c.0.s8 %v4573_v44 }
 0x3c3   : > { %v5389_v14 = vunpack.c.1.s8 %v4573_v44  ;;  %v6892_v55 = vpack.c.bf16 %v6076_v3, %v6068_v35  ;;  %7419 = vmatmul.bf16.vlgmr.msra.gmra.mxu0 %v9916_v33  ;;  %v6277_v38 = vcvt.s32.f32 %v5253_v4  ;;  %v5028_v43 = vunpack.c.0.s8 %v4484_v41 }
 0x3c4   : > { %7463 = vmatpush.bf16.msrb.mxu0 %v7005_v6  ;;  %v6285_v46 = vcvt.s32.f32 %v5261_v50  ;;  %v6829_v5 = vpack.c.bf16 %v5949_v19, %v5941_v32  ;;  %v6405_v54 = vcvt.s32.f32 %v5381_v52  ;;  %v5036_v11 = vunpack.c.1.s8 %v4484_v41  ;;  %v4628_v52 = vld [vmem:[%s9260_s18 + $0x788] sm:$0xff] }
 0x3c5   : > { %7432 = vmatmul.bf16.vlgmr.msra.gmra.mxu1 %v9984_v39  ;;  %v6413_v26 = vcvt.s32.f32 %v5389_v14  ;;  %7352 = vmatpush.bf16.msra.mxu3 %v6892_v55  ;;  %v6052_v51 = vcvt.s32.f32 %v5028_v43  ;;  %v4901_v34 = vunpack.c.0.s8 %v4453_v49  ;;  %v4909_v61 = vunpack.c.1.s8 %v4453_v49 }
 0x3c6   : > { %7476 = vmatpush.bf16.msrb.mxu1 %v7069_v63  ;;  %v6997_v15 = vpack.c.bf16 %v6285_v46, %v6277_v38  ;;  %7443 = vmatpush.bf16.msra.mxu2 %v6829_v5  ;;  %v6060_v57 = vcvt.s32.f32 %v5036_v11  ;;  %v5652_v44 = vunpack.c.2.s8 %v4636_v21  ;;  %v5660_v59 = vunpack.c.3.s8 %v4636_v21  ;;  %v7240_v41 = vpop.f32.mrf.mxu2  ;;  %v4597_v38 = vld [vmem:[%s9260_s18 + $0x690] sm:$0xff] }
 0x3c7   : > { %v7061_v22 = vpack.c.bf16 %v6413_v26, %v6405_v54  ;;  %v5925_v28 = vcvt.s32.f32 %v4901_v34  ;;  %v5933_v60 = vcvt.s32.f32 %v4909_v61  ;;  %v5525_v18 = vunpack.c.2.s8 %v4605_v47  ;;  %v7253_v12 = vpop.f32.mrf.mxu3 }
 0x3c8   : > { %7464 = vmatpush.bf16.msrb.mxu0 %v6997_v15  ;;  %v5533_v37 = vunpack.c.3.s8 %v4605_v47  ;;  %v6884_v20 = vpack.c.bf16 %v6060_v57, %v6052_v51  ;;  %v6676_v53 = vcvt.s32.f32 %v5652_v44  ;;  %v6684_v56 = vcvt.s32.f32 %v5660_v59  ;;  %v4525_v15 = vld [vmem:[%s9260_s18 + $0x450] sm:$0xff] }
 0x3c9   : > { %v5237_v25 = vunpack.c.2.s8 %v4533_v7  ;;  %v6821_v9 = vpack.c.bf16 %v5933_v60, %v5925_v28  ;;  %v6549_v49 = vcvt.s32.f32 %v5525_v18  ;;  %v5245_v17 = vunpack.c.3.s8 %v4533_v7  ;;  %v4557_v57 = vld [vmem:[%s9260_s18 + $0x550] sm:$0xff] }
 0x3ca   : > { %7477 = vmatpush.bf16.msrb.mxu1 %v7061_v22  ;;  %v6557_v62 = vcvt.s32.f32 %v5533_v37  ;;  %7353 = vmatpush.bf16.msra.mxu3 %v6884_v20  ;;  %v7196_v16 = vpack.c.bf16 %v6684_v56, %v6676_v53  ;;  %v5365_v36 = vunpack.c.2.s8 %v4565_v42  ;;  %v5373_v1 = vunpack.c.3.s8 %v4565_v42 }
 0x3cb   : > { %v6261_v2 = vcvt.s32.f32 %v5237_v25  ;;  %7444 = vmatpush.bf16.msra.mxu2 %v6821_v9  ;;  %v6269_v30 = vcvt.s32.f32 %v5245_v17  ;;  %v10484_v6 = vadd.f32 %v10457_v27, %v10455_v8  ;;  %v5636_v35 = vunpack.c.0.s8 %v4636_v21 }
 0x3cc   : > { %v7133_v24 = vpack.c.bf16 %v6557_v62, %v6549_v49  ;;  %v6389_v13 = vcvt.s32.f32 %v5365_v36  ;;  %v6397_v40 = vcvt.s32.f32 %v5373_v1  ;;  %v5644_v63 = vunpack.c.1.s8 %v4636_v21 }
 0x3cd   : > { %v5509_v3 = vunpack.c.0.s8 %v4605_v47  ;;  %v6989_v4 = vpack.c.bf16 %v6269_v30, %v6261_v2  ;;  %v6660_v50 = vcvt.s32.f32 %v5636_v35  ;;  %v5517_v32 = vunpack.c.1.s8 %v4605_v47  ;;  %7354 = vmatmul.bf16.vlgmr.msra.gmra.mxu3 %v10136_v45  ;;  %v4620_v35 = vld [vmem:[%s9260_s18 + $0x748] sm:$0xff] }
 0x3ce   : > { %7398 = vmatpush.bf16.msrb.mxu3 %v7196_v16  ;;  %v5221_v19 = vunpack.c.0.s8 %v4533_v7  ;;  %v7053_v14 = vpack.c.bf16 %v6397_v40, %v6389_v13  ;;  %7445 = vmatmul.bf16.vlgmr.msra.gmra.mxu2 %v10060_v0  ;;  %v6668_v8 = vcvt.s32.f32 %v5644_v63  ;;  %v5229_v55 = vunpack.c.1.s8 %v4533_v7 }
 0x3cf   : > { %7489 = vmatpush.bf16.msrb.mxu2 %v7133_v24  ;;  %v6533_v27 = vcvt.s32.f32 %v5509_v3  ;;  %7465 = vmatpush.bf16.msrb.mxu0 %v6989_v4  ;;  %v6541_v46 = vcvt.s32.f32 %v5517_v32  ;;  %v5349_v21 = vunpack.c.0.s8 %v4565_v42  ;;  %v5357_v5 = vunpack.c.1.s8 %v4565_v42 }
 0x3d0   : > { %v6245_v43 = vcvt.s32.f32 %v5221_v19  ;;  %7478 = vmatpush.bf16.msrb.mxu1 %v7053_v14  ;;  %v7188_v54 = vpack.c.bf16 %v6668_v8, %v6660_v50  ;;  %v6253_v26 = vcvt.s32.f32 %v5229_v55  ;;  %v5620_v11 = vunpack.c.2.s8 %v4628_v52  ;;  %v10494_v14 = vpop.f32.mrf.mxu0 }
 0x3d1   : > { %v5628_v47 = vunpack.c.3.s8 %v4628_v52  ;;  %v7125_v51 = vpack.c.bf16 %v6541_v46, %v6533_v27  ;;  %v6373_v34 = vcvt.s32.f32 %v5349_v21  ;;  %v6381_v61 = vcvt.s32.f32 %v5357_v5  ;;  %v10496_v8 = vpop.f32.mrf.mxu1 }
 0x3d2   : > { %v5493_v22 = vunpack.c.2.s8 %v4597_v38  ;;  %7399 = vmatpush.bf16.msrb.mxu3 %v7188_v54  ;;  %v6981_v7 = vpack.c.bf16 %v6253_v26, %v6245_v43  ;;  %v6644_v44 = vcvt.s32.f32 %v5620_v11  ;;  %v5501_v28 = vunpack.c.3.s8 %v4597_v38  ;;  %v4517_v43 = vld [vmem:[%s9260_s18 + $0x410] sm:$0xff] }
 0x3d3   : > { %v6652_v59 = vcvt.s32.f32 %v5628_v47  ;;  %7490 = vmatpush.bf16.msrb.mxu2 %v7125_v51  ;;  %v7045_v60 = vpack.c.bf16 %v6381_v61, %v6373_v34  ;;  %v5205_v37 = vunpack.c.2.s8 %v4525_v15  ;;  %v5213_v42 = vunpack.c.3.s8 %v4525_v15  ;;  %v4549_v11 = vld [vmem:[%s9260_s18 + $0x510] sm:$0xff] }
 0x3d4   : > { %v6517_v18 = vcvt.s32.f32 %v5493_v22  ;;  %7466 = vmatpush.bf16.msrb.mxu0 %v6981_v7  ;;  %v6525_v12 = vcvt.s32.f32 %v5501_v28  ;;  %v5333_v20 = vunpack.c.2.s8 %v4557_v57  ;;  %v5341_v53 = vunpack.c.3.s8 %v4557_v57 }
 0x3d5   : > { %v7180_v41 = vpack.c.bf16 %v6652_v59, %v6644_v44  ;;  %7479 = vmatpush.bf16.msrb.mxu1 %v7045_v60  ;;  %v6229_v56 = vcvt.s32.f32 %v5205_v37  ;;  %v6237_v25 = vcvt.s32.f32 %v5213_v42  ;;  %v5604_v9 = vunpack.c.0.s8 %v4628_v52 }
 0x3d6   : > { %v5612_v49 = vunpack.c.1.s8 %v4628_v52  ;;  %v7117_v62 = vpack.c.bf16 %v6525_v12, %v6517_v18  ;;  %v6357_v17 = vcvt.s32.f32 %v5333_v20  ;;  %v6365_v16 = vcvt.s32.f32 %v5341_v53  ;;  %v4589_v52 = vld [vmem:[%s9260_s18 + $0x650] sm:$0xff] }
 0x3d7   : > { %7400 = vmatpush.bf16.msrb.mxu3 %v7180_v41  ;;  %v5477_v2 = vunpack.c.0.s8 %v4597_v38  ;;  %v6973_v36 = vpack.c.bf16 %v6237_v25, %v6229_v56  ;;  %v6628_v1 = vcvt.s32.f32 %v5604_v9  ;;  %v5485_v30 = vunpack.c.1.s8 %v4597_v38  ;;  %v4414_v9 = vld [vmem:[%s9260_s18 + $0xd8] sm:$0xff] }
 0x3d8   : > { %v6636_v24 = vcvt.s32.f32 %v5612_v49  ;;  %7491 = vmatpush.bf16.msrb.mxu2 %v7117_v62  ;;  %v7037_v13 = vpack.c.bf16 %v6365_v16, %v6357_v17  ;;  %v5189_v63 = vunpack.c.0.s8 %v4525_v15  ;;  %v5197_v3 = vunpack.c.1.s8 %v4525_v15  ;;  %v7266_v49 = vpop.f32.mrf.mxu0 }
 0x3d9   : > { %v6501_v40 = vcvt.s32.f32 %v5477_v2  ;;  %7467 = vmatpush.bf16.msrb.mxu0 %v6973_v36  ;;  %v6509_v50 = vcvt.s32.f32 %v5485_v30  ;;  %v5317_v32 = vunpack.c.0.s8 %v4557_v57  ;;  %v5325_v19 = vunpack.c.1.s8 %v4557_v57  ;;  %v7279_v62 = vpop.f32.mrf.mxu1 }
 0x3da   : > { %v7172_v4 = vpack.c.bf16 %v6636_v24, %v6628_v1  ;;  %7480 = vmatpush.bf16.msrb.mxu1 %v7037_v13  ;;  %v6213_v27 = vcvt.s32.f32 %v5189_v63  ;;  %v6221_v55 = vcvt.s32.f32 %v5197_v3  ;;  %v7239_v38 = vadd.f32 %v10472_v10, %v10484_v6  ;;  %v4446_v13 = vld [vmem:[%s9260_s18 + $0x1d8] sm:$0xff] }
 0x3db   : > { %v5588_v46 = vunpack.c.2.s8 %v4620_v35  ;;  %v7109_v21 = vpack.c.bf16 %v6509_v50, %v6501_v40  ;;  %v6341_v5 = vcvt.s32.f32 %v5317_v32  ;;  %v6349_v54 = vcvt.s32.f32 %v5325_v19  ;;  %v4612_v50 = vld [vmem:[%s9260_s18 + $0x708] sm:$0xff]  ;;  %v4478_v62 = vld [vmem:[%s9260_s18 + $0x2d8] sm:$0xff] }
 0x3dc   : > { %7401 = vmatpush.bf16.msrb.mxu3 %v7172_v4  ;;  %v5596_v26 = vunpack.c.3.s8 %v4620_v35  ;;  %v6965_v47 = vpack.c.bf16 %v6221_v55, %v6213_v27  ;;  %v10503_v15 = vadd.f32 %v10474_v29, %v7239_v38  ;;  %v5461_v34 = vunpack.c.2.s8 %v4589_v52  ;;  %v4581_v55 = vld [vmem:[%s9260_s18 + $0x610] sm:$0xff] }
 0x3dd   : > { %v6612_v51 = vcvt.s32.f32 %v5588_v46  ;;  %7492 = vmatpush.bf16.msrb.mxu2 %v7109_v21  ;;  %v7029_v61 = vpack.c.bf16 %v6349_v54, %v6341_v5  ;;  %v5469_v57 = vunpack.c.3.s8 %v4589_v52  ;;  %v5173_v7 = vunpack.c.2.s8 %v4517_v43 }
 0x3de   : > { %v6620_v22 = vcvt.s32.f32 %v5596_v26  ;;  %7468 = vmatpush.bf16.msrb.mxu0 %v6965_v47  ;;  %v6485_v10 = vcvt.s32.f32 %v5461_v34  ;;  %v5181_v6 = vunpack.c.3.s8 %v4517_v43  ;;  %v5301_v44 = vunpack.c.2.s8 %v4549_v11 }
 0x3df   : > { %v5309_v59 = vunpack.c.3.s8 %v4549_v11  ;;  %7481 = vmatpush.bf16.msrb.mxu1 %v7029_v61  ;;  %v6493_v60 = vcvt.s32.f32 %v5469_v57  ;;  %v6197_v18 = vcvt.s32.f32 %v5173_v7  ;;  %v5572_v37 = vunpack.c.0.s8 %v4620_v35 }
 0x3e0   : > { %v7164_v28 = vpack.c.bf16 %v6620_v22, %v6612_v51  ;;  %v6205_v29 = vcvt.s32.f32 %v5181_v6  ;;  %v6325_v42 = vcvt.s32.f32 %v5301_v44  ;;  %v5580_v12 = vunpack.c.1.s8 %v4620_v35 }
 0x3e1   : > { %v6333_v41 = vcvt.s32.f32 %v5309_v59  ;;  %v7101_v20 = vpack.c.bf16 %v6493_v60, %v6485_v10  ;;  %v6596_v53 = vcvt.s32.f32 %v5572_v37  ;;  %v5445_v56 = vunpack.c.0.s8 %v4589_v52 }
 0x3e2   : > { %7402 = vmatpush.bf16.msrb.mxu3 %v7164_v28  ;;  %v5453_v25 = vunpack.c.1.s8 %v4589_v52  ;;  %v6957_v17 = vpack.c.bf16 %v6205_v29, %v6197_v18  ;;  %v6604_v2 = vcvt.s32.f32 %v5580_v12  ;;  %v5157_v36 = vunpack.c.0.s8 %v4517_v43 }
 0x3e3   : > { %v7021_v16 = vpack.c.bf16 %v6333_v41, %v6325_v42  ;;  %7493 = vmatpush.bf16.msrb.mxu2 %v7101_v20  ;;  %v6469_v1 = vcvt.s32.f32 %v5445_v56  ;;  %v5165_v30 = vunpack.c.1.s8 %v4517_v43  ;;  %v5285_v35 = vunpack.c.0.s8 %v4549_v11 }
 0x3e4   : > { %v6477_v24 = vcvt.s32.f32 %v5453_v25  ;;  %7469 = vmatpush.bf16.msrb.mxu0 %v6957_v17  ;;  %v7156_v40 = vpack.c.bf16 %v6604_v2, %v6596_v53  ;;  %v6181_v63 = vcvt.s32.f32 %v5157_v36  ;;  %v5293_v3 = vunpack.c.1.s8 %v4549_v11  ;;  %v4509_v53 = vld [vmem:[%s9260_s18 + $0x3d0] sm:$0xff] }
 0x3e5   : > { %7482 = vmatpush.bf16.msrb.mxu1 %v7021_v16  ;;  %v4758_v4 = vunpack.c.2.s8 %v4414_v9  ;;  %v6189_v19 = vcvt.s32.f32 %v5165_v30  ;;  %v6309_v52 = vcvt.s32.f32 %v5285_v35  ;;  %v4766_v27 = vunpack.c.3.s8 %v4414_v9 }
 0x3e6   : > { %v7093_v32 = vpack.c.bf16 %v6477_v24, %v6469_v1  ;;  %7403 = vmatpush.bf16.msrb.mxu3 %v7156_v40  ;;  %v6317_v38 = vcvt.s32.f32 %v5293_v3  ;;  %v4886_v21 = vunpack.c.2.s8 %v4446_v13  ;;  %v4894_v5 = vunpack.c.3.s8 %v4446_v13  ;;  %v4406_v1 = vld [vmem:[%s9260_s18 + $0x98] sm:$0xff] }
 0x3e7   : > { %v5782_v46 = vcvt.s32.f32 %v4758_v4  ;;  %v6949_v43 = vpack.c.bf16 %v6189_v19, %v6181_v63  ;;  %v5790_v54 = vcvt.s32.f32 %v4766_v27  ;;  %v5556_v26 = vunpack.c.2.s8 %v4612_v50  ;;  %v4438_v40 = vld [vmem:[%s9260_s18 + $0x198] sm:$0xff] }
 0x3e8   : > { %7494 = vmatpush.bf16.msrb.mxu2 %v7093_v32  ;;  %v5564_v47 = vunpack.c.3.s8 %v4612_v50  ;;  %v7013_v51 = vpack.c.bf16 %v6317_v38, %v6309_v52  ;;  %v5910_v34 = vcvt.s32.f32 %v4886_v21  ;;  %v5918_v11 = vcvt.s32.f32 %v4894_v5 }
 0x3e9   : > { %v5429_v61 = vunpack.c.2.s8 %v4581_v55  ;;  %7470 = vmatpush.bf16.msrb.mxu0 %v6949_v43  ;;  %v6750_v22 = vpack.c.bf16 %v5790_v54, %v5782_v46  ;;  %v6580_v57 = vcvt.s32.f32 %v5556_v26  ;;  %v5437_v10 = vunpack.c.3.s8 %v4581_v55 }
 0x3ea   : > { %v6588_v7 = vcvt.s32.f32 %v5564_v47  ;;  %7483 = vmatpush.bf16.msrb.mxu1 %v7013_v51  ;;  %v6814_v6 = vpack.c.bf16 %v5918_v11, %v5910_v34  ;;  %v4742_v59 = vunpack.c.0.s8 %v4414_v9  ;;  %v4750_v28 = vunpack.c.1.s8 %v4414_v9 }
 0x3eb   : > { %v6453_v44 = vcvt.s32.f32 %v5429_v61  ;;  %v6461_v18 = vcvt.s32.f32 %v5437_v10  ;;  %v4870_v37 = vunpack.c.0.s8 %v4446_v13  ;;  %v4878_v29 = vunpack.c.1.s8 %v4446_v13 }
 0x3ec   : > { %v7148_v60 = vpack.c.bf16 %v6588_v7, %v6580_v57  ;;  %7471 = vmatmul.bf16.vlgmr.msrb.gmra.mxu0 %v10224_v48  ;;  %v5766_v42 = vcvt.s32.f32 %v4742_v59  ;;  %v5774_v41 = vcvt.s32.f32 %v4750_v28  ;;  %v5540_v12 = vunpack.c.0.s8 %v4612_v50  ;;  %v4501_v28 = vld [vmem:[%s9260_s18 + $0x390] sm:$0xff] }
 0x3ed   : > { %7515 = vmatpush.bf16.msra.mxu0 %v6750_v22  ;;  %v5548_v20 = vunpack.c.1.s8 %v4612_v50  ;;  %7484 = vmatmul.bf16.vlgmr.msrb.gmra.mxu1 %v10322_v23  ;;  %v7085_v56 = vpack.c.bf16 %v6461_v18, %v6453_v44  ;;  %v5894_v25 = vcvt.s32.f32 %v4870_v37  ;;  %v5902_v9 = vcvt.s32.f32 %v4878_v29  ;;  %v4470_v37 = vld [vmem:[%s9260_s18 + $0x298] sm:$0xff] }
 0x3ee   : > { %7528 = vmatpush.bf16.msra.mxu1 %v6814_v6  ;;  %7404 = vmatpush.bf16.msrb.mxu3 %v7148_v60  ;;  %v5413_v49 = vunpack.c.0.s8 %v4581_v55  ;;  %v6742_v17 = vpack.c.bf16 %v5774_v41, %v5766_v42  ;;  %v6564_v16 = vcvt.s32.f32 %v5540_v12  ;;  %v5421_v36 = vunpack.c.1.s8 %v4581_v55 }
 0x3ef   : > { %v6572_v2 = vcvt.s32.f32 %v5548_v20  ;;  %7495 = vmatpush.bf16.msrb.mxu2 %v7085_v56  ;;  %v6806_v24 = vpack.c.bf16 %v5902_v9, %v5894_v25  ;;  %v5141_v35 = vunpack.c.2.s8 %v4509_v53  ;;  %v5149_v13 = vunpack.c.3.s8 %v4509_v53  ;;  %v4398_v25 = vld [vmem:[%s9260_s18 + $0x58] sm:$0xff] }
 0x3f0   : > { %v6437_v30 = vcvt.s32.f32 %v5413_v49  ;;  %v6445_v3 = vcvt.s32.f32 %v5421_v36  ;;  %v5014_v4 = vunpack.c.2.s8 %v4478_v62  ;;  %v5022_v50 = vunpack.c.3.s8 %v4478_v62 }
 0x3f1   : > { %7516 = vmatpush.bf16.msra.mxu0 %v6742_v17  ;;  %v7140_v63 = vpack.c.bf16 %v6572_v2, %v6564_v16  ;;  %v6165_v32 = vcvt.s32.f32 %v5141_v35  ;;  %v6173_v19 = vcvt.s32.f32 %v5149_v13  ;;  %v4726_v52 = vunpack.c.2.s8 %v4406_v1  ;;  %v4430_v16 = vld [vmem:[%s9260_s18 + $0x158] sm:$0xff] }
 0x3f2   : > { %7529 = vmatpush.bf16.msra.mxu1 %v6806_v24  ;;  %v4734_v27 = vunpack.c.3.s8 %v4406_v1  ;;  %v7077_v38 = vpack.c.bf16 %v6445_v3, %v6437_v30  ;;  %v6038_v55 = vcvt.s32.f32 %v5014_v4  ;;  %v6046_v46 = vcvt.s32.f32 %v5022_v50 }
 0x3f3   : > { %7405 = vmatpush.bf16.msrb.mxu3 %v7140_v63  ;;  %v4854_v21 = vunpack.c.2.s8 %v4438_v40  ;;  %v6941_v5 = vpack.c.bf16 %v6173_v19, %v6165_v32  ;;  %v5750_v43 = vcvt.s32.f32 %v4726_v52  ;;  %v4862_v26 = vunpack.c.3.s8 %v4438_v40 }
 0x3f4   : > { %v5758_v54 = vcvt.s32.f32 %v4734_v27  ;;  %7496 = vmatpush.bf16.msrb.mxu2 %v7077_v38  ;;  %v6878_v47 = vpack.c.bf16 %v6046_v46, %v6038_v55  ;;  %v7265_v34 = vadd.f32 %v10494_v14, %v10503_v15  ;;  %v5125_v11 = vunpack.c.0.s8 %v4509_v53 }
 0x3f5   : > { %v5878_v51 = vcvt.s32.f32 %v4854_v21  ;;  %v5886_v22 = vcvt.s32.f32 %v4862_v26  ;;  %v5133_v57 = vunpack.c.1.s8 %v4509_v53  ;;  %v4998_v7 = vunpack.c.0.s8 %v4478_v62 }
 0x3f6   : > { %v6734_v61 = vpack.c.bf16 %v5758_v54, %v5750_v43  ;;  %7406 = vmatmul.bf16.vlgmr.msrb.gmra.mxu3 %v10466_v31  ;;  %v10519_v10 = vadd.f32 %v10496_v8, %v7265_v34  ;;  %v6149_v6 = vcvt.s32.f32 %v5125_v11  ;;  %v5006_v44 = vunpack.c.1.s8 %v4478_v62 }
 0x3f7   : > { %7450 = vmatpush.bf16.msra.mxu3 %v6941_v5  ;;  %v4710_v59 = vunpack.c.0.s8 %v4406_v1  ;;  %v6798_v14 = vpack.c.bf16 %v5886_v22, %v5878_v51  ;;  %7497 = vmatmul.bf16.vlgmr.msrb.gmra.mxu2 %v10382_v58  ;;  %v6157_v15 = vcvt.s32.f32 %v5133_v57  ;;  %v6022_v60 = vcvt.s32.f32 %v4998_v7  ;;  %v4462_v22 = vld [vmem:[%s9260_s18 + $0x258] sm:$0xff]  ;;  %v10528_v57 = vpop.f32.mrf.mxu0  ;;  %v10530_v7 = vpop.f32.mrf.mxu1 }
 0x3f8   : > { %7541 = vmatpush.bf16.msra.mxu2 %v6878_v47  ;;  %7517 = vmatpush.bf16.msra.mxu0 %v6734_v61  ;;  %v4718_v18 = vunpack.c.1.s8 %v4406_v1  ;;  %v6030_v29 = vcvt.s32.f32 %v5006_v44  ;;  %v4838_v41 = vunpack.c.0.s8 %v4438_v40  ;;  %v4846_v12 = vunpack.c.1.s8 %v4438_v40  ;;  %v4493_v47 = vld [vmem:[%s9260_s18 + $0x350] sm:$0xff] }
 0x3f9   : > { %v5734_v42 = vcvt.s32.f32 %v4710_v59  ;;  %7530 = vmatpush.bf16.msra.mxu1 %v6798_v14  ;;  %v6933_v8 = vpack.c.bf16 %v6157_v15, %v6149_v6  ;;  %v5109_v53 = vunpack.c.2.s8 %v4501_v28  ;;  %v5117_v56 = vunpack.c.3.s8 %v4501_v28 }
 0x3fa   : > { %v5742_v20 = vcvt.s32.f32 %v4718_v18  ;;  %v6870_v9 = vpack.c.bf16 %v6030_v29, %v6022_v60  ;;  %v5862_v49 = vcvt.s32.f32 %v4838_v41  ;;  %v5870_v62 = vcvt.s32.f32 %v4846_v12 }
 0x3fb   : > { %v4982_v17 = vunpack.c.2.s8 %v4470_v37  ;;  %7451 = vmatpush.bf16.msra.mxu3 %v6933_v8  ;;  %v6133_v36 = vcvt.s32.f32 %v5109_v53  ;;  %v6141_v1 = vcvt.s32.f32 %v5117_v56  ;;  %v4990_v24 = vunpack.c.3.s8 %v4470_v37  ;;  %v4422_v8 = vld [vmem:[%s9260_s18 + $0x118] sm:$0xff] }
 0x3fc   : > { %v6726_v2 = vpack.c.bf16 %v5742_v20, %v5734_v42  ;;  %7542 = vmatpush.bf16.msra.mxu2 %v6870_v9  ;;  %v6790_v30 = vpack.c.bf16 %v5870_v62, %v5862_v49  ;;  %v4694_v13 = vunpack.c.2.s8 %v4398_v25  ;;  %v4702_v40 = vunpack.c.3.s8 %v4398_v25 }
 0x3fd   : > { %v6006_v35 = vcvt.s32.f32 %v4982_v17  ;;  %v6925_v63 = vpack.c.bf16 %v6141_v1, %v6133_v36  ;;  %v6014_v3 = vcvt.s32.f32 %v4990_v24  ;;  %v4822_v4 = vunpack.c.2.s8 %v4430_v16 }
 0x3fe   : > { %7518 = vmatpush.bf16.msra.mxu0 %v6726_v2  ;;  %v4830_v50 = vunpack.c.3.s8 %v4430_v16  ;;  %7531 = vmatpush.bf16.msra.mxu1 %v6790_v30  ;;  %v5718_v32 = vcvt.s32.f32 %v4694_v13  ;;  %v5726_v19 = vcvt.s32.f32 %v4702_v40  ;;  %v5093_v52 = vunpack.c.0.s8 %v4501_v28 }
 0x3ff   : > { %v5101_v27 = vunpack.c.1.s8 %v4501_v28  ;;  %7452 = vmatpush.bf16.msra.mxu3 %v6925_v63  ;;  %v6862_v38 = vpack.c.bf16 %v6014_v3, %v6006_v35  ;;  %v5846_v55 = vcvt.s32.f32 %v4822_v4  ;;  %v4966_v21 = vunpack.c.0.s8 %v4470_v37 }
 0x400   : > { %v5854_v46 = vcvt.s32.f32 %v4830_v50  ;;  %v6718_v5 = vpack.c.bf16 %v5726_v19, %v5718_v32  ;;  %v6117_v43 = vcvt.s32.f32 %v5093_v52  ;;  %v4974_v26 = vunpack.c.1.s8 %v4470_v37  ;;  %v4390_v37 = vld [vmem:[%s9260_s18 + $0x18] sm:$0xff]  ;;  %v7318_v50 = vpop.f32.mrf.mxu0  ;;  %v7331_v32 = vpop.f32.mrf.mxu1 }
 0x401   : > { %v6125_v54 = vcvt.s32.f32 %v5101_v27  ;;  %7543 = vmatpush.bf16.msra.mxu2 %v6862_v38  ;;  %v5990_v34 = vcvt.s32.f32 %v4966_v21  ;;  %v4678_v11 = vunpack.c.0.s8 %v4398_v25  ;;  %v4686_v61 = vunpack.c.1.s8 %v4398_v25 }
 0x402   : > { %v6782_v51 = vpack.c.bf16 %v5854_v46, %v5846_v55  ;;  %7519 = vmatpush.bf16.msra.mxu0 %v6718_v5  ;;  %v5998_v44 = vcvt.s32.f32 %v4974_v26  ;;  %v4806_v59 = vunpack.c.0.s8 %v4430_v16  ;;  %v4814_v28 = vunpack.c.1.s8 %v4430_v16  ;;  %v4542_v55 = vld [vmem:[%s9260_s18 + $0x4d8] sm:$0xff] }
 0x403   : > { %v6917_v6 = vpack.c.bf16 %v6125_v54, %v6117_v43  ;;  %v5702_v14 = vcvt.s32.f32 %v4678_v11  ;;  %v5710_v15 = vcvt.s32.f32 %v4686_v61  ;;  %v5077_v60 = vunpack.c.2.s8 %v4493_v47  ;;  %v4574_v54 = vld [vmem:[%s9260_s18 + $0x5d8] sm:$0xff] }
 0x404   : > { %7532 = vmatpush.bf16.msra.mxu1 %v6782_v51  ;;  %v5085_v18 = vunpack.c.3.s8 %v4493_v47  ;;  %v6854_v29 = vpack.c.bf16 %v5998_v44, %v5990_v34  ;;  %v5830_v42 = vcvt.s32.f32 %v4806_v59  ;;  %v5838_v41 = vcvt.s32.f32 %v4814_v28 }
 0x405   : > { %7453 = vmatpush.bf16.msra.mxu3 %v6917_v6  ;;  %v4950_v12 = vunpack.c.2.s8 %v4462_v22  ;;  %v6710_v20 = vpack.c.bf16 %v5710_v15, %v5702_v14  ;;  %v6101_v53 = vcvt.s32.f32 %v5077_v60  ;;  %v4958_v25 = vunpack.c.3.s8 %v4462_v22  ;;  %v4454_v60 = vld [vmem:[%s9260_s18 + $0x218] sm:$0xff] }
 0x406   : > { %v6109_v56 = vcvt.s32.f32 %v5085_v18  ;;  %7544 = vmatpush.bf16.msra.mxu2 %v6854_v29  ;;  %v6774_v9 = vpack.c.bf16 %v5838_v41, %v5830_v42  ;;  %v4662_v62 = vunpack.c.2.s8 %v4390_v37  ;;  %v4670_v17 = vunpack.c.3.s8 %v4390_v37 }
 0x407   : > { %v5974_v49 = vcvt.s32.f32 %v4950_v12  ;;  %7520 = vmatpush.bf16.msra.mxu0 %v6710_v20  ;;  %v5982_v2 = vcvt.s32.f32 %v4958_v25  ;;  %v4790_v36 = vunpack.c.2.s8 %v4422_v8  ;;  %v4798_v1 = vunpack.c.3.s8 %v4422_v8 }
 0x408   : > { %v6909_v16 = vpack.c.bf16 %v6109_v56, %v6101_v53  ;;  %7533 = vmatpush.bf16.msra.mxu1 %v6774_v9  ;;  %v5686_v24 = vcvt.s32.f32 %v4662_v62  ;;  %v5694_v30 = vcvt.s32.f32 %v4670_v17  ;;  %v5061_v35 = vunpack.c.0.s8 %v4493_v47  ;;  %v10538_v53 = vpop.f32.mrf.mxu2 }
 0x409   : > { %v5069_v13 = vunpack.c.1.s8 %v4493_v47  ;;  %v6846_v40 = vpack.c.bf16 %v5982_v2, %v5974_v49  ;;  %v5814_v63 = vcvt.s32.f32 %v4790_v36  ;;  %v5822_v3 = vcvt.s32.f32 %v4798_v1 }
 0x40a   : > { %7454 = vmatpush.bf16.msra.mxu3 %v6909_v16  ;;  %v4934_v4 = vunpack.c.0.s8 %v4462_v22  ;;  %v6702_v19 = vpack.c.bf16 %v5694_v30, %v5686_v24  ;;  %v6085_v52 = vcvt.s32.f32 %v5061_v35  ;;  %v4942_v38 = vunpack.c.1.s8 %v4462_v22  ;;  %v4485_v22 = vld [vmem:[%s9260_s18 + $0x310] sm:$0xff] }
 0x40b   : > { %v6093_v27 = vcvt.s32.f32 %v5069_v13  ;;  %7545 = vmatpush.bf16.msra.mxu2 %v6846_v40  ;;  %v6766_v46 = vpack.c.bf16 %v5822_v3, %v5814_v63  ;;  %v4646_v5 = vunpack.c.0.s8 %v4390_v37  ;;  %v4654_v43 = vunpack.c.1.s8 %v4390_v37  ;;  %v4637_v3 = vld [vmem:[%s9260_s18 + $0x7d0] sm:$0xff] }
 0x40c   : > { %v5958_v21 = vcvt.s32.f32 %v4934_v4  ;;  %7521 = vmatpush.bf16.msra.mxu0 %v6702_v19  ;;  %v5966_v47 = vcvt.s32.f32 %v4942_v38  ;;  %v4774_v51 = vunpack.c.0.s8 %v4422_v8  ;;  %v4782_v34 = vunpack.c.1.s8 %v4422_v8 }
 0x40d   : > { %v6901_v26 = vpack.c.bf16 %v6093_v27, %v6085_v52  ;;  %7534 = vmatpush.bf16.msra.mxu1 %v6766_v46  ;;  %v5670_v11 = vcvt.s32.f32 %v4646_v5  ;;  %v5678_v61 = vcvt.s32.f32 %v4654_v43  ;;  %v5270_v6 = vunpack.c.2.s8 %v4542_v55  ;;  %v4606_v52 = vld [vmem:[%s9260_s18 + $0x6d8] sm:$0xff] }
 0x40e   : > { %v5278_v44 = vunpack.c.3.s8 %v4542_v55  ;;  %v6838_v59 = vpack.c.bf16 %v5966_v47, %v5958_v21  ;;  %v5798_v28 = vcvt.s32.f32 %v4774_v51  ;;  %v5806_v14 = vcvt.s32.f32 %v4782_v34 }
 0x40f   : > { %7455 = vmatpush.bf16.msra.mxu3 %v6901_v26  ;;  %v5398_v15 = vunpack.c.2.s8 %v4574_v54  ;;  %v6694_v18 = vpack.c.bf16 %v5678_v61, %v5670_v11  ;;  %v6294_v37 = vcvt.s32.f32 %v5270_v6  ;;  %v5406_v42 = vunpack.c.3.s8 %v4574_v54  ;;  %v4534_v26 = vld [vmem:[%s9260_s18 + $0x498] sm:$0xff] }
 0x410   : > { %v6302_v29 = vcvt.s32.f32 %v5278_v44  ;;  %7546 = vmatpush.bf16.msra.mxu2 %v6838_v59  ;;  %v6758_v41 = vpack.c.bf16 %v5806_v14, %v5798_v28  ;;  %v5045_v8 = vunpack.c.2.s8 %v4485_v22  ;;  %v5053_v20 = vunpack.c.3.s8 %v4485_v22  ;;  %v4566_v61 = vld [vmem:[%s9260_s18 + $0x598] sm:$0xff]  ;;  %v7292_v6 = vpop.f32.mrf.mxu2 }
 0x411   : > { %v6422_v12 = vcvt.s32.f32 %v5398_v15  ;;  %7522 = vmatpush.bf16.msra.mxu0 %v6694_v18  ;;  %v6430_v25 = vcvt.s32.f32 %v5406_v42  ;;  %v4918_v9 = vunpack.c.2.s8 %v4454_v60  ;;  %v4926_v49 = vunpack.c.3.s8 %v4454_v60 }
 0x412   : > { %v7006_v56 = vpack.c.bf16 %v6302_v29, %v6294_v37  ;;  %7535 = vmatpush.bf16.msra.mxu1 %v6758_v41  ;;  %v6069_v62 = vcvt.s32.f32 %v5045_v8  ;;  %v6077_v17 = vcvt.s32.f32 %v5053_v20  ;;  %v5254_v16 = vunpack.c.0.s8 %v4542_v55 }
 0x413   : > { %v5262_v2 = vunpack.c.1.s8 %v4542_v55  ;;  %v7070_v36 = vpack.c.bf16 %v6430_v25, %v6422_v12  ;;  %v5942_v1 = vcvt.s32.f32 %v4918_v9  ;;  %v5950_v24 = vcvt.s32.f32 %v4926_v49 }
 0x414   : > { %v5382_v30 = vunpack.c.0.s8 %v4574_v54  ;;  %v6893_v35 = vpack.c.bf16 %v6077_v17, %v6069_v62  ;;  %7523 = vmatmul.bf16.vlgmr.msra.gmra.mxu0 %v9916_v33  ;;  %v6278_v13 = vcvt.s32.f32 %v5254_v16  ;;  %v5390_v63 = vunpack.c.1.s8 %v4574_v54 }
 0x415   : > { %7567 = vmatpush.bf16.msrb.mxu0 %v7006_v56  ;;  %v6286_v40 = vcvt.s32.f32 %v5262_v2  ;;  %v6830_v4 = vpack.c.bf16 %v5950_v24, %v5942_v1  ;;  %v5029_v32 = vunpack.c.0.s8 %v4485_v22  ;;  %v5037_v19 = vunpack.c.1.s8 %v4485_v22  ;;  %7536 = vmatmul.bf16.vlgmr.msra.gmra.mxu1 %v9984_v39  ;;  %v4629_v1 = vld [vmem:[%s9260_s18 + $0x790] sm:$0xff] }
 0x416   : > { %7580 = vmatpush.bf16.msrb.mxu1 %v7070_v36  ;;  %v6406_v50 = vcvt.s32.f32 %v5382_v30  ;;  %7456 = vmatpush.bf16.msra.mxu3 %v6893_v35  ;;  %v6414_v38 = vcvt.s32.f32 %v5390_v63  ;;  %v4902_v55 = vunpack.c.0.s8 %v4454_v60  ;;  %v4910_v46 = vunpack.c.1.s8 %v4454_v60 }
 0x417   : > { %v6998_v27 = vpack.c.bf16 %v6286_v40, %v6278_v13  ;;  %7547 = vmatpush.bf16.msra.mxu2 %v6830_v4  ;;  %v6053_v21 = vcvt.s32.f32 %v5029_v32  ;;  %v6061_v5 = vcvt.s32.f32 %v5037_v19  ;;  %v5653_v43 = vunpack.c.2.s8 %v4637_v3 }
 0x418   : > { %v5661_v54 = vunpack.c.3.s8 %v4637_v3  ;;  %v7062_v47 = vpack.c.bf16 %v6414_v38, %v6406_v50  ;;  %v5926_v51 = vcvt.s32.f32 %v4902_v55  ;;  %v5934_v34 = vcvt.s32.f32 %v4910_v46 }
 0x419   : > { %7568 = vmatpush.bf16.msrb.mxu0 %v6998_v27  ;;  %v5526_v11 = vunpack.c.2.s8 %v4606_v52  ;;  %v6885_v44 = vpack.c.bf16 %v6061_v5, %v6053_v21  ;;  %v6677_v22 = vcvt.s32.f32 %v5653_v43  ;;  %v5534_v28 = vunpack.c.3.s8 %v4606_v52  ;;  %v4558_v21 = vld [vmem:[%s9260_s18 + $0x558] sm:$0xff] }
 0x41a   : > { %v6685_v59 = vcvt.s32.f32 %v5661_v54  ;;  %7581 = vmatpush.bf16.msrb.mxu1 %v7062_v47  ;;  %v6822_v14 = vpack.c.bf16 %v5934_v34, %v5926_v51  ;;  %v5238_v60 = vunpack.c.2.s8 %v4534_v26  ;;  %v5246_v18 = vunpack.c.3.s8 %v4534_v26 }
 0x41b   : > { %v6550_v15 = vcvt.s32.f32 %v5526_v11  ;;  %7457 = vmatpush.bf16.msra.mxu3 %v6885_v44  ;;  %v6558_v29 = vcvt.s32.f32 %v5534_v28  ;;  %v5366_v42 = vunpack.c.2.s8 %v4566_v61  ;;  %v5374_v41 = vunpack.c.3.s8 %v4566_v61 }
 0x41c   : > { %v7197_v37 = vpack.c.bf16 %v6685_v59, %v6677_v22  ;;  %7548 = vmatpush.bf16.msra.mxu2 %v6822_v14  ;;  %v6262_v12 = vcvt.s32.f32 %v5238_v60  ;;  %v6270_v8 = vcvt.s32.f32 %v5246_v18  ;;  %v10548_v20 = vadd.f32 %v10530_v7, %v10528_v57 }
 0x41d   : > { %v5637_v56 = vunpack.c.0.s8 %v4637_v3  ;;  %v7134_v25 = vpack.c.bf16 %v6558_v29, %v6550_v15  ;;  %v6390_v9 = vcvt.s32.f32 %v5366_v42  ;;  %v6398_v49 = vcvt.s32.f32 %v5374_v41 }
 0x41e   : > { %v5645_v62 = vunpack.c.1.s8 %v4637_v3  ;;  %v6990_v17 = vpack.c.bf16 %v6270_v8, %v6262_v12  ;;  %7458 = vmatmul.bf16.vlgmr.msra.gmra.mxu3 %v10136_v45  ;;  %v5510_v2 = vunpack.c.0.s8 %v4606_v52  ;;  %v5518_v36 = vunpack.c.1.s8 %v4606_v52  ;;  %v4598_v3 = vld [vmem:[%s9260_s18 + $0x698] sm:$0xff] }
 0x41f   : > { %7502 = vmatpush.bf16.msrb.mxu3 %v7197_v37  ;;  %v6661_v16 = vcvt.s32.f32 %v5637_v56  ;;  %v7054_v24 = vpack.c.bf16 %v6398_v49, %v6390_v9  ;;  %v5222_v57 = vunpack.c.0.s8 %v4534_v26  ;;  %v5230_v7 = vunpack.c.1.s8 %v4534_v26  ;;  %7549 = vmatmul.bf16.vlgmr.msra.gmra.mxu2 %v10060_v0  ;;  %v4526_v52 = vld [vmem:[%s9260_s18 + $0x458] sm:$0xff] }
 0x420   : > { %7593 = vmatpush.bf16.msrb.mxu2 %v7134_v25  ;;  %v6669_v30 = vcvt.s32.f32 %v5645_v62  ;;  %7569 = vmatpush.bf16.msrb.mxu0 %v6990_v17  ;;  %v6534_v35 = vcvt.s32.f32 %v5510_v2  ;;  %v6542_v13 = vcvt.s32.f32 %v5518_v36  ;;  %v5350_v40 = vunpack.c.0.s8 %v4566_v61  ;;  %v4621_v62 = vld [vmem:[%s9260_s18 + $0x750] sm:$0xff] }
 0x421   : > { %v5358_v63 = vunpack.c.1.s8 %v4566_v61  ;;  %7582 = vmatpush.bf16.msrb.mxu1 %v7054_v24  ;;  %v6246_v50 = vcvt.s32.f32 %v5222_v57  ;;  %v6254_v32 = vcvt.s32.f32 %v5230_v7  ;;  %v5621_v19 = vunpack.c.2.s8 %v4629_v1  ;;  %v10558_v24 = vpop.f32.mrf.mxu2 }
 0x422   : > { %v7189_v4 = vpack.c.bf16 %v6669_v30, %v6661_v16  ;;  %v7126_v27 = vpack.c.bf16 %v6542_v13, %v6534_v35  ;;  %v6374_v38 = vcvt.s32.f32 %v5350_v40  ;;  %v5629_v46 = vunpack.c.3.s8 %v4629_v1  ;;  %v10560_v30 = vpop.f32.mrf.mxu0  ;;  %v4518_v40 = vld [vmem:[%s9260_s18 + $0x418] sm:$0xff] }
 0x423   : > { %v6382_v55 = vcvt.s32.f32 %v5358_v63  ;;  %v6982_v5 = vpack.c.bf16 %v6254_v32, %v6246_v50  ;;  %v6645_v43 = vcvt.s32.f32 %v5621_v19  ;;  %v5494_v54 = vunpack.c.2.s8 %v4598_v3  ;;  %v10567_v63 = vpop.f32.mrf.mxu1  ;;  %v4550_v19 = vld [vmem:[%s9260_s18 + $0x518] sm:$0xff] }
 0x424   : > { %7503 = vmatpush.bf16.msrb.mxu3 %v7189_v4  ;;  %v5502_v26 = vunpack.c.3.s8 %v4598_v3  ;;  %7594 = vmatpush.bf16.msrb.mxu2 %v7126_v27  ;;  %v6653_v51 = vcvt.s32.f32 %v5629_v46  ;;  %v5206_v34 = vunpack.c.2.s8 %v4526_v52  ;;  %v5214_v11 = vunpack.c.3.s8 %v4526_v52 }
 0x425   : > { %v7046_v47 = vpack.c.bf16 %v6382_v55, %v6374_v38  ;;  %7570 = vmatpush.bf16.msrb.mxu0 %v6982_v5  ;;  %v6518_v61 = vcvt.s32.f32 %v5494_v54  ;;  %v5334_v44 = vunpack.c.2.s8 %v4558_v21  ;;  %v5342_v22 = vunpack.c.3.s8 %v4558_v21 }
 0x426   : > { %v6526_v6 = vcvt.s32.f32 %v5502_v26  ;;  %v7181_v59 = vpack.c.bf16 %v6653_v51, %v6645_v43  ;;  %v6230_v28 = vcvt.s32.f32 %v5206_v34  ;;  %v6238_v14 = vcvt.s32.f32 %v5214_v11 }
 0x427   : > { %7583 = vmatpush.bf16.msrb.mxu1 %v7046_v47  ;;  %v5605_v15 = vunpack.c.0.s8 %v4629_v1  ;;  %v6358_v18 = vcvt.s32.f32 %v5334_v44  ;;  %v6366_v37 = vcvt.s32.f32 %v5342_v22  ;;  %v5613_v29 = vunpack.c.1.s8 %v4629_v1  ;;  %v4590_v1 = vld [vmem:[%s9260_s18 + $0x658] sm:$0xff] }
 0x428   : > { %v7118_v60 = vpack.c.bf16 %v6526_v6, %v6518_v61  ;;  %7504 = vmatpush.bf16.msrb.mxu3 %v7181_v59  ;;  %v6974_v42 = vpack.c.bf16 %v6238_v14, %v6230_v28  ;;  %v5478_v12 = vunpack.c.0.s8 %v4598_v3  ;;  %v5486_v8 = vunpack.c.1.s8 %v4598_v3 }
 0x429   : > { %v6629_v41 = vcvt.s32.f32 %v5605_v15  ;;  %v7038_v56 = vpack.c.bf16 %v6366_v37, %v6358_v18  ;;  %v6637_v25 = vcvt.s32.f32 %v5613_v29  ;;  %v5190_v9 = vunpack.c.0.s8 %v4526_v52 }
 0x42a   : > { %7595 = vmatpush.bf16.msrb.mxu2 %v7118_v60  ;;  %v5198_v49 = vunpack.c.1.s8 %v4526_v52  ;;  %7571 = vmatpush.bf16.msrb.mxu0 %v6974_v42  ;;  %v6502_v17 = vcvt.s32.f32 %v5478_v12  ;;  %v6510_v16 = vcvt.s32.f32 %v5486_v8  ;;  %v5318_v2 = vunpack.c.0.s8 %v4558_v21  ;;  %v7344_v60 = vpop.f32.mrf.mxu2  ;;  %v7370_v18 = vpop.f32.mrf.mxu0  ;;  %v4415_v12 = vld [vmem:[%s9260_s18 + $0xe0] sm:$0xff] }
 0x42b   : > { %v5326_v36 = vunpack.c.1.s8 %v4558_v21  ;;  %7584 = vmatpush.bf16.msrb.mxu1 %v7038_v56  ;;  %v7173_v57 = vpack.c.bf16 %v6637_v25, %v6629_v41  ;;  %v6214_v7 = vcvt.s32.f32 %v5190_v9  ;;  %v10564_v13 = vadd.f32 %v10538_v53, %v10519_v10  ;;  %v7383_v8 = vpop.f32.mrf.mxu1  ;;  %v4510_v60 = vld [vmem:[%s9260_s18 + $0x3d8] sm:$0xff] }
 0x42c   : > { %v6222_v35 = vcvt.s32.f32 %v5198_v49  ;;  %v7110_v3 = vpack.c.bf16 %v6510_v16, %v6502_v17  ;;  %v6342_v4 = vcvt.s32.f32 %v5318_v2  ;;  %v5589_v32 = vunpack.c.2.s8 %v4621_v62 }
 0x42d   : > { %v6350_v50 = vcvt.s32.f32 %v5326_v36  ;;  %7505 = vmatpush.bf16.msrb.mxu3 %v7173_v57  ;;  %v5597_v27 = vunpack.c.3.s8 %v4621_v62  ;;  %v5462_v38 = vunpack.c.2.s8 %v4590_v1  ;;  %v5470_v55 = vunpack.c.3.s8 %v4590_v1  ;;  %v4613_v57 = vld [vmem:[%s9260_s18 + $0x710] sm:$0xff] }
 0x42e   : > { %v6966_v52 = vpack.c.bf16 %v6222_v35, %v6214_v7  ;;  %7596 = vmatpush.bf16.msrb.mxu2 %v7110_v3  ;;  %v6613_v21 = vcvt.s32.f32 %v5589_v32  ;;  %v5174_v5 = vunpack.c.2.s8 %v4518_v40  ;;  %v5182_v43 = vunpack.c.3.s8 %v4518_v40 }
 0x42f   : > { %v7030_v46 = vpack.c.bf16 %v6350_v50, %v6342_v4  ;;  %v6621_v10 = vcvt.s32.f32 %v5597_v27  ;;  %v6486_v53 = vcvt.s32.f32 %v5462_v38  ;;  %v6494_v54 = vcvt.s32.f32 %v5470_v55 }
 0x430   : > { %7572 = vmatpush.bf16.msrb.mxu0 %v6966_v52  ;;  %v5302_v26 = vunpack.c.2.s8 %v4550_v19  ;;  %v6198_v47 = vcvt.s32.f32 %v5174_v5  ;;  %v6206_v51 = vcvt.s32.f32 %v5182_v43  ;;  %v5310_v34 = vunpack.c.3.s8 %v4550_v19 }
 0x431   : > { %7585 = vmatpush.bf16.msrb.mxu1 %v7030_v46  ;;  %v5573_v11 = vunpack.c.0.s8 %v4621_v62  ;;  %v7165_v61 = vpack.c.bf16 %v6621_v10, %v6613_v21  ;;  %v7102_v6 = vpack.c.bf16 %v6494_v54, %v6486_v53  ;;  %v5581_v22 = vunpack.c.1.s8 %v4621_v62  ;;  %v4447_v62 = vld [vmem:[%s9260_s18 + $0x1e0] sm:$0xff] }
 0x432   : > { %v6326_v44 = vcvt.s32.f32 %v5302_v26  ;;  %v6958_v59 = vpack.c.bf16 %v6206_v51, %v6198_v47  ;;  %v6334_v28 = vcvt.s32.f32 %v5310_v34  ;;  %v5446_v15 = vunpack.c.0.s8 %v4590_v1 }
 0x433   : > { %v6597_v14 = vcvt.s32.f32 %v5573_v11  ;;  %7506 = vmatpush.bf16.msrb.mxu3 %v7165_v61  ;;  %7597 = vmatpush.bf16.msrb.mxu2 %v7102_v6  ;;  %v6605_v37 = vcvt.s32.f32 %v5581_v22  ;;  %v5454_v29 = vunpack.c.1.s8 %v4590_v1  ;;  %v5158_v42 = vunpack.c.0.s8 %v4518_v40 }
 0x434   : > { %v5166_v41 = vunpack.c.1.s8 %v4518_v40  ;;  %7573 = vmatpush.bf16.msrb.mxu0 %v6958_v59  ;;  %v7022_v56 = vpack.c.bf16 %v6334_v28, %v6326_v44  ;;  %v6470_v25 = vcvt.s32.f32 %v5446_v15  ;;  %v5286_v9 = vunpack.c.0.s8 %v4550_v19  ;;  %v4582_v40 = vld [vmem:[%s9260_s18 + $0x618] sm:$0xff] }
 0x435   : > { %v5294_v49 = vunpack.c.1.s8 %v4550_v19  ;;  %v7157_v17 = vpack.c.bf16 %v6605_v37, %v6597_v14  ;;  %v6478_v16 = vcvt.s32.f32 %v5454_v29  ;;  %v6182_v2 = vcvt.s32.f32 %v5158_v42 }
 0x436   : > { %v6190_v36 = vcvt.s32.f32 %v5166_v41  ;;  %7586 = vmatpush.bf16.msrb.mxu1 %v7022_v56  ;;  %v6310_v7 = vcvt.s32.f32 %v5286_v9  ;;  %v4759_v1 = vunpack.c.2.s8 %v4415_v12  ;;  %v4767_v3 = vunpack.c.3.s8 %v4415_v12  ;;  %v4479_v41 = vld [vmem:[%s9260_s18 + $0x2e0] sm:$0xff] }
 0x437   : > { %v6318_v35 = vcvt.s32.f32 %v5294_v49  ;;  %7507 = vmatpush.bf16.msrb.mxu3 %v7157_v17  ;;  %v7094_v4 = vpack.c.bf16 %v6478_v16, %v6470_v25  ;;  %v4887_v32 = vunpack.c.2.s8 %v4447_v62  ;;  %v4895_v52 = vunpack.c.3.s8 %v4447_v62  ;;  %v4407_v49 = vld [vmem:[%s9260_s18 + $0xa0] sm:$0xff] }
 0x438   : > { %v6950_v50 = vpack.c.bf16 %v6190_v36, %v6182_v2  ;;  %v5783_v38 = vcvt.s32.f32 %v4759_v1  ;;  %v5791_v19 = vcvt.s32.f32 %v4767_v3  ;;  %v5557_v55 = vunpack.c.2.s8 %v4613_v57  ;;  %v4439_v36 = vld [vmem:[%s9260_s18 + $0x1a0] sm:$0xff] }
 0x439   : > { %v7014_v27 = vpack.c.bf16 %v6318_v35, %v6310_v7  ;;  %7598 = vmatpush.bf16.msrb.mxu2 %v7094_v4  ;;  %v5911_v46 = vcvt.s32.f32 %v4887_v32  ;;  %v5919_v21 = vcvt.s32.f32 %v4895_v52  ;;  %v5565_v5 = vunpack.c.3.s8 %v4613_v57 }
 0x43a   : > { %7574 = vmatpush.bf16.msrb.mxu0 %v6950_v50  ;;  %v5430_v43 = vunpack.c.2.s8 %v4582_v40  ;;  %v6751_v10 = vpack.c.bf16 %v5791_v19, %v5783_v38  ;;  %v6581_v53 = vcvt.s32.f32 %v5557_v55  ;;  %v5438_v54 = vunpack.c.3.s8 %v4582_v40 }
 0x43b   : > { %7587 = vmatpush.bf16.msrb.mxu1 %v7014_v27  ;;  %v4743_v26 = vunpack.c.0.s8 %v4415_v12  ;;  %v6815_v47 = vpack.c.bf16 %v5919_v21, %v5911_v46  ;;  %v6589_v51 = vcvt.s32.f32 %v5565_v5  ;;  %v4751_v11 = vunpack.c.1.s8 %v4415_v12  ;;  %v10578_v12 = vpop.f32.mrf.mxu2 }
 0x43c   : > { %v6454_v34 = vcvt.s32.f32 %v5430_v43  ;;  %v6462_v61 = vcvt.s32.f32 %v5438_v54  ;;  %v4871_v44 = vunpack.c.0.s8 %v4447_v62  ;;  %v4879_v22 = vunpack.c.1.s8 %v4447_v62 }
 0x43d   : > { %v5767_v6 = vcvt.s32.f32 %v4743_v26  ;;  %v7149_v59 = vpack.c.bf16 %v6589_v51, %v6581_v53  ;;  %7575 = vmatmul.bf16.vlgmr.msrb.gmra.mxu0 %v10224_v48  ;;  %v5775_v28 = vcvt.s32.f32 %v4751_v11  ;;  %v5541_v14 = vunpack.c.0.s8 %v4613_v57 }
 0x43e   : > { %7619 = vmatpush.bf16.msra.mxu0 %v6751_v10  ;;  %v5549_v15 = vunpack.c.1.s8 %v4613_v57  ;;  %7588 = vmatmul.bf16.vlgmr.msrb.gmra.mxu1 %v10322_v23  ;;  %v7086_v18 = vpack.c.bf16 %v6462_v61, %v6454_v34  ;;  %v5895_v37 = vcvt.s32.f32 %v4871_v44  ;;  %v5903_v29 = vcvt.s32.f32 %v4879_v22  ;;  %v4502_v22 = vld [vmem:[%s9260_s18 + $0x398] sm:$0xff] }
 0x43f   : > { %7632 = vmatpush.bf16.msra.mxu1 %v6815_v47  ;;  %v5414_v42 = vunpack.c.0.s8 %v4582_v40  ;;  %7508 = vmatpush.bf16.msrb.mxu3 %v7149_v59  ;;  %v6743_v8 = vpack.c.bf16 %v5775_v28, %v5767_v6  ;;  %v6565_v56 = vcvt.s32.f32 %v5541_v14  ;;  %v5422_v9 = vunpack.c.1.s8 %v4582_v40  ;;  %v4471_v14 = vld [vmem:[%s9260_s18 + $0x2a0] sm:$0xff] }
 0x440   : > { %v6573_v25 = vcvt.s32.f32 %v5549_v15  ;;  %7599 = vmatpush.bf16.msrb.mxu2 %v7086_v18  ;;  %v6807_v62 = vpack.c.bf16 %v5903_v29, %v5895_v37  ;;  %v5142_v16 = vunpack.c.2.s8 %v4510_v60  ;;  %v5150_v2 = vunpack.c.3.s8 %v4510_v60  ;;  %v4399_v29 = vld [vmem:[%s9260_s18 + $0x60] sm:$0xff] }
 0x441   : > { %v6438_v17 = vcvt.s32.f32 %v5414_v42  ;;  %v6446_v7 = vcvt.s32.f32 %v5422_v9  ;;  %v5015_v35 = vunpack.c.2.s8 %v4479_v41  ;;  %v5023_v1 = vunpack.c.3.s8 %v4479_v41 }
 0x442   : > { %7620 = vmatpush.bf16.msra.mxu0 %v6743_v8  ;;  %v7141_v57 = vpack.c.bf16 %v6573_v25, %v6565_v56  ;;  %v6166_v3 = vcvt.s32.f32 %v5142_v16  ;;  %v6174_v4 = vcvt.s32.f32 %v5150_v2  ;;  %v4727_v50 = vunpack.c.2.s8 %v4407_v49  ;;  %v4431_v25 = vld [vmem:[%s9260_s18 + $0x160] sm:$0xff] }
 0x443   : > { %7633 = vmatpush.bf16.msra.mxu1 %v6807_v62  ;;  %v4735_v32 = vunpack.c.3.s8 %v4407_v49  ;;  %v7078_v52 = vpack.c.bf16 %v6446_v7, %v6438_v17  ;;  %v6039_v40 = vcvt.s32.f32 %v5015_v35  ;;  %v6047_v27 = vcvt.s32.f32 %v5023_v1  ;;  %v7396_v34 = vpop.f32.mrf.mxu2 }
 0x444   : > { %7509 = vmatpush.bf16.msrb.mxu3 %v7141_v57  ;;  %v4855_v38 = vunpack.c.2.s8 %v4439_v36  ;;  %v6942_v19 = vpack.c.bf16 %v6174_v4, %v6166_v3  ;;  %v5751_v55 = vcvt.s32.f32 %v4727_v50  ;;  %v4863_v21 = vunpack.c.3.s8 %v4439_v36 }
 0x445   : > { %v5759_v46 = vcvt.s32.f32 %v4735_v32  ;;  %7600 = vmatpush.bf16.msrb.mxu2 %v7078_v52  ;;  %v6879_v5 = vpack.c.bf16 %v6047_v27, %v6039_v40  ;;  %v10584_v10 = vadd.f32 %v10558_v24, %v10548_v20  ;;  %v5126_v53 = vunpack.c.0.s8 %v4510_v60 }
 0x446   : > { %v5879_v43 = vcvt.s32.f32 %v4855_v38  ;;  %v5887_v26 = vcvt.s32.f32 %v4863_v21  ;;  %v5134_v47 = vunpack.c.1.s8 %v4510_v60  ;;  %v4999_v51 = vunpack.c.0.s8 %v4479_v41 }
 0x447   : > { %v6735_v54 = vpack.c.bf16 %v5759_v46, %v5751_v55  ;;  %7510 = vmatmul.bf16.vlgmr.msrb.gmra.mxu3 %v10466_v31  ;;  %v6150_v11 = vcvt.s32.f32 %v5126_v53  ;;  %v5007_v61 = vunpack.c.1.s8 %v4479_v41  ;;  %v4711_v6 = vunpack.c.0.s8 %v4407_v49 }
 0x448   : > { %7554 = vmatpush.bf16.msra.mxu3 %v6942_v19  ;;  %v4719_v44 = vunpack.c.1.s8 %v4407_v49  ;;  %v6799_v20 = vpack.c.bf16 %v5887_v26, %v5879_v43  ;;  %7601 = vmatmul.bf16.vlgmr.msrb.gmra.mxu2 %v10382_v58  ;;  %v6158_v24 = vcvt.s32.f32 %v5134_v47  ;;  %v6023_v59 = vcvt.s32.f32 %v4999_v51  ;;  %v4494_v47 = vld [vmem:[%s9260_s18 + $0x358] sm:$0xff] }
 0x449   : > { %7645 = vmatpush.bf16.msra.mxu2 %v6879_v5  ;;  %7621 = vmatpush.bf16.msra.mxu0 %v6735_v54  ;;  %v4839_v28 = vunpack.c.0.s8 %v4439_v36  ;;  %v6031_v15 = vcvt.s32.f32 %v5007_v61  ;;  %v5735_v60 = vcvt.s32.f32 %v4711_v6  ;;  %v4847_v37 = vunpack.c.1.s8 %v4439_v36  ;;  %v4463_v6 = vld [vmem:[%s9260_s18 + $0x260] sm:$0xff] }
 0x44a   : > { %v5743_v18 = vcvt.s32.f32 %v4719_v44  ;;  %7634 = vmatpush.bf16.msra.mxu1 %v6799_v20  ;;  %v6934_v42 = vpack.c.bf16 %v6158_v24, %v6150_v11  ;;  %v5110_v8 = vunpack.c.2.s8 %v4502_v22  ;;  %v5118_v56 = vunpack.c.3.s8 %v4502_v22  ;;  %v10594_v44 = vpop.f32.mrf.mxu0 }
 0x44b   : > { %v5863_v41 = vcvt.s32.f32 %v4839_v28  ;;  %v6871_v9 = vpack.c.bf16 %v6031_v15, %v6023_v59  ;;  %v5871_v62 = vcvt.s32.f32 %v4847_v37  ;;  %v4983_v17 = vunpack.c.2.s8 %v4471_v14 }
 0x44c   : > { %v6727_v49 = vpack.c.bf16 %v5743_v18, %v5735_v60  ;;  %7555 = vmatpush.bf16.msra.mxu3 %v6934_v42  ;;  %v6134_v16 = vcvt.s32.f32 %v5110_v8  ;;  %v6142_v2 = vcvt.s32.f32 %v5118_v56  ;;  %v4991_v57 = vunpack.c.3.s8 %v4471_v14  ;;  %v4423_v56 = vld [vmem:[%s9260_s18 + $0x120] sm:$0xff] }
 0x44d   : > { %v4695_v7 = vunpack.c.2.s8 %v4399_v29  ;;  %7646 = vmatpush.bf16.msra.mxu2 %v6871_v9  ;;  %v6791_v35 = vpack.c.bf16 %v5871_v62, %v5863_v41  ;;  %v6007_v36 = vcvt.s32.f32 %v4983_v17  ;;  %v4703_v1 = vunpack.c.3.s8 %v4399_v29 }
 0x44e   : > { %7622 = vmatpush.bf16.msra.mxu0 %v6727_v49  ;;  %v4823_v3 = vunpack.c.2.s8 %v4431_v25  ;;  %v6926_v4 = vpack.c.bf16 %v6142_v2, %v6134_v16  ;;  %v6015_v50 = vcvt.s32.f32 %v4991_v57  ;;  %v4831_v52 = vunpack.c.3.s8 %v4431_v25 }
 0x44f   : > { %v5719_v32 = vcvt.s32.f32 %v4695_v7  ;;  %7635 = vmatpush.bf16.msra.mxu1 %v6791_v35  ;;  %v5727_v40 = vcvt.s32.f32 %v4703_v1  ;;  %v5094_v38 = vunpack.c.0.s8 %v4502_v22  ;;  %v5102_v19 = vunpack.c.1.s8 %v4502_v22  ;;  %v10596_v22 = vpop.f32.mrf.mxu1 }
 0x450   : > { %v5847_v27 = vcvt.s32.f32 %v4823_v3  ;;  %7556 = vmatpush.bf16.msra.mxu3 %v6926_v4  ;;  %v6863_v55 = vpack.c.bf16 %v6015_v50, %v6007_v36  ;;  %v5855_v46 = vcvt.s32.f32 %v4831_v52  ;;  %v4967_v21 = vunpack.c.0.s8 %v4471_v14 }
 0x451   : > { %v4975_v5 = vunpack.c.1.s8 %v4471_v14  ;;  %v6719_v43 = vpack.c.bf16 %v5727_v40, %v5719_v32  ;;  %v6118_v53 = vcvt.s32.f32 %v5094_v38  ;;  %v6126_v54 = vcvt.s32.f32 %v5102_v19  ;;  %v4391_v14 = vld [vmem:[%s9260_s18 + $0x20] sm:$0xff] }
 0x452   : > { %v4679_v26 = vunpack.c.0.s8 %v4399_v29  ;;  %7647 = vmatpush.bf16.msra.mxu2 %v6863_v55  ;;  %v6783_v51 = vpack.c.bf16 %v5855_v46, %v5847_v27  ;;  %v5991_v34 = vcvt.s32.f32 %v4967_v21  ;;  %v4687_v61 = vunpack.c.1.s8 %v4399_v29  ;;  %v7422_v19 = vpop.f32.mrf.mxu0 }
 0x453   : > { %v5999_v11 = vcvt.s32.f32 %v4975_v5  ;;  %7623 = vmatpush.bf16.msra.mxu0 %v6719_v43  ;;  %v6918_v20 = vpack.c.bf16 %v6126_v54, %v6118_v53  ;;  %v4807_v59 = vunpack.c.0.s8 %v4431_v25  ;;  %v4815_v28 = vunpack.c.1.s8 %v4431_v25  ;;  %v4543_v53 = vld [vmem:[%s9260_s18 + $0x4e0] sm:$0xff] }
 0x454   : > { %v5703_v24 = vcvt.s32.f32 %v4679_v26  ;;  %7636 = vmatpush.bf16.msra.mxu1 %v6783_v51  ;;  %v5711_v60 = vcvt.s32.f32 %v4687_v61  ;;  %v5078_v18 = vunpack.c.2.s8 %v4494_v47  ;;  %v5086_v37 = vunpack.c.3.s8 %v4494_v47 }
 0x455   : > { %v6855_v15 = vpack.c.bf16 %v5999_v11, %v5991_v34  ;;  %7557 = vmatpush.bf16.msra.mxu3 %v6918_v20  ;;  %v5831_v42 = vcvt.s32.f32 %v4807_v59  ;;  %v5839_v29 = vcvt.s32.f32 %v4815_v28  ;;  %v4951_v41 = vunpack.c.2.s8 %v4463_v6 }
 0x456   : > { %v4959_v8 = vunpack.c.3.s8 %v4463_v6  ;;  %v6711_v9 = vpack.c.bf16 %v5711_v60, %v5703_v24  ;;  %v6102_v49 = vcvt.s32.f32 %v5078_v18  ;;  %v6110_v62 = vcvt.s32.f32 %v5086_v37  ;;  %v4486_v24 = vld [vmem:[%s9260_s18 + $0x318] sm:$0xff] }
 0x457   : > { %7648 = vmatpush.bf16.msra.mxu2 %v6855_v15  ;;  %v4663_v17 = vunpack.c.2.s8 %v4391_v14  ;;  %v6775_v16 = vpack.c.bf16 %v5839_v29, %v5831_v42  ;;  %v5975_v2 = vcvt.s32.f32 %v4951_v41  ;;  %v4671_v57 = vunpack.c.3.s8 %v4391_v14  ;;  %v7435_v55 = vpop.f32.mrf.mxu1  ;;  %v4455_v41 = vld [vmem:[%s9260_s18 + $0x220] sm:$0xff] }
 0x458   : > { %v5983_v25 = vcvt.s32.f32 %v4959_v8  ;;  %7624 = vmatpush.bf16.msra.mxu0 %v6711_v9  ;;  %v6910_v7 = vpack.c.bf16 %v6110_v62, %v6102_v49  ;;  %v4791_v36 = vunpack.c.2.s8 %v4423_v56  ;;  %v4799_v1 = vunpack.c.3.s8 %v4423_v56 }
 0x459   : > { %v5687_v35 = vcvt.s32.f32 %v4663_v17  ;;  %7637 = vmatpush.bf16.msra.mxu1 %v6775_v16  ;;  %v5695_v4 = vcvt.s32.f32 %v4671_v57  ;;  %v5062_v50 = vunpack.c.0.s8 %v4494_v47  ;;  %v5070_v32 = vunpack.c.1.s8 %v4494_v47  ;;  %v4575_v47 = vld [vmem:[%s9260_s18 + $0x5e0] sm:$0xff] }
 0x45a   : > { %v6847_v3 = vpack.c.bf16 %v5983_v25, %v5975_v2  ;;  %7558 = vmatpush.bf16.msra.mxu3 %v6910_v7  ;;  %v5815_v52 = vcvt.s32.f32 %v4791_v36  ;;  %v5823_v40 = vcvt.s32.f32 %v4799_v1  ;;  %v4935_v27 = vunpack.c.0.s8 %v4463_v6  ;;  %v10604_v2 = vpop.f32.mrf.mxu3 }
 0x45b   : > { %v4943_v38 = vunpack.c.1.s8 %v4463_v6  ;;  %v6703_v46 = vpack.c.bf16 %v5695_v4, %v5687_v35  ;;  %v6086_v21 = vcvt.s32.f32 %v5062_v50  ;;  %v6094_v5 = vcvt.s32.f32 %v5070_v32 }
 0x45c   : > { %7649 = vmatpush.bf16.msra.mxu2 %v6847_v3  ;;  %v4647_v43 = vunpack.c.0.s8 %v4391_v14  ;;  %v6767_v54 = vpack.c.bf16 %v5823_v40, %v5815_v52  ;;  %v5959_v26 = vcvt.s32.f32 %v4935_v27  ;;  %v4655_v34 = vunpack.c.1.s8 %v4391_v14 }
 0x45d   : > { %v5967_v51 = vcvt.s32.f32 %v4943_v38  ;;  %7625 = vmatpush.bf16.msra.mxu0 %v6703_v46  ;;  %v6902_v11 = vpack.c.bf16 %v6094_v5, %v6086_v21  ;;  %v4775_v20 = vunpack.c.0.s8 %v4423_v56  ;;  %v4783_v6 = vunpack.c.1.s8 %v4423_v56  ;;  %v4638_v46 = vld [vmem:[%s9260_s18 + $0x7d8] sm:$0xff]  ;;  %v10608_v21 = vpop.f32.mrf.mxu2 }
 0x45e   : > { %v5671_v61 = vcvt.s32.f32 %v4647_v43  ;;  %7638 = vmatpush.bf16.msra.mxu1 %v6767_v54  ;;  %v5679_v28 = vcvt.s32.f32 %v4655_v34  ;;  %v5271_v15 = vunpack.c.2.s8 %v4543_v53  ;;  %v5279_v60 = vunpack.c.3.s8 %v4543_v53 }
 0x45f   : > { %v6839_v59 = vpack.c.bf16 %v5967_v51, %v5959_v26  ;;  %7559 = vmatpush.bf16.msra.mxu3 %v6902_v11  ;;  %v5799_v18 = vcvt.s32.f32 %v4775_v20  ;;  %v5807_v37 = vcvt.s32.f32 %v4783_v6  ;;  %v5399_v42 = vunpack.c.2.s8 %v4575_v47  ;;  %v4607_v26 = vld [vmem:[%s9260_s18 + $0x6e0] sm:$0xff] }
 0x460   : > { %v5407_v29 = vunpack.c.3.s8 %v4575_v47  ;;  %v6695_v14 = vpack.c.bf16 %v5679_v28, %v5671_v61  ;;  %v6295_v8 = vcvt.s32.f32 %v5271_v15  ;;  %v6303_v9 = vcvt.s32.f32 %v5279_v60  ;;  %v4535_v61 = vld [vmem:[%s9260_s18 + $0x4a0] sm:$0xff] }
 0x461   : > { %7650 = vmatpush.bf16.msra.mxu2 %v6839_v59  ;;  %v5046_v49 = vunpack.c.2.s8 %v4486_v24  ;;  %v6759_v62 = vpack.c.bf16 %v5807_v37, %v5799_v18  ;;  %v6423_v17 = vcvt.s32.f32 %v5399_v42  ;;  %v5054_v16 = vunpack.c.3.s8 %v4486_v24  ;;  %v4567_v42 = vld [vmem:[%s9260_s18 + $0x5a0] sm:$0xff] }
 0x462   : > { %v6431_v56 = vcvt.s32.f32 %v5407_v29  ;;  %7626 = vmatpush.bf16.msra.mxu0 %v6695_v14  ;;  %v7007_v25 = vpack.c.bf16 %v6303_v9, %v6295_v8  ;;  %v4919_v7 = vunpack.c.2.s8 %v4455_v41  ;;  %v4927_v35 = vunpack.c.3.s8 %v4455_v41 }
 0x463   : > { %v6070_v57 = vcvt.s32.f32 %v5046_v49  ;;  %7639 = vmatpush.bf16.msra.mxu1 %v6759_v62  ;;  %v6078_v1 = vcvt.s32.f32 %v5054_v16  ;;  %v5255_v3 = vunpack.c.0.s8 %v4543_v53  ;;  %v5263_v4 = vunpack.c.1.s8 %v4543_v53 }
 0x464   : > { %v7071_v36 = vpack.c.bf16 %v6431_v56, %v6423_v17  ;;  %v5943_v50 = vcvt.s32.f32 %v4919_v7  ;;  %v5951_v32 = vcvt.s32.f32 %v4927_v35  ;;  %v5383_v52 = vunpack.c.0.s8 %v4575_v47 }
 0x465   : > { %v5391_v40 = vunpack.c.1.s8 %v4575_v47  ;;  %v6894_v27 = vpack.c.bf16 %v6078_v1, %v6070_v57  ;;  %7627 = vmatmul.bf16.vlgmr.msra.gmra.mxu0 %v9916_v33  ;;  %v6279_v38 = vcvt.s32.f32 %v5255_v3  ;;  %v6287_v19 = vcvt.s32.f32 %v5263_v4  ;;  %v7448_v3 = vpop.f32.mrf.mxu2 }
 0x466   : > { %7671 = vmatpush.bf16.msrb.mxu0 %v7007_v25  ;;  %v5030_v55 = vunpack.c.0.s8 %v4486_v24  ;;  %7640 = vmatmul.bf16.vlgmr.msra.gmra.mxu1 %v9984_v39  ;;  %v6831_v5 = vpack.c.bf16 %v5951_v32, %v5943_v50  ;;  %v6407_v43 = vcvt.s32.f32 %v5383_v52  ;;  %v5038_v54 = vunpack.c.1.s8 %v4486_v24  ;;  %v7305_v24 = vpop.f32.mrf.mxu3 }
 0x467   : > { %7684 = vmatpush.bf16.msrb.mxu1 %v7071_v36  ;;  %v6415_v53 = vcvt.s32.f32 %v5391_v40  ;;  %7560 = vmatpush.bf16.msra.mxu3 %v6894_v27  ;;  %v6999_v51 = vpack.c.bf16 %v6287_v19, %v6279_v38  ;;  %v4903_v47 = vunpack.c.0.s8 %v4455_v41  ;;  %v4911_v11 = vunpack.c.1.s8 %v4455_v41 }
 0x468   : > { %v6054_v34 = vcvt.s32.f32 %v5030_v55  ;;  %7651 = vmatpush.bf16.msra.mxu2 %v6831_v5  ;;  %v6062_v6 = vcvt.s32.f32 %v5038_v54  ;;  %v5654_v59 = vunpack.c.2.s8 %v4638_v46  ;;  %v5662_v28 = vunpack.c.3.s8 %v4638_v46  ;;  %v4630_v55 = vld [vmem:[%s9260_s18 + $0x798] sm:$0xff] }
 0x469   : > { %v7063_v20 = vpack.c.bf16 %v6415_v53, %v6407_v43  ;;  %v5927_v15 = vcvt.s32.f32 %v4903_v47  ;;  %v5935_v60 = vcvt.s32.f32 %v4911_v11  ;;  %v5527_v18 = vunpack.c.2.s8 %v4607_v26  ;;  %v4599_v53 = vld [vmem:[%s9260_s18 + $0x6a0] sm:$0xff] }
 0x46a   : > { %7672 = vmatpush.bf16.msrb.mxu0 %v6999_v51  ;;  %v5535_v37 = vunpack.c.3.s8 %v4607_v26  ;;  %v6886_v29 = vpack.c.bf16 %v6062_v6, %v6054_v34  ;;  %v6678_v14 = vcvt.s32.f32 %v5654_v59  ;;  %v6686_v8 = vcvt.s32.f32 %v5662_v28  ;;  %v4527_v6 = vld [vmem:[%s9260_s18 + $0x460] sm:$0xff] }
 0x46b   : > { %7685 = vmatpush.bf16.msrb.mxu1 %v7063_v20  ;;  %v5239_v9 = vunpack.c.2.s8 %v4535_v61  ;;  %v6823_v49 = vpack.c.bf16 %v5935_v60, %v5927_v15  ;;  %v6551_v41 = vcvt.s32.f32 %v5527_v18  ;;  %v5247_v17 = vunpack.c.3.s8 %v4535_v61  ;;  %v4559_v18 = vld [vmem:[%s9260_s18 + $0x560] sm:$0xff] }
 0x46c   : > { %v6559_v62 = vcvt.s32.f32 %v5535_v37  ;;  %7561 = vmatpush.bf16.msra.mxu3 %v6886_v29  ;;  %v7198_v56 = vpack.c.bf16 %v6686_v8, %v6678_v14  ;;  %v5367_v25 = vunpack.c.2.s8 %v4567_v42  ;;  %v5375_v57 = vunpack.c.3.s8 %v4567_v42 }
 0x46d   : > { %v6263_v16 = vcvt.s32.f32 %v5239_v9  ;;  %7652 = vmatpush.bf16.msra.mxu2 %v6823_v49  ;;  %v6271_v35 = vcvt.s32.f32 %v5247_v17  ;;  %v10616_v36 = vadd.f32 %v10596_v22, %v10594_v44  ;;  %v5638_v1 = vunpack.c.0.s8 %v4638_v46 }
 0x46e   : > { %v7135_v7 = vpack.c.bf16 %v6559_v62, %v6551_v41  ;;  %v6391_v4 = vcvt.s32.f32 %v5367_v25  ;;  %v6399_v50 = vcvt.s32.f32 %v5375_v57  ;;  %v5646_v32 = vunpack.c.1.s8 %v4638_v46 }
 0x46f   : > { %v5511_v52 = vunpack.c.0.s8 %v4607_v26  ;;  %v6991_v40 = vpack.c.bf16 %v6271_v35, %v6263_v16  ;;  %7562 = vmatmul.bf16.vlgmr.msra.gmra.mxu3 %v10136_v45  ;;  %v6662_v27 = vcvt.s32.f32 %v5638_v1  ;;  %v5519_v38 = vunpack.c.1.s8 %v4607_v26 }
 0x470   : > { %7606 = vmatpush.bf16.msrb.mxu3 %v7198_v56  ;;  %v5223_v19 = vunpack.c.0.s8 %v4535_v61  ;;  %v7055_v5 = vpack.c.bf16 %v6399_v50, %v6391_v4  ;;  %7653 = vmatmul.bf16.vlgmr.msra.gmra.mxu2 %v10060_v0  ;;  %v6670_v44 = vcvt.s32.f32 %v5646_v32  ;;  %v5231_v43 = vunpack.c.1.s8 %v4535_v61 }
 0x471   : > { %7697 = vmatpush.bf16.msrb.mxu2 %v7135_v7  ;;  %v6535_v22 = vcvt.s32.f32 %v5511_v52  ;;  %7673 = vmatpush.bf16.msrb.mxu0 %v6991_v40  ;;  %v6543_v46 = vcvt.s32.f32 %v5519_v38  ;;  %v5351_v51 = vunpack.c.0.s8 %v4567_v42  ;;  %v5359_v34 = vunpack.c.1.s8 %v4567_v42 }
 0x472   : > { %v6247_v54 = vcvt.s32.f32 %v5223_v19  ;;  %7686 = vmatpush.bf16.msrb.mxu1 %v7055_v5  ;;  %v7190_v47 = vpack.c.bf16 %v6670_v44, %v6662_v27  ;;  %v6255_v11 = vcvt.s32.f32 %v5231_v43  ;;  %v5622_v26 = vunpack.c.2.s8 %v4630_v55  ;;  %v4622_v43 = vld [vmem:[%s9260_s18 + $0x758] sm:$0xff] }
 0x473   : > { %v5630_v20 = vunpack.c.3.s8 %v4630_v55  ;;  %v7127_v59 = vpack.c.bf16 %v6543_v46, %v6535_v22  ;;  %v6375_v28 = vcvt.s32.f32 %v5351_v51  ;;  %v6383_v15 = vcvt.s32.f32 %v5359_v34  ;;  %v4591_v51 = vld [vmem:[%s9260_s18 + $0x660] sm:$0xff]  ;;  %v10630_v34 = vpop.f32.mrf.mxu3 }
 0x474   : > { %v5495_v60 = vunpack.c.2.s8 %v4599_v53  ;;  %7607 = vmatpush.bf16.msrb.mxu3 %v7190_v47  ;;  %v6983_v61 = vpack.c.bf16 %v6255_v11, %v6247_v54  ;;  %v6646_v37 = vcvt.s32.f32 %v5622_v26  ;;  %v5503_v29 = vunpack.c.3.s8 %v4599_v53  ;;  %v10632_v47 = vpop.f32.mrf.mxu0 }
 0x475   : > { %v6654_v24 = vcvt.s32.f32 %v5630_v20  ;;  %7698 = vmatpush.bf16.msrb.mxu2 %v7127_v59  ;;  %v7047_v14 = vpack.c.bf16 %v6383_v15, %v6375_v28  ;;  %v5207_v42 = vunpack.c.2.s8 %v4527_v6  ;;  %v5215_v9 = vunpack.c.3.s8 %v4527_v6  ;;  %v10635_v59 = vpop.f32.mrf.mxu1 }
 0x476   : > { %v6519_v8 = vcvt.s32.f32 %v5495_v60  ;;  %7674 = vmatpush.bf16.msrb.mxu0 %v6983_v61  ;;  %v6527_v41 = vcvt.s32.f32 %v5503_v29  ;;  %v5335_v62 = vunpack.c.2.s8 %v4559_v18  ;;  %v5343_v17 = vunpack.c.3.s8 %v4559_v18 }
 0x477   : > { %v7182_v49 = vpack.c.bf16 %v6654_v24, %v6646_v37  ;;  %7687 = vmatpush.bf16.msrb.mxu1 %v7047_v14  ;;  %v6231_v56 = vcvt.s32.f32 %v5207_v42  ;;  %v6239_v16 = vcvt.s32.f32 %v5215_v9  ;;  %v5606_v25 = vunpack.c.0.s8 %v4630_v55 }
 0x478   : > { %v5614_v57 = vunpack.c.1.s8 %v4630_v55  ;;  %v7119_v7 = vpack.c.bf16 %v6527_v41, %v6519_v8  ;;  %v6359_v35 = vcvt.s32.f32 %v5335_v62  ;;  %v6367_v1 = vcvt.s32.f32 %v5343_v17 }
 0x479   : > { %7608 = vmatpush.bf16.msrb.mxu3 %v7182_v49  ;;  %v5479_v3 = vunpack.c.0.s8 %v4599_v53  ;;  %v6975_v4 = vpack.c.bf16 %v6239_v16, %v6231_v56  ;;  %v6630_v50 = vcvt.s32.f32 %v5606_v25  ;;  %v5487_v52 = vunpack.c.1.s8 %v4599_v53 }
 0x47a   : > { %v6638_v32 = vcvt.s32.f32 %v5614_v57  ;;  %7699 = vmatpush.bf16.msrb.mxu2 %v7119_v7  ;;  %v7039_v40 = vpack.c.bf16 %v6367_v1, %v6359_v35  ;;  %v5191_v38 = vunpack.c.0.s8 %v4527_v6  ;;  %v5199_v19 = vunpack.c.1.s8 %v4527_v6  ;;  %v4519_v6 = vld [vmem:[%s9260_s18 + $0x420] sm:$0xff] }
 0x47b   : > { %v6503_v27 = vcvt.s32.f32 %v5479_v3  ;;  %7675 = vmatpush.bf16.msrb.mxu0 %v6975_v4  ;;  %v6511_v55 = vcvt.s32.f32 %v5487_v52  ;;  %v5319_v44 = vunpack.c.0.s8 %v4559_v18  ;;  %v5327_v22 = vunpack.c.1.s8 %v4559_v18  ;;  %v4551_v18 = vld [vmem:[%s9260_s18 + $0x520] sm:$0xff]  ;;  %v7357_v35 = vpop.f32.mrf.mxu3  ;;  %v4416_v52 = vld [vmem:[%s9260_s18 + $0xe8] sm:$0xff] }
 0x47c   : > { %v7174_v5 = vpack.c.bf16 %v6638_v32, %v6630_v50  ;;  %7688 = vmatpush.bf16.msrb.mxu1 %v7039_v40  ;;  %v6215_v46 = vcvt.s32.f32 %v5191_v38  ;;  %v6223_v54 = vcvt.s32.f32 %v5199_v19  ;;  %v10627_v53 = vadd.f32 %v10604_v2, %v10564_v13  ;;  %v7474_v1 = vpop.f32.mrf.mxu0  ;;  %v10646_v35 = vpop.f32.mrf.mxu2 }
 0x47d   : > { %v7111_v11 = vpack.c.bf16 %v6511_v55, %v6503_v27  ;;  %v6343_v26 = vcvt.s32.f32 %v5319_v44  ;;  %v6351_v20 = vcvt.s32.f32 %v5327_v22  ;;  %v5590_v15 = vunpack.c.2.s8 %v4622_v43  ;;  %v7487_v40 = vpop.f32.mrf.mxu1  ;;  %v4448_v55 = vld [vmem:[%s9260_s18 + $0x1e8] sm:$0xff] }
 0x47e   : > { %7609 = vmatpush.bf16.msrb.mxu3 %v7174_v5  ;;  %v6967_v28 = vpack.c.bf16 %v6223_v54, %v6215_v46  ;;  %v5598_v60 = vunpack.c.3.s8 %v4622_v43  ;;  %v5463_v13 = vunpack.c.2.s8 %v4591_v51  ;;  %v5471_v2 = vunpack.c.3.s8 %v4591_v51 }
 0x47f   : > { %7700 = vmatpush.bf16.msrb.mxu2 %v7111_v11  ;;  %v7031_v61 = vpack.c.bf16 %v6351_v20, %v6343_v26  ;;  %v10640_v37 = vadd.f32 %v10608_v21, %v10616_v36  ;;  %v6614_v24 = vcvt.s32.f32 %v5590_v15  ;;  %v5175_v14 = vunpack.c.2.s8 %v4519_v6  ;;  %v4614_v20 = vld [vmem:[%s9260_s18 + $0x718] sm:$0xff] }
 0x480   : > { %7676 = vmatpush.bf16.msrb.mxu0 %v6967_v28  ;;  %v6622_v29 = vcvt.s32.f32 %v5598_v60  ;;  %v6487_v8 = vcvt.s32.f32 %v5463_v13  ;;  %v6495_v42 = vcvt.s32.f32 %v5471_v2  ;;  %v5183_v9 = vunpack.c.3.s8 %v4519_v6  ;;  %v4583_v13 = vld [vmem:[%s9260_s18 + $0x620] sm:$0xff] }
 0x481   : > { %7689 = vmatpush.bf16.msrb.mxu1 %v7031_v61  ;;  %v5303_v49 = vunpack.c.2.s8 %v4551_v18  ;;  %v6199_v62 = vcvt.s32.f32 %v5175_v14  ;;  %v5311_v17 = vunpack.c.3.s8 %v4551_v18  ;;  %v5574_v57 = vunpack.c.0.s8 %v4622_v43 }
 0x482   : > { %v7166_v41 = vpack.c.bf16 %v6622_v29, %v6614_v24  ;;  %v7103_v56 = vpack.c.bf16 %v6495_v42, %v6487_v8  ;;  %v6207_v16 = vcvt.s32.f32 %v5183_v9  ;;  %v5582_v36 = vunpack.c.1.s8 %v4622_v43 }
 0x483   : > { %v6327_v25 = vcvt.s32.f32 %v5303_v49  ;;  %v6335_v21 = vcvt.s32.f32 %v5311_v17  ;;  %v5447_v7 = vunpack.c.0.s8 %v4591_v51  ;;  %v6598_v4 = vcvt.s32.f32 %v5574_v57 }
 0x484   : > { %7610 = vmatpush.bf16.msrb.mxu3 %v7166_v41  ;;  %7701 = vmatpush.bf16.msrb.mxu2 %v7103_v56  ;;  %v6959_v3 = vpack.c.bf16 %v6207_v16, %v6199_v62  ;;  %v5455_v50 = vunpack.c.1.s8 %v4591_v51  ;;  %v5159_v32 = vunpack.c.0.s8 %v4519_v6  ;;  %v6606_v38 = vcvt.s32.f32 %v5582_v36 }
 0x485   : > { %v7023_v27 = vpack.c.bf16 %v6335_v21, %v6327_v25  ;;  %v6471_v19 = vcvt.s32.f32 %v5447_v7  ;;  %v5167_v5 = vunpack.c.1.s8 %v4519_v6  ;;  %v5287_v43 = vunpack.c.0.s8 %v4551_v18 }
 0x486   : > { %7677 = vmatpush.bf16.msrb.mxu0 %v6959_v3  ;;  %v6479_v44 = vcvt.s32.f32 %v5455_v50  ;;  %v6183_v22 = vcvt.s32.f32 %v5159_v32  ;;  %v5295_v46 = vunpack.c.1.s8 %v4551_v18  ;;  %v7158_v54 = vpack.c.bf16 %v6606_v38, %v6598_v4  ;;  %v4511_v32 = vld [vmem:[%s9260_s18 + $0x3e0] sm:$0xff] }
 0x487   : > { %7690 = vmatpush.bf16.msrb.mxu1 %v7023_v27  ;;  %v6191_v11 = vcvt.s32.f32 %v5167_v5  ;;  %v4760_v26 = vunpack.c.2.s8 %v4416_v52  ;;  %v4768_v51 = vunpack.c.3.s8 %v4416_v52  ;;  %v6311_v15 = vcvt.s32.f32 %v5287_v43 }
 0x488   : > { %v7095_v28 = vpack.c.bf16 %v6479_v44, %v6471_v19  ;;  %v6319_v60 = vcvt.s32.f32 %v5295_v46  ;;  %v4888_v61 = vunpack.c.2.s8 %v4448_v55  ;;  %7611 = vmatpush.bf16.msrb.mxu3 %v7158_v54  ;;  %v4896_v29 = vunpack.c.3.s8 %v4448_v55  ;;  %v10651_v19 = vld [vmem:[%s9260_s18 + $0x2e8] sm:$0xff]  ;;  %v10654_v46 = vpop.f32.mrf.mxu3 }
 0x489   : > { %v6951_v6 = vpack.c.bf16 %v6191_v11, %v6183_v22  ;;  %v5784_v2 = vcvt.s32.f32 %v4760_v26  ;;  %v5792_v24 = vcvt.s32.f32 %v4768_v51  ;;  %v5558_v18 = vunpack.c.2.s8 %v4614_v20  ;;  %v4408_v51 = vld [vmem:[%s9260_s18 + $0xa8] sm:$0xff] }
 0x48a   : > { %7702 = vmatpush.bf16.msrb.mxu2 %v7095_v28  ;;  %v7015_v14 = vpack.c.bf16 %v6319_v60, %v6311_v15  ;;  %v5912_v8 = vcvt.s32.f32 %v4888_v61  ;;  %v5566_v42 = vunpack.c.3.s8 %v4614_v20  ;;  %v5920_v49 = vcvt.s32.f32 %v4896_v29  ;;  %v4440_v61 = vld [vmem:[%s9260_s18 + $0x1a8] sm:$0xff] }
 0x48b   : > { %7678 = vmatpush.bf16.msrb.mxu0 %v6951_v6  ;;  %v6752_v9 = vpack.c.bf16 %v5792_v24, %v5784_v2  ;;  %v5431_v41 = vunpack.c.2.s8 %v4583_v13  ;;  %v5439_v62 = vunpack.c.3.s8 %v4583_v13  ;;  %v6582_v17 = vcvt.s32.f32 %v5558_v18 }
 0x48c   : > { %7691 = vmatpush.bf16.msrb.mxu1 %v7015_v14  ;;  %v6590_v56 = vcvt.s32.f32 %v5566_v42  ;;  %v4744_v16 = vunpack.c.0.s8 %v4416_v52  ;;  %v4752_v25 = vunpack.c.1.s8 %v4416_v52  ;;  %v6816_v57 = vpack.c.bf16 %v5920_v49, %v5912_v8 }
 0x48d   : > { %v6455_v21 = vcvt.s32.f32 %v5431_v41  ;;  %v6463_v36 = vcvt.s32.f32 %v5439_v62  ;;  %v4872_v7 = vunpack.c.0.s8 %v4448_v55  ;;  %v4880_v50 = vunpack.c.1.s8 %v4448_v55  ;;  %v7500_v62 = vpop.f32.mrf.mxu2 }
 0x48e   : > { %v7150_v1 = vpack.c.bf16 %v6590_v56, %v6582_v17  ;;  %7679 = vmatmul.bf16.vlgmr.msrb.gmra.mxu0 %v10224_v48  ;;  %v5768_v3 = vcvt.s32.f32 %v4744_v16  ;;  %v5776_v4 = vcvt.s32.f32 %v4752_v25  ;;  %v5542_v52 = vunpack.c.0.s8 %v4614_v20 }
 0x48f   : > { %7723 = vmatpush.bf16.msra.mxu0 %v6752_v9  ;;  %v7087_v40 = vpack.c.bf16 %v6463_v36, %v6455_v21  ;;  %v5896_v27 = vcvt.s32.f32 %v4872_v7  ;;  %v5550_v38 = vunpack.c.1.s8 %v4614_v20  ;;  %7692 = vmatmul.bf16.vlgmr.msrb.gmra.mxu1 %v10322_v23  ;;  %v5904_v44 = vcvt.s32.f32 %v4880_v50 }
 0x490   : > { %7736 = vmatpush.bf16.msra.mxu1 %v6816_v57  ;;  %7612 = vmatpush.bf16.msrb.mxu3 %v7150_v1  ;;  %v6744_v5 = vpack.c.bf16 %v5776_v4, %v5768_v3  ;;  %v5415_v22 = vunpack.c.0.s8 %v4583_v13  ;;  %v5423_v43 = vunpack.c.1.s8 %v4583_v13  ;;  %v6566_v55 = vcvt.s32.f32 %v5542_v52 }
 0x491   : > { %7703 = vmatpush.bf16.msrb.mxu2 %v7087_v40  ;;  %v6574_v54 = vcvt.s32.f32 %v5550_v38  ;;  %v5143_v11 = vunpack.c.2.s8 %v4511_v32  ;;  %v5151_v26 = vunpack.c.3.s8 %v4511_v32  ;;  %v6808_v20 = vpack.c.bf16 %v5904_v44, %v5896_v27  ;;  %v4503_v40 = vld [vmem:[%s9260_s18 + $0x3a0] sm:$0xff]  ;;  %v7409_v27 = vpop.f32.mrf.mxu3 }
 0x492   : > { %v6439_v28 = vcvt.s32.f32 %v5415_v22  ;;  %v6447_v15 = vcvt.s32.f32 %v5423_v43  ;;  %v5016_v60 = vunpack.c.2.s8 %v10651_v19  ;;  %v5024_v13 = vunpack.c.3.s8 %v10651_v19  ;;  %v4472_v22 = vld [vmem:[%s9260_s18 + $0x2a8] sm:$0xff] }
 0x493   : > { %7724 = vmatpush.bf16.msra.mxu0 %v6744_v5  ;;  %v7142_v6 = vpack.c.bf16 %v6574_v54, %v6566_v55  ;;  %v6167_v2 = vcvt.s32.f32 %v5143_v11  ;;  %v6175_v24 = vcvt.s32.f32 %v5151_v26  ;;  %v4728_v8 = vunpack.c.2.s8 %v4408_v51  ;;  %v4400_v26 = vld [vmem:[%s9260_s18 + $0x68] sm:$0xff] }
 0x494   : > { %7737 = vmatpush.bf16.msra.mxu1 %v6808_v20  ;;  %v7079_v29 = vpack.c.bf16 %v6447_v15, %v6439_v28  ;;  %v6040_v14 = vcvt.s32.f32 %v5016_v60  ;;  %v4736_v18 = vunpack.c.3.s8 %v4408_v51  ;;  %v6048_v9 = vcvt.s32.f32 %v5024_v13  ;;  %v4432_v60 = vld [vmem:[%s9260_s18 + $0x168] sm:$0xff] }
 0x495   : > { %7613 = vmatpush.bf16.msrb.mxu3 %v7142_v6  ;;  %v6943_v42 = vpack.c.bf16 %v6175_v24, %v6167_v2  ;;  %v4856_v49 = vunpack.c.2.s8 %v4440_v61  ;;  %v4864_v41 = vunpack.c.3.s8 %v4440_v61  ;;  %v5752_v17 = vcvt.s32.f32 %v4728_v8 }
 0x496   : > { %7704 = vmatpush.bf16.msrb.mxu2 %v7079_v29  ;;  %v5760_v56 = vcvt.s32.f32 %v4736_v18  ;;  %v7356_v16 = vadd.f32 %v10630_v34, %v10584_v10  ;;  %v5127_v25 = vunpack.c.0.s8 %v4511_v32  ;;  %v6880_v57 = vpack.c.bf16 %v6048_v9, %v6040_v14 }
 0x497   : > { %v5880_v21 = vcvt.s32.f32 %v4856_v49  ;;  %v5888_v36 = vcvt.s32.f32 %v4864_v41  ;;  %v5135_v7 = vunpack.c.1.s8 %v4511_v32  ;;  %v5000_v50 = vunpack.c.0.s8 %v10651_v19 }
 0x498   : > { %v6736_v1 = vpack.c.bf16 %v5760_v56, %v5752_v17  ;;  %v10663_v3 = vadd.f32 %v10560_v30, %v7356_v16  ;;  %7614 = vmatmul.bf16.vlgmr.msrb.gmra.mxu3 %v10466_v31  ;;  %v6151_v4 = vcvt.s32.f32 %v5127_v25  ;;  %v5008_v52 = vunpack.c.1.s8 %v10651_v19 }
 0x499   : > { %7658 = vmatpush.bf16.msra.mxu3 %v6943_v42  ;;  %v6800_v10 = vpack.c.bf16 %v5888_v36, %v5880_v21  ;;  %v6159_v34 = vcvt.s32.f32 %v5135_v7  ;;  %v4712_v38 = vunpack.c.0.s8 %v4408_v51  ;;  %7705 = vmatmul.bf16.vlgmr.msrb.gmra.mxu2 %v10382_v58  ;;  %v6024_v30 = vcvt.s32.f32 %v5000_v50 }
 0x49a   : > { %7749 = vmatpush.bf16.msra.mxu2 %v6880_v57  ;;  %7725 = vmatpush.bf16.msra.mxu0 %v6736_v1  ;;  %v4720_v32 = vunpack.c.1.s8 %v4408_v51  ;;  %v4840_v5 = vunpack.c.0.s8 %v4440_v61  ;;  %v4848_v44 = vunpack.c.1.s8 %v4440_v61  ;;  %v6032_v55 = vcvt.s32.f32 %v5008_v52 }
 0x49b   : > { %7738 = vmatpush.bf16.msra.mxu1 %v6800_v10  ;;  %v6935_v43 = vpack.c.bf16 %v6159_v34, %v6151_v4  ;;  %v5736_v54 = vcvt.s32.f32 %v4712_v38  ;;  %v5111_v11 = vunpack.c.2.s8 %v4503_v40  ;;  %v5119_v19 = vunpack.c.3.s8 %v4503_v40  ;;  %v4495_v34 = vld [vmem:[%s9260_s18 + $0x360] sm:$0xff] }
 0x49c   : > { %v5744_v20 = vcvt.s32.f32 %v4720_v32  ;;  %v5864_v28 = vcvt.s32.f32 %v4840_v5  ;;  %v5872_v15 = vcvt.s32.f32 %v4848_v44  ;;  %v6872_v6 = vpack.c.bf16 %v6032_v55, %v6024_v30  ;;  %v4464_v5 = vld [vmem:[%s9260_s18 + $0x268] sm:$0xff] }
 0x49d   : > { %7659 = vmatpush.bf16.msra.mxu3 %v6935_v43  ;;  %v6135_v2 = vcvt.s32.f32 %v5111_v11  ;;  %v4984_v24 = vunpack.c.2.s8 %v4472_v22  ;;  %v4992_v13 = vunpack.c.3.s8 %v4472_v22  ;;  %v6143_v61 = vcvt.s32.f32 %v5119_v19  ;;  %v10679_v19 = vpop.f32.mrf.mxu1 }
 0x49e   : > { %v6728_v51 = vpack.c.bf16 %v5744_v20, %v5736_v54  ;;  %v6792_v29 = vpack.c.bf16 %v5872_v15, %v5864_v28  ;;  %v4696_v14 = vunpack.c.2.s8 %v4400_v26  ;;  %7750 = vmatpush.bf16.msra.mxu2 %v6872_v6  ;;  %v4704_v42 = vunpack.c.3.s8 %v4400_v26  ;;  %v4392_v54 = vld [vmem:[%s9260_s18 + $0x28] sm:$0xff] }
 0x49f   : > { %v6008_v8 = vcvt.s32.f32 %v4984_v24  ;;  %v6016_v18 = vcvt.s32.f32 %v4992_v13  ;;  %v4824_v9 = vunpack.c.2.s8 %v4432_v60  ;;  %v6927_v49 = vpack.c.bf16 %v6143_v61, %v6135_v2  ;;  %v4424_v15 = vld [vmem:[%s9260_s18 + $0x128] sm:$0xff] }
 0x4a0   : > { %7726 = vmatpush.bf16.msra.mxu0 %v6728_v51  ;;  %7739 = vmatpush.bf16.msra.mxu1 %v6792_v29  ;;  %v5720_v41 = vcvt.s32.f32 %v4696_v14  ;;  %v4832_v62 = vunpack.c.3.s8 %v4432_v60  ;;  %v5095_v17 = vunpack.c.0.s8 %v4503_v40  ;;  %v5728_v16 = vcvt.s32.f32 %v4704_v42 }
 0x4a1   : > { %v6864_v56 = vpack.c.bf16 %v6016_v18, %v6008_v8  ;;  %v5848_v25 = vcvt.s32.f32 %v4824_v9  ;;  %v5103_v57 = vunpack.c.1.s8 %v4503_v40  ;;  %7660 = vmatpush.bf16.msra.mxu3 %v6927_v49  ;;  %v4968_v7 = vunpack.c.0.s8 %v4472_v22 }
 0x4a2   : > { %v5856_v21 = vcvt.s32.f32 %v4832_v62  ;;  %v6119_v36 = vcvt.s32.f32 %v5095_v17  ;;  %v4976_v1 = vunpack.c.1.s8 %v4472_v22  ;;  %v6720_v4 = vpack.c.bf16 %v5728_v16, %v5720_v41 }
 0x4a3   : > { %7751 = vmatpush.bf16.msra.mxu2 %v6864_v56  ;;  %v6127_v50 = vcvt.s32.f32 %v5103_v57  ;;  %v4680_v27 = vunpack.c.0.s8 %v4400_v26  ;;  %v4688_v10 = vunpack.c.1.s8 %v4400_v26  ;;  %v5992_v38 = vcvt.s32.f32 %v4968_v7  ;;  %v10677_v26 = vpop.f32.mrf.mxu0 }
 0x4a4   : > { %v6784_v52 = vpack.c.bf16 %v5856_v21, %v5848_v25  ;;  %v6000_v30 = vcvt.s32.f32 %v4976_v1  ;;  %v4808_v32 = vunpack.c.0.s8 %v4432_v60  ;;  %7727 = vmatpush.bf16.msra.mxu0 %v6720_v4  ;;  %v4816_v55 = vunpack.c.1.s8 %v4432_v60 }
 0x4a5   : > { %v6919_v40 = vpack.c.bf16 %v6127_v50, %v6119_v36  ;;  %v5704_v44 = vcvt.s32.f32 %v4680_v27  ;;  %v5712_v43 = vcvt.s32.f32 %v4688_v10  ;;  %v5079_v20 = vunpack.c.2.s8 %v4495_v34 }
 0x4a6   : > { %7740 = vmatpush.bf16.msra.mxu1 %v6784_v52  ;;  %v6856_v22 = vpack.c.bf16 %v6000_v30, %v5992_v38  ;;  %v5832_v11 = vcvt.s32.f32 %v4808_v32  ;;  %v5087_v28 = vunpack.c.3.s8 %v4495_v34  ;;  %v5840_v2 = vcvt.s32.f32 %v4816_v55  ;;  %v10685_v38 = vld [vmem:[%s9260_s18 + $0x4e8] sm:$0xff] }
 0x4a7   : > { %7661 = vmatpush.bf16.msra.mxu3 %v6919_v40  ;;  %v6712_v6 = vpack.c.bf16 %v5712_v43, %v5704_v44  ;;  %v4952_v24 = vunpack.c.2.s8 %v4464_v5  ;;  %v4960_v13 = vunpack.c.3.s8 %v4464_v5  ;;  %v6103_v51 = vcvt.s32.f32 %v5079_v20  ;;  %v4576_v55 = vld [vmem:[%s9260_s18 + $0x5e8] sm:$0xff]  ;;  %v4487_v20 = vld [vmem:[%s9260_s18 + $0x320] sm:$0xff] }
 0x4a8   : > { %7752 = vmatpush.bf16.msra.mxu2 %v6856_v22  ;;  %v6111_v29 = vcvt.s32.f32 %v5087_v28  ;;  %v4664_v60 = vunpack.c.2.s8 %v4392_v54  ;;  %v4672_v61 = vunpack.c.3.s8 %v4392_v54  ;;  %v6776_v14 = vpack.c.bf16 %v5840_v2, %v5832_v11 }
 0x4a9   : > { %7728 = vmatpush.bf16.msra.mxu0 %v6712_v6  ;;  %v5976_v8 = vcvt.s32.f32 %v4952_v24  ;;  %v5984_v18 = vcvt.s32.f32 %v4960_v13  ;;  %v4792_v42 = vunpack.c.2.s8 %v4424_v15  ;;  %v4800_v62 = vunpack.c.3.s8 %v4424_v15  ;;  %v4456_v24 = vld [vmem:[%s9260_s18 + $0x228] sm:$0xff]  ;;  %v10696_v13 = vld [vmem:[%s9329_s15] sm:$0xff] }
 0x4aa   : > { %v6911_v9 = vpack.c.bf16 %v6111_v29, %v6103_v51  ;;  %v5688_v49 = vcvt.s32.f32 %v4664_v60  ;;  %v5696_v41 = vcvt.s32.f32 %v4672_v61  ;;  %7741 = vmatpush.bf16.msra.mxu1 %v6776_v14  ;;  %v7382_v16 = vadd.f32 %v10567_v63, %v10663_v3  ;;  %v7539_v3 = vpop.f32.mrf.mxu1 }
 0x4ab   : > { %v6848_v17 = vpack.c.bf16 %v5984_v18, %v5976_v8  ;;  %v5816_v56 = vcvt.s32.f32 %v4792_v42  ;;  %v5824_v57 = vcvt.s32.f32 %v4800_v62  ;;  %v5063_v21 = vunpack.c.0.s8 %v4495_v34  ;;  %v7526_v63 = vpop.f32.mrf.mxu0 }
 0x4ac   : > { %7662 = vmatpush.bf16.msra.mxu3 %v6911_v9  ;;  %v6704_v25 = vpack.c.bf16 %v5696_v41, %v5688_v49  ;;  %v7395_v36 = vadd.f32 %v10578_v12, %v7382_v16  ;;  %v5071_v7 = vunpack.c.1.s8 %v4495_v34  ;;  %v4936_v1 = vunpack.c.0.s8 %v4464_v5 }
 0x4ad   : > { %7753 = vmatpush.bf16.msra.mxu2 %v6848_v17  ;;  %v4944_v4 = vunpack.c.1.s8 %v4464_v5  ;;  %v6768_v50 = vpack.c.bf16 %v5824_v57, %v5816_v56  ;;  %v6087_v27 = vcvt.s32.f32 %v5063_v21  ;;  %v4648_v10 = vunpack.c.0.s8 %v4392_v54 }
 0x4ae   : > { %7729 = vmatpush.bf16.msra.mxu0 %v6704_v25  ;;  %v4656_v52 = vunpack.c.1.s8 %v4392_v54  ;;  %v10688_v30 = vadd.f32 %v10654_v46, %v7395_v36  ;;  %v6095_v32 = vcvt.s32.f32 %v5071_v7  ;;  %v5960_v40 = vcvt.s32.f32 %v4936_v1 }
 0x4af   : > { %v5968_v12 = vcvt.s32.f32 %v4944_v4  ;;  %7742 = vmatpush.bf16.msra.mxu1 %v6768_v50  ;;  %v5672_v34 = vcvt.s32.f32 %v4648_v10  ;;  %v4776_v44 = vunpack.c.0.s8 %v4424_v15  ;;  %v4784_v43 = vunpack.c.1.s8 %v4424_v15  ;;  %v10708_v10 = vpop.f32.mrf.mxu2 }
 0x4b0   : > { %v5680_v5 = vcvt.s32.f32 %v4656_v52  ;;  %v6903_v54 = vpack.c.bf16 %v6095_v32, %v6087_v27  ;;  %v5272_v11 = vunpack.c.2.s8 %v10685_v38  ;;  %v5280_v2 = vunpack.c.3.s8 %v10685_v38  ;;  %v10706_v27 = vpop.f32.mrf.mxu3  ;;  %v4639_v32 = vld [vmem:[%s9260_s18 + $0x7e0] sm:$0xff] }
 0x4b1   : > { %v6840_v22 = vpack.c.bf16 %v5968_v12, %v5960_v40  ;;  %v5800_v6 = vcvt.s32.f32 %v4776_v44  ;;  %v5808_v46 = vcvt.s32.f32 %v4784_v43  ;;  %v8035_v51 = vperm.slane %v10696_v13, 4 }
 0x4b2   : > { %v6696_v28 = vpack.c.bf16 %v5680_v5, %v5672_v34  ;;  %7663 = vmatpush.bf16.msra.mxu3 %v6903_v54  ;;  %v6296_v29 = vcvt.s32.f32 %v5272_v11  ;;  %v5400_v15 = vunpack.c.2.s8 %v4576_v55  ;;  %v5408_v60 = vunpack.c.3.s8 %v4576_v55  ;;  %v4608_v5 = vld [vmem:[%s9260_s18 + $0x6e8] sm:$0xff] }
 0x4b3   : > { %7754 = vmatpush.bf16.msra.mxu2 %v6840_v22  ;;  %v6760_v61 = vpack.c.bf16 %v5808_v46, %v5800_v6  ;;  %v6304_v14 = vcvt.s32.f32 %v5280_v2  ;;  %v5047_v8 = vunpack.c.2.s8 %v4487_v20  ;;  %v5055_v18 = vunpack.c.3.s8 %v4487_v20  ;;  %v4536_v11 = vld [vmem:[%s9260_s18 + $0x4a8] sm:$0xff] }
 0x4b4   : > { %7730 = vmatpush.bf16.msra.mxu0 %v6696_v28  ;;  %v8051_v42 = vperm.slane %v10696_v13, 5  ;;  %v6424_v9 = vcvt.s32.f32 %v5400_v15  ;;  %v6432_v49 = vcvt.s32.f32 %v5408_v60  ;;  %v4920_v41 = vunpack.c.2.s8 %v4456_v24  ;;  %v4568_v46 = vld [vmem:[%s9260_s18 + $0x5a8] sm:$0xff] }
 0x4b5   : > { %7743 = vmatpush.bf16.msra.mxu1 %v6760_v61  ;;  %v7008_v62 = vpack.c.bf16 %v6304_v14, %v6296_v29  ;;  %v6071_v17 = vcvt.s32.f32 %v5047_v8  ;;  %v6079_v56 = vcvt.s32.f32 %v5055_v18  ;;  %v4928_v16 = vunpack.c.3.s8 %v4456_v24 }
 0x4b6   : > { %v10701_v25 = vmul.f32 %v8035_v51, %v10627_v53  ;;  %v7072_v57 = vpack.c.bf16 %v6432_v49, %v6424_v9  ;;  %v5944_v21 = vcvt.s32.f32 %v4920_v41  ;;  %v5256_v36 = vunpack.c.0.s8 %v10685_v38 }
 0x4b7   : > { %7731 = vmatmul.bf16.vlgmr.msra.gmra.mxu0 %v9916_v33  ;;  %v6895_v7 = vpack.c.bf16 %v6079_v56, %v6071_v17  ;;  %v5952_v1 = vcvt.s32.f32 %v4928_v16  ;;  %v5264_v4 = vunpack.c.1.s8 %v10685_v38  ;;  %v5384_v50 = vunpack.c.0.s8 %v4576_v55 }
 0x4b8   : > { %7775 = vmatpush.bf16.msrb.mxu0 %v7008_v62  ;;  %v6280_v53 = vcvt.s32.f32 %v5256_v36  ;;  %v5392_v52 = vunpack.c.1.s8 %v4576_v55  ;;  %v5031_v63 = vunpack.c.0.s8 %v4487_v20  ;;  %v5039_v3 = vunpack.c.1.s8 %v4487_v20  ;;  %7744 = vmatmul.bf16.vlgmr.msra.gmra.mxu1 %v9984_v39  ;;  %v7461_v16 = vpop.f32.mrf.mxu3 }
 0x4b9   : > { %7788 = vmatpush.bf16.msrb.mxu1 %v7072_v57  ;;  %7664 = vmatpush.bf16.msra.mxu3 %v6895_v7  ;;  %v6832_v40 = vpack.c.bf16 %v5952_v1, %v5944_v21  ;;  %v6288_v12 = vcvt.s32.f32 %v5264_v4  ;;  %v6408_v38 = vcvt.s32.f32 %v5384_v50  ;;  %v4904_v34 = vunpack.c.0.s8 %v4456_v24  ;;  %v7552_v57 = vpop.f32.mrf.mxu2 }
 0x4ba   : > { %v6416_v44 = vcvt.s32.f32 %v5392_v52  ;;  %v6055_v43 = vcvt.s32.f32 %v5031_v63  ;;  %v6063_v54 = vcvt.s32.f32 %v5039_v3  ;;  %v4912_v22 = vunpack.c.1.s8 %v4456_v24 }
 0x4bb   : > { %7755 = vmatpush.bf16.msra.mxu2 %v6832_v40  ;;  %v7000_v28 = vpack.c.bf16 %v6288_v12, %v6280_v53  ;;  %v5928_v55 = vcvt.s32.f32 %v4904_v34  ;;  %v5655_v6 = vunpack.c.2.s8 %v4639_v32  ;;  %v5663_v20 = vunpack.c.3.s8 %v4639_v32 }
 0x4bc   : > { %v7064_v2 = vpack.c.bf16 %v6416_v44, %v6408_v38  ;;  %v6887_v51 = vpack.c.bf16 %v6063_v54, %v6055_v43  ;;  %v5936_v29 = vcvt.s32.f32 %v4912_v22  ;;  %v5528_v15 = vunpack.c.2.s8 %v4608_v5  ;;  %v4631_v38 = vld [vmem:[%s9260_s18 + $0x7a0] sm:$0xff]  ;;  %v4600_v43 = vld [vmem:[%s9260_s18 + $0x6a8] sm:$0xff] }
 0x4bd   : > { %7776 = vmatpush.bf16.msrb.mxu0 %v7000_v28  ;;  %v6679_v60 = vcvt.s32.f32 %v5655_v6  ;;  %v6687_v61 = vcvt.s32.f32 %v5663_v20  ;;  %v5536_v14 = vunpack.c.3.s8 %v4608_v5  ;;  %v5240_v8 = vunpack.c.2.s8 %v4536_v11 }
 0x4be   : > { %7789 = vmatpush.bf16.msrb.mxu1 %v7064_v2  ;;  %7665 = vmatpush.bf16.msra.mxu3 %v6887_v51  ;;  %v6824_v18 = vpack.c.bf16 %v5936_v29, %v5928_v55  ;;  %v6552_v24 = vcvt.s32.f32 %v5528_v15  ;;  %v5248_v9 = vunpack.c.3.s8 %v4536_v11  ;;  %v5368_v49 = vunpack.c.2.s8 %v4568_v46  ;;  %v4528_v2 = vld [vmem:[%s9260_s18 + $0x468] sm:$0xff] }
 0x4bf   : > { %v7199_v41 = vpack.c.bf16 %v6687_v61, %v6679_v60  ;;  %v6560_v62 = vcvt.s32.f32 %v5536_v14  ;;  %v6264_v17 = vcvt.s32.f32 %v5240_v8  ;;  %v5376_v56 = vunpack.c.3.s8 %v4568_v46 }
 0x4c0   : > { %7756 = vmatpush.bf16.msra.mxu2 %v6824_v18  ;;  %v6272_v21 = vcvt.s32.f32 %v5248_v9  ;;  %v6392_v36 = vcvt.s32.f32 %v5368_v49  ;;  %v10717_v7 = vadd.f32 %v10679_v19, %v10677_v26  ;;  %v5639_v1 = vunpack.c.0.s8 %v4639_v32 }
 0x4c1   : > { %v7136_v4 = vpack.c.bf16 %v6560_v62, %v6552_v24  ;;  %v6400_v50 = vcvt.s32.f32 %v5376_v56  ;;  %v5647_v53 = vunpack.c.1.s8 %v4639_v32  ;;  %v5512_v52 = vunpack.c.0.s8 %v4608_v5  ;;  %7666 = vmatmul.bf16.vlgmr.msra.gmra.mxu3 %v10136_v45 }
 0x4c2   : > { %7710 = vmatpush.bf16.msrb.mxu3 %v7199_v41  ;;  %v6992_v63 = vpack.c.bf16 %v6272_v21, %v6264_v17  ;;  %v6663_v3 = vcvt.s32.f32 %v5639_v1  ;;  %v5520_v40 = vunpack.c.1.s8 %v4608_v5  ;;  %v5224_v12 = vunpack.c.0.s8 %v4536_v11 }
 0x4c3   : > { %v7056_v34 = vpack.c.bf16 %v6400_v50, %v6392_v36  ;;  %v6671_v44 = vcvt.s32.f32 %v5647_v53  ;;  %v6536_v26 = vcvt.s32.f32 %v5512_v52  ;;  %v5232_v19 = vunpack.c.1.s8 %v4536_v11  ;;  %7757 = vmatmul.bf16.vlgmr.msra.gmra.mxu2 %v10060_v0  ;;  %v4560_v11 = vld [vmem:[%s9260_s18 + $0x568] sm:$0xff] }
 0x4c4   : > { %7801 = vmatpush.bf16.msrb.mxu2 %v7136_v4  ;;  %7777 = vmatpush.bf16.msrb.mxu0 %v6992_v63  ;;  %v6544_v32 = vcvt.s32.f32 %v5520_v40  ;;  %v6248_v54 = vcvt.s32.f32 %v5224_v12  ;;  %v5352_v22 = vunpack.c.0.s8 %v4568_v46  ;;  %v5360_v28 = vunpack.c.1.s8 %v4568_v46  ;;  %v4623_v12 = vld [vmem:[%s9260_s18 + $0x760] sm:$0xff] }
 0x4c5   : > { %7790 = vmatpush.bf16.msrb.mxu1 %v7056_v34  ;;  %v7191_v55 = vpack.c.bf16 %v6671_v44, %v6663_v3  ;;  %v6256_v5 = vcvt.s32.f32 %v5232_v19  ;;  %v5623_v6 = vunpack.c.2.s8 %v4631_v38  ;;  %v5631_v20 = vunpack.c.3.s8 %v4631_v38 }
 0x4c6   : > { %v7128_v51 = vpack.c.bf16 %v6544_v32, %v6536_v26  ;;  %v6376_v29 = vcvt.s32.f32 %v5352_v22  ;;  %v6384_v15 = vcvt.s32.f32 %v5360_v28  ;;  %v5496_v60 = vunpack.c.2.s8 %v4600_v43  ;;  %v10727_v32 = vld [vmem:[%s9260_s18 + $0x668] sm:$0xff] }
 0x4c7   : > { %7711 = vmatpush.bf16.msrb.mxu3 %v7191_v55  ;;  %v6984_v61 = vpack.c.bf16 %v6256_v5, %v6248_v54  ;;  %v6647_v14 = vcvt.s32.f32 %v5623_v6  ;;  %v6655_v8 = vcvt.s32.f32 %v5631_v20  ;;  %v5504_v18 = vunpack.c.3.s8 %v4600_v43  ;;  %v10729_v55 = vpop.f32.mrf.mxu0  ;;  %v10731_v5 = vpop.f32.mrf.mxu1 }
 0x4c8   : > { %7802 = vmatpush.bf16.msrb.mxu2 %v7128_v51  ;;  %v7048_v24 = vpack.c.bf16 %v6384_v15, %v6376_v29  ;;  %v6520_v9 = vcvt.s32.f32 %v5496_v60  ;;  %v5208_v46 = vunpack.c.2.s8 %v4528_v2  ;;  %v5216_v49 = vunpack.c.3.s8 %v4528_v2 }
 0x4c9   : > { %7778 = vmatpush.bf16.msrb.mxu0 %v6984_v61  ;;  %v7183_v41 = vpack.c.bf16 %v6655_v8, %v6647_v14  ;;  %v6528_v62 = vcvt.s32.f32 %v5504_v18  ;;  %v5336_v17 = vunpack.c.2.s8 %v4560_v11  ;;  %v5344_v56 = vunpack.c.3.s8 %v4560_v11  ;;  %v4520_v61 = vld [vmem:[%s9260_s18 + $0x428] sm:$0xff] }
 0x4ca   : > { %7791 = vmatpush.bf16.msrb.mxu1 %v7048_v24  ;;  %v6232_v16 = vcvt.s32.f32 %v5208_v46  ;;  %v6240_v57 = vcvt.s32.f32 %v5216_v49  ;;  %v5607_v21 = vunpack.c.0.s8 %v4631_v38  ;;  %v5615_v36 = vunpack.c.1.s8 %v4631_v38  ;;  %v4552_v24 = vld [vmem:[%s9260_s18 + $0x528] sm:$0xff] }
 0x4cb   : > { %7712 = vmatpush.bf16.msrb.mxu3 %v7183_v41  ;;  %v7120_v1 = vpack.c.bf16 %v6528_v62, %v6520_v9  ;;  %v6360_v4 = vcvt.s32.f32 %v5336_v17  ;;  %v6368_v50 = vcvt.s32.f32 %v5344_v56  ;;  %v5480_v53 = vunpack.c.0.s8 %v4600_v43 }
 0x4cc   : > { %v6976_v52 = vpack.c.bf16 %v6240_v57, %v6232_v16  ;;  %v6631_v63 = vcvt.s32.f32 %v5607_v21  ;;  %v6639_v3 = vcvt.s32.f32 %v5615_v36  ;;  %v5488_v40 = vunpack.c.1.s8 %v4600_v43 }
 0x4cd   : > { %7803 = vmatpush.bf16.msrb.mxu2 %v7120_v1  ;;  %v7040_v34 = vpack.c.bf16 %v6368_v50, %v6360_v4  ;;  %v6504_v44 = vcvt.s32.f32 %v5480_v53  ;;  %v5192_v26 = vunpack.c.0.s8 %v4528_v2  ;;  %v5200_v19 = vunpack.c.1.s8 %v4528_v2 }
 0x4ce   : > { %7779 = vmatpush.bf16.msrb.mxu0 %v6976_v52  ;;  %v7175_v38 = vpack.c.bf16 %v6639_v3, %v6631_v63  ;;  %v6512_v54 = vcvt.s32.f32 %v5488_v40  ;;  %v5320_v22 = vunpack.c.0.s8 %v4560_v11  ;;  %v5328_v28 = vunpack.c.1.s8 %v4560_v11 }
 0x4cf   : > { %7792 = vmatpush.bf16.msrb.mxu1 %v7040_v34  ;;  %v6216_v43 = vcvt.s32.f32 %v5192_v26  ;;  %v6224_v6 = vcvt.s32.f32 %v5200_v19  ;;  %v5591_v20 = vunpack.c.2.s8 %v4623_v12  ;;  %v5599_v51 = vunpack.c.3.s8 %v4623_v12  ;;  %v7578_v63 = vpop.f32.mrf.mxu0  ;;  %v7591_v3 = vpop.f32.mrf.mxu1  ;;  %v4417_v26 = vld [vmem:[%s9260_s18 + $0xf0] sm:$0xff] }
 0x4d0   : > { %7713 = vmatpush.bf16.msrb.mxu3 %v7175_v38  ;;  %v7112_v2 = vpack.c.bf16 %v6512_v54, %v6504_v44  ;;  %v6344_v29 = vcvt.s32.f32 %v5320_v22  ;;  %v6352_v15 = vcvt.s32.f32 %v5328_v28  ;;  %v5464_v60 = vunpack.c.2.s8 %v10727_v32  ;;  %v4449_v22 = vld [vmem:[%s9260_s18 + $0x1f0] sm:$0xff] }
 0x4d1   : > { %v6968_v14 = vpack.c.bf16 %v6224_v6, %v6216_v43  ;;  %v6615_v8 = vcvt.s32.f32 %v5591_v20  ;;  %v6623_v11 = vcvt.s32.f32 %v5599_v51  ;;  %v5472_v18 = vunpack.c.3.s8 %v10727_v32  ;;  %v4615_v51 = vld [vmem:[%s9260_s18 + $0x720] sm:$0xff] }
 0x4d2   : > { %7804 = vmatpush.bf16.msrb.mxu2 %v7112_v2  ;;  %v7032_v9 = vpack.c.bf16 %v6352_v15, %v6344_v29  ;;  %v6488_v46 = vcvt.s32.f32 %v5464_v60  ;;  %v7460_v49 = vadd.f32 %v10706_v27, %v10640_v37  ;;  %v10741_v41 = vadd.f32 %v10708_v10, %v10717_v7 }
 0x4d3   : > { %7780 = vmatpush.bf16.msrb.mxu0 %v6968_v14  ;;  %v7167_v62 = vpack.c.bf16 %v6623_v11, %v6615_v8  ;;  %v6496_v17 = vcvt.s32.f32 %v5472_v18  ;;  %v5176_v56 = vunpack.c.2.s8 %v4520_v61  ;;  %v5184_v16 = vunpack.c.3.s8 %v4520_v61 }
 0x4d4   : > { %7793 = vmatpush.bf16.msrb.mxu1 %v7032_v9  ;;  %v10744_v57 = vadd.f32 %v10632_v47, %v7460_v49  ;;  %v5304_v21 = vunpack.c.2.s8 %v4552_v24  ;;  %v5312_v36 = vunpack.c.3.s8 %v4552_v24  ;;  %v5575_v1 = vunpack.c.0.s8 %v4623_v12 }
 0x4d5   : > { %7714 = vmatpush.bf16.msrb.mxu3 %v7167_v62  ;;  %v7104_v4 = vpack.c.bf16 %v6496_v17, %v6488_v46  ;;  %v6200_v37 = vcvt.s32.f32 %v5176_v56  ;;  %v6208_v27 = vcvt.s32.f32 %v5184_v16  ;;  %v5583_v50 = vunpack.c.1.s8 %v4623_v12 }
 0x4d6   : > { %v6328_v10 = vcvt.s32.f32 %v5304_v21  ;;  %v6336_v7 = vcvt.s32.f32 %v5312_v36  ;;  %v6599_v53 = vcvt.s32.f32 %v5575_v1  ;;  %v5448_v52 = vunpack.c.0.s8 %v10727_v32 }
 0x4d7   : > { %7805 = vmatpush.bf16.msrb.mxu2 %v7104_v4  ;;  %v6960_v47 = vpack.c.bf16 %v6208_v27, %v6200_v37  ;;  %v6607_v40 = vcvt.s32.f32 %v5583_v50  ;;  %v5456_v34 = vunpack.c.1.s8 %v10727_v32  ;;  %v5160_v44 = vunpack.c.0.s8 %v4520_v61 }
 0x4d8   : > { %v7024_v19 = vpack.c.bf16 %v6336_v7, %v6328_v10  ;;  %v6472_v38 = vcvt.s32.f32 %v5448_v52  ;;  %v5168_v54 = vunpack.c.1.s8 %v4520_v61  ;;  %v5288_v12 = vunpack.c.0.s8 %v4552_v24  ;;  %v4584_v61 = vld [vmem:[%s9260_s18 + $0x628] sm:$0xff]  ;;  %v10752_v10 = vpop.f32.mrf.mxu3 }
 0x4d9   : > { %7781 = vmatpush.bf16.msrb.mxu0 %v6960_v47  ;;  %v7159_v28 = vpack.c.bf16 %v6607_v40, %v6599_v53  ;;  %v6480_v43 = vcvt.s32.f32 %v5456_v34  ;;  %v6184_v6 = vcvt.s32.f32 %v5160_v44  ;;  %v5296_v20 = vunpack.c.1.s8 %v4552_v24  ;;  %v4512_v44 = vld [vmem:[%s9260_s18 + $0x3e8] sm:$0xff] }
 0x4da   : > { %7794 = vmatpush.bf16.msrb.mxu1 %v7024_v19  ;;  %v6192_v2 = vcvt.s32.f32 %v5168_v54  ;;  %v6312_v29 = vcvt.s32.f32 %v5288_v12  ;;  %v4761_v15 = vunpack.c.2.s8 %v4417_v26  ;;  %v4769_v60 = vunpack.c.3.s8 %v4417_v26  ;;  %v4481_v12 = vld [vmem:[%s9260_s18 + $0x2f0] sm:$0xff] }
 0x4db   : > { %7715 = vmatpush.bf16.msrb.mxu3 %v7159_v28  ;;  %v7096_v32 = vpack.c.bf16 %v6480_v43, %v6472_v38  ;;  %v6320_v14 = vcvt.s32.f32 %v5296_v20  ;;  %v4889_v8 = vunpack.c.2.s8 %v4449_v22  ;;  %v4897_v11 = vunpack.c.3.s8 %v4449_v22  ;;  %v4409_v20 = vld [vmem:[%s9260_s18 + $0xb0] sm:$0xff] }
 0x4dc   : > { %v6952_v18 = vpack.c.bf16 %v6192_v2, %v6184_v6  ;;  %v5785_v9 = vcvt.s32.f32 %v4761_v15  ;;  %v5793_v46 = vcvt.s32.f32 %v4769_v60  ;;  %v5559_v49 = vunpack.c.2.s8 %v4615_v51 }
 0x4dd   : > { %7806 = vmatpush.bf16.msrb.mxu2 %v7096_v32  ;;  %v7016_v62 = vpack.c.bf16 %v6320_v14, %v6312_v29  ;;  %v5913_v17 = vcvt.s32.f32 %v4889_v8  ;;  %v5921_v24 = vcvt.s32.f32 %v4897_v11  ;;  %v5567_v56 = vunpack.c.3.s8 %v4615_v51 }
 0x4de   : > { %7782 = vmatpush.bf16.msrb.mxu0 %v6952_v18  ;;  %v6753_v16 = vpack.c.bf16 %v5793_v46, %v5785_v9  ;;  %v6583_v21 = vcvt.s32.f32 %v5559_v49  ;;  %v5432_v36 = vunpack.c.2.s8 %v4584_v61  ;;  %v5440_v1 = vunpack.c.3.s8 %v4584_v61  ;;  %v4441_v18 = vld [vmem:[%s9260_s18 + $0x1b0] sm:$0xff] }
 0x4df   : > { %7795 = vmatpush.bf16.msrb.mxu1 %v7016_v62  ;;  %v6817_v4 = vpack.c.bf16 %v5921_v24, %v5913_v17  ;;  %v6591_v37 = vcvt.s32.f32 %v5567_v56  ;;  %v4745_v27 = vunpack.c.0.s8 %v4417_v26  ;;  %v4753_v50 = vunpack.c.1.s8 %v4417_v26  ;;  %v10760_v62 = vpop.f32.mrf.mxu2 }
 0x4e0   : > { %v6456_v7 = vcvt.s32.f32 %v5432_v36  ;;  %v6464_v53 = vcvt.s32.f32 %v5440_v1  ;;  %v4873_v52 = vunpack.c.0.s8 %v4449_v22  ;;  %v4881_v63 = vunpack.c.1.s8 %v4449_v22 }
 0x4e1   : > { %v7151_v3 = vpack.c.bf16 %v6591_v37, %v6583_v21  ;;  %7783 = vmatmul.bf16.vlgmr.msrb.gmra.mxu0 %v10224_v48  ;;  %v5769_v47 = vcvt.s32.f32 %v4745_v27  ;;  %v5777_v40 = vcvt.s32.f32 %v4753_v50  ;;  %v5543_v34 = vunpack.c.0.s8 %v4615_v51 }
 0x4e2   : > { %7827 = vmatpush.bf16.msra.mxu0 %v6753_v16  ;;  %7796 = vmatmul.bf16.vlgmr.msrb.gmra.mxu1 %v10322_v23  ;;  %v7088_v26 = vpack.c.bf16 %v6464_v53, %v6456_v7  ;;  %v5897_v19 = vcvt.s32.f32 %v4873_v52  ;;  %v5905_v38 = vcvt.s32.f32 %v4881_v63  ;;  %v5551_v54 = vunpack.c.1.s8 %v4615_v51  ;;  %v7513_v16 = vpop.f32.mrf.mxu3 }
 0x4e3   : > { %7840 = vmatpush.bf16.msra.mxu1 %v6817_v4  ;;  %7716 = vmatpush.bf16.msrb.mxu3 %v7151_v3  ;;  %v6745_v28 = vpack.c.bf16 %v5777_v40, %v5769_v47  ;;  %v6567_v22 = vcvt.s32.f32 %v5543_v34  ;;  %v5416_v43 = vunpack.c.0.s8 %v4584_v61  ;;  %v5424_v6 = vunpack.c.1.s8 %v4584_v61 }
 0x4e4   : > { %7807 = vmatpush.bf16.msrb.mxu2 %v7088_v26  ;;  %v6809_v2 = vpack.c.bf16 %v5905_v38, %v5897_v19  ;;  %v6575_v29 = vcvt.s32.f32 %v5551_v54  ;;  %v5144_v15 = vunpack.c.2.s8 %v4512_v44  ;;  %v5152_v60 = vunpack.c.3.s8 %v4512_v44  ;;  %v4504_v19 = vld [vmem:[%s9260_s18 + $0x3a8] sm:$0xff] }
 0x4e5   : > { %v6440_v32 = vcvt.s32.f32 %v5416_v43  ;;  %v6448_v14 = vcvt.s32.f32 %v5424_v6  ;;  %v5017_v8 = vunpack.c.2.s8 %v4481_v12  ;;  %v5025_v11 = vunpack.c.3.s8 %v4481_v12 }
 0x4e6   : > { %7828 = vmatpush.bf16.msra.mxu0 %v6745_v28  ;;  %v7143_v51 = vpack.c.bf16 %v6575_v29, %v6567_v22  ;;  %v6168_v9 = vcvt.s32.f32 %v5144_v15  ;;  %v6176_v46 = vcvt.s32.f32 %v5152_v60  ;;  %v4729_v49 = vunpack.c.2.s8 %v4409_v20  ;;  %v4473_v22 = vld [vmem:[%s9260_s18 + $0x2b0] sm:$0xff] }
 0x4e7   : > { %7841 = vmatpush.bf16.msra.mxu1 %v6809_v2  ;;  %v7080_v61 = vpack.c.bf16 %v6448_v14, %v6440_v32  ;;  %v6041_v17 = vcvt.s32.f32 %v5017_v8  ;;  %v6049_v24 = vcvt.s32.f32 %v5025_v11  ;;  %v4737_v56 = vunpack.c.3.s8 %v4409_v20  ;;  %v4401_v29 = vld [vmem:[%s9260_s18 + $0x70] sm:$0xff]  ;;  %v7604_v8 = vpop.f32.mrf.mxu2 }
 0x4e8   : > { %7717 = vmatpush.bf16.msrb.mxu3 %v7143_v51  ;;  %v6944_v21 = vpack.c.bf16 %v6176_v46, %v6168_v9  ;;  %v5753_v36 = vcvt.s32.f32 %v4729_v49  ;;  %v4857_v1 = vunpack.c.2.s8 %v4441_v18  ;;  %v4865_v4 = vunpack.c.3.s8 %v4441_v18 }
 0x4e9   : > { %7808 = vmatpush.bf16.msrb.mxu2 %v7080_v61  ;;  %v6881_v37 = vpack.c.bf16 %v6049_v24, %v6041_v17  ;;  %v5761_v27 = vcvt.s32.f32 %v4737_v56  ;;  %v5128_v50 = vunpack.c.0.s8 %v4512_v44  ;;  %v5136_v7 = vunpack.c.1.s8 %v4512_v44 }
 0x4ea   : > { %v5881_v53 = vcvt.s32.f32 %v4857_v1  ;;  %v5889_v52 = vcvt.s32.f32 %v4865_v4  ;;  %v5001_v63 = vunpack.c.0.s8 %v4481_v12  ;;  %v5009_v3 = vunpack.c.1.s8 %v4481_v12 }
 0x4eb   : > { %v6737_v47 = vpack.c.bf16 %v5761_v27, %v5753_v36  ;;  %7718 = vmatmul.bf16.vlgmr.msrb.gmra.mxu3 %v10466_v31  ;;  %v6152_v40 = vcvt.s32.f32 %v5128_v50  ;;  %v6160_v34 = vcvt.s32.f32 %v5136_v7  ;;  %v4713_v26 = vunpack.c.0.s8 %v4409_v20 }
 0x4ec   : > { %7762 = vmatpush.bf16.msra.mxu3 %v6944_v21  ;;  %v6801_v38 = vpack.c.bf16 %v5889_v52, %v5881_v53  ;;  %7809 = vmatmul.bf16.vlgmr.msrb.gmra.mxu2 %v10382_v58  ;;  %v6025_v54 = vcvt.s32.f32 %v5001_v63  ;;  %v6033_v44 = vcvt.s32.f32 %v5009_v3  ;;  %v4721_v28 = vunpack.c.1.s8 %v4409_v20  ;;  %v4433_v20 = vld [vmem:[%s9260_s18 + $0x170] sm:$0xff] }
 0x4ed   : > { %7853 = vmatpush.bf16.msra.mxu2 %v6881_v37  ;;  %7829 = vmatpush.bf16.msra.mxu0 %v6737_v47  ;;  %v6936_v43 = vpack.c.bf16 %v6160_v34, %v6152_v40  ;;  %v5737_v12 = vcvt.s32.f32 %v4713_v26  ;;  %v4841_v6 = vunpack.c.0.s8 %v4441_v18  ;;  %v4849_v2 = vunpack.c.1.s8 %v4441_v18 }
 0x4ee   : > { %7842 = vmatpush.bf16.msra.mxu1 %v6801_v38  ;;  %v6873_v15 = vpack.c.bf16 %v6033_v44, %v6025_v54  ;;  %v5745_v60 = vcvt.s32.f32 %v4721_v28  ;;  %v5112_v32 = vunpack.c.2.s8 %v4504_v19  ;;  %v5120_v14 = vunpack.c.3.s8 %v4504_v19  ;;  %v4496_v54 = vld [vmem:[%s9260_s18 + $0x368] sm:$0xff] }
 0x4ef   : > { %v5865_v11 = vcvt.s32.f32 %v4841_v6  ;;  %v5873_v51 = vcvt.s32.f32 %v4849_v2  ;;  %v4985_v9 = vunpack.c.2.s8 %v4473_v22  ;;  %v4993_v46 = vunpack.c.3.s8 %v4473_v22  ;;  %v4465_v6 = vld [vmem:[%s9260_s18 + $0x270] sm:$0xff] }
 0x4f0   : > { %7763 = vmatpush.bf16.msra.mxu3 %v6936_v43  ;;  %v6729_v49 = vpack.c.bf16 %v5745_v60, %v5737_v12  ;;  %v6136_v61 = vcvt.s32.f32 %v5112_v32  ;;  %v6144_v17 = vcvt.s32.f32 %v5120_v14  ;;  %v4697_v24 = vunpack.c.2.s8 %v4401_v29 }
 0x4f1   : > { %7854 = vmatpush.bf16.msra.mxu2 %v6873_v15  ;;  %v6793_v56 = vpack.c.bf16 %v5873_v51, %v5865_v11  ;;  %v6009_v18 = vcvt.s32.f32 %v4985_v9  ;;  %v6017_v16 = vcvt.s32.f32 %v4993_v46  ;;  %v4705_v21 = vunpack.c.3.s8 %v4401_v29  ;;  %v10770_v11 = vpop.f32.mrf.mxu0  ;;  %v10772_v51 = vpop.f32.mrf.mxu1 }
 0x4f2   : > { %7830 = vmatpush.bf16.msra.mxu0 %v6729_v49  ;;  %v6928_v36 = vpack.c.bf16 %v6144_v17, %v6136_v61  ;;  %v5721_v1 = vcvt.s32.f32 %v4697_v24  ;;  %v4825_v4 = vunpack.c.2.s8 %v4433_v20  ;;  %v4833_v37 = vunpack.c.3.s8 %v4433_v20  ;;  %v4393_v61 = vld [vmem:[%s9260_s18 + $0x30] sm:$0xff] }
 0x4f3   : > { %7843 = vmatpush.bf16.msra.mxu1 %v6793_v56  ;;  %v6865_v27 = vpack.c.bf16 %v6017_v16, %v6009_v18  ;;  %v5729_v50 = vcvt.s32.f32 %v4705_v21  ;;  %v5096_v7 = vunpack.c.0.s8 %v4504_v19  ;;  %v5104_v53 = vunpack.c.1.s8 %v4504_v19  ;;  %v4425_v18 = vld [vmem:[%s9260_s18 + $0x130] sm:$0xff] }
 0x4f4   : > { %7764 = vmatpush.bf16.msra.mxu3 %v6928_v36  ;;  %v5849_v52 = vcvt.s32.f32 %v4825_v4  ;;  %v5857_v63 = vcvt.s32.f32 %v4833_v37  ;;  %v4969_v3 = vunpack.c.0.s8 %v4473_v22  ;;  %v4977_v47 = vunpack.c.1.s8 %v4473_v22 }
 0x4f5   : > { %7855 = vmatpush.bf16.msra.mxu2 %v6865_v27  ;;  %v6721_v40 = vpack.c.bf16 %v5729_v50, %v5721_v1  ;;  %v6120_v34 = vcvt.s32.f32 %v5096_v7  ;;  %v6128_v26 = vcvt.s32.f32 %v5104_v53  ;;  %v4681_v38 = vunpack.c.0.s8 %v4401_v29 }
 0x4f6   : > { %v6785_v44 = vpack.c.bf16 %v5857_v63, %v5849_v52  ;;  %v5993_v28 = vcvt.s32.f32 %v4969_v3  ;;  %v6001_v43 = vcvt.s32.f32 %v4977_v47  ;;  %v4689_v12 = vunpack.c.1.s8 %v4401_v29 }
 0x4f7   : > { %7831 = vmatpush.bf16.msra.mxu0 %v6721_v40  ;;  %v6920_v2 = vpack.c.bf16 %v6128_v26, %v6120_v34  ;;  %v5705_v19 = vcvt.s32.f32 %v4681_v38  ;;  %v4809_v15 = vunpack.c.0.s8 %v4433_v20  ;;  %v4817_v60 = vunpack.c.1.s8 %v4433_v20  ;;  %v4545_v38 = vld [vmem:[%s9260_s18 + $0x4f0] sm:$0xff] }
 0x4f8   : > { %7844 = vmatpush.bf16.msra.mxu1 %v6785_v44  ;;  %v6857_v32 = vpack.c.bf16 %v6001_v43, %v5993_v28  ;;  %v5713_v22 = vcvt.s32.f32 %v4689_v12  ;;  %v5080_v14 = vunpack.c.2.s8 %v4496_v54  ;;  %v5088_v8 = vunpack.c.3.s8 %v4496_v54 }
 0x4f9   : > { %7765 = vmatpush.bf16.msra.mxu3 %v6920_v2  ;;  %v5833_v9 = vcvt.s32.f32 %v4809_v15  ;;  %v5841_v29 = vcvt.s32.f32 %v4817_v60  ;;  %v4953_v46 = vunpack.c.2.s8 %v4465_v6  ;;  %v4961_v49 = vunpack.c.3.s8 %v4465_v6  ;;  %v7630_v44 = vpop.f32.mrf.mxu0  ;;  %v7643_v28 = vpop.f32.mrf.mxu1  ;;  %v4577_v60 = vld [vmem:[%s9260_s18 + $0x5f0] sm:$0xff] }
 0x4fa   : > { %7856 = vmatpush.bf16.msra.mxu2 %v6857_v32  ;;  %v6713_v17 = vpack.c.bf16 %v5713_v22, %v5705_v19  ;;  %v6104_v24 = vcvt.s32.f32 %v5080_v14  ;;  %v6112_v20 = vcvt.s32.f32 %v5088_v8  ;;  %v7486_v56 = vadd.f32 %v10635_v59, %v10744_v57 }
 0x4fb   : > { %v6777_v16 = vpack.c.bf16 %v5841_v29, %v5833_v9  ;;  %v5977_v21 = vcvt.s32.f32 %v4953_v46  ;;  %v5985_v36 = vcvt.s32.f32 %v4961_v49  ;;  %v8059_v1 = vadd.f32 %v8051_v42, %v10701_v25  ;;  %v4488_v49 = vld [vmem:[%s9260_s18 + $0x328] sm:$0xff] }
 0x4fc   : > { %7832 = vmatpush.bf16.msra.mxu0 %v6713_v17  ;;  %v6912_v4 = vpack.c.bf16 %v6112_v20, %v6104_v24  ;;  %v7499_v37 = vadd.f32 %v10646_v35, %v7486_v56  ;;  %v4665_v27 = vunpack.c.2.s8 %v4393_v61  ;;  %v4673_v7 = vunpack.c.3.s8 %v4393_v61  ;;  %v4457_v56 = vld [vmem:[%s9260_s18 + $0x230] sm:$0xff] }
 0x4fd   : > { %7845 = vmatpush.bf16.msra.mxu1 %v6777_v16  ;;  %v6849_v50 = vpack.c.bf16 %v5985_v36, %v5977_v21  ;;  %v4793_v53 = vunpack.c.2.s8 %v4425_v18  ;;  %v4801_v52 = vunpack.c.3.s8 %v4425_v18  ;;  %v5064_v63 = vunpack.c.0.s8 %v4496_v54  ;;  %v10792_v16 = vld [vmem:[%s9329_s15 + $0x8] sm:$0xff] }
 0x4fe   : > { %7766 = vmatpush.bf16.msra.mxu3 %v6912_v4  ;;  %v10783_v59 = vadd.f32 %v10752_v10, %v7499_v37  ;;  %v5689_v57 = vcvt.s32.f32 %v4665_v27  ;;  %v5072_v3 = vunpack.c.1.s8 %v4496_v54  ;;  %v5697_v13 = vcvt.s32.f32 %v4673_v7 }
 0x4ff   : > { %7857 = vmatpush.bf16.msra.mxu2 %v6849_v50  ;;  %v5817_v42 = vcvt.s32.f32 %v4793_v53  ;;  %v5825_v25 = vcvt.s32.f32 %v4801_v52  ;;  %v4937_v35 = vunpack.c.0.s8 %v4465_v6  ;;  %v8067_v47 = vmax.f32 %v8059_v1, 0.0 }
 0x500   : > { %v6088_v40 = vcvt.s32.f32 %v5064_v63  ;;  %v6096_v34 = vcvt.s32.f32 %v5072_v3  ;;  %v4945_v26 = vunpack.c.1.s8 %v4465_v6  ;;  %v6705_v43 = vpack.c.bf16 %v5697_v13, %v5689_v57 }
 0x501   : > { %v6769_v12 = vpack.c.bf16 %v5825_v25, %v5817_v42  ;;  %v5961_v10 = vcvt.s32.f32 %v4937_v35  ;;  %v4649_v2 = vunpack.c.0.s8 %v4393_v61  ;;  %v4657_v15 = vunpack.c.1.s8 %v4393_v61 }
 0x502   : > { %v6904_v19 = vpack.c.bf16 %v6096_v34, %v6088_v40  ;;  %v5969_v54 = vcvt.s32.f32 %v4945_v26  ;;  %7833 = vmatpush.bf16.msra.mxu0 %v6705_v43  ;;  %v4777_v22 = vunpack.c.0.s8 %v4425_v18  ;;  %v4785_v14 = vunpack.c.1.s8 %v4425_v18  ;;  %v10795_v34 = vpop.f32.mrf.mxu3  ;;  %v10797_v26 = vpop.f32.mrf.mxu2 }
 0x503   : > { %7846 = vmatpush.bf16.msra.mxu1 %v6769_v12  ;;  %v5673_v32 = vcvt.s32.f32 %v4649_v2  ;;  %v5273_v6 = vunpack.c.2.s8 %v4545_v38  ;;  %v10787_v8 = vpack.c.bf16 %v8067_v47, %v8067_v47  ;;  %v5681_v29 = vcvt.s32.f32 %v4657_v15  ;;  %v4609_v15 = vld [vmem:[%s9260_s18 + $0x6f0] sm:$0xff] }
 0x504   : > { %7767 = vmatpush.bf16.msra.mxu3 %v6904_v19  ;;  %v6841_v9 = vpack.c.bf16 %v5969_v54, %v5961_v10  ;;  %v5281_v46 = vunpack.c.3.s8 %v4545_v38  ;;  %v5801_v17 = vcvt.s32.f32 %v4777_v22  ;;  %v5809_v24 = vcvt.s32.f32 %v4785_v14  ;;  %v4640_v10 = vld [vmem:[%s9260_s18 + $0x7e8] sm:$0xff] }
 0x505   : > { %v6297_v20 = vcvt.s32.f32 %v5273_v6  ;;  %v5401_v61 = vunpack.c.2.s8 %v4577_v60  ;;  %v8036_v21 = vperm.slane %v10792_v16, 4  ;;  %v6697_v36 = vpack.c.bf16 %v5681_v29, %v5673_v32 }
 0x506   : > { %7858 = vmatpush.bf16.msra.mxu2 %v6841_v9  ;;  %v6305_v18 = vcvt.s32.f32 %v5281_v46  ;;  %v5409_v1 = vunpack.c.3.s8 %v4577_v60  ;;  %v6761_v4 = vpack.c.bf16 %v5809_v24, %v5801_v17  ;;  %v5048_v27 = vunpack.c.2.s8 %v4488_v49  ;;  %v4537_v17 = vld [vmem:[%s9260_s18 + $0x4b0] sm:$0xff] }
 0x507   : > { %v6425_v37 = vcvt.s32.f32 %v5401_v61  ;;  %v5056_v50 = vunpack.c.3.s8 %v4488_v49  ;;  %7834 = vmatpush.bf16.msra.mxu0 %v6697_v36  ;;  %v4921_v52 = vunpack.c.2.s8 %v4457_v56  ;;  %v4929_v57 = vunpack.c.3.s8 %v4457_v56  ;;  %v4569_v36 = vld [vmem:[%s9260_s18 + $0x5b0] sm:$0xff] }
 0x508   : > { %v7009_v7 = vpack.c.bf16 %v6305_v18, %v6297_v20  ;;  %v6433_v53 = vcvt.s32.f32 %v5409_v1  ;;  %7847 = vmatpush.bf16.msra.mxu1 %v6761_v4  ;;  %v6072_v63 = vcvt.s32.f32 %v5048_v27  ;;  %v5257_v13 = vunpack.c.0.s8 %v4545_v38 }
 0x509   : > { %v6080_v3 = vcvt.s32.f32 %v5056_v50  ;;  %v5265_v42 = vunpack.c.1.s8 %v4545_v38  ;;  %v5945_v35 = vcvt.s32.f32 %v4921_v52  ;;  %v5953_v47 = vcvt.s32.f32 %v4929_v57 }
 0x50a   : > { %v7073_v25 = vpack.c.bf16 %v6433_v53, %v6425_v37  ;;  %v5385_v40 = vunpack.c.0.s8 %v4577_v60  ;;  %7835 = vmatmul.bf16.vlgmr.msra.gmra.mxu0 %v9916_v33  ;;  %v6281_v28 = vcvt.s32.f32 %v5257_v13  ;;  %v5393_v12 = vunpack.c.1.s8 %v4577_v60  ;;  %v7656_v13 = vpop.f32.mrf.mxu2 }
 0x50b   : > { %7879 = vmatpush.bf16.msrb.mxu0 %v7009_v7  ;;  %v6896_v44 = vpack.c.bf16 %v6080_v3, %v6072_v63  ;;  %v6289_v43 = vcvt.s32.f32 %v5265_v42  ;;  %v6833_v2 = vpack.c.bf16 %v5953_v47, %v5945_v35  ;;  %v5032_v19 = vunpack.c.0.s8 %v4488_v49  ;;  %7848 = vmatmul.bf16.vlgmr.msra.gmra.mxu1 %v9984_v39  ;;  %v7565_v3 = vpop.f32.mrf.mxu3 }
 0x50c   : > { %7892 = vmatpush.bf16.msrb.mxu1 %v7073_v25  ;;  %v6409_v38 = vcvt.s32.f32 %v5385_v40  ;;  %v5040_v54 = vunpack.c.1.s8 %v4488_v49  ;;  %v6417_v22 = vcvt.s32.f32 %v5393_v12  ;;  %v4905_v14 = vunpack.c.0.s8 %v4457_v56 }
 0x50d   : > { %7768 = vmatpush.bf16.msra.mxu3 %v6896_v44  ;;  %v7001_v32 = vpack.c.bf16 %v6289_v43, %v6281_v28  ;;  %v4913_v6 = vunpack.c.1.s8 %v4457_v56  ;;  %7859 = vmatpush.bf16.msra.mxu2 %v6833_v2  ;;  %v6056_v9 = vcvt.s32.f32 %v5032_v19  ;;  %v5656_v60 = vunpack.c.2.s8 %v4640_v10 }
 0x50e   : > { %v6064_v29 = vcvt.s32.f32 %v5040_v54  ;;  %v5664_v46 = vunpack.c.3.s8 %v4640_v10  ;;  %v7065_v24 = vpack.c.bf16 %v6417_v22, %v6409_v38  ;;  %v5929_v20 = vcvt.s32.f32 %v4905_v14  ;;  %v4632_v54 = vld [vmem:[%s9260_s18 + $0x7a8] sm:$0xff] }
 0x50f   : > { %7880 = vmatpush.bf16.msrb.mxu0 %v7001_v32  ;;  %v5937_v61 = vcvt.s32.f32 %v4913_v6  ;;  %v5529_v49 = vunpack.c.2.s8 %v4609_v15  ;;  %v6680_v1 = vcvt.s32.f32 %v5656_v60  ;;  %v5537_v37 = vunpack.c.3.s8 %v4609_v15 }
 0x510   : > { %v6888_v18 = vpack.c.bf16 %v6064_v29, %v6056_v9  ;;  %v6688_v4 = vcvt.s32.f32 %v5664_v46  ;;  %7893 = vmatpush.bf16.msrb.mxu1 %v7065_v24  ;;  %v5241_v56 = vunpack.c.2.s8 %v4537_v17  ;;  %v5249_v7 = vunpack.c.3.s8 %v4537_v17  ;;  %v4601_v29 = vld [vmem:[%s9260_s18 + $0x6b0] sm:$0xff] }
 0x511   : > { %v6825_v27 = vpack.c.bf16 %v5937_v61, %v5929_v20  ;;  %v6553_v50 = vcvt.s32.f32 %v5529_v49  ;;  %v6561_v52 = vcvt.s32.f32 %v5537_v37  ;;  %v5369_v57 = vunpack.c.2.s8 %v4569_v36  ;;  %v4529_v20 = vld [vmem:[%s9260_s18 + $0x470] sm:$0xff] }
 0x512   : > { %7769 = vmatpush.bf16.msra.mxu3 %v6888_v18  ;;  %v7200_v53 = vpack.c.bf16 %v6688_v4, %v6680_v1  ;;  %v5377_v63 = vunpack.c.3.s8 %v4569_v36  ;;  %v6265_v42 = vcvt.s32.f32 %v5241_v56  ;;  %v6273_v25 = vcvt.s32.f32 %v5249_v7 }
 0x513   : > { %7860 = vmatpush.bf16.msra.mxu2 %v6825_v27  ;;  %v10807_v35 = vadd.f32 %v10772_v51, %v10770_v11  ;;  %v5640_v47 = vunpack.c.0.s8 %v4640_v10  ;;  %v7137_v40 = vpack.c.bf16 %v6561_v52, %v6553_v50  ;;  %v6393_v44 = vcvt.s32.f32 %v5369_v57 }
 0x514   : > { %v6401_v28 = vcvt.s32.f32 %v5377_v63  ;;  %v5648_v43 = vunpack.c.1.s8 %v4640_v10  ;;  %v6993_v12 = vpack.c.bf16 %v6273_v25, %v6265_v42  ;;  %v5513_v38 = vunpack.c.0.s8 %v4609_v15 }
 0x515   : > { %7770 = vmatmul.bf16.vlgmr.msra.gmra.mxu3 %v10136_v45  ;;  %v6664_v2 = vcvt.s32.f32 %v5640_v47  ;;  %v5521_v19 = vunpack.c.1.s8 %v4609_v15  ;;  %v5225_v11 = vunpack.c.0.s8 %v4537_v17  ;;  %v5233_v51 = vunpack.c.1.s8 %v4537_v17  ;;  %v4561_v17 = vld [vmem:[%s9260_s18 + $0x570] sm:$0xff] }
 0x516   : > { %7814 = vmatpush.bf16.msrb.mxu3 %v7200_v53  ;;  %v7057_v32 = vpack.c.bf16 %v6401_v28, %v6393_v44  ;;  %v6672_v22 = vcvt.s32.f32 %v5648_v43  ;;  %7881 = vmatpush.bf16.msrb.mxu0 %v6993_v12  ;;  %v6537_v14 = vcvt.s32.f32 %v5513_v38  ;;  %v5353_v6 = vunpack.c.0.s8 %v4569_v36 }
 0x517   : > { %7905 = vmatpush.bf16.msrb.mxu2 %v7137_v40  ;;  %v6545_v10 = vcvt.s32.f32 %v5521_v19  ;;  %v5361_v9 = vunpack.c.1.s8 %v4569_v36  ;;  %v6249_v46 = vcvt.s32.f32 %v5225_v11  ;;  %v6257_v15 = vcvt.s32.f32 %v5233_v51 }
 0x518   : > { %7861 = vmatmul.bf16.vlgmr.msra.gmra.mxu2 %v10060_v0  ;;  %7894 = vmatpush.bf16.msrb.mxu1 %v7057_v32  ;;  %v7192_v60 = vpack.c.bf16 %v6672_v22, %v6664_v2  ;;  %v5624_v24 = vunpack.c.2.s8 %v4632_v54  ;;  %v6377_v49 = vcvt.s32.f32 %v5353_v6  ;;  %v5632_v1 = vunpack.c.3.s8 %v4632_v54  ;;  %v10816_v32 = vld [vmem:[%s9260_s18 + $0x768] sm:$0xff] }
 0x519   : > { %v7129_v61 = vpack.c.bf16 %v6545_v10, %v6537_v14  ;;  %v6385_v18 = vcvt.s32.f32 %v5361_v9  ;;  %v6985_v4 = vpack.c.bf16 %v6257_v15, %v6249_v46  ;;  %v5497_v27 = vunpack.c.2.s8 %v4601_v29  ;;  %v10819_v46 = vpop.f32.mrf.mxu0  ;;  %v10821_v15 = vpop.f32.mrf.mxu1 }
 0x51a   : > { %7815 = vmatpush.bf16.msrb.mxu3 %v7192_v60  ;;  %v6648_v37 = vcvt.s32.f32 %v5624_v24  ;;  %v5505_v50 = vunpack.c.3.s8 %v4601_v29  ;;  %v6656_v36 = vcvt.s32.f32 %v5632_v1  ;;  %v5209_v7 = vunpack.c.2.s8 %v4529_v20 }
 0x51b   : > { %7906 = vmatpush.bf16.msrb.mxu2 %v7129_v61  ;;  %v7049_v56 = vpack.c.bf16 %v6385_v18, %v6377_v49  ;;  %v5217_v53 = vunpack.c.3.s8 %v4529_v20  ;;  %7882 = vmatpush.bf16.msrb.mxu0 %v6985_v4  ;;  %v6521_v52 = vcvt.s32.f32 %v5497_v27  ;;  %v5337_v63 = vunpack.c.2.s8 %v4561_v17 }
 0x51c   : > { %v6529_v57 = vcvt.s32.f32 %v5505_v50  ;;  %v5345_v3 = vunpack.c.3.s8 %v4561_v17  ;;  %v7184_v13 = vpack.c.bf16 %v6656_v36, %v6648_v37  ;;  %v6233_v42 = vcvt.s32.f32 %v5209_v7  ;;  %v4521_v37 = vld [vmem:[%s9260_s18 + $0x430] sm:$0xff] }
 0x51d   : > { %7895 = vmatpush.bf16.msrb.mxu1 %v7049_v56  ;;  %v6241_v25 = vcvt.s32.f32 %v5217_v53  ;;  %v5608_v47 = vunpack.c.0.s8 %v4632_v54  ;;  %v6361_v44 = vcvt.s32.f32 %v5337_v63  ;;  %v5616_v43 = vunpack.c.1.s8 %v4632_v54  ;;  %v4593_v54 = vld [vmem:[%s9260_s18 + $0x670] sm:$0xff] }
 0x51e   : > { %v7121_v40 = vpack.c.bf16 %v6529_v57, %v6521_v52  ;;  %v6369_v28 = vcvt.s32.f32 %v5345_v3  ;;  %7816 = vmatpush.bf16.msrb.mxu3 %v7184_v13  ;;  %v5481_v38 = vunpack.c.0.s8 %v4601_v29  ;;  %v5489_v19 = vunpack.c.1.s8 %v4601_v29  ;;  %v4553_v36 = vld [vmem:[%s9260_s18 + $0x530] sm:$0xff] }
 0x51f   : > { %v6977_v12 = vpack.c.bf16 %v6241_v25, %v6233_v42  ;;  %v6632_v2 = vcvt.s32.f32 %v5608_v47  ;;  %v6640_v11 = vcvt.s32.f32 %v5616_v43  ;;  %v5193_v51 = vunpack.c.0.s8 %v4529_v20 }
 0x520   : > { %7907 = vmatpush.bf16.msrb.mxu2 %v7121_v40  ;;  %v7041_v22 = vpack.c.bf16 %v6369_v28, %v6361_v44  ;;  %v5201_v14 = vunpack.c.1.s8 %v4529_v20  ;;  %v6505_v10 = vcvt.s32.f32 %v5481_v38  ;;  %v6513_v6 = vcvt.s32.f32 %v5489_v19 }
 0x521   : > { %7883 = vmatpush.bf16.msrb.mxu0 %v6977_v12  ;;  %v5321_v9 = vunpack.c.0.s8 %v4561_v17  ;;  %v5329_v60 = vunpack.c.1.s8 %v4561_v17  ;;  %v7176_v29 = vpack.c.bf16 %v6640_v11, %v6632_v2  ;;  %v6217_v24 = vcvt.s32.f32 %v5193_v51  ;;  %v7682_v38 = vpop.f32.mrf.mxu0  ;;  %v7695_v19 = vpop.f32.mrf.mxu1 }
 0x522   : > { %7896 = vmatpush.bf16.msrb.mxu1 %v7041_v22  ;;  %v6225_v61 = vcvt.s32.f32 %v5201_v14  ;;  %v5592_v49 = vunpack.c.2.s8 %v10816_v32  ;;  %v7113_v18 = vpack.c.bf16 %v6513_v6, %v6505_v10  ;;  %v5600_v4 = vunpack.c.3.s8 %v10816_v32  ;;  %v4418_v14 = vld [vmem:[%s9260_s18 + $0xf8] sm:$0xff]  ;;  %v10842_v19 = vpop.f32.mrf.mxu3 }
 0x523   : > { %v6345_v20 = vcvt.s32.f32 %v5321_v9  ;;  %v6353_v1 = vcvt.s32.f32 %v5329_v60  ;;  %7817 = vmatpush.bf16.msrb.mxu3 %v7176_v29  ;;  %v5465_v50 = vunpack.c.2.s8 %v4593_v54  ;;  %v5473_v56 = vunpack.c.3.s8 %v4593_v54  ;;  %v4450_v29 = vld [vmem:[%s9260_s18 + $0x1f8] sm:$0xff] }
 0x524   : > { %v6969_v17 = vpack.c.bf16 %v6225_v61, %v6217_v24  ;;  %v6616_v27 = vcvt.s32.f32 %v5592_v49  ;;  %7908 = vmatpush.bf16.msrb.mxu2 %v7113_v18  ;;  %v6624_v53 = vcvt.s32.f32 %v5600_v4  ;;  %v7564_v52 = vadd.f32 %v10795_v34, %v10741_v41 }
 0x525   : > { %v7033_v7 = vpack.c.bf16 %v6353_v1, %v6345_v20  ;;  %v10831_v57 = vadd.f32 %v10797_v26, %v10807_v35  ;;  %v6489_v63 = vcvt.s32.f32 %v5465_v50  ;;  %v6497_v3 = vcvt.s32.f32 %v5473_v56 }
 0x526   : > { %7884 = vmatpush.bf16.msrb.mxu0 %v6969_v17  ;;  %v5177_v13 = vunpack.c.2.s8 %v4521_v37  ;;  %v5185_v42 = vunpack.c.3.s8 %v4521_v37  ;;  %v7168_v25 = vpack.c.bf16 %v6624_v53, %v6616_v27  ;;  %v10834_v47 = vadd.f32 %v10729_v55, %v7564_v52 }
 0x527   : > { %7897 = vmatpush.bf16.msrb.mxu1 %v7033_v7  ;;  %v5305_v40 = vunpack.c.2.s8 %v4553_v36  ;;  %v5313_v44 = vunpack.c.3.s8 %v4553_v36  ;;  %v7105_v28 = vpack.c.bf16 %v6497_v3, %v6489_v63  ;;  %v5576_v34 = vunpack.c.0.s8 %v10816_v32  ;;  %v4585_v7 = vld [vmem:[%s9260_s18 + $0x630] sm:$0xff] }
 0x528   : > { %v6201_v43 = vcvt.s32.f32 %v5177_v13  ;;  %v6209_v41 = vcvt.s32.f32 %v5185_v42  ;;  %7818 = vmatpush.bf16.msrb.mxu3 %v7168_v25  ;;  %v5584_v12 = vunpack.c.1.s8 %v10816_v32  ;;  %v5449_v2 = vunpack.c.0.s8 %v4593_v54 }
 0x529   : > { %v6329_v26 = vcvt.s32.f32 %v5305_v40  ;;  %v6337_v35 = vcvt.s32.f32 %v5313_v44  ;;  %7909 = vmatpush.bf16.msrb.mxu2 %v7105_v28  ;;  %v6600_v22 = vcvt.s32.f32 %v5576_v34  ;;  %v5457_v11 = vunpack.c.1.s8 %v4593_v54  ;;  %v4616_v54 = vld [vmem:[%s9260_s18 + $0x728] sm:$0xff] }
 0x52a   : > { %v6961_v55 = vpack.c.bf16 %v6209_v41, %v6201_v43  ;;  %v5161_v51 = vunpack.c.0.s8 %v4521_v37  ;;  %v6608_v6 = vcvt.s32.f32 %v5584_v12  ;;  %v6473_v9 = vcvt.s32.f32 %v5449_v2 }
 0x52b   : > { %v7025_v10 = vpack.c.bf16 %v6337_v35, %v6329_v26  ;;  %v5169_v60 = vunpack.c.1.s8 %v4521_v37  ;;  %v6481_v24 = vcvt.s32.f32 %v5457_v11  ;;  %v5289_v32 = vunpack.c.0.s8 %v4553_v36 }
 0x52c   : > { %7885 = vmatpush.bf16.msrb.mxu0 %v6961_v55  ;;  %v6185_v61 = vcvt.s32.f32 %v5161_v51  ;;  %v5297_v49 = vunpack.c.1.s8 %v4553_v36  ;;  %v7160_v18 = vpack.c.bf16 %v6608_v6, %v6600_v22  ;;  %v4762_v1 = vunpack.c.2.s8 %v4418_v14 }
 0x52d   : > { %7898 = vmatpush.bf16.msrb.mxu1 %v7025_v10  ;;  %v6193_v20 = vcvt.s32.f32 %v5169_v60  ;;  %v4770_v4 = vunpack.c.3.s8 %v4418_v14  ;;  %v7097_v17 = vpack.c.bf16 %v6481_v24, %v6473_v9  ;;  %v6313_v27 = vcvt.s32.f32 %v5289_v32  ;;  %v4513_v10 = vld [vmem:[%s9260_s18 + $0x3f0] sm:$0xff]  ;;  %v4482_v24 = vld [vmem:[%s9260_s18 + $0x2f8] sm:$0xff] }
 0x52e   : > { %v6321_v50 = vcvt.s32.f32 %v5297_v49  ;;  %v4890_v56 = vunpack.c.2.s8 %v4450_v29  ;;  %7819 = vmatpush.bf16.msrb.mxu3 %v7160_v18  ;;  %v5786_v53 = vcvt.s32.f32 %v4762_v1  ;;  %v4898_v63 = vunpack.c.3.s8 %v4450_v29 }
 0x52f   : > { %v6953_v37 = vpack.c.bf16 %v6193_v20, %v6185_v61  ;;  %v5794_v52 = vcvt.s32.f32 %v4770_v4  ;;  %7910 = vmatpush.bf16.msrb.mxu2 %v7097_v17  ;;  %v5560_v36 = vunpack.c.2.s8 %v4616_v54  ;;  %v5568_v42 = vunpack.c.3.s8 %v4616_v54  ;;  %v4410_v17 = vld [vmem:[%s9260_s18 + $0xb8] sm:$0xff] }
 0x530   : > { %v7017_v3 = vpack.c.bf16 %v6321_v50, %v6313_v27  ;;  %v5914_v13 = vcvt.s32.f32 %v4890_v56  ;;  %v5922_v40 = vcvt.s32.f32 %v4898_v63  ;;  %v5433_v44 = vunpack.c.2.s8 %v4585_v7 }
 0x531   : > { %7886 = vmatpush.bf16.msrb.mxu0 %v6953_v37  ;;  %v6754_v25 = vpack.c.bf16 %v5794_v52, %v5786_v53  ;;  %v5441_v28 = vunpack.c.3.s8 %v4585_v7  ;;  %v6584_v43 = vcvt.s32.f32 %v5560_v36  ;;  %v6592_v41 = vcvt.s32.f32 %v5568_v42  ;;  %v4442_v37 = vld [vmem:[%s9260_s18 + $0x1b8] sm:$0xff] }
 0x532   : > { %7899 = vmatpush.bf16.msrb.mxu1 %v7017_v3  ;;  %v4746_v34 = vunpack.c.0.s8 %v4418_v14  ;;  %v4754_v26 = vunpack.c.1.s8 %v4418_v14  ;;  %v6818_v35 = vpack.c.bf16 %v5922_v40, %v5914_v13  ;;  %v6457_v12 = vcvt.s32.f32 %v5433_v44 }
 0x533   : > { %v6465_v2 = vcvt.s32.f32 %v5441_v28  ;;  %v4874_v38 = vunpack.c.0.s8 %v4450_v29  ;;  %v7152_v55 = vpack.c.bf16 %v6592_v41, %v6584_v43  ;;  %v4882_v51 = vunpack.c.1.s8 %v4450_v29  ;;  %v7617_v41 = vpop.f32.mrf.mxu3 }
 0x534   : > { %7887 = vmatmul.bf16.vlgmr.msrb.gmra.mxu0 %v10224_v48  ;;  %v5770_v22 = vcvt.s32.f32 %v4746_v34  ;;  %v5778_v11 = vcvt.s32.f32 %v4754_v26  ;;  %v5544_v14 = vunpack.c.0.s8 %v4616_v54  ;;  %v5552_v60 = vunpack.c.1.s8 %v4616_v54 }
 0x535   : > { %7931 = vmatpush.bf16.msra.mxu0 %v6754_v25  ;;  %v7089_v6 = vpack.c.bf16 %v6465_v2, %v6457_v12  ;;  %v5898_v9 = vcvt.s32.f32 %v4874_v38  ;;  %7820 = vmatpush.bf16.msrb.mxu3 %v7152_v55  ;;  %v5906_v32 = vcvt.s32.f32 %v4882_v51  ;;  %v5417_v49 = vunpack.c.0.s8 %v4585_v7  ;;  %v10850_v25 = vpop.f32.mrf.mxu2 }
 0x536   : > { %7944 = vmatpush.bf16.msra.mxu1 %v6818_v35  ;;  %v6746_v61 = vpack.c.bf16 %v5778_v11, %v5770_v22  ;;  %v5425_v18 = vunpack.c.1.s8 %v4585_v7  ;;  %v6568_v20 = vcvt.s32.f32 %v5544_v14  ;;  %v6576_v1 = vcvt.s32.f32 %v5552_v60  ;;  %v4505_v14 = vld [vmem:[%s9260_s18 + $0x3b0] sm:$0xff] }
 0x537   : > { %7900 = vmatmul.bf16.vlgmr.msrb.gmra.mxu1 %v10322_v23  ;;  %7911 = vmatpush.bf16.msrb.mxu2 %v7089_v6  ;;  %v5145_v29 = vunpack.c.2.s8 %v4513_v10  ;;  %v5153_v4 = vunpack.c.3.s8 %v4513_v10  ;;  %v6810_v27 = vpack.c.bf16 %v5906_v32, %v5898_v9  ;;  %v6441_v50 = vcvt.s32.f32 %v5417_v49 }
 0x538   : > { %v6449_v56 = vcvt.s32.f32 %v5425_v18  ;;  %v5018_v54 = vunpack.c.2.s8 %v4482_v24  ;;  %v7144_v53 = vpack.c.bf16 %v6576_v1, %v6568_v20  ;;  %v5026_v3 = vunpack.c.3.s8 %v4482_v24 }
 0x539   : > { %7932 = vmatpush.bf16.msra.mxu0 %v6746_v61  ;;  %v6169_v52 = vcvt.s32.f32 %v5145_v29  ;;  %v6177_v63 = vcvt.s32.f32 %v5153_v4  ;;  %v4730_v7 = vunpack.c.2.s8 %v4410_v17  ;;  %v4738_v42 = vunpack.c.3.s8 %v4410_v17 }
 0x53a   : > { %7945 = vmatpush.bf16.msra.mxu1 %v6810_v27  ;;  %v7081_v13 = vpack.c.bf16 %v6449_v56, %v6441_v50  ;;  %v6042_v36 = vcvt.s32.f32 %v5018_v54  ;;  %7821 = vmatpush.bf16.msrb.mxu3 %v7144_v53  ;;  %v6050_v44 = vcvt.s32.f32 %v5026_v3  ;;  %v4858_v28 = vunpack.c.2.s8 %v4442_v37  ;;  %v4402_v56 = vld [vmem:[%s9260_s18 + $0x78] sm:$0xff] }
 0x53b   : > { %v6945_v40 = vpack.c.bf16 %v6177_v63, %v6169_v52  ;;  %v4866_v43 = vunpack.c.3.s8 %v4442_v37  ;;  %v5754_v34 = vcvt.s32.f32 %v4730_v7  ;;  %v5762_v26 = vcvt.s32.f32 %v4738_v42  ;;  %v4434_v63 = vld [vmem:[%s9260_s18 + $0x178] sm:$0xff] }
 0x53c   : > { %7912 = vmatpush.bf16.msrb.mxu2 %v7081_v13  ;;  %v5129_v35 = vunpack.c.0.s8 %v4513_v10  ;;  %v5137_v12 = vunpack.c.1.s8 %v4513_v10  ;;  %v6882_v2 = vpack.c.bf16 %v6050_v44, %v6042_v36  ;;  %v5882_v38 = vcvt.s32.f32 %v4858_v28  ;;  %v4474_v10 = vld [vmem:[%s9260_s18 + $0x2b8] sm:$0xff] }
 0x53d   : > { %v5890_v55 = vcvt.s32.f32 %v4866_v43  ;;  %v5002_v22 = vunpack.c.0.s8 %v4482_v24  ;;  %v6738_v11 = vpack.c.bf16 %v5762_v26, %v5754_v34  ;;  %7822 = vmatmul.bf16.vlgmr.msrb.gmra.mxu3 %v10466_v31  ;;  %v5010_v9 = vunpack.c.1.s8 %v4482_v24  ;;  %v7708_v3 = vpop.f32.mrf.mxu2 }
 0x53e   : > { %7866 = vmatpush.bf16.msra.mxu3 %v6945_v40  ;;  %v6153_v51 = vcvt.s32.f32 %v5129_v35  ;;  %v6161_v6 = vcvt.s32.f32 %v5137_v12  ;;  %v4714_v32 = vunpack.c.0.s8 %v4410_v17  ;;  %v4722_v49 = vunpack.c.1.s8 %v4410_v17 }
 0x53f   : > { %v6802_v60 = vpack.c.bf16 %v5890_v55, %v5882_v38  ;;  %v6026_v61 = vcvt.s32.f32 %v5002_v22  ;;  %7933 = vmatpush.bf16.msra.mxu0 %v6738_v11  ;;  %7913 = vmatmul.bf16.vlgmr.msrb.gmra.mxu2 %v10382_v58  ;;  %v6034_v20 = vcvt.s32.f32 %v5010_v9  ;;  %v4842_v1 = vunpack.c.0.s8 %v4442_v37 }
 0x540   : > { %7957 = vmatpush.bf16.msra.mxu2 %v6882_v2  ;;  %v6937_v18 = vpack.c.bf16 %v6161_v6, %v6153_v51  ;;  %v4850_v29 = vunpack.c.1.s8 %v4442_v37  ;;  %v5738_v4 = vcvt.s32.f32 %v4714_v32  ;;  %v5746_v27 = vcvt.s32.f32 %v4722_v49  ;;  %v4497_v32 = vld [vmem:[%s9260_s18 + $0x370] sm:$0xff] }
 0x541   : > { %7946 = vmatpush.bf16.msra.mxu1 %v6802_v60  ;;  %v5113_v24 = vunpack.c.2.s8 %v4505_v14  ;;  %v5121_v50 = vunpack.c.3.s8 %v4505_v14  ;;  %v6874_v54 = vpack.c.bf16 %v6034_v20, %v6026_v61  ;;  %v5866_v53 = vcvt.s32.f32 %v4842_v1 }
 0x542   : > { %7867 = vmatpush.bf16.msra.mxu3 %v6937_v18  ;;  %v5874_v52 = vcvt.s32.f32 %v4850_v29  ;;  %v4986_v17 = vunpack.c.2.s8 %v4474_v10  ;;  %v6730_v13 = vpack.c.bf16 %v5746_v27, %v5738_v4  ;;  %v4994_v42 = vunpack.c.3.s8 %v4474_v10  ;;  %v4466_v29 = vld [vmem:[%s9260_s18 + $0x278] sm:$0xff] }
 0x543   : > { %v6137_v36 = vcvt.s32.f32 %v5113_v24  ;;  %v6145_v7 = vcvt.s32.f32 %v5121_v50  ;;  %v4698_v44 = vunpack.c.2.s8 %v4402_v56  ;;  %v4706_v28 = vunpack.c.3.s8 %v4402_v56 }
 0x544   : > { %7958 = vmatpush.bf16.msra.mxu2 %v6874_v54  ;;  %v6794_v40 = vpack.c.bf16 %v5874_v52, %v5866_v53  ;;  %v6010_v37 = vcvt.s32.f32 %v4986_v17  ;;  %7934 = vmatpush.bf16.msra.mxu0 %v6730_v13  ;;  %v6018_v41 = vcvt.s32.f32 %v4994_v42  ;;  %v4826_v34 = vunpack.c.2.s8 %v4434_v63  ;;  %v10862_v17 = vpop.f32.mrf.mxu1 }
 0x545   : > { %v6929_v43 = vpack.c.bf16 %v6145_v7, %v6137_v36  ;;  %v4834_v26 = vunpack.c.3.s8 %v4434_v63  ;;  %v5722_v35 = vcvt.s32.f32 %v4698_v44  ;;  %v5730_v12 = vcvt.s32.f32 %v4706_v28  ;;  %v4394_v7 = vld [vmem:[%s9260_s18 + $0x38] sm:$0xff] }
 0x546   : > { %7947 = vmatpush.bf16.msra.mxu1 %v6794_v40  ;;  %v5097_v2 = vunpack.c.0.s8 %v4505_v14  ;;  %v5105_v38 = vunpack.c.1.s8 %v4505_v14  ;;  %v6866_v55 = vpack.c.bf16 %v6018_v41, %v6010_v37  ;;  %v5850_v22 = vcvt.s32.f32 %v4826_v34  ;;  %v4426_v44 = vld [vmem:[%s9260_s18 + $0x138] sm:$0xff] }
 0x547   : > { %7868 = vmatpush.bf16.msra.mxu3 %v6929_v43  ;;  %v5858_v11 = vcvt.s32.f32 %v4834_v26  ;;  %v4970_v51 = vunpack.c.0.s8 %v4474_v10  ;;  %v6722_v6 = vpack.c.bf16 %v5730_v12, %v5722_v35  ;;  %v4978_v61 = vunpack.c.1.s8 %v4474_v10  ;;  %v10860_v10 = vpop.f32.mrf.mxu0 }
 0x548   : > { %v6121_v9 = vcvt.s32.f32 %v5097_v2  ;;  %v6129_v60 = vcvt.s32.f32 %v5105_v38  ;;  %7959 = vmatpush.bf16.msra.mxu2 %v6866_v55  ;;  %v4682_v20 = vunpack.c.0.s8 %v4402_v56  ;;  %v4690_v1 = vunpack.c.1.s8 %v4402_v56 }
 0x549   : > { %v6786_v49 = vpack.c.bf16 %v5858_v11, %v5850_v22  ;;  %v5994_v18 = vcvt.s32.f32 %v4970_v51  ;;  %7935 = vmatpush.bf16.msra.mxu0 %v6722_v6  ;;  %v6002_v14 = vcvt.s32.f32 %v4978_v61  ;;  %v4810_v27 = vunpack.c.0.s8 %v4434_v63 }
 0x54a   : > { %v6921_v4 = vpack.c.bf16 %v6129_v60, %v6121_v9  ;;  %v4818_v24 = vunpack.c.1.s8 %v4434_v63  ;;  %v5706_v50 = vcvt.s32.f32 %v4682_v20  ;;  %v5714_v54 = vcvt.s32.f32 %v4690_v1 }
 0x54b   : > { %7948 = vmatpush.bf16.msra.mxu1 %v6786_v49  ;;  %v5081_v53 = vunpack.c.2.s8 %v4497_v32  ;;  %v5089_v52 = vunpack.c.3.s8 %v4497_v32  ;;  %v6858_v3 = vpack.c.bf16 %v6002_v14, %v5994_v18  ;;  %v5834_v56 = vcvt.s32.f32 %v4810_v27  ;;  %v4546_v27 = vld [vmem:[%s9260_s18 + $0x4f8] sm:$0xff] }
 0x54c   : > { %7869 = vmatpush.bf16.msra.mxu3 %v6921_v4  ;;  %v5842_v13 = vcvt.s32.f32 %v4818_v24  ;;  %v4954_v36 = vunpack.c.2.s8 %v4466_v29  ;;  %v6714_v42 = vpack.c.bf16 %v5714_v54, %v5706_v50  ;;  %v4962_v63 = vunpack.c.3.s8 %v4466_v29  ;;  %v7747_v20 = vpop.f32.mrf.mxu1 }
 0x54d   : > { %v6105_v40 = vcvt.s32.f32 %v5081_v53  ;;  %v6113_v37 = vcvt.s32.f32 %v5089_v52  ;;  %v8052_v28 = vperm.slane %v10792_v16, 5  ;;  %7960 = vmatpush.bf16.msra.mxu2 %v6858_v3  ;;  %v7590_v34 = vadd.f32 %v10731_v5, %v10834_v47  ;;  %v4578_v53 = vld [vmem:[%s9260_s18 + $0x5f8] sm:$0xff]  ;;  %v10881_v52 = vld [vmem:[%s9329_s15 + $0x10] sm:$0xff] }
 0x54e   : > { %v6778_v43 = vpack.c.bf16 %v5842_v13, %v5834_v56  ;;  %v5978_v41 = vcvt.s32.f32 %v4954_v36  ;;  %v8044_v26 = vmul.f32 %v8036_v21, %v10688_v30  ;;  %7936 = vmatpush.bf16.msra.mxu0 %v6714_v42  ;;  %v5986_v12 = vcvt.s32.f32 %v4962_v63  ;;  %v4489_v63 = vld [vmem:[%s9260_s18 + $0x330] sm:$0xff] }
 0x54f   : > { %v6913_v35 = vpack.c.bf16 %v6113_v37, %v6105_v40  ;;  %v4666_v2 = vunpack.c.2.s8 %v4394_v7  ;;  %v7603_v38 = vadd.f32 %v10760_v62, %v7590_v34  ;;  %v4674_v55 = vunpack.c.3.s8 %v4394_v7  ;;  %v7734_v18 = vpop.f32.mrf.mxu0  ;;  %v4458_v34 = vld [vmem:[%s9260_s18 + $0x238] sm:$0xff] }
 0x550   : > { %7949 = vmatpush.bf16.msra.mxu1 %v6778_v43  ;;  %v4794_v22 = vunpack.c.2.s8 %v4426_v44  ;;  %v4802_v11 = vunpack.c.3.s8 %v4426_v44  ;;  %v6850_v51 = vpack.c.bf16 %v5986_v12, %v5978_v41  ;;  %v5065_v9 = vunpack.c.0.s8 %v4497_v32  ;;  %v10892_v18 = vpop.f32.mrf.mxu2 }
 0x551   : > { %7870 = vmatpush.bf16.msra.mxu3 %v6913_v35  ;;  %v5690_v6 = vcvt.s32.f32 %v4666_v2  ;;  %v5073_v60 = vunpack.c.1.s8 %v4497_v32  ;;  %v10874_v5 = vadd.f32 %v10842_v19, %v7603_v38  ;;  %v5698_v30 = vcvt.s32.f32 %v4674_v55 }
 0x552   : > { %v5818_v16 = vcvt.s32.f32 %v4794_v22  ;;  %v5826_v21 = vcvt.s32.f32 %v4802_v11  ;;  %7961 = vmatpush.bf16.msra.mxu2 %v6850_v51  ;;  %v6089_v47 = vcvt.s32.f32 %v5065_v9  ;;  %v4938_v61 = vunpack.c.0.s8 %v4466_v29 }
 0x553   : > { %v6097_v62 = vcvt.s32.f32 %v5073_v60  ;;  %v4946_v49 = vunpack.c.1.s8 %v4466_v29  ;;  %v10876_v1 = vadd.f32 %v8052_v28, %v8044_v26  ;;  %v6706_v4 = vpack.c.bf16 %v5698_v30, %v5690_v6 }
 0x554   : > { %v6770_v32 = vpack.c.bf16 %v5826_v21, %v5818_v16  ;;  %v4650_v14 = vunpack.c.0.s8 %v4394_v7  ;;  %v5962_v24 = vcvt.s32.f32 %v4938_v61  ;;  %v4658_v54 = vunpack.c.1.s8 %v4394_v7 }
 0x555   : > { %v6905_v19 = vpack.c.bf16 %v6097_v62, %v6089_v47  ;;  %v5970_v50 = vcvt.s32.f32 %v4946_v49  ;;  %v8037_v3 = vperm.slane %v10881_v52, 4  ;;  %7937 = vmatpush.bf16.msra.mxu0 %v6706_v4  ;;  %v4778_v56 = vunpack.c.0.s8 %v4426_v44  ;;  %v10890_v49 = vpop.f32.mrf.mxu3 }
 0x556   : > { %7950 = vmatpush.bf16.msra.mxu1 %v6770_v32  ;;  %v5674_v29 = vcvt.s32.f32 %v4650_v14  ;;  %v4786_v13 = vunpack.c.1.s8 %v4426_v44  ;;  %v5682_v42 = vcvt.s32.f32 %v4658_v54  ;;  %v5274_v40 = vunpack.c.2.s8 %v4546_v27 }
 0x557   : > { %7871 = vmatpush.bf16.msra.mxu3 %v6905_v19  ;;  %v6842_v36 = vpack.c.bf16 %v5970_v50, %v5962_v24  ;;  %v5282_v37 = vunpack.c.3.s8 %v4546_v27  ;;  %v8053_v28 = vperm.slane %v10881_v52, 5  ;;  %v5802_v7 = vcvt.s32.f32 %v4778_v56  ;;  %v10896_v19 = vld [vmem:[%s9260_s18 + $0x7f0] sm:$0xff] }
 0x558   : > { %v5810_v43 = vcvt.s32.f32 %v4786_v13  ;;  %v5402_v41 = vunpack.c.2.s8 %v4578_v53  ;;  %v6698_v26 = vpack.c.bf16 %v5682_v42, %v5674_v29  ;;  %v6298_v35 = vcvt.s32.f32 %v5274_v40 }
 0x559   : > { %7962 = vmatpush.bf16.msra.mxu2 %v6842_v36  ;;  %v6306_v12 = vcvt.s32.f32 %v5282_v37  ;;  %v5410_v2 = vunpack.c.3.s8 %v4578_v53  ;;  %v10888_v38 = vmul.f32 %v8037_v3, %v10783_v59  ;;  %v5049_v22 = vunpack.c.2.s8 %v4489_v63  ;;  %v4610_v3 = vld [vmem:[%s9260_s18 + $0x6f8] sm:$0xff] }
 0x55a   : > { %v6762_v44 = vpack.c.bf16 %v5810_v43, %v5802_v7  ;;  %v6426_v55 = vcvt.s32.f32 %v5402_v41  ;;  %7938 = vmatpush.bf16.msra.mxu0 %v6698_v26  ;;  %v5057_v6 = vunpack.c.3.s8 %v4489_v63  ;;  %v4922_v9 = vunpack.c.2.s8 %v4458_v34  ;;  %v4538_v37 = vld [vmem:[%s9260_s18 + $0x4b8] sm:$0xff] }
 0x55b   : > { %v7010_v11 = vpack.c.bf16 %v6306_v12, %v6298_v35  ;;  %v6434_v51 = vcvt.s32.f32 %v5410_v2  ;;  %v6073_v60 = vcvt.s32.f32 %v5049_v22  ;;  %v4930_v30 = vunpack.c.3.s8 %v4458_v34 }
 0x55c   : > { %7951 = vmatpush.bf16.msra.mxu1 %v6762_v44  ;;  %v5258_v16 = vunpack.c.0.s8 %v4546_v27  ;;  %v5266_v21 = vunpack.c.1.s8 %v4546_v27  ;;  %v6081_v62 = vcvt.s32.f32 %v5057_v6  ;;  %v5946_v59 = vcvt.s32.f32 %v4922_v9 }
 0x55d   : > { %v7074_v47 = vpack.c.bf16 %v6434_v51, %v6426_v55  ;;  %v5386_v61 = vunpack.c.0.s8 %v4578_v53  ;;  %7939 = vmatmul.bf16.vlgmr.msra.gmra.mxu0 %v9916_v33  ;;  %v5954_v20 = vcvt.s32.f32 %v4930_v30  ;;  %v5394_v14 = vunpack.c.1.s8 %v4578_v53  ;;  %v7760_v30 = vpop.f32.mrf.mxu2 }
 0x55e   : > { %7983 = vmatpush.bf16.msrb.mxu0 %v7010_v11  ;;  %v6282_v4 = vcvt.s32.f32 %v5258_v16  ;;  %v6290_v32 = vcvt.s32.f32 %v5266_v21  ;;  %v6897_v27 = vpack.c.bf16 %v6081_v62, %v6073_v60  ;;  %v5033_v50 = vunpack.c.0.s8 %v4489_v63  ;;  %v7669_v60 = vpop.f32.mrf.mxu3 }
 0x55f   : > { %v6410_v24 = vcvt.s32.f32 %v5386_v61  ;;  %v5041_v54 = vunpack.c.1.s8 %v4489_v63  ;;  %7952 = vmatmul.bf16.vlgmr.msra.gmra.mxu1 %v9984_v39  ;;  %v6834_v29 = vpack.c.bf16 %v5954_v20, %v5946_v59  ;;  %v6418_v13 = vcvt.s32.f32 %v5394_v14  ;;  %v4570_v39 = vld [vmem:[%s9260_s18 + $0x5b8] sm:$0xff] }
 0x560   : > { %7996 = vmatpush.bf16.msrb.mxu1 %v7074_v47  ;;  %v7002_v56 = vpack.c.bf16 %v6290_v32, %v6282_v4  ;;  %v4906_v33 = vunpack.c.0.s8 %v4458_v34  ;;  %7872 = vmatpush.bf16.msra.mxu3 %v6897_v27  ;;  %v6057_v36 = vcvt.s32.f32 %v5033_v50  ;;  %v4914_v53 = vunpack.c.1.s8 %v4458_v34  ;;  %v4633_v50 = vld [vmem:[%s9260_s18 + $0x7b0] sm:$0xff] }
 0x561   : > { %v6065_v42 = vcvt.s32.f32 %v5041_v54  ;;  %v5657_v40 = vunpack.c.2.s8 %v10896_v19  ;;  %7963 = vmatpush.bf16.msra.mxu2 %v6834_v29  ;;  %v7066_v7 = vpack.c.bf16 %v6418_v13, %v6410_v24  ;;  %v5665_v63 = vunpack.c.3.s8 %v10896_v19 }
 0x562   : > { %7984 = vmatpush.bf16.msrb.mxu0 %v7002_v56  ;;  %v5930_v43 = vcvt.s32.f32 %v4906_v33  ;;  %v5530_v41 = vunpack.c.2.s8 %v4610_v3  ;;  %v5938_v35 = vcvt.s32.f32 %v4914_v53  ;;  %v5538_v2 = vunpack.c.3.s8 %v4610_v3 }
 0x563   : > { %v6889_v26 = vpack.c.bf16 %v6065_v42, %v6057_v36  ;;  %v6681_v12 = vcvt.s32.f32 %v5657_v40  ;;  %v6689_v44 = vcvt.s32.f32 %v5665_v63  ;;  %v5242_v22 = vunpack.c.2.s8 %v4538_v37  ;;  %v4602_v36 = vld [vmem:[%s9260_s18 + $0x6b8] sm:$0xff] }
 0x564   : > { %7997 = vmatpush.bf16.msrb.mxu1 %v7066_v7  ;;  %v6554_v55 = vcvt.s32.f32 %v5530_v41  ;;  %v5250_v34 = vunpack.c.3.s8 %v4538_v37  ;;  %v6826_v11 = vpack.c.bf16 %v5938_v35, %v5930_v43  ;;  %v6562_v51 = vcvt.s32.f32 %v5538_v2  ;;  %v4530_v7 = vld [vmem:[%s9260_s18 + $0x478] sm:$0xff] }
 0x565   : > { %7873 = vmatpush.bf16.msra.mxu3 %v6889_v26  ;;  %v5370_v6 = vunpack.c.2.s8 %v4570_v39  ;;  %v5378_v9 = vunpack.c.3.s8 %v4570_v39  ;;  %v7201_v16 = vpack.c.bf16 %v6689_v44, %v6681_v12  ;;  %v6266_v21 = vcvt.s32.f32 %v5242_v22 }
 0x566   : > { %v6274_v47 = vcvt.s32.f32 %v5250_v34  ;;  %v10906_v62 = vadd.f32 %v10862_v17, %v10860_v10  ;;  %7964 = vmatpush.bf16.msra.mxu2 %v6826_v11  ;;  %v7138_v59 = vpack.c.bf16 %v6562_v51, %v6554_v55  ;;  %v5641_v4 = vunpack.c.0.s8 %v10896_v19 }
 0x567   : > { %v6394_v61 = vcvt.s32.f32 %v5370_v6  ;;  %v6402_v20 = vcvt.s32.f32 %v5378_v9  ;;  %v5649_v14 = vunpack.c.1.s8 %v10896_v19  ;;  %v5514_v27 = vunpack.c.0.s8 %v4610_v3 }
 0x568   : > { %v6994_v32 = vpack.c.bf16 %v6274_v47, %v6266_v21  ;;  %v5522_v24 = vunpack.c.1.s8 %v4610_v3  ;;  %7874 = vmatmul.bf16.vlgmr.msra.gmra.mxu3 %v10136_v45  ;;  %v6665_v10 = vcvt.s32.f32 %v5641_v4  ;;  %v5226_v17 = vunpack.c.0.s8 %v4538_v37 }
 0x569   : > { %7918 = vmatpush.bf16.msrb.mxu3 %v7201_v16  ;;  %v7058_v54 = vpack.c.bf16 %v6402_v20, %v6394_v61  ;;  %v5234_v29 = vunpack.c.1.s8 %v4538_v37  ;;  %7965 = vmatmul.bf16.vlgmr.msra.gmra.mxu2 %v10060_v0  ;;  %v6673_v56 = vcvt.s32.f32 %v5649_v14  ;;  %v6538_v13 = vcvt.s32.f32 %v5514_v27  ;;  %v4562_v37 = vld [vmem:[%s9260_s18 + $0x578] sm:$0xff]  ;;  %v10917_v27 = vld [vmem:[%s9260_s18 + $0x770] sm:$0xff] }
 0x56a   : > { %8009 = vmatpush.bf16.msrb.mxu2 %v7138_v59  ;;  %7985 = vmatpush.bf16.msrb.mxu0 %v6994_v32  ;;  %v6546_v33 = vcvt.s32.f32 %v5522_v24  ;;  %v5354_v19 = vunpack.c.0.s8 %v4570_v39  ;;  %v6250_v3 = vcvt.s32.f32 %v5226_v17  ;;  %v5362_v53 = vunpack.c.1.s8 %v4570_v39 }
 0x56b   : > { %7998 = vmatpush.bf16.msrb.mxu1 %v7058_v54  ;;  %v6258_v42 = vcvt.s32.f32 %v5234_v29  ;;  %v5625_v40 = vunpack.c.2.s8 %v4633_v50  ;;  %v7193_v43 = vpack.c.bf16 %v6673_v56, %v6665_v10  ;;  %v5633_v26 = vunpack.c.3.s8 %v4633_v50 }
 0x56c   : > { %v7130_v63 = vpack.c.bf16 %v6546_v33, %v6538_v13  ;;  %v6378_v41 = vcvt.s32.f32 %v5354_v19  ;;  %v6386_v12 = vcvt.s32.f32 %v5362_v53  ;;  %v5498_v2 = vunpack.c.2.s8 %v4602_v36  ;;  %v10920_v19 = vpop.f32.mrf.mxu0 }
 0x56d   : > { %v6986_v35 = vpack.c.bf16 %v6258_v42, %v6250_v3  ;;  %v6649_v0 = vcvt.s32.f32 %v5625_v40  ;;  %7919 = vmatpush.bf16.msrb.mxu3 %v7193_v43  ;;  %v6657_v44 = vcvt.s32.f32 %v5633_v26  ;;  %v5506_v55 = vunpack.c.3.s8 %v4602_v36  ;;  %v10922_v3 = vpop.f32.mrf.mxu1 }
 0x56e   : > { %8010 = vmatpush.bf16.msrb.mxu2 %v7130_v63  ;;  %v5210_v22 = vunpack.c.2.s8 %v4530_v7  ;;  %v5218_v34 = vunpack.c.3.s8 %v4530_v7  ;;  %v7050_v11 = vpack.c.bf16 %v6386_v12, %v6378_v41  ;;  %v6522_v39 = vcvt.s32.f32 %v5498_v2 }
 0x56f   : > { %7986 = vmatpush.bf16.msrb.mxu0 %v6986_v35  ;;  %v5338_v51 = vunpack.c.2.s8 %v4562_v37  ;;  %v5346_v6 = vunpack.c.3.s8 %v4562_v37  ;;  %v7185_v9 = vpack.c.bf16 %v6657_v44, %v6649_v0  ;;  %v6530_v60 = vcvt.s32.f32 %v5506_v55  ;;  %v4522_v35 = vld [vmem:[%s9260_s18 + $0x438] sm:$0xff] }
 0x570   : > { %v6234_v30 = vcvt.s32.f32 %v5210_v22  ;;  %v6242_v16 = vcvt.s32.f32 %v5218_v34  ;;  %7999 = vmatpush.bf16.msrb.mxu1 %v7050_v11  ;;  %v5609_v59 = vunpack.c.0.s8 %v4633_v50  ;;  %v5617_v61 = vunpack.c.1.s8 %v4633_v50  ;;  %v4594_v50 = vld [vmem:[%s9260_s18 + $0x678] sm:$0xff] }
 0x571   : > { %v6362_v21 = vcvt.s32.f32 %v5338_v51  ;;  %v6370_v47 = vcvt.s32.f32 %v5346_v6  ;;  %7920 = vmatpush.bf16.msrb.mxu3 %v7185_v9  ;;  %v7122_v20 = vpack.c.bf16 %v6530_v60, %v6522_v39  ;;  %v5482_v32 = vunpack.c.0.s8 %v4602_v36  ;;  %v4554_v44 = vld [vmem:[%s9260_s18 + $0x538] sm:$0xff] }
 0x572   : > { %v6978_v4 = vpack.c.bf16 %v6242_v16, %v6234_v30  ;;  %v5490_v14 = vunpack.c.1.s8 %v4602_v36  ;;  %v6633_v54 = vcvt.s32.f32 %v5609_v59  ;;  %v6641_v10 = vcvt.s32.f32 %v5617_v61 }
 0x573   : > { %v7042_v24 = vpack.c.bf16 %v6370_v47, %v6362_v21  ;;  %v5194_v17 = vunpack.c.0.s8 %v4530_v7  ;;  %8011 = vmatpush.bf16.msrb.mxu2 %v7122_v20  ;;  %v6506_v29 = vcvt.s32.f32 %v5482_v32  ;;  %v5202_v13 = vunpack.c.1.s8 %v4530_v7 }
 0x574   : > { %7987 = vmatpush.bf16.msrb.mxu0 %v6978_v4  ;;  %v6514_v56 = vcvt.s32.f32 %v5490_v14  ;;  %v5322_v33 = vunpack.c.0.s8 %v4562_v37  ;;  %v7177_v36 = vpack.c.bf16 %v6641_v10, %v6633_v54  ;;  %v5330_v53 = vunpack.c.1.s8 %v4562_v37  ;;  %v7786_v20 = vpop.f32.mrf.mxu0  ;;  %v8086_v54 = vld [vmem:[%s9262_s30 + $0x18] sm:$0xff] }
 0x575   : > { %8000 = vmatpush.bf16.msrb.mxu1 %v7042_v24  ;;  %v6218_v42 = vcvt.s32.f32 %v5194_v17  ;;  %v5593_v40 = vunpack.c.2.s8 %v10917_v27  ;;  %v6226_v63 = vcvt.s32.f32 %v5202_v13  ;;  %v5601_v26 = vunpack.c.3.s8 %v10917_v27  ;;  %v7799_v4 = vpop.f32.mrf.mxu1  ;;  %v8090_v13 = vld [vmem:[%s9262_s30 + $0x38] sm:$0xff] }
 0x576   : > { %v7114_v43 = vpack.c.bf16 %v6514_v56, %v6506_v29  ;;  %v6346_v41 = vcvt.s32.f32 %v5322_v33  ;;  %7921 = vmatpush.bf16.msrb.mxu3 %v7177_v36  ;;  %v6354_v7 = vcvt.s32.f32 %v5330_v53  ;;  %v5466_v0 = vunpack.c.2.s8 %v4594_v50 }
 0x577   : > { %v6617_v12 = vcvt.s32.f32 %v5593_v40  ;;  %v5474_v2 = vunpack.c.3.s8 %v4594_v50  ;;  %v6970_v55 = vpack.c.bf16 %v6226_v63, %v6218_v42  ;;  %v6625_v22 = vcvt.s32.f32 %v5601_v26 }
 0x578   : > { %8012 = vmatpush.bf16.msrb.mxu2 %v7114_v43  ;;  %v7668_v37 = vadd.f32 %v10890_v49, %v10831_v57  ;;  %v10932_v34 = vadd.f32 %v10892_v18, %v10906_v62  ;;  %v7034_v11 = vpack.c.bf16 %v6354_v7, %v6346_v41  ;;  %v6490_v39 = vcvt.s32.f32 %v5466_v0  ;;  %v4617_v41 = vld [vmem:[%s9260_s18 + $0x730] sm:$0xff]  ;;  %v4586_v0 = vld [vmem:[%s9260_s18 + $0x638] sm:$0xff] }
 0x579   : > { %v6498_v51 = vcvt.s32.f32 %v5474_v2  ;;  %v5178_v6 = vunpack.c.2.s8 %v4522_v35  ;;  %7988 = vmatpush.bf16.msrb.mxu0 %v6970_v55  ;;  %v7169_v9 = vpack.c.bf16 %v6625_v22, %v6617_v12  ;;  %v5186_v30 = vunpack.c.3.s8 %v4522_v35 }
 0x57a   : > { %v10935_v60 = vadd.f32 %v10819_v46, %v7668_v37  ;;  %v5306_v16 = vunpack.c.2.s8 %v4554_v44  ;;  %8001 = vmatpush.bf16.msrb.mxu1 %v7034_v11  ;;  %v5314_v57 = vunpack.c.3.s8 %v4554_v44  ;;  %v5577_v49 = vunpack.c.0.s8 %v10917_v27 }
 0x57b   : > { %v7106_v21 = vpack.c.bf16 %v6498_v51, %v6490_v39  ;;  %v6202_v47 = vcvt.s32.f32 %v5178_v6  ;;  %7922 = vmatpush.bf16.msrb.mxu3 %v7169_v9  ;;  %v6210_v18 = vcvt.s32.f32 %v5186_v30  ;;  %v5585_v59 = vunpack.c.1.s8 %v10917_v27 }
 0x57c   : > { %v6330_v62 = vcvt.s32.f32 %v5306_v16  ;;  %v5450_v61 = vunpack.c.0.s8 %v4594_v50  ;;  %v6338_v46 = vcvt.s32.f32 %v5314_v57  ;;  %v6601_v32 = vcvt.s32.f32 %v5577_v49 }
 0x57d   : > { %8013 = vmatpush.bf16.msrb.mxu2 %v7106_v21  ;;  %v5458_v14 = vunpack.c.1.s8 %v4594_v50  ;;  %v5162_v24 = vunpack.c.0.s8 %v4522_v35  ;;  %v6962_v10 = vpack.c.bf16 %v6210_v18, %v6202_v47  ;;  %v6609_v17 = vcvt.s32.f32 %v5585_v59 }
 0x57e   : > { %v6474_v29 = vcvt.s32.f32 %v5450_v61  ;;  %v5170_v56 = vunpack.c.1.s8 %v4522_v35  ;;  %v7026_v33 = vpack.c.bf16 %v6338_v46, %v6330_v62  ;;  %v5290_v27 = vunpack.c.0.s8 %v4554_v44  ;;  %v10943_v61 = vpop.f32.mrf.mxu3 }
 0x57f   : > { %v6482_v36 = vcvt.s32.f32 %v5458_v14  ;;  %v6186_v42 = vcvt.s32.f32 %v5162_v24  ;;  %7989 = vmatpush.bf16.msrb.mxu0 %v6962_v10  ;;  %v7161_v53 = vpack.c.bf16 %v6609_v17, %v6601_v32  ;;  %v5298_v43 = vunpack.c.1.s8 %v4554_v44  ;;  %v4514_v14 = vld [vmem:[%s9260_s18 + $0x3f8] sm:$0xff] }
 0x580   : > { %v6194_v40 = vcvt.s32.f32 %v5170_v56  ;;  %v8129_v63 = vunpack.c.2.s8 %v8086_v54  ;;  %8002 = vmatpush.bf16.msrb.mxu1 %v7026_v33  ;;  %v6314_v26 = vcvt.s32.f32 %v5290_v27  ;;  %v8130_v7 = vunpack.c.3.s8 %v8086_v54 }
 0x581   : > { %v7098_v50 = vpack.c.bf16 %v6482_v36, %v6474_v29  ;;  %v8145_v12 = vunpack.c.2.s8 %v8090_v13  ;;  %7923 = vmatpush.bf16.msrb.mxu3 %v7161_v53  ;;  %v6322_v2 = vcvt.s32.f32 %v5298_v43  ;;  %v8146_v22 = vunpack.c.3.s8 %v8090_v13 }
 0x582   : > { %v6954_v35 = vpack.c.bf16 %v6194_v40, %v6186_v42  ;;  %v8257_v55 = vcvt.s32.f32 %v8129_v63  ;;  %v8258_v37 = vcvt.s32.f32 %v8130_v7  ;;  %v5561_v39 = vunpack.c.2.s8 %v4617_v41  ;;  %v8094_v42 = vld [vmem:[%s9262_s30 + $0x58] sm:$0xff] }
 0x583   : > { %8014 = vmatpush.bf16.msrb.mxu2 %v7098_v50  ;;  %v8273_v11 = vcvt.s32.f32 %v8145_v12  ;;  %v5569_v51 = vunpack.c.3.s8 %v4617_v41  ;;  %v7018_v44 = vpack.c.bf16 %v6322_v2, %v6314_v26  ;;  %v8274_v6 = vcvt.s32.f32 %v8146_v22 }
 0x584   : > { %7990 = vmatpush.bf16.msrb.mxu0 %v6954_v35  ;;  %v5434_v9 = vunpack.c.2.s8 %v4586_v0  ;;  %v5442_v30 = vunpack.c.3.s8 %v4586_v0  ;;  %v8378_v16 = vpack.c.bf16 %v8258_v37, %v8257_v55  ;;  %v6585_v21 = vcvt.s32.f32 %v5561_v39  ;;  %v10951_v37 = vpop.f32.mrf.mxu2 }
 0x585   : > { %v6593_v47 = vcvt.s32.f32 %v5569_v51  ;;  %v8127_v57 = vunpack.c.0.s8 %v8086_v54  ;;  %8003 = vmatpush.bf16.msrb.mxu1 %v7018_v44  ;;  %v8386_v49 = vpack.c.bf16 %v8274_v6, %v8273_v11  ;;  %v8128_v59 = vunpack.c.1.s8 %v8086_v54 }
 0x586   : > { %v6458_v18 = vcvt.s32.f32 %v5434_v9  ;;  %v6466_v62 = vcvt.s32.f32 %v5442_v30  ;;  %v8143_v46 = vunpack.c.0.s8 %v8090_v13  ;;  %v8144_v32 = vunpack.c.1.s8 %v8090_v13  ;;  %v7721_v6 = vpop.f32.mrf.mxu3 }
 0x587   : > { %v7153_v20 = vpack.c.bf16 %v6593_v47, %v6585_v21  ;;  %v8255_v4 = vcvt.s32.f32 %v8127_v57  ;;  %7991 = vmatmul.bf16.vlgmr.msrb.gmra.mxu0 %v10224_v48  ;;  %v8256_v10 = vcvt.s32.f32 %v8128_v59  ;;  %v5545_v17 = vunpack.c.0.s8 %v4617_v41  ;;  %v8085_v48 = vld [vmem:[%s9262_s30 + $0x10] sm:$0xff] }
 0x588   : > { %8435 = vmatpush.bf16.msra.mxu0 %v8378_v16  ;;  %v7090_v24 = vpack.c.bf16 %v6466_v62, %v6458_v18  ;;  %v5553_v29 = vunpack.c.1.s8 %v4617_v41  ;;  %8004 = vmatmul.bf16.vlgmr.msrb.gmra.mxu1 %v10322_v23  ;;  %v8271_v54 = vcvt.s32.f32 %v8143_v46  ;;  %v8272_v56 = vcvt.s32.f32 %v8144_v32  ;;  %v8089_v41 = vld [vmem:[%s9262_s30 + $0x30] sm:$0xff]  ;;  %v4506_v46 = vld [vmem:[%s9260_s18 + $0x3b8] sm:$0xff] }
 0x589   : > { %8448 = vmatpush.bf16.msra.mxu1 %v8386_v49  ;;  %7924 = vmatpush.bf16.msrb.mxu3 %v7153_v20  ;;  %v5418_v33 = vunpack.c.0.s8 %v4586_v0  ;;  %v5426_v36 = vunpack.c.1.s8 %v4586_v0  ;;  %v8377_v13 = vpack.c.bf16 %v8256_v10, %v8255_v4  ;;  %v6569_v27 = vcvt.s32.f32 %v5545_v17 }
 0x58a   : > { %8015 = vmatpush.bf16.msrb.mxu2 %v7090_v24  ;;  %v6577_v53 = vcvt.s32.f32 %v5553_v29  ;;  %v5146_v40 = vunpack.c.2.s8 %v4514_v14  ;;  %v8385_v43 = vpack.c.bf16 %v8272_v56, %v8271_v54  ;;  %v5154_v26 = vunpack.c.3.s8 %v4514_v14 }
 0x58b   : > { %v6442_v63 = vcvt.s32.f32 %v5418_v33  ;;  %v6450_v50 = vcvt.s32.f32 %v5426_v36  ;;  %v8161_v12 = vunpack.c.2.s8 %v8094_v42  ;;  %v8162_v35 = vunpack.c.3.s8 %v8094_v42  ;;  %v8093_v33 = vld [vmem:[%s9262_s30 + $0x50] sm:$0xff] }
 0x58c   : > { %8436 = vmatpush.bf16.msra.mxu0 %v8377_v13  ;;  %v7145_v7 = vpack.c.bf16 %v6577_v53, %v6569_v27  ;;  %v6170_v23 = vcvt.s32.f32 %v5146_v40  ;;  %v6178_v0 = vcvt.s32.f32 %v5154_v26  ;;  %v8125_v55 = vunpack.c.2.s8 %v8085_v48  ;;  %v8084_v53 = vld [vmem:[%s9262_s30 + $0x8] sm:$0xff]  ;;  %v7812_v26 = vpop.f32.mrf.mxu2 }
 0x58d   : > { %8449 = vmatpush.bf16.msra.mxu1 %v8385_v43  ;;  %v7082_v2 = vpack.c.bf16 %v6450_v50, %v6442_v63  ;;  %v8126_v22 = vunpack.c.3.s8 %v8085_v48  ;;  %v8289_v11 = vcvt.s32.f32 %v8161_v12  ;;  %v8290_v39 = vcvt.s32.f32 %v8162_v35 }
 0x58e   : > { %7925 = vmatpush.bf16.msrb.mxu3 %v7145_v7  ;;  %v8141_v51 = vunpack.c.2.s8 %v8089_v41  ;;  %v8142_v44 = vunpack.c.3.s8 %v8089_v41  ;;  %v6946_v9 = vpack.c.bf16 %v6178_v0, %v6170_v23  ;;  %v8253_v30 = vcvt.s32.f32 %v8125_v55 }
 0x58f   : > { %8016 = vmatpush.bf16.msrb.mxu2 %v7082_v2  ;;  %v8254_v16 = vcvt.s32.f32 %v8126_v22  ;;  %v5130_v21 = vunpack.c.0.s8 %v4514_v14  ;;  %v8394_v47 = vpack.c.bf16 %v8290_v39, %v8289_v11  ;;  %v5138_v18 = vunpack.c.1.s8 %v4514_v14 }
 0x590   : > { %v8269_v57 = vcvt.s32.f32 %v8141_v51  ;;  %v8270_v49 = vcvt.s32.f32 %v8142_v44  ;;  %v8159_v20 = vunpack.c.0.s8 %v8094_v42  ;;  %v8160_v4 = vunpack.c.1.s8 %v8094_v42 }
 0x591   : > { %v8376_v62 = vpack.c.bf16 %v8254_v16, %v8253_v30  ;;  %v6154_v59 = vcvt.s32.f32 %v5130_v21  ;;  %7926 = vmatmul.bf16.vlgmr.msrb.gmra.mxu3 %v10466_v31  ;;  %v6162_v24 = vcvt.s32.f32 %v5138_v18  ;;  %v8123_v10 = vunpack.c.0.s8 %v8085_v48 }
 0x592   : > { %7970 = vmatpush.bf16.msra.mxu3 %v6946_v9  ;;  %v8384_v32 = vpack.c.bf16 %v8270_v49, %v8269_v57  ;;  %v8124_v17 = vunpack.c.1.s8 %v8085_v48  ;;  %8017 = vmatmul.bf16.vlgmr.msrb.gmra.mxu2 %v10382_v58  ;;  %v8287_v14 = vcvt.s32.f32 %v8159_v20  ;;  %v8288_v29 = vcvt.s32.f32 %v8160_v4  ;;  %v8088_v48 = vld [vmem:[%s9262_s30 + $0x28] sm:$0xff]  ;;  %v10962_v20 = vpop.f32.mrf.mxu0  ;;  %v10964_v4 = vpop.f32.mrf.mxu1 }
 0x593   : > { %8461 = vmatpush.bf16.msra.mxu2 %v8394_v47  ;;  %8437 = vmatpush.bf16.msra.mxu0 %v8376_v62  ;;  %v8139_v54 = vunpack.c.0.s8 %v8089_v41  ;;  %v8140_v56 = vunpack.c.1.s8 %v8089_v41  ;;  %v6938_v36 = vpack.c.bf16 %v6162_v24, %v6154_v59  ;;  %v8251_v42 = vcvt.s32.f32 %v8123_v10  ;;  %v10960_v59 = vld [vmem:[%s9260_s18 + $0x378] sm:$0xff] }
 0x594   : > { %8450 = vmatpush.bf16.msra.mxu1 %v8384_v32  ;;  %v8252_v13 = vcvt.s32.f32 %v8124_v17  ;;  %v5114_v27 = vunpack.c.2.s8 %v4506_v46  ;;  %v8393_v40 = vpack.c.bf16 %v8288_v29, %v8287_v14  ;;  %v5122_v50 = vunpack.c.3.s8 %v4506_v46 }
 0x595   : > { %v8267_v43 = vcvt.s32.f32 %v8139_v54  ;;  %v8268_v63 = vcvt.s32.f32 %v8140_v56  ;;  %v8157_v23 = vunpack.c.2.s8 %v8093_v33  ;;  %v8158_v12 = vunpack.c.3.s8 %v8093_v33  ;;  %v8092_v56 = vld [vmem:[%s9262_s30 + $0x48] sm:$0xff] }
 0x596   : > { %7971 = vmatpush.bf16.msra.mxu3 %v6938_v36  ;;  %v8375_v58 = vpack.c.bf16 %v8252_v13, %v8251_v42  ;;  %v6138_v7 = vcvt.s32.f32 %v5114_v27  ;;  %v6146_v35 = vcvt.s32.f32 %v5122_v50  ;;  %v8121_v2 = vunpack.c.2.s8 %v8084_v53 }
 0x597   : > { %8462 = vmatpush.bf16.msra.mxu2 %v8393_v40  ;;  %v8383_v41 = vpack.c.bf16 %v8268_v63, %v8267_v43  ;;  %v8122_v0 = vunpack.c.3.s8 %v8084_v53  ;;  %v8285_v55 = vcvt.s32.f32 %v8157_v23  ;;  %v8286_v22 = vcvt.s32.f32 %v8158_v12 }
 0x598   : > { %8438 = vmatpush.bf16.msra.mxu0 %v8375_v58  ;;  %v8137_v11 = vunpack.c.2.s8 %v8088_v48  ;;  %v8138_v39 = vunpack.c.3.s8 %v8088_v48  ;;  %v6930_v51 = vpack.c.bf16 %v6146_v35, %v6138_v7  ;;  %v8249_v44 = vcvt.s32.f32 %v8121_v2 }
 0x599   : > { %8451 = vmatpush.bf16.msra.mxu1 %v8383_v41  ;;  %v8250_v6 = vcvt.s32.f32 %v8122_v0  ;;  %v5098_v9 = vunpack.c.0.s8 %v4506_v46  ;;  %v8392_v30 = vpack.c.bf16 %v8286_v22, %v8285_v55  ;;  %v5106_v47 = vunpack.c.1.s8 %v4506_v46 }
 0x59a   : > { %v8265_v16 = vcvt.s32.f32 %v8137_v11  ;;  %v8266_v21 = vcvt.s32.f32 %v8138_v39  ;;  %7972 = vmatpush.bf16.msra.mxu3 %v6930_v51  ;;  %v8155_v18 = vunpack.c.0.s8 %v8093_v33  ;;  %v8156_v62 = vunpack.c.1.s8 %v8093_v33 }
 0x59b   : > { %v8374_v57 = vpack.c.bf16 %v8250_v6, %v8249_v44  ;;  %v6122_v49 = vcvt.s32.f32 %v5098_v9  ;;  %8463 = vmatpush.bf16.msra.mxu2 %v8392_v30  ;;  %v6130_v24 = vcvt.s32.f32 %v5106_v47  ;;  %v8119_v10 = vunpack.c.0.s8 %v8084_v53  ;;  %v7838_v44 = vpop.f32.mrf.mxu0  ;;  %v7851_v6 = vpop.f32.mrf.mxu1 }
 0x59c   : > { %v8382_v32 = vpack.c.bf16 %v8266_v21, %v8265_v16  ;;  %v8120_v17 = vunpack.c.1.s8 %v8084_v53  ;;  %v8283_v46 = vcvt.s32.f32 %v8155_v18  ;;  %v8284_v14 = vcvt.s32.f32 %v8156_v62  ;;  %v8083_v53 = vld [vmem:[%s9262_s30] sm:$0xff] }
 0x59d   : > { %8439 = vmatpush.bf16.msra.mxu0 %v8374_v57  ;;  %v8135_v29 = vunpack.c.0.s8 %v8088_v48  ;;  %v8136_v54 = vunpack.c.1.s8 %v8088_v48  ;;  %v6922_v33 = vpack.c.bf16 %v6130_v24, %v6122_v49  ;;  %v8247_v36 = vcvt.s32.f32 %v8119_v10  ;;  %v8087_v48 = vld [vmem:[%s9262_s30 + $0x20] sm:$0xff]  ;;  %v8102_v24 = vld [vmem:[%s9262_s30 + $0x98] sm:$0xff] }
 0x59e   : > { %8452 = vmatpush.bf16.msra.mxu1 %v8382_v32  ;;  %v8248_v42 = vcvt.s32.f32 %v8120_v17  ;;  %v5082_v13 = vunpack.c.2.s8 %v10960_v59  ;;  %v8391_v27 = vpack.c.bf16 %v8284_v14, %v8283_v46  ;;  %v5090_v63 = vunpack.c.3.s8 %v10960_v59  ;;  %v4490_v14 = vld [vmem:[%s9260_s18 + $0x338] sm:$0xff] }
 0x59f   : > { %v8263_v40 = vcvt.s32.f32 %v8135_v29  ;;  %v8264_v43 = vcvt.s32.f32 %v8136_v54  ;;  %7973 = vmatpush.bf16.msra.mxu3 %v6922_v33  ;;  %v8153_v58 = vunpack.c.2.s8 %v8092_v56  ;;  %v8154_v7 = vunpack.c.3.s8 %v8092_v56  ;;  %v10985_v29 = vpop.f32.mrf.mxu3  ;;  %v10987_v54 = vpop.f32.mrf.mxu2 }
 0x5a0   : > { %v8373_v50 = vpack.c.bf16 %v8248_v42, %v8247_v36  ;;  %v6106_v26 = vcvt.s32.f32 %v5082_v13  ;;  %v8068_v23 = vmax.f32 %v10876_v1, 0.0  ;;  %8464 = vmatpush.bf16.msra.mxu2 %v8391_v27  ;;  %v6114_v41 = vcvt.s32.f32 %v5090_v63 }
 0x5a1   : > { %v8381_v12 = vpack.c.bf16 %v8264_v43, %v8263_v40  ;;  %v7694_v35 = vadd.f32 %v10821_v15, %v10935_v60  ;;  %v8061_v2 = vadd.f32 %v8053_v28, %v10888_v38  ;;  %v8281_v0 = vcvt.s32.f32 %v8153_v58  ;;  %v8091_v43 = vld [vmem:[%s9262_s30 + $0x40] sm:$0xff] }
 0x5a2   : > { %8440 = vmatpush.bf16.msra.mxu0 %v8373_v50  ;;  %v8282_v55 = vcvt.s32.f32 %v8154_v7  ;;  %v8117_v22 = vunpack.c.2.s8 %v8083_v53  ;;  %v6914_v11 = vpack.c.bf16 %v6114_v41, %v6106_v26  ;;  %v8118_v51 = vunpack.c.3.s8 %v8083_v53  ;;  %v10993_v41 = vld [vmem:[%s9329_s15 + $0x20] sm:$0xff] }
 0x5a3   : > { %8453 = vmatpush.bf16.msra.mxu1 %v8381_v12  ;;  %v7707_v39 = vadd.f32 %v10850_v25, %v7694_v35  ;;  %v8133_v1 = vunpack.c.2.s8 %v8087_v48  ;;  %v8134_v16 = vunpack.c.3.s8 %v8087_v48  ;;  %v5066_v15 = vunpack.c.0.s8 %v10960_v59 }
 0x5a4   : > { %v8390_v9 = vpack.c.bf16 %v8282_v55, %v8281_v0  ;;  %v8245_v30 = vcvt.s32.f32 %v8117_v22  ;;  %7974 = vmatpush.bf16.msra.mxu3 %v6914_v11  ;;  %v8246_v28 = vcvt.s32.f32 %v8118_v51  ;;  %v5074_v60 = vunpack.c.1.s8 %v10960_v59 }
 0x5a5   : > { %v10980_v52 = vadd.f32 %v10943_v61, %v7707_v39  ;;  %v8261_v38 = vcvt.s32.f32 %v8133_v1  ;;  %v8262_v25 = vcvt.s32.f32 %v8134_v16  ;;  %v6090_v21 = vcvt.s32.f32 %v5066_v15 }
 0x5a6   : > { %8465 = vmatpush.bf16.msra.mxu2 %v8390_v9  ;;  %v8151_v47 = vunpack.c.0.s8 %v8092_v56  ;;  %v8152_v57 = vunpack.c.1.s8 %v8092_v56  ;;  %v8069_v49 = vmax.f32 %v8061_v2, 0.0  ;;  %v8372_v18 = vpack.c.bf16 %v8246_v28, %v8245_v30  ;;  %v4642_v9 = vld [vmem:[%s9260_s18 + $0x7f8] sm:$0xff] }
 0x5a7   : > { %v6098_v62 = vcvt.s32.f32 %v5074_v60  ;;  %v8115_v32 = vunpack.c.0.s8 %v8083_v53  ;;  %v8380_v10 = vpack.c.bf16 %v8262_v25, %v8261_v38  ;;  %v8116_v46 = vunpack.c.1.s8 %v8083_v53  ;;  %v8101_v38 = vld [vmem:[%s9262_s30 + $0x90] sm:$0xff]  ;;  %v7773_v60 = vpop.f32.mrf.mxu3  ;;  %v7864_v25 = vpop.f32.mrf.mxu2 }
 0x5a8   : > { %v8279_v17 = vcvt.s32.f32 %v8151_v47  ;;  %v8280_v61 = vcvt.s32.f32 %v8152_v57  ;;  %v8076_v59 = vpack.c.bf16 %v8068_v23, %v8068_v23  ;;  %8441 = vmatpush.bf16.msra.mxu0 %v8372_v18  ;;  %v8131_v56 = vunpack.c.0.s8 %v8087_v48 }
 0x5a9   : > { %v6906_v33 = vpack.c.bf16 %v6098_v62, %v6090_v21  ;;  %v8243_v36 = vcvt.s32.f32 %v8115_v32  ;;  %8454 = vmatpush.bf16.msra.mxu1 %v8380_v10  ;;  %v8244_v13 = vcvt.s32.f32 %v8116_v46  ;;  %v8132_v27 = vunpack.c.1.s8 %v8087_v48 }
 0x5aa   : > { %v8389_v42 = vpack.c.bf16 %v8280_v61, %v8279_v17  ;;  %v8193_v40 = vunpack.c.2.s8 %v8102_v24  ;;  %v10990_v63 = vpack.c.bf16 %v8069_v49, %v8069_v49  ;;  %v8259_v53 = vcvt.s32.f32 %v8131_v56 }
 0x5ab   : > { %7975 = vmatpush.bf16.msra.mxu3 %v6906_v33  ;;  %v8194_v50 = vunpack.c.3.s8 %v8102_v24  ;;  %v5050_v26 = vunpack.c.2.s8 %v4490_v14  ;;  %v8371_v58 = vpack.c.bf16 %v8244_v13, %v8243_v36  ;;  %v8260_v7 = vcvt.s32.f32 %v8132_v27 }
 0x5ac   : > { %8466 = vmatpush.bf16.msra.mxu2 %v8389_v42  ;;  %v8321_v23 = vcvt.s32.f32 %v8193_v40  ;;  %v5058_v12 = vunpack.c.3.s8 %v4490_v14  ;;  %v8039_v35 = vperm.slane %v10993_v41, 4  ;;  %v8149_v0 = vunpack.c.2.s8 %v8091_v43  ;;  %v4634_v42 = vld [vmem:[%s9260_s18 + $0x7b8] sm:$0xff] }
 0x5ad   : > { %v8322_v2 = vcvt.s32.f32 %v8194_v50  ;;  %v6074_v48 = vcvt.s32.f32 %v5050_v26  ;;  %8442 = vmatpush.bf16.msra.mxu0 %v8371_v58  ;;  %v8379_v55 = vpack.c.bf16 %v8260_v7, %v8259_v53  ;;  %v8150_v11 = vunpack.c.3.s8 %v8091_v43 }
 0x5ae   : > { %v6082_v22 = vcvt.s32.f32 %v5058_v12  ;;  %v8191_v39 = vunpack.c.0.s8 %v8102_v24  ;;  %v8277_v1 = vcvt.s32.f32 %v8149_v0  ;;  %v8192_v44 = vunpack.c.1.s8 %v8102_v24 }
 0x5af   : > { %v8410_v51 = vpack.c.bf16 %v8322_v2, %v8321_v23  ;;  %v5034_v6 = vunpack.c.0.s8 %v4490_v14  ;;  %8455 = vmatpush.bf16.msra.mxu1 %v8379_v55  ;;  %v8278_v16 = vcvt.s32.f32 %v8150_v11  ;;  %v5042_v28 = vunpack.c.1.s8 %v4490_v14 }
 0x5b0   : > { %v6898_v30 = vpack.c.bf16 %v6082_v22, %v6074_v48  ;;  %v8319_v15 = vcvt.s32.f32 %v8191_v39  ;;  %v8320_v21 = vcvt.s32.f32 %v8192_v44  ;;  %v8147_v57 = vunpack.c.0.s8 %v8091_v43  ;;  %8443 = vmatmul.bf16.vlgmr.msra.gmra.mxu0 %v10787_v8 }
 0x5b1   : > { %8487 = vmatpush.bf16.msrb.mxu0 %v8410_v51  ;;  %v6058_v47 = vcvt.s32.f32 %v5034_v6  ;;  %v8148_v49 = vunpack.c.1.s8 %v8091_v43  ;;  %v8388_v18 = vpack.c.bf16 %v8278_v16, %v8277_v1  ;;  %v6066_v62 = vcvt.s32.f32 %v5042_v28  ;;  %v8100_v43 = vld [vmem:[%s9262_s30 + $0x88] sm:$0xff]  ;;  %v11003_v2 = vpop.f32.mrf.mxu0  ;;  %v4626_v1 = vld [vmem:[%s9260_s18 + $0x778] sm:$0xff] }
 0x5b2   : > { %7976 = vmatpush.bf16.msra.mxu3 %v6898_v30  ;;  %v5658_v32 = vunpack.c.2.s8 %v4642_v9  ;;  %v5666_v24 = vunpack.c.3.s8 %v4642_v9  ;;  %8456 = vmatmul.bf16.vlgmr.msra.gmra.mxu1 %v8076_v59  ;;  %v8409_v10 = vpack.c.bf16 %v8320_v21, %v8319_v15  ;;  %v8275_v17 = vcvt.s32.f32 %v8147_v57 }
 0x5b3   : > { %v8276_v61 = vcvt.s32.f32 %v8148_v49  ;;  %v8189_v46 = vunpack.c.2.s8 %v8101_v38  ;;  %8467 = vmatpush.bf16.msra.mxu2 %v8388_v18  ;;  %v6890_v14 = vpack.c.bf16 %v6066_v62, %v6058_v47  ;;  %v8190_v56 = vunpack.c.3.s8 %v8101_v38  ;;  %v8099_v47 = vld [vmem:[%s9262_s30 + $0x80] sm:$0xff] }
 0x5b4   : > { %v6682_v33 = vcvt.s32.f32 %v5658_v32  ;;  %v6690_v36 = vcvt.s32.f32 %v5666_v24  ;;  %v7850_v8 = vadd.f32 %v10964_v4, %v10962_v20  ;;  %v5642_v40 = vunpack.c.0.s8 %v4642_v9  ;;  %v11005_v48 = vpop.f32.mrf.mxu1 }
 0x5b5   : > { %8488 = vmatpush.bf16.msrb.mxu0 %v8409_v10  ;;  %v8387_v13 = vpack.c.bf16 %v8276_v61, %v8275_v17  ;;  %v8317_v27 = vcvt.s32.f32 %v8189_v46  ;;  %v8318_v53 = vcvt.s32.f32 %v8190_v56  ;;  %v5650_v50 = vunpack.c.1.s8 %v4642_v9 }
 0x5b6   : > { %7977 = vmatpush.bf16.msra.mxu3 %v6890_v14  ;;  %v7202_v59 = vpack.c.bf16 %v6690_v36, %v6682_v33  ;;  %v8187_v26 = vunpack.c.0.s8 %v8101_v38  ;;  %v6666_v58 = vcvt.s32.f32 %v5642_v40  ;;  %v8188_v7 = vunpack.c.1.s8 %v8101_v38  ;;  %v4618_v14 = vld [vmem:[%s9260_s18 + $0x738] sm:$0xff] }
 0x5b7   : > { %v5626_v23 = vunpack.c.2.s8 %v4634_v42  ;;  %v5634_v12 = vunpack.c.3.s8 %v4634_v42  ;;  %8468 = vmatpush.bf16.msra.mxu2 %v8387_v13  ;;  %v8408_v0 = vpack.c.bf16 %v8318_v53, %v8317_v27  ;;  %v6674_v20 = vcvt.s32.f32 %v5650_v50 }
 0x5b8   : > { %v8315_v4 = vcvt.s32.f32 %v8187_v26  ;;  %v8185_v55 = vunpack.c.2.s8 %v8100_v43  ;;  %v8316_v22 = vcvt.s32.f32 %v8188_v7  ;;  %v8186_v51 = vunpack.c.3.s8 %v8100_v43 }
 0x5b9   : > { %7978 = vmatmul.bf16.vlgmr.msra.gmra.mxu3 %v10136_v45  ;;  %v6650_v11 = vcvt.s32.f32 %v5626_v23  ;;  %v6658_v39 = vcvt.s32.f32 %v5634_v12  ;;  %8489 = vmatpush.bf16.msrb.mxu0 %v8408_v0  ;;  %v7194_v44 = vpack.c.bf16 %v6674_v20, %v6666_v58  ;;  %v5610_v9 = vunpack.c.0.s8 %v4634_v42  ;;  %v7890_v33 = vpop.f32.mrf.mxu0 }
 0x5ba   : > { %8022 = vmatpush.bf16.msrb.mxu3 %v7202_v59  ;;  %v8313_v6 = vcvt.s32.f32 %v8185_v55  ;;  %v5618_v30 = vunpack.c.1.s8 %v4634_v42  ;;  %8469 = vmatmul.bf16.vlgmr.msra.gmra.mxu2 %v10990_v63  ;;  %v8407_v16 = vpack.c.bf16 %v8316_v22, %v8315_v4  ;;  %v8314_v28 = vcvt.s32.f32 %v8186_v51  ;;  %v8106_v42 = vld [vmem:[%s9262_s30 + $0xb8] sm:$0xff] }
 0x5bb   : > { %v7186_v15 = vpack.c.bf16 %v6658_v39, %v6650_v11  ;;  %v8183_v38 = vunpack.c.0.s8 %v8100_v43  ;;  %v6634_v60 = vcvt.s32.f32 %v5610_v9  ;;  %v8184_v25 = vunpack.c.1.s8 %v8100_v43 }
 0x5bc   : > { %v6642_v45 = vcvt.s32.f32 %v5618_v30  ;;  %v5594_v21 = vunpack.c.2.s8 %v4626_v1  ;;  %v8047_v57 = vmul.f32 %v8039_v35, %v10980_v52  ;;  %v8055_v49 = vperm.slane %v10993_v41, 5  ;;  %v7903_v36 = vpop.f32.mrf.mxu1 }
 0x5bd   : > { %v5602_v18 = vunpack.c.3.s8 %v4626_v1  ;;  %8490 = vmatpush.bf16.msrb.mxu0 %v8407_v16  ;;  %v8406_v63 = vpack.c.bf16 %v8314_v28, %v8313_v6  ;;  %v8311_v62 = vcvt.s32.f32 %v8183_v38  ;;  %v8312_v32 = vcvt.s32.f32 %v8184_v25  ;;  %v8105_v16 = vld [vmem:[%s9262_s30 + $0xb0] sm:$0xff] }
 0x5be   : > { %8023 = vmatpush.bf16.msrb.mxu3 %v7194_v44  ;;  %v11016_v24 = vadd.f32 %v10987_v54, %v7850_v8  ;;  %v6618_v10 = vcvt.s32.f32 %v5594_v21  ;;  %v8181_v61 = vunpack.c.2.s8 %v8099_v47  ;;  %v8182_v46 = vunpack.c.3.s8 %v8099_v47 }
 0x5bf   : > { %v6626_v17 = vcvt.s32.f32 %v5602_v18  ;;  %v7178_v52 = vpack.c.bf16 %v6642_v45, %v6634_v60  ;;  %v5578_v35 = vunpack.c.0.s8 %v4626_v1  ;;  %v5586_v41 = vunpack.c.1.s8 %v4626_v1  ;;  %v8098_v1 = vld [vmem:[%s9262_s30 + $0x78] sm:$0xff] }
 0x5c0   : > { %v8179_v56 = vunpack.c.0.s8 %v8099_v47  ;;  %v8309_v13 = vcvt.s32.f32 %v8181_v61  ;;  %v8310_v27 = vcvt.s32.f32 %v8182_v46  ;;  %v8180_v40 = vunpack.c.1.s8 %v8099_v47  ;;  %v11022_v4 = vpop.f32.mrf.mxu3 }
 0x5c1   : > { %v11020_v43 = vadd.f32 %v8055_v49, %v8047_v57  ;;  %8491 = vmatpush.bf16.msrb.mxu0 %v8406_v63  ;;  %v8405_v54 = vpack.c.bf16 %v8312_v32, %v8311_v62  ;;  %v5562_v8 = vunpack.c.2.s8 %v4618_v14  ;;  %v7170_v59 = vpack.c.bf16 %v6626_v17, %v6618_v10 }
 0x5c2   : > { %8024 = vmatpush.bf16.msrb.mxu3 %v7186_v15  ;;  %v6602_v53 = vcvt.s32.f32 %v5578_v35  ;;  %v5570_v50 = vunpack.c.3.s8 %v4618_v14  ;;  %v8209_v26 = vunpack.c.2.s8 %v8106_v42  ;;  %v6610_v58 = vcvt.s32.f32 %v5586_v41  ;;  %v11024_v55 = vpop.f32.mrf.mxu2  ;;  %v8097_v35 = vld [vmem:[%s9262_s30 + $0x70] sm:$0xff] }
 0x5c3   : > { %v8307_v7 = vcvt.s32.f32 %v8179_v56  ;;  %v8308_v23 = vcvt.s32.f32 %v8180_v40  ;;  %v8210_v12 = vunpack.c.3.s8 %v8106_v42  ;;  %v8404_v0 = vpack.c.bf16 %v8310_v27, %v8309_v13 }
 0x5c4   : > { %v8337_v20 = vcvt.s32.f32 %v8209_v26  ;;  %v6586_v22 = vcvt.s32.f32 %v5562_v8  ;;  %v6594_v11 = vcvt.s32.f32 %v5570_v50  ;;  %v5546_v51 = vunpack.c.0.s8 %v4618_v14 }
 0x5c5   : > { %8492 = vmatpush.bf16.msrb.mxu0 %v8405_v54  ;;  %v8338_v39 = vcvt.s32.f32 %v8210_v12  ;;  %v8071_v44 = vmax.f32 %v11020_v43, 0.0  ;;  %v5554_v6 = vunpack.c.1.s8 %v4618_v14  ;;  %v8207_v9 = vunpack.c.0.s8 %v8106_v42  ;;  %v8104_v14 = vld [vmem:[%s9262_s30 + $0xa8] sm:$0xff] }
 0x5c6   : > { %8025 = vmatpush.bf16.msrb.mxu3 %v7178_v52  ;;  %v8208_v30 = vunpack.c.1.s8 %v8106_v42  ;;  %v7772_v15 = vadd.f32 %v10985_v29, %v10932_v34  ;;  %v7162_v28 = vpack.c.bf16 %v6610_v58, %v6602_v53  ;;  %v8403_v38 = vpack.c.bf16 %v8308_v23, %v8307_v7 }
 0x5c7   : > { %v8418_v60 = vpack.c.bf16 %v8338_v39, %v8337_v20  ;;  %v8177_v45 = vunpack.c.2.s8 %v8098_v1  ;;  %v8178_v25 = vunpack.c.3.s8 %v8098_v1  ;;  %v8335_v21 = vcvt.s32.f32 %v8207_v9  ;;  %v8103_v20 = vld [vmem:[%s9262_s30 + $0xa0] sm:$0xff]  ;;  %v8096_v9 = vld [vmem:[%s9262_s30 + $0x68] sm:$0xff] }
 0x5c8   : > { %v8336_v47 = vcvt.s32.f32 %v8208_v30  ;;  %v7154_v57 = vpack.c.bf16 %v6594_v11, %v6586_v22  ;;  %v6570_v49 = vcvt.s32.f32 %v5546_v51  ;;  %v8205_v18 = vunpack.c.2.s8 %v8105_v16  ;;  %v7825_v41 = vpop.f32.mrf.mxu3  ;;  %v8864_v30 = vld [vmem:[%s9329_s15 + $0x28] sm:$0xff] }
 0x5c9   : > { %8493 = vmatpush.bf16.msrb.mxu0 %v8404_v0  ;;  %8500 = vmatpush.bf16.msrb.mxu1 %v8418_v60  ;;  %v8206_v63 = vunpack.c.3.s8 %v8105_v16  ;;  %v6578_v62 = vcvt.s32.f32 %v5554_v6  ;;  %v8175_v10 = vunpack.c.0.s8 %v8098_v1  ;;  %v8176_v17 = vunpack.c.1.s8 %v8098_v1 }
 0x5ca   : > { %8026 = vmatpush.bf16.msrb.mxu3 %v7170_v59  ;;  %v8417_v32 = vpack.c.bf16 %v8336_v47, %v8335_v21  ;;  %v8333_v34 = vcvt.s32.f32 %v8205_v18  ;;  %v8203_v61 = vunpack.c.0.s8 %v8105_v16  ;;  %v8204_v46 = vunpack.c.1.s8 %v8105_v16  ;;  %v7916_v56 = vpop.f32.mrf.mxu2 }
 0x5cb   : > { %v8334_v29 = vcvt.s32.f32 %v8206_v63  ;;  %v7785_v33 = vadd.f32 %v10920_v19, %v7772_v15  ;;  %v8305_v36 = vcvt.s32.f32 %v8177_v45  ;;  %v8306_v52 = vcvt.s32.f32 %v8178_v25 }
 0x5cc   : > { %v8331_v13 = vcvt.s32.f32 %v8203_v61  ;;  %v8332_v27 = vcvt.s32.f32 %v8204_v46  ;;  %v8079_v40 = vpack.c.bf16 %v8071_v44, %v8071_v44  ;;  %v7146_v43 = vpack.c.bf16 %v6578_v62, %v6570_v49 }
 0x5cd   : > { %8494 = vmatpush.bf16.msrb.mxu0 %v8403_v38  ;;  %8501 = vmatpush.bf16.msrb.mxu1 %v8417_v32  ;;  %v8416_v42 = vpack.c.bf16 %v8334_v29, %v8333_v34  ;;  %v8201_v54 = vunpack.c.2.s8 %v8104_v14  ;;  %v8202_v8 = vunpack.c.3.s8 %v8104_v14  ;;  %v8303_v59 = vcvt.s32.f32 %v8175_v10 }
 0x5ce   : > { %8027 = vmatpush.bf16.msrb.mxu3 %v7162_v28  ;;  %v8304_v53 = vcvt.s32.f32 %v8176_v17  ;;  %v8173_v50 = vunpack.c.2.s8 %v8097_v35  ;;  %v8174_v19 = vunpack.c.3.s8 %v8097_v35  ;;  %v8402_v26 = vpack.c.bf16 %v8306_v52, %v8305_v36 }
 0x5cf   : > { %v7798_v58 = vadd.f32 %v10922_v3, %v7785_v33  ;;  %v8415_v7 = vpack.c.bf16 %v8332_v27, %v8331_v13  ;;  %v8171_v23 = vunpack.c.0.s8 %v8097_v35  ;;  %v8329_v12 = vcvt.s32.f32 %v8201_v54 }
 0x5d0   : > { %8495 = vmatmul.bf16.vlgmr.msrb.gmra.mxu0 %v8079_v40  ;;  %v8330_v0 = vcvt.s32.f32 %v8202_v8  ;;  %v8172_v22 = vunpack.c.1.s8 %v8097_v35  ;;  %v8199_v39 = vunpack.c.0.s8 %v8104_v14  ;;  %v8200_v51 = vunpack.c.1.s8 %v8104_v14 }
 0x5d1   : > { %8502 = vmatpush.bf16.msrb.mxu1 %v8416_v42  ;;  %v7811_v11 = vadd.f32 %v10951_v37, %v7798_v58  ;;  %v8401_v1 = vpack.c.bf16 %v8304_v53, %v8303_v59  ;;  %v8301_v44 = vcvt.s32.f32 %v8173_v50  ;;  %v8302_v6 = vcvt.s32.f32 %v8174_v19  ;;  %v8095_v42 = vld [vmem:[%s9262_s30 + $0x60] sm:$0xff] }
 0x5d2   : > { %8028 = vmatpush.bf16.msrb.mxu3 %v7154_v57  ;;  %v8040_v16 = vperm.slane %v8864_v30, 4  ;;  %v8197_v15 = vunpack.c.2.s8 %v8103_v20  ;;  %v8198_v28 = vunpack.c.3.s8 %v8103_v20  ;;  %v8414_v38 = vpack.c.bf16 %v8330_v0, %v8329_v12  ;;  %v8110_v57 = vld [vmem:[%s9262_s30 + $0xd8] sm:$0xff] }
 0x5d3   : > { %v7824_v3 = vadd.f32 %v11022_v4, %v7811_v11  ;;  %v8327_v60 = vcvt.s32.f32 %v8199_v39  ;;  %v8328_v45 = vcvt.s32.f32 %v8200_v51  ;;  %v8299_v37 = vcvt.s32.f32 %v8171_v23 }
 0x5d4   : > { %v8300_v25 = vcvt.s32.f32 %v8172_v22  ;;  %v8169_v21 = vunpack.c.2.s8 %v8096_v9  ;;  %v8170_v47 = vunpack.c.3.s8 %v8096_v9  ;;  %v8400_v49 = vpack.c.bf16 %v8302_v6, %v8301_v44 }
 0x5d5   : > { %8503 = vmatpush.bf16.msrb.mxu1 %v8415_v7  ;;  %v8048_v18 = vmul.f32 %v8040_v16, %v7824_v3  ;;  %v8056_v63 = vperm.slane %v8864_v30, 5  ;;  %v8325_v4 = vcvt.s32.f32 %v8197_v15  ;;  %v8326_v62 = vcvt.s32.f32 %v8198_v28  ;;  %v8109_v28 = vld [vmem:[%s9262_s30 + $0xd0] sm:$0xff] }
 0x5d6   : > { %8029 = vmatpush.bf16.msrb.mxu3 %v7146_v43  ;;  %v8413_v32 = vpack.c.bf16 %v8328_v45, %v8327_v60  ;;  %v8195_v10 = vunpack.c.0.s8 %v8103_v20  ;;  %v8196_v17 = vunpack.c.1.s8 %v8103_v20  ;;  %v8225_v34 = vunpack.c.2.s8 %v8110_v57  ;;  %v8865_v20 = vld [vmem:[%s9329_s15 + $0x18] sm:$0xff] }
 0x5d7   : > { %v8399_v29 = vpack.c.bf16 %v8300_v25, %v8299_v37  ;;  %v8297_v61 = vcvt.s32.f32 %v8169_v21  ;;  %v8226_v14 = vunpack.c.3.s8 %v8110_v57  ;;  %v8167_v33 = vunpack.c.0.s8 %v8096_v9 }
 0x5d8   : > { %v8168_v36 = vunpack.c.1.s8 %v8096_v9  ;;  %v8353_v52 = vcvt.s32.f32 %v8225_v34  ;;  %v8223_v35 = vunpack.c.0.s8 %v8110_v57  ;;  %v8064_v41 = vadd.f32 %v8056_v63, %v8048_v18 }
 0x5d9   : > { %8030 = vmatmul.bf16.vlgmr.msrb.gmra.mxu3 %v10466_v31  ;;  %8504 = vmatpush.bf16.msrb.mxu1 %v8414_v38  ;;  %v8298_v31 = vcvt.s32.f32 %v8170_v47  ;;  %v8412_v56 = vpack.c.bf16 %v8326_v62, %v8325_v4  ;;  %v8354_v27 = vcvt.s32.f32 %v8226_v14  ;;  %v8224_v40 = vunpack.c.1.s8 %v8110_v57 }
 0x5da   : > { %8474 = vmatpush.bf16.msra.mxu3 %v8402_v26  ;;  %v7940_v46 = vpop.f32.mrf.mxu0  ;;  %v8323_v43 = vcvt.s32.f32 %v8195_v10  ;;  %v8324_v54 = vcvt.s32.f32 %v8196_v17  ;;  %v8351_v59 = vcvt.s32.f32 %v8223_v35  ;;  %v8165_v26 = vunpack.c.2.s8 %v8095_v42 }
 0x5db   : > { %v8426_v53 = vpack.c.bf16 %v8354_v27, %v8353_v52  ;;  %v8352_v50 = vcvt.s32.f32 %v8224_v40  ;;  %v8398_v19 = vpack.c.bf16 %v8298_v31, %v8297_v61  ;;  %v8166_v58 = vunpack.c.3.s8 %v8095_v42  ;;  %v8108_v31 = vld [vmem:[%s9262_s30 + $0xc8] sm:$0xff] }
 0x5dc   : > { %v7953_v13 = vpop.f32.mrf.mxu1  ;;  %v8072_v7 = vmax.f32 %v8064_v41, 0.0  ;;  %v8295_v23 = vcvt.s32.f32 %v8167_v33  ;;  %v8296_v12 = vcvt.s32.f32 %v8168_v36  ;;  %v8038_v22 = vperm.slane %v8865_v20, 4 }
 0x5dd   : > { %8505 = vmatpush.bf16.msrb.mxu1 %v8413_v32  ;;  %v7954_v8 = vadd.f32 %v7953_v13, %v7940_v46  ;;  %8513 = vmatpush.bf16.msrb.mxu2 %v8426_v53  ;;  %v8425_v0 = vpack.c.bf16 %v8352_v50, %v8351_v59  ;;  %v8411_v11 = vpack.c.bf16 %v8324_v54, %v8323_v43  ;;  %v8293_v51 = vcvt.s32.f32 %v8165_v26 }
 0x5de   : > { %8475 = vmatpush.bf16.msra.mxu3 %v8401_v1  ;;  %v8294_v1 = vcvt.s32.f32 %v8166_v58  ;;  %v8163_v44 = vunpack.c.0.s8 %v8095_v42  ;;  %v8164_v6 = vunpack.c.1.s8 %v8095_v42  ;;  %v8080_v9 = vpack.c.bf16 %v8072_v7, %v8072_v7 }
 0x5df   : > { %v8397_v3 = vpack.c.bf16 %v8296_v12, %v8295_v23  ;;  %v8046_v16 = vmul.f32 %v8038_v22, %v10874_v5  ;;  %v8054_v15 = vperm.slane %v8865_v20, 5  ;;  %v8221_v38 = vunpack.c.2.s8 %v8109_v28 }
 0x5e0   : > { %v8222_v60 = vunpack.c.3.s8 %v8109_v28  ;;  %v8219_v45 = vunpack.c.0.s8 %v8109_v28  ;;  %v8220_v37 = vunpack.c.1.s8 %v8109_v28  ;;  %v8396_v25 = vpack.c.bf16 %v8294_v1, %v8293_v51 }
 0x5e1   : > { %8506 = vmatpush.bf16.msrb.mxu1 %v8412_v56  ;;  %8514 = vmatpush.bf16.msrb.mxu2 %v8425_v0  ;;  %v8291_v21 = vcvt.s32.f32 %v8163_v44  ;;  %v8292_v47 = vcvt.s32.f32 %v8164_v6  ;;  %v8349_v57 = vcvt.s32.f32 %v8221_v38  ;;  %v8062_v4 = vadd.f32 %v8054_v15, %v8046_v16  ;;  %v8114_v38 = vld [vmem:[%s9262_s30 + $0xf8] sm:$0xff] }
 0x5e2   : > { %8476 = vmatpush.bf16.msra.mxu3 %v8400_v49  ;;  %v7942_v39 = vpop.f32.mrf.mxu0  ;;  %v8350_v49 = vcvt.s32.f32 %v8222_v60  ;;  %v8347_v18 = vcvt.s32.f32 %v8219_v45  ;;  %v8348_v63 = vcvt.s32.f32 %v8220_v37  ;;  %v8217_v14 = vunpack.c.2.s8 %v8108_v31 }
 0x5e3   : > { %v8395_v32 = vpack.c.bf16 %v8292_v47, %v8291_v21  ;;  %v8218_v33 = vunpack.c.3.s8 %v8108_v31  ;;  %v8215_v27 = vunpack.c.0.s8 %v8108_v31  ;;  %v8216_v40 = vunpack.c.1.s8 %v8108_v31 }
 0x5e4   : > { %v7955_v30 = vpop.f32.mrf.mxu1  ;;  %v8424_v62 = vpack.c.bf16 %v8350_v49, %v8349_v57  ;;  %v8423_v34 = vpack.c.bf16 %v8348_v63, %v8347_v18  ;;  %v8345_v36 = vcvt.s32.f32 %v8217_v14  ;;  %v8241_v60 = vunpack.c.2.s8 %v8114_v38 }
 0x5e5   : > { %8507 = vmatpush.bf16.msrb.mxu1 %v8411_v11  ;;  %v8346_v52 = vcvt.s32.f32 %v8218_v33  ;;  %v8344_v59 = vcvt.s32.f32 %v8216_v40  ;;  %v8866_v11 = vld [vmem:[%s9329_s15 + $0x30] sm:$0xff]  ;;  %v8242_v45 = vunpack.c.3.s8 %v8114_v38  ;;  %v8239_v37 = vunpack.c.0.s8 %v8114_v38 }
 0x5e6   : > { %8477 = vmatpush.bf16.msra.mxu3 %v8399_v29  ;;  %8515 = vmatpush.bf16.msrb.mxu2 %v8424_v62  ;;  %v8070_v29 = vmax.f32 %v8062_v4, 0.0  ;;  %v8041_v39 = vperm.slane %v8866_v11, 4  ;;  %v8057_v44 = vperm.slane %v8866_v11, 5  ;;  %v8369_v21 = vcvt.s32.f32 %v8241_v60  ;;  %v8113_v4 = vld [vmem:[%s9262_s30 + $0xf0] sm:$0xff] }
 0x5e7   : > { %v8370_v47 = vcvt.s32.f32 %v8242_v45  ;;  %v8367_v57 = vcvt.s32.f32 %v8239_v37 }
 0x5e8   : > { %8508 = vmatmul.bf16.vlgmr.msrb.gmra.mxu1 %v8080_v9  ;;  %v8078_v41 = vpack.c.bf16 %v8070_v29, %v8070_v29 }
 0x5e9   : > { %v8434_v18 = vpack.c.bf16 %v8370_v47, %v8369_v21 }
 0x5ea   : > { %8478 = vmatpush.bf16.msra.mxu3 %v8398_v19  ;;  %8516 = vmatpush.bf16.msrb.mxu2 %v8423_v34 }
 0x5eb   : > { %v7875_v5 = vpop.f32.mrf.mxu3 }
 0x5ec   : > { %v7876_v10 = vadd.f32 %v7875_v5, %v11016_v24  ;;  %v7966_v17 = vpop.f32.mrf.mxu2  ;;  %v8422_v24 = vpack.c.bf16 %v8346_v52, %v8345_v36  ;;  %v8237_v5 = vunpack.c.2.s8 %v8113_v4 }
 0x5ed   : > { %v11047_v61 = vadd.f32 %v7966_v17, %v7954_v8  ;;  %v8343_v8 = vcvt.s32.f32 %v8215_v27  ;;  %v8236_v17 = vunpack.c.1.s8 %v8113_v4 }
 0x5ee   : > { %8479 = vmatpush.bf16.msra.mxu3 %v8397_v3  ;;  %v7889_v46 = vadd.f32 %v11003_v2, %v7876_v10  ;;  %8517 = vmatpush.bf16.msrb.mxu2 %v8422_v24  ;;  %v8107_v2 = vld [vmem:[%s9262_s30 + $0xc0] sm:$0xff]  ;;  %v8235_v10 = vunpack.c.0.s8 %v8113_v4  ;;  %v8365_v31 = vcvt.s32.f32 %v8237_v5 }
 0x5ef   : > { %v8213_v43 = vunpack.c.2.s8 %v8107_v2  ;;  %v8214_v54 = vunpack.c.3.s8 %v8107_v2  ;;  %v8211_v53 = vunpack.c.0.s8 %v8107_v2  ;;  %v8212_v50 = vunpack.c.1.s8 %v8107_v2 }
 0x5f0   : > { %v7902_v35 = vadd.f32 %v11005_v48, %v7889_v46  ;;  %v8421_v26 = vpack.c.bf16 %v8344_v59, %v8343_v8  ;;  %v8363_v14 = vcvt.s32.f32 %v8235_v10  ;;  %v8364_v33 = vcvt.s32.f32 %v8236_v17  ;;  %v8868_v17 = vld [vmem:[%s9329_s15] sm:$0xff] }
 0x5f1   : > { %v8341_v19 = vcvt.s32.f32 %v8213_v43  ;;  %v8342_v48 = vcvt.s32.f32 %v8214_v54  ;;  %v8340_v7 = vcvt.s32.f32 %v8212_v50 }
 0x5f2   : > { %8480 = vmatpush.bf16.msra.mxu3 %v8396_v25  ;;  %v7915_v56 = vadd.f32 %v11024_v55, %v7902_v35  ;;  %8518 = vmatpush.bf16.msrb.mxu2 %v8421_v26  ;;  %v8339_v55 = vcvt.s32.f32 %v8211_v53  ;;  %v8240_v25 = vunpack.c.1.s8 %v8114_v38  ;;  %v8431_v52 = vpack.c.bf16 %v8364_v33, %v8363_v14  ;;  %v8112_v35 = vld [vmem:[%s9262_s30 + $0xe8] sm:$0xff] }
 0x5f3   : > { %v7877_v42 = vpop.f32.mrf.mxu3  ;;  %v8420_v58 = vpack.c.bf16 %v8342_v48, %v8341_v19  ;;  %v8233_v24 = vunpack.c.2.s8 %v8112_v35  ;;  %v8231_v50 = vunpack.c.0.s8 %v8112_v35  ;;  %v8232_v19 = vunpack.c.1.s8 %v8112_v35 }
 0x5f4   : > { %v7968_v13 = vpop.f32.mrf.mxu2  ;;  %v8419_v0 = vpack.c.bf16 %v8340_v7, %v8339_v55  ;;  %v8368_v49 = vcvt.s32.f32 %v8240_v25  ;;  %v8111_v55 = vld [vmem:[%s9262_s30 + $0xe0] sm:$0xff] }
 0x5f5   : > { %v8361_v13 = vcvt.s32.f32 %v8233_v24  ;;  %v8359_v26 = vcvt.s32.f32 %v8231_v50  ;;  %v8228_v11 = vunpack.c.1.s8 %v8111_v55 }
 0x5f6   : > { %8481 = vmatpush.bf16.msra.mxu3 %v8395_v32  ;;  %8519 = vmatpush.bf16.msrb.mxu2 %v8420_v58  ;;  %v8433_v63 = vpack.c.bf16 %v8368_v49, %v8367_v57  ;;  %v8238_v32 = vunpack.c.3.s8 %v8113_v4  ;;  %v8360_v58 = vcvt.s32.f32 %v8232_v19 }
 0x5f8   : > { %v8366_v46 = vcvt.s32.f32 %v8238_v32 }
 0x5f9   : > { %8482 = vmatmul.bf16.vlgmr.msra.gmra.mxu3 %v8078_v41 }
 0x5fa   : > { %8520 = vmatpush.bf16.msrb.mxu2 %v8419_v0  ;;  %8526 = vmatpush.bf16.msrb.mxu3 %v8434_v18  ;;  %v8432_v36 = vpack.c.bf16 %v8366_v46, %v8365_v31  ;;  %v8229_v0 = vunpack.c.2.s8 %v8111_v55  ;;  %v8541_v46 = vperm.slane %v8868_v17, 7 }
 0x5fe   : > { %8527 = vmatpush.bf16.msrb.mxu3 %v8433_v63 }
 0x602   : > { %8528 = vmatpush.bf16.msrb.mxu3 %v8432_v36 }
 0x604   : > { %v7992_v23 = vpop.f32.mrf.mxu0 }
 0x605   : > { %v8005_v12 = vpop.f32.mrf.mxu1 }
 0x606   : > { %8529 = vmatpush.bf16.msrb.mxu3 %v8431_v52 }
 0x60c   : > { %v7994_v20 = vpop.f32.mrf.mxu0 }
 0x60d   : > { %v8007_v22 = vpop.f32.mrf.mxu1  ;;  %v8230_v20 = vunpack.c.3.s8 %v8111_v55 }
 0x60e   : > { %v8227_v22 = vunpack.c.0.s8 %v8111_v55 }
 0x614   : > { %v7927_v51 = vpop.f32.mrf.mxu3 }
 0x615   : > { %v7928_v1 = vadd.f32 %v7927_v51, %v7915_v56  ;;  %v8018_v6 = vpop.f32.mrf.mxu2  ;;  %v8234_v56 = vunpack.c.3.s8 %v8112_v35 }
 0x617   : > { %v8049_v9 = vmul.f32 %v8041_v39, %v7928_v1  ;;  %v8362_v27 = vcvt.s32.f32 %v8234_v56  ;;  %v8429_v39 = vpack.c.bf16 %v8360_v58, %v8359_v26  ;;  %v8358_v1 = vcvt.s32.f32 %v8230_v20 }
 0x619   : > { %v8065_v3 = vadd.f32 %v8057_v44, %v8049_v9  ;;  %v8430_v40 = vpack.c.bf16 %v8362_v27, %v8361_v13  ;;  %v8356_v44 = vcvt.s32.f32 %v8228_v11 }
 0x61b   : > { %v8073_v30 = vmax.f32 %v8065_v3, 0.0  ;;  %8530 = vmatpush.bf16.msrb.mxu3 %v8430_v40 }
 0x61c   : > { %v7929_v16 = vpop.f32.mrf.mxu3 }
 0x61d   : > { %v8081_v15 = vpack.c.bf16 %v8073_v30, %v8073_v30  ;;  %v8020_v28 = vpop.f32.mrf.mxu2  ;;  %v8867_v30 = vld [vmem:[%s9329_s15 + $0x38] sm:$0xff] }
 0x61e   : > { %v8042_v16 = vperm.slane %v8867_v30, 4  ;;  %v8058_v38 = vperm.slane %v8867_v30, 5 }
 0x61f   : > { %8521 = vmatmul.bf16.vlgmr.msrb.gmra.mxu2 %v8081_v15  ;;  %8531 = vmatpush.bf16.msrb.mxu3 %v8429_v39 }
 0x62d   : > { %v8444_v62 = vpop.f32.mrf.mxu0 }
 0x62f   : > { %v8457_v34 = vpop.f32.mrf.mxu1 }
 0x630   : > { %v8458_v29 = vadd.f32 %v8457_v34, %v8444_v62  ;;  %v8539_v34 = vperm.slane %v8868_v17, 6 }
 0x635   : > { %v8446_v41 = vpop.f32.mrf.mxu0 }
 0x637   : > { %v8459_v42 = vpop.f32.mrf.mxu1 }
 0x63c   : > { %v7979_v2 = vpop.f32.mrf.mxu3 }
 0x63d   : > { %v7980_v43 = vadd.f32 %v7979_v2, %v11047_v61  ;;  %v8470_v54 = vpop.f32.mrf.mxu2  ;;  %v8357_v61 = vcvt.s32.f32 %v8229_v0 }
 0x63e   : > { %v8471_v59 = vadd.f32 %v8470_v54, %v8458_v29 }
 0x63f   : > { %v7993_v8 = vadd.f32 %v7992_v23, %v7980_v43  ;;  %v8355_v23 = vcvt.s32.f32 %v8227_v22 }
 0x641   : > { %v8006_v53 = vadd.f32 %v8005_v12, %v7993_v8  ;;  %v8428_v12 = vpack.c.bf16 %v8358_v1, %v8357_v61  ;;  %v8427_v9 = vpack.c.bf16 %v8356_v44, %v8355_v23 }
 0x643   : > { %v8019_v48 = vadd.f32 %v8018_v6, %v8006_v53  ;;  %8532 = vmatpush.bf16.msrb.mxu3 %v8428_v12 }
 0x644   : > { %v7981_v7 = vpop.f32.mrf.mxu3 }
 0x645   : > { %v8472_v51 = vpop.f32.mrf.mxu2 }
 0x647   : > { %8533 = vmatpush.bf16.msrb.mxu3 %v8427_v9 }
 0x64d   : > { %v8496_v6 = vpop.f32.mrf.mxu0 }
 0x655   : > { %v8498_v3 = vpop.f32.mrf.mxu0 }
 0x65c   : > { %v8031_v15 = vpop.f32.mrf.mxu3 }
 0x65d   : > { %v8032_v28 = vadd.f32 %v8031_v15, %v8019_v48 }
 0x65f   : > { %v8050_v60 = vmul.f32 %v8042_v16, %v8032_v28 }
 0x661   : > { %v8066_v45 = vadd.f32 %v8058_v38, %v8050_v60 }
 0x663   : > { %v8074_v37 = vmax.f32 %v8066_v45, 0.0 }
 0x664   : > { %v8033_v25 = vpop.f32.mrf.mxu3 }
 0x665   : > { %v8082_v21 = vpack.c.bf16 %v8074_v37, %v8074_v37  ;;  %v8509_v47 = vpop.f32.mrf.mxu1 }
 0x667   : > { %8534 = vmatmul.bf16.vlgmr.msrb.gmra.mxu3 %v8082_v21 }
 0x66d   : > { %v8511_v57 = vpop.f32.mrf.mxu1 }
 0x67c   : > { %v8483_v49 = vpop.f32.mrf.mxu3 }
 0x67d   : > { %v8484_v18 = vadd.f32 %v8483_v49, %v8471_v59 }
 0x67f   : > { %v8497_v63 = vadd.f32 %v8496_v6, %v8484_v18 }
 0x681   : > { %v8510_v4 = vadd.f32 %v8509_v47, %v8497_v63 }
 0x684   : > { %v8485_v62 = vpop.f32.mrf.mxu3 }
 0x6a2   : > { %v8522_v5 = vpop.f32.mrf.mxu2 }
 0x6a3   : > { %v8523_v32 = vadd.f32 %v8522_v5, %v8510_v4 }
 0x6aa   : > { %v8524_v10 = vpop.f32.mrf.mxu2 }
 0x6ea   : > { %v8535_v29 = vpop.f32.mrf.mxu3 }
 0x6eb   : > { %v8536_v31 = vadd.f32 %v8535_v29, %v8523_v32 }
 0x6ed   : > { %v8540_v14 = vmul.f32 %v8539_v34, %v8536_v31 }
 0x6ef   : > { %v8542_v33 = vadd.f32 %v8541_v46, %v8540_v14 }
 0x6f1   : > { %v8543_v36 = vmax.f32 %v8542_v33, 0.0 }
 0x6f2   : > { %v8537_v52 = vpop.f32.mrf.mxu3 }
 0x6f3   : > { %8544 = vst [vmem:[%s479_s13] sm:$0xff] %v8543_v36 }
 0x6f4 PF: > { %s25_s26 = sadd.s32 1, %s9077_s26   ;;  %s11138_s12 = sld [smem:[#allocation13_spill]] }
 0x6f5   : > { %p22_p0 = scmp.ge.s32.totalorder %s25_s26, 4   ;;  %s11139_s23 = sld [smem:[#allocation15_spill]] }
 0x6f6   : > { %s11140_s6 = sld [smem:[#allocation14_spill]]  ;;  %s11141_s21 = smov %s9061_s22 }
 0x6f7   : > { %s11143_s24 = smov %s9073_s25 }
 0x6f8   :  { %24 = sbr.rel (!%p22_p0) target bundleno = 13 (0xd), region = 135 }
 0x6fa   : > { %s11142_s22 = smov %s11138_s12 }
 0x6fc   : > { %s11144_s25 = smov %s11140_s6 }
 0x6fd   :  { %8570 = vsyncpa [#allocation3], 1 }
 0x6fe   :  { %8572 = vsyncpa [#allocation3 + $0x1], 1 }
 0x6ff   :  { %8573 = vsyncpa [#allocation5], 1 }
 0x700   :  { %8575 = vsyncpa [#allocation5 + $0x1], 1 }
 0x701   :  { %8576 = vsyncpa [#allocation8], 1 }
 0x702   :  { %8578 = vsyncpa [#allocation8 + $0x1], 1 }

</bundles_post_ra>
